<compile_context>
chip_gen: v7x
topology: tpu7x:2x2x1
jax: 0.10.0
libtpu: 0.0.40
codegen_flags: <defaults>
</compile_context>

<pallas_src>
import math

import jax
import jax.numpy as jnp
from jax.experimental import pallas as pl

# ---- hyper-parameters (small, consistent with the reference module) --------------------------
src_vocab_size = 16
d_model = 32
d_ff = 64
d_k = d_v = 8
n_heads = 4
n_layers = 2
src_seq_len = 8
# The reference PositionalEncoding.forward returns pe[:batch_size, :] ([B, d_model]); adding it to
# the [B, S, D] embedding only broadcasts in PyTorch when batch_size == src_seq_len (then pe[s] is
# added at position s).  We reproduce exactly that behaviour, so batch_size == src_seq_len.
batch_size = src_seq_len

_INV_SQRT_DK = 1.0 / math.sqrt(d_k)

# ---- packed parameter slab layout: one fp32 [n_layers, P_ROWS, P_COLS] input == one DMA -------
# rows   0: 32, cols 0:96 -> W_qkv  (in=d_model, out=3*d_model), columns = [Q | K | V]
# rows  32: 64, cols 0:32 -> W_out  (in=n_heads*d_v, out=d_model)
# rows  64: 96, cols 0:64 -> W_ff1  (in=d_model, out=d_ff)   (Conv1d k=1 == per-position Linear)
# rows  96:160, cols 0:32 -> W_ff2  (in=d_ff,    out=d_model)
# rows 160:168            -> bias block:
#   row 160 cols 0:96 -> b_qkv ([bq|bk|bv]);  row 161 cols 0:32 -> b_out
#   row 162 / 163     -> LayerNorm1 gamma / beta
#   row 164 cols 0:64 -> b_ff1;  row 165 -> b_ff2;  rows 166 / 167 -> LayerNorm2 gamma / beta
P_ROWS = 168
P_COLS = 3 * d_model  # 96


def _layer_norm(x, gamma, beta, eps=1e-5):
    # matches torch.nn.LayerNorm(d_model): biased variance over the last axis, eps=1e-5
    mu = jnp.mean(x, axis=-1, keepdims=True)
    var = jnp.mean((x - mu) ** 2, axis=-1, keepdims=True)
    return (x - mu) * jax.lax.rsqrt(var + eps) * gamma + beta


# ---------------------------------- the fused encoder kernel ----------------------------------
def encoder_stack_kernel(tok_ref, emb_ref, pe_ref, params_ref, out_ref, attn_ref):
    """Whole encoder forward in a single kernel invocation.

    tok_ref:    [B, S] int32                 token ids (0 == PAD)
    emb_ref:    [V, D]                       embedding table
    pe_ref:     [S, D]                       positional encoding (added per position, see note)
    params_ref: [n_layers, P_ROWS, P_COLS]   packed per-layer weights/biases (layout above)
    out_ref:    [B, S, D]                    final encoder output
    attn_ref:   [n_layers, B, S, H*S]        attention weights, heads concatenated on lane axis
    """
    B, S, D, V = batch_size, src_seq_len, d_model, src_vocab_size
    tok = tok_ref[...]                                                     # [B, S] int32

    # ---- embedding as one-hot matmul (MXU) — no in-kernel gather needed -----------------------
    onehot = (jax.lax.broadcasted_iota(jnp.int32, (B, S, V), 2)
              == tok[:, :, None]).astype(jnp.float32)                      # [B, S, V]
    x3 = jnp.einsum('bsv,vd->bsd', onehot, emb_ref[...],
                    preferred_element_type=jnp.float32)                    # [B, S, D]
    # PositionalEncoding: pe[:batch_size] broadcast over dim 0 => pe[s] added at position s
    x3 = x3 + pe_ref[...][None, :, :]

    # ---- additive key-padding mask: 0 for real keys, -1e9 for PAD keys ------------------------
    neg_mask = jnp.where(tok == 0, jnp.float32(-1e9), jnp.float32(0.0))[:, None, :]  # [B,1,S]

    x = x3.reshape(B * S, D)                 # flattened rows: all pointwise matmuls are 2-D MXU

    for layer in range(n_layers):            # static unroll: both layers inside one pallas_call
        # ---- single packed slab, static slices (one DMA carried all per-layer params) --------
        w_qkv = params_ref[layer, 0:32, :]        # [32, 96]   (in, out) orientation
        w_out = params_ref[layer, 32:64, 0:32]    # [32, 32]
        w_ff1 = params_ref[layer, 64:96, 0:64]    # [32, 64]
        w_ff2 = params_ref[layer, 96:160, 0:32]   # [64, 32]
        bias = params_ref[layer, 160:168, :]      # [8, 96] aligned bias/affine block
        b_qkv = bias[0:1, :]                      # [1, 96]
        b_out = bias[1:2, 0:32]
        g1 = bias[2:3, 0:32]
        be1 = bias[3:4, 0:32]
        b_ff1 = bias[4:5, 0:64]
        b_ff2 = bias[5:6, 0:32]
        g2 = bias[6:7, 0:32]
        be2 = bias[7:8, 0:32]

        # ---- fused Q/K/V projection: ONE [64,32]x[32,96] MXU contraction ----------------------
        qkv = jnp.dot(x, w_qkv, preferred_element_type=jnp.float32) + b_qkv   # [B*S, 3*D]
        qkv3 = qkv.reshape(B, S, 3 * d_model)

        # ---- scaled dot-product attention (additive mask, EUP-reciprocal softmax) -------------
        ctx_heads = []
        attn_heads = []
        for h in range(n_heads):             # static unroll over heads
            qh = qkv3[:, :, h * d_k:(h + 1) * d_k]                              # [B, S, d_k]
            kh = qkv3[:, :, d_model + h * d_k:d_model + (h + 1) * d_k]          # [B, S, d_k]
            vh = qkv3[:, :, 2 * d_model + h * d_v:2 * d_model + (h + 1) * d_v]  # [B, S, d_v]

            scores = jnp.einsum('bqd,bkd->bqk', qh, kh,
                                preferred_element_type=jnp.float32) * _INV_SQRT_DK + neg_mask
            m = jnp.max(scores, axis=-1, keepdims=True)
            e = jnp.exp(scores - m)
            attn_h = e * pl.reciprocal(jnp.sum(e, axis=-1, keepdims=True), approx=True)
            attn_heads.append(attn_h)
            ctx_heads.append(jnp.einsum('bqk,bkd->bqd', attn_h, vh,
                                        preferred_element_type=jnp.float32))    # [B, S, d_v]

        # one attention write per layer (heads concatenated on the lane axis -> 32-lane stores)
        attn_ref[layer] = jnp.concatenate(attn_heads, axis=-1)                  # [B, S, H*S]
        ctx = jnp.concatenate(ctx_heads, axis=-1).reshape(B * S, n_heads * d_v)  # [B*S, H*d_v]

        # ---- output projection + residual + LayerNorm ----------------------------------------
        o = jnp.dot(ctx, w_out, preferred_element_type=jnp.float32) + b_out
        y = _layer_norm(o + x, g1, be1)

        # ---- position-wise FFN (Conv1d k=1 == Linear) + residual + LayerNorm ------------------
        h1 = jnp.maximum(jnp.dot(y, w_ff1, preferred_element_type=jnp.float32) + b_ff1, 0.0)
        h2 = jnp.dot(h1, w_ff2, preferred_element_type=jnp.float32) + b_ff2
        x = _layer_norm(h2 + y, g2, be2)

    out_ref[...] = x.reshape(B, S, D)


def _cost_estimate():
    bs = batch_size * src_seq_len
    emb_mm = 2 * bs * src_vocab_size * d_model                              # one-hot embedding
    mm = 2 * bs * d_model * (3 * d_model)                                   # fused QKV
    mm += 2 * 2 * n_heads * batch_size * src_seq_len * src_seq_len * d_k    # scores + ctx
    mm += 2 * bs * (n_heads * d_v) * d_model                                # output projection
    mm += 2 * 2 * bs * d_model * d_ff                                       # FFN (two matmuls)
    flops = emb_mm + n_layers * mm
    transcendentals = n_layers * (n_heads * batch_size * src_seq_len * src_seq_len  # exp
                                  + n_heads * batch_size * src_seq_len              # reciprocal
                                  + 2 * bs)                                          # LN rsqrt
    bytes_accessed = 4 * (batch_size * src_seq_len                           # token ids
                          + src_vocab_size * d_model                         # embedding table
                          + src_seq_len * d_model                            # positional encoding
                          + n_layers * P_ROWS * P_COLS                       # params slab
                          + bs * d_model                                     # out
                          + n_layers * bs * n_heads * src_seq_len)           # attn
    return pl.CostEstimate(flops=flops, transcendentals=transcendentals,
                           bytes_accessed=bytes_accessed)


def _encoder_stack(enc_inputs, emb_table, pe, packed_params):
    return pl.pallas_call(
        encoder_stack_kernel,
        out_shape=(
            jax.ShapeDtypeStruct((batch_size, src_seq_len, d_model), jnp.float32),
            jax.ShapeDtypeStruct((n_layers, batch_size, src_seq_len, n_heads * src_seq_len),
                                 jnp.float32),
        ),
        cost_estimate=_cost_estimate(),
    )(enc_inputs, emb_table, pe, packed_params)


@jax.jit
def encoder_forward(enc_inputs, emb_table, pe, packed_params):
    """enc_inputs: int32 [B, S] -> (enc_outputs [B, S, D], attn [n_layers, B, H, S, S])."""
    out, attn_cat = _encoder_stack(enc_inputs, emb_table, pe, packed_params)

    # heads were concatenated on the lane axis inside the kernel; restore [L, B, H, S, S]
    attn = attn_cat.reshape(n_layers, batch_size, src_seq_len, n_heads, src_seq_len)
    attn = jnp.transpose(attn, (0, 1, 3, 2, 4))
    return out, attn


# --------------------------------------- parameters -------------------------------------------
def make_positional_encoding(max_len, dm):
    position = jnp.arange(0, max_len, dtype=jnp.float32)[:, None]
    div_term = jnp.exp(jnp.arange(0, dm, 2, dtype=jnp.float32) * (-math.log(10000.0) / dm))
    pe = jnp.zeros((max_len, dm), dtype=jnp.float32)
    pe = pe.at[:, 0::2].set(jnp.sin(position * div_term))
    pe = pe.at[:, 1::2].set(jnp.cos(position * div_term))
    return pe


def init_params(key):
    """Random parameters in PyTorch (out, in) orientation, mirroring the reference module."""
    def lin(k, out_f, in_f, scale=0.1):
        return scale * jax.random.normal(k, (out_f, in_f), dtype=jnp.float32)

    emb_key, *layer_keys = jax.random.split(key, n_layers + 1)
    emb_table = 0.1 * jax.random.normal(emb_key, (src_vocab_size, d_model), dtype=jnp.float32)

    layers = []
    for lk in layer_keys:
        ks = jax.random.split(lk, 8)
        layers.append(dict(
            wq=lin(ks[0], n_heads * d_k, d_model), bq=jnp.zeros((n_heads * d_k,), jnp.float32),
            wk=lin(ks[1], n_heads * d_k, d_model), bk=jnp.zeros((n_heads * d_k,), jnp.float32),
            wv=lin(ks[2], n_heads * d_v, d_model), bv=jnp.zeros((n_heads * d_v,), jnp.float32),
            wo=lin(ks[3], d_model, n_heads * d_v),
            bo=0.01 * jax.random.normal(ks[4], (d_model,), dtype=jnp.float32),
            g1=jnp.ones((d_model,), jnp.float32), be1=jnp.zeros((d_model,), jnp.float32),
            wc1=lin(ks[5], d_ff, d_model), bc1=jnp.zeros((d_ff,), jnp.float32),
            wc2=lin(ks[6], d_model, d_ff),
            bc2=0.01 * jax.random.normal(ks[7], (d_model,), dtype=jnp.float32),
            g2=jnp.ones((d_model,), jnp.float32), be2=jnp.zeros((d_model,), jnp.float32),
        ))
    return emb_table, layers


def pack_params(layers):
    """Pack the 16 per-layer tensors into one [n_layers, P_ROWS, P_COLS] fp32 slab (one DMA)."""
    slabs = []
    for p in layers:
        s = jnp.zeros((P_ROWS, P_COLS), jnp.float32)
        s = s.at[0:32, 0:96].set(jnp.concatenate([p['wq'].T, p['wk'].T, p['wv'].T], axis=1))
        s = s.at[32:64, 0:32].set(p['wo'].T)
        s = s.at[64:96, 0:64].set(p['wc1'].T)
        s = s.at[96:160, 0:32].set(p['wc2'].T)
        s = s.at[160, 0:96].set(jnp.concatenate([p['bq'], p['bk'], p['bv']]))
        s = s.at[161, 0:32].set(p['bo'])
        s = s.at[162, 0:32].set(p['g1'])
        s = s.at[163, 0:32].set(p['be1'])
        s = s.at[164, 0:64].set(p['bc1'])
        s = s.at[165, 0:32].set(p['bc2'])
        s = s.at[166, 0:32].set(p['g2'])
        s = s.at[167, 0:32].set(p['be2'])
        slabs.append(s)
    return jnp.stack(slabs, axis=0)


# --------------------------- pure-JAX reference (mirrors the PyTorch spec) ---------------------
def encoder_forward_ref(enc_inputs, emb_table, pe, layers):
    mask = jnp.broadcast_to((enc_inputs == 0)[:, None, :],
                            (batch_size, src_seq_len, src_seq_len))
    x = emb_table[enc_inputs] + pe[:batch_size, :]
    attns = []
    for p in layers:
        q = (x @ p['wq'].T + p['bq']).reshape(batch_size, src_seq_len, n_heads, d_k).transpose(0, 2, 1, 3)
        k = (x @ p['wk'].T + p['bk']).reshape(batch_size, src_seq_len, n_heads, d_k).transpose(0, 2, 1, 3)
        v = (x @ p['wv'].T + p['bv']).reshape(batch_size, src_seq_len, n_heads, d_v).transpose(0, 2, 1, 3)
        scores = jnp.einsum('bhqd,bhkd->bhqk', q, k) / math.sqrt(d_k)
        scores = jnp.where(mask[:, None, :, :], -1e9, scores)
        attn = jax.nn.softmax(scores, axis=-1)
        ctx = jnp.einsum('bhqk,bhkd->bhqd', attn, v)
        ctx = ctx.transpose(0, 2, 1, 3).reshape(batch_size, src_seq_len, n_heads * d_v)
        y = _layer_norm(ctx @ p['wo'].T + p['bo'] + x, p['g1'], p['be1'])
        h1 = jax.nn.relu(y @ p['wc1'].T + p['bc1'])
        x = _layer_norm(h1 @ p['wc2'].T + p['bc2'] + y, p['g2'], p['be2'])
        attns.append(attn)
    return x, jnp.stack(attns, axis=0)


# ----------------------------------------------- main -----------------------------------------
if __name__ == "__main__":
    key = jax.random.PRNGKey(0)
    pkey, tkey = jax.random.split(key)

    emb_table, layers = init_params(pkey)
    packed_params = pack_params(layers)
    pe = make_positional_encoding(src_seq_len, d_model)

    # deterministic token ids with trailing PAD (0) tokens to exercise the attention mask
    enc_inputs = jax.random.randint(tkey, (batch_size, src_seq_len), 1, src_vocab_size,
                                    dtype=jnp.int32)
    enc_inputs = enc_inputs.at[:, -2:].set(0)

    enc_outputs, enc_self_attns = encoder_forward(enc_inputs, emb_table, pe, packed_params)
    jax.block_until_ready(enc_outputs)
    jax.block_until_ready(enc_self_attns)

    assert enc_outputs.shape == (batch_size, src_seq_len, d_model)
    assert enc_self_attns.shape == (n_layers, batch_size, n_heads, src_seq_len, src_seq_len)
    assert bool(jnp.all(jnp.isfinite(enc_outputs)))
    assert bool(jnp.all(jnp.isfinite(enc_self_attns)))

    # cross-check the fused Pallas kernel against the pure-JAX reference of the PyTorch module
    ref_out, ref_attn = encoder_forward_ref(enc_inputs, emb_table, pe, layers)
    out_err = float(jnp.max(jnp.abs(enc_outputs - ref_out)))
    attn_err = float(jnp.max(jnp.abs(enc_self_attns - ref_attn)))
    assert out_err < 5e-2 and attn_err < 5e-2, (out_err, attn_err)

    print("KERNEL_OK")
</pallas_src>

<mosaic_0001>
module attributes {stable_mosaic.version = 11 : i64} {
  func.func @encoder_stack_kernel(%arg0: memref<8x8xi32, #tpu.memory_space<vmem>>, %arg1: memref<16x32xf32, #tpu.memory_space<vmem>>, %arg2: memref<8x32xf32, #tpu.memory_space<vmem>>, %arg3: memref<2x168x96xf32, #tpu.memory_space<vmem>>, %arg4: memref<8x8x32xf32, #tpu.memory_space<vmem>>, %arg5: memref<2x8x8x32xf32, #tpu.memory_space<vmem>>) attributes {dimension_semantics = [], scalar_prefetch = 0 : i64, scratch_operands = 0 : i64, tpu.core_type = #tpu.core_type<tc>} {
    %c0 = arith.constant 0 : index
    %c0_0 = arith.constant 0 : index
    %0 = vector.load %arg0[%c0, %c0_0] : memref<8x8xi32, #tpu.memory_space<vmem>>, vector<8x8xi32>
    %1 = tpu.iota {dimensions = array<i32: 2>} : vector<8x8x16xi32>
    %2 = vector.shape_cast %0 : vector<8x8xi32> to vector<8x8x1xi32>
    %3 = vector.broadcast %2 : vector<8x8x1xi32> to vector<8x8x16xi32>
    %4 = arith.cmpi eq, %1, %3 : vector<8x8x16xi32>
    %5 = arith.extui %4 : vector<8x8x16xi1> to vector<8x8x16xi32>
    %6 = arith.sitofp %5 : vector<8x8x16xi32> to vector<8x8x16xf32>
    %c0_1 = arith.constant 0 : index
    %c0_2 = arith.constant 0 : index
    %7 = vector.load %arg1[%c0_1, %c0_2] : memref<16x32xf32, #tpu.memory_space<vmem>>, vector<16x32xf32>
    "tpu.trace_start"() <{level = 10 : i32, message = "bsv,vd->bsd"}> : () -> ()
    %cst = arith.constant dense<0.000000e+00> : vector<8x8x32xf32>
    %8 = tpu.matmul %6, %7, %cst {dimension_numbers = #tpu.dot_dimension_numbers<[2], [0], [0, 1], [1], [0, 0, 0, 1, 1, 1], [], []>} : vector<8x8x16xf32>, vector<16x32xf32>, vector<8x8x32xf32> -> vector<8x8x32xf32>
    "tpu.trace_stop"() : () -> ()
    %c0_3 = arith.constant 0 : index
    %c0_4 = arith.constant 0 : index
    %9 = vector.load %arg2[%c0_3, %c0_4] : memref<8x32xf32, #tpu.memory_space<vmem>>, vector<8x32xf32>
    %10 = vector.shape_cast %9 : vector<8x32xf32> to vector<1x8x32xf32>
    %11 = vector.broadcast %10 : vector<1x8x32xf32> to vector<8x8x32xf32>
    %12 = arith.addf %8, %11 : vector<8x8x32xf32>
    %c0_i32 = arith.constant 0 : i32
    %13 = vector.broadcast %c0_i32 : i32 to vector<8x8xi32>
    %14 = arith.cmpi eq, %0, %13 : vector<8x8xi32>
    %cst_5 = arith.constant -1.000000e+09 : f32
    %cst_6 = arith.constant 0.000000e+00 : f32
    %15 = vector.broadcast %cst_5 : f32 to vector<8x8xf32>
    %16 = vector.broadcast %cst_6 : f32 to vector<8x8xf32>
    %17 = arith.select %14, %15, %16 : vector<8x8xi1>, vector<8x8xf32>
    %18 = vector.shape_cast %17 : vector<8x8xf32> to vector<8x1x8xf32>
    %19 = vector.shape_cast %12 : vector<8x8x32xf32> to vector<64x32xf32>
    %c0_7 = arith.constant 0 : index
    %c0_8 = arith.constant 0 : index
    %c0_9 = arith.constant 0 : index
    %20 = vector.load %arg3[%c0_7, %c0_8, %c0_9] : memref<2x168x96xf32, #tpu.memory_space<vmem>>, vector<1x32x96xf32>
    %21 = vector.shape_cast %20 : vector<1x32x96xf32> to vector<32x96xf32>
    %c0_10 = arith.constant 0 : index
    %c32 = arith.constant 32 : index
    %c0_11 = arith.constant 0 : index
    %22 = vector.load %arg3[%c0_10, %c32, %c0_11] : memref<2x168x96xf32, #tpu.memory_space<vmem>>, vector<1x32x32xf32>
    %23 = vector.shape_cast %22 : vector<1x32x32xf32> to vector<32x32xf32>
    %c0_12 = arith.constant 0 : index
    %c64 = arith.constant 64 : index
    %c0_13 = arith.constant 0 : index
    %24 = vector.load %arg3[%c0_12, %c64, %c0_13] : memref<2x168x96xf32, #tpu.memory_space<vmem>>, vector<1x32x64xf32>
    %25 = vector.shape_cast %24 : vector<1x32x64xf32> to vector<32x64xf32>
    %c0_14 = arith.constant 0 : index
    %c96 = arith.constant 96 : index
    %c0_15 = arith.constant 0 : index
    %26 = vector.load %arg3[%c0_14, %c96, %c0_15] : memref<2x168x96xf32, #tpu.memory_space<vmem>>, vector<1x64x32xf32>
    %27 = vector.shape_cast %26 : vector<1x64x32xf32> to vector<64x32xf32>
    %c0_16 = arith.constant 0 : index
    %c160 = arith.constant 160 : index
    %c0_17 = arith.constant 0 : index
    %28 = vector.load %arg3[%c0_16, %c160, %c0_17] : memref<2x168x96xf32, #tpu.memory_space<vmem>>, vector<1x8x96xf32>
    %29 = vector.shape_cast %28 : vector<1x8x96xf32> to vector<8x96xf32>
    %30 = vector.extract_strided_slice %29 {offsets = [0, 0], sizes = [1, 96], strides = [1, 1]} : vector<8x96xf32> to vector<1x96xf32>
    %31 = vector.extract_strided_slice %29 {offsets = [1, 0], sizes = [1, 32], strides = [1, 1]} : vector<8x96xf32> to vector<1x32xf32>
    %32 = vector.extract_strided_slice %29 {offsets = [2, 0], sizes = [1, 32], strides = [1, 1]} : vector<8x96xf32> to vector<1x32xf32>
    %33 = vector.extract_strided_slice %29 {offsets = [3, 0], sizes = [1, 32], strides = [1, 1]} : vector<8x96xf32> to vector<1x32xf32>
    %34 = vector.extract_strided_slice %29 {offsets = [4, 0], sizes = [1, 64], strides = [1, 1]} : vector<8x96xf32> to vector<1x64xf32>
    %35 = vector.extract_strided_slice %29 {offsets = [5, 0], sizes = [1, 32], strides = [1, 1]} : vector<8x96xf32> to vector<1x32xf32>
    %36 = vector.extract_strided_slice %29 {offsets = [6, 0], sizes = [1, 32], strides = [1, 1]} : vector<8x96xf32> to vector<1x32xf32>
    %37 = vector.extract_strided_slice %29 {offsets = [7, 0], sizes = [1, 32], strides = [1, 1]} : vector<8x96xf32> to vector<1x32xf32>
    %cst_18 = arith.constant dense<0.000000e+00> : vector<64x96xf32>
    %38 = tpu.matmul %19, %21, %cst_18 {dimension_numbers = #tpu.dot_dimension_numbers<[1], [0], [0], [1], [0, 0, 1, 1], [], []>} : vector<64x32xf32>, vector<32x96xf32>, vector<64x96xf32> -> vector<64x96xf32>
    %39 = vector.broadcast %30 : vector<1x96xf32> to vector<64x96xf32>
    %40 = arith.addf %38, %39 : vector<64x96xf32>
    %41 = vector.shape_cast %40 : vector<64x96xf32> to vector<8x8x96xf32>
    %42 = vector.extract_strided_slice %41 {offsets = [0, 0, 0], sizes = [8, 8, 8], strides = [1, 1, 1]} : vector<8x8x96xf32> to vector<8x8x8xf32>
    %43 = vector.extract_strided_slice %41 {offsets = [0, 0, 32], sizes = [8, 8, 8], strides = [1, 1, 1]} : vector<8x8x96xf32> to vector<8x8x8xf32>
    %44 = vector.extract_strided_slice %41 {offsets = [0, 0, 64], sizes = [8, 8, 8], strides = [1, 1, 1]} : vector<8x8x96xf32> to vector<8x8x8xf32>
    "tpu.trace_start"() <{level = 10 : i32, message = "bqd,bkd->bqk"}> : () -> ()
    %cst_19 = arith.constant dense<0.000000e+00> : vector<8x8x8xf32>
    %45 = tpu.matmul %42, %43, %cst_19 {dimension_numbers = #tpu.dot_dimension_numbers<[2], [2], [1], [1], [0, 0, 0, 1, 1, 1], [0], [0]>} : vector<8x8x8xf32>, vector<8x8x8xf32>, vector<8x8x8xf32> -> vector<8x8x8xf32>
    "tpu.trace_stop"() : () -> ()
    %cst_20 = arith.constant 0.353553385 : f32
    %46 = vector.broadcast %cst_20 : f32 to vector<8x8x8xf32>
    %47 = arith.mulf %45, %46 : vector<8x8x8xf32>
    %48 = vector.broadcast %18 : vector<8x1x8xf32> to vector<8x8x8xf32>
    %49 = arith.addf %47, %48 : vector<8x8x8xf32>
    %cst_21 = arith.constant dense<0xFF800000> : vector<8x8xf32>
    %50 = vector.multi_reduction <maximumf>, %49, %cst_21 [2] : vector<8x8x8xf32> to vector<8x8xf32>
    %51 = vector.shape_cast %50 : vector<8x8xf32> to vector<8x8x1xf32>
    %52 = vector.broadcast %51 : vector<8x8x1xf32> to vector<8x8x8xf32>
    %53 = arith.subf %49, %52 : vector<8x8x8xf32>
    %54 = math.exp %53 : vector<8x8x8xf32>
    %cst_22 = arith.constant dense<0.000000e+00> : vector<8x8xf32>
    %55 = vector.multi_reduction <add>, %54, %cst_22 [2] : vector<8x8x8xf32> to vector<8x8xf32>
    %56 = vector.shape_cast %55 : vector<8x8xf32> to vector<8x8x1xf32>
    %57 = tpu.reciprocal %56 {approx = true} : vector<8x8x1xf32> -> vector<8x8x1xf32>
    %58 = vector.broadcast %57 : vector<8x8x1xf32> to vector<8x8x8xf32>
    %59 = arith.mulf %54, %58 : vector<8x8x8xf32>
    "tpu.trace_start"() <{level = 10 : i32, message = "bqk,bkd->bqd"}> : () -> ()
    %cst_23 = arith.constant dense<0.000000e+00> : vector<8x8x8xf32>
    %60 = tpu.matmul %59, %44, %cst_23 {dimension_numbers = #tpu.dot_dimension_numbers<[2], [1], [1], [2], [0, 0, 0, 1, 1, 2], [0], [0]>} : vector<8x8x8xf32>, vector<8x8x8xf32>, vector<8x8x8xf32> -> vector<8x8x8xf32>
    "tpu.trace_stop"() : () -> ()
    %61 = vector.extract_strided_slice %41 {offsets = [0, 0, 8], sizes = [8, 8, 8], strides = [1, 1, 1]} : vector<8x8x96xf32> to vector<8x8x8xf32>
    %62 = vector.extract_strided_slice %41 {offsets = [0, 0, 40], sizes = [8, 8, 8], strides = [1, 1, 1]} : vector<8x8x96xf32> to vector<8x8x8xf32>
    %63 = vector.extract_strided_slice %41 {offsets = [0, 0, 72], sizes = [8, 8, 8], strides = [1, 1, 1]} : vector<8x8x96xf32> to vector<8x8x8xf32>
    "tpu.trace_start"() <{level = 10 : i32, message = "bqd,bkd->bqk"}> : () -> ()
    %cst_24 = arith.constant dense<0.000000e+00> : vector<8x8x8xf32>
    %64 = tpu.matmul %61, %62, %cst_24 {dimension_numbers = #tpu.dot_dimension_numbers<[2], [2], [1], [1], [0, 0, 0, 1, 1, 1], [0], [0]>} : vector<8x8x8xf32>, vector<8x8x8xf32>, vector<8x8x8xf32> -> vector<8x8x8xf32>
    "tpu.trace_stop"() : () -> ()
    %cst_25 = arith.constant 0.353553385 : f32
    %65 = vector.broadcast %cst_25 : f32 to vector<8x8x8xf32>
    %66 = arith.mulf %64, %65 : vector<8x8x8xf32>
    %67 = vector.broadcast %18 : vector<8x1x8xf32> to vector<8x8x8xf32>
    %68 = arith.addf %66, %67 : vector<8x8x8xf32>
    %cst_26 = arith.constant dense<0xFF800000> : vector<8x8xf32>
    %69 = vector.multi_reduction <maximumf>, %68, %cst_26 [2] : vector<8x8x8xf32> to vector<8x8xf32>
    %70 = vector.shape_cast %69 : vector<8x8xf32> to vector<8x8x1xf32>
    %71 = vector.broadcast %70 : vector<8x8x1xf32> to vector<8x8x8xf32>
    %72 = arith.subf %68, %71 : vector<8x8x8xf32>
    %73 = math.exp %72 : vector<8x8x8xf32>
    %cst_27 = arith.constant dense<0.000000e+00> : vector<8x8xf32>
    %74 = vector.multi_reduction <add>, %73, %cst_27 [2] : vector<8x8x8xf32> to vector<8x8xf32>
    %75 = vector.shape_cast %74 : vector<8x8xf32> to vector<8x8x1xf32>
    %76 = tpu.reciprocal %75 {approx = true} : vector<8x8x1xf32> -> vector<8x8x1xf32>
    %77 = vector.broadcast %76 : vector<8x8x1xf32> to vector<8x8x8xf32>
    %78 = arith.mulf %73, %77 : vector<8x8x8xf32>
    "tpu.trace_start"() <{level = 10 : i32, message = "bqk,bkd->bqd"}> : () -> ()
    %cst_28 = arith.constant dense<0.000000e+00> : vector<8x8x8xf32>
    %79 = tpu.matmul %78, %63, %cst_28 {dimension_numbers = #tpu.dot_dimension_numbers<[2], [1], [1], [2], [0, 0, 0, 1, 1, 2], [0], [0]>} : vector<8x8x8xf32>, vector<8x8x8xf32>, vector<8x8x8xf32> -> vector<8x8x8xf32>
    "tpu.trace_stop"() : () -> ()
    %80 = vector.extract_strided_slice %41 {offsets = [0, 0, 16], sizes = [8, 8, 8], strides = [1, 1, 1]} : vector<8x8x96xf32> to vector<8x8x8xf32>
    %81 = vector.extract_strided_slice %41 {offsets = [0, 0, 48], sizes = [8, 8, 8], strides = [1, 1, 1]} : vector<8x8x96xf32> to vector<8x8x8xf32>
    %82 = vector.extract_strided_slice %41 {offsets = [0, 0, 80], sizes = [8, 8, 8], strides = [1, 1, 1]} : vector<8x8x96xf32> to vector<8x8x8xf32>
    "tpu.trace_start"() <{level = 10 : i32, message = "bqd,bkd->bqk"}> : () -> ()
    %cst_29 = arith.constant dense<0.000000e+00> : vector<8x8x8xf32>
    %83 = tpu.matmul %80, %81, %cst_29 {dimension_numbers = #tpu.dot_dimension_numbers<[2], [2], [1], [1], [0, 0, 0, 1, 1, 1], [0], [0]>} : vector<8x8x8xf32>, vector<8x8x8xf32>, vector<8x8x8xf32> -> vector<8x8x8xf32>
    "tpu.trace_stop"() : () -> ()
    %cst_30 = arith.constant 0.353553385 : f32
    %84 = vector.broadcast %cst_30 : f32 to vector<8x8x8xf32>
    %85 = arith.mulf %83, %84 : vector<8x8x8xf32>
    %86 = vector.broadcast %18 : vector<8x1x8xf32> to vector<8x8x8xf32>
    %87 = arith.addf %85, %86 : vector<8x8x8xf32>
    %cst_31 = arith.constant dense<0xFF800000> : vector<8x8xf32>
    %88 = vector.multi_reduction <maximumf>, %87, %cst_31 [2] : vector<8x8x8xf32> to vector<8x8xf32>
    %89 = vector.shape_cast %88 : vector<8x8xf32> to vector<8x8x1xf32>
    %90 = vector.broadcast %89 : vector<8x8x1xf32> to vector<8x8x8xf32>
    %91 = arith.subf %87, %90 : vector<8x8x8xf32>
    %92 = math.exp %91 : vector<8x8x8xf32>
    %cst_32 = arith.constant dense<0.000000e+00> : vector<8x8xf32>
    %93 = vector.multi_reduction <add>, %92, %cst_32 [2] : vector<8x8x8xf32> to vector<8x8xf32>
    %94 = vector.shape_cast %93 : vector<8x8xf32> to vector<8x8x1xf32>
    %95 = tpu.reciprocal %94 {approx = true} : vector<8x8x1xf32> -> vector<8x8x1xf32>
    %96 = vector.broadcast %95 : vector<8x8x1xf32> to vector<8x8x8xf32>
    %97 = arith.mulf %92, %96 : vector<8x8x8xf32>
    "tpu.trace_start"() <{level = 10 : i32, message = "bqk,bkd->bqd"}> : () -> ()
    %cst_33 = arith.constant dense<0.000000e+00> : vector<8x8x8xf32>
    %98 = tpu.matmul %97, %82, %cst_33 {dimension_numbers = #tpu.dot_dimension_numbers<[2], [1], [1], [2], [0, 0, 0, 1, 1, 2], [0], [0]>} : vector<8x8x8xf32>, vector<8x8x8xf32>, vector<8x8x8xf32> -> vector<8x8x8xf32>
    "tpu.trace_stop"() : () -> ()
    %99 = vector.extract_strided_slice %41 {offsets = [0, 0, 24], sizes = [8, 8, 8], strides = [1, 1, 1]} : vector<8x8x96xf32> to vector<8x8x8xf32>
    %100 = vector.extract_strided_slice %41 {offsets = [0, 0, 56], sizes = [8, 8, 8], strides = [1, 1, 1]} : vector<8x8x96xf32> to vector<8x8x8xf32>
    %101 = vector.extract_strided_slice %41 {offsets = [0, 0, 88], sizes = [8, 8, 8], strides = [1, 1, 1]} : vector<8x8x96xf32> to vector<8x8x8xf32>
    "tpu.trace_start"() <{level = 10 : i32, message = "bqd,bkd->bqk"}> : () -> ()
    %cst_34 = arith.constant dense<0.000000e+00> : vector<8x8x8xf32>
    %102 = tpu.matmul %99, %100, %cst_34 {dimension_numbers = #tpu.dot_dimension_numbers<[2], [2], [1], [1], [0, 0, 0, 1, 1, 1], [0], [0]>} : vector<8x8x8xf32>, vector<8x8x8xf32>, vector<8x8x8xf32> -> vector<8x8x8xf32>
    "tpu.trace_stop"() : () -> ()
    %cst_35 = arith.constant 0.353553385 : f32
    %103 = vector.broadcast %cst_35 : f32 to vector<8x8x8xf32>
    %104 = arith.mulf %102, %103 : vector<8x8x8xf32>
    %105 = vector.broadcast %18 : vector<8x1x8xf32> to vector<8x8x8xf32>
    %106 = arith.addf %104, %105 : vector<8x8x8xf32>
    %cst_36 = arith.constant dense<0xFF800000> : vector<8x8xf32>
    %107 = vector.multi_reduction <maximumf>, %106, %cst_36 [2] : vector<8x8x8xf32> to vector<8x8xf32>
    %108 = vector.shape_cast %107 : vector<8x8xf32> to vector<8x8x1xf32>
    %109 = vector.broadcast %108 : vector<8x8x1xf32> to vector<8x8x8xf32>
    %110 = arith.subf %106, %109 : vector<8x8x8xf32>
    %111 = math.exp %110 : vector<8x8x8xf32>
    %cst_37 = arith.constant dense<0.000000e+00> : vector<8x8xf32>
    %112 = vector.multi_reduction <add>, %111, %cst_37 [2] : vector<8x8x8xf32> to vector<8x8xf32>
    %113 = vector.shape_cast %112 : vector<8x8xf32> to vector<8x8x1xf32>
    %114 = tpu.reciprocal %113 {approx = true} : vector<8x8x1xf32> -> vector<8x8x1xf32>
    %115 = vector.broadcast %114 : vector<8x8x1xf32> to vector<8x8x8xf32>
    %116 = arith.mulf %111, %115 : vector<8x8x8xf32>
    "tpu.trace_start"() <{level = 10 : i32, message = "bqk,bkd->bqd"}> : () -> ()
    %cst_38 = arith.constant dense<0.000000e+00> : vector<8x8x8xf32>
    %117 = tpu.matmul %116, %101, %cst_38 {dimension_numbers = #tpu.dot_dimension_numbers<[2], [1], [1], [2], [0, 0, 0, 1, 1, 2], [0], [0]>} : vector<8x8x8xf32>, vector<8x8x8xf32>, vector<8x8x8xf32> -> vector<8x8x8xf32>
    "tpu.trace_stop"() : () -> ()
    %118 = tpu.concatenate %59, %78, %97, %116 in 2 : vector<8x8x8xf32>, vector<8x8x8xf32>, vector<8x8x8xf32>, vector<8x8x8xf32> -> vector<8x8x32xf32>
    %c0_39 = arith.constant 0 : index
    %c0_40 = arith.constant 0 : index
    %c0_41 = arith.constant 0 : index
    %c0_42 = arith.constant 0 : index
    %119 = vector.load %arg5[%c0_39, %c0_40, %c0_41, %c0_42] : memref<2x8x8x32xf32, #tpu.memory_space<vmem>>, vector<1x8x8x32xf32>
    %120 = vector.shape_cast %119 : vector<1x8x8x32xf32> to vector<8x8x32xf32>
    %121 = vector.shape_cast %118 : vector<8x8x32xf32> to vector<1x8x8x32xf32>
    tpu.vector_store %arg5[%c0_39, %c0_40, %c0_41, %c0_42], %121 {strides = array<i32>} : memref<2x8x8x32xf32, #tpu.memory_space<vmem>>, vector<1x8x8x32xf32>,
    %122 = tpu.concatenate %60, %79, %98, %117 in 2 : vector<8x8x8xf32>, vector<8x8x8xf32>, vector<8x8x8xf32>, vector<8x8x8xf32> -> vector<8x8x32xf32>
    %123 = vector.shape_cast %122 : vector<8x8x32xf32> to vector<64x32xf32>
    %cst_43 = arith.constant dense<0.000000e+00> : vector<64x32xf32>
    %124 = tpu.matmul %123, %23, %cst_43 {dimension_numbers = #tpu.dot_dimension_numbers<[1], [0], [0], [1], [0, 0, 1, 1], [], []>} : vector<64x32xf32>, vector<32x32xf32>, vector<64x32xf32> -> vector<64x32xf32>
    %125 = vector.broadcast %31 : vector<1x32xf32> to vector<64x32xf32>
    %126 = arith.addf %124, %125 : vector<64x32xf32>
    %127 = arith.addf %126, %19 : vector<64x32xf32>
    %cst_44 = arith.constant dense<0.000000e+00> : vector<64xf32>
    %128 = vector.multi_reduction <add>, %127, %cst_44 [1] : vector<64x32xf32> to vector<64xf32>
    %129 = vector.shape_cast %128 : vector<64xf32> to vector<64x1xf32>
    %cst_45 = arith.constant 3.200000e+01 : f32
    %130 = vector.broadcast %cst_45 : f32 to vector<64x1xf32>
    %131 = arith.divf %129, %130 : vector<64x1xf32>
    %132 = vector.broadcast %131 : vector<64x1xf32> to vector<64x32xf32>
    %133 = arith.subf %127, %132 : vector<64x32xf32>
    %134 = arith.mulf %133, %133 : vector<64x32xf32>
    %cst_46 = arith.constant dense<0.000000e+00> : vector<64xf32>
    %135 = vector.multi_reduction <add>, %134, %cst_46 [1] : vector<64x32xf32> to vector<64xf32>
    %136 = vector.shape_cast %135 : vector<64xf32> to vector<64x1xf32>
    %cst_47 = arith.constant 3.200000e+01 : f32
    %137 = vector.broadcast %cst_47 : f32 to vector<64x1xf32>
    %138 = arith.divf %136, %137 : vector<64x1xf32>
    %139 = vector.broadcast %131 : vector<64x1xf32> to vector<64x32xf32>
    %140 = arith.subf %127, %139 : vector<64x32xf32>
    %cst_48 = arith.constant 9.99999974E-6 : f32
    %141 = vector.broadcast %cst_48 : f32 to vector<64x1xf32>
    %142 = arith.addf %138, %141 : vector<64x1xf32>
    %143 = math.rsqrt %142 : vector<64x1xf32>
    %144 = vector.broadcast %143 : vector<64x1xf32> to vector<64x32xf32>
    %145 = arith.mulf %140, %144 : vector<64x32xf32>
    %146 = vector.broadcast %32 : vector<1x32xf32> to vector<64x32xf32>
    %147 = arith.mulf %145, %146 : vector<64x32xf32>
    %148 = vector.broadcast %33 : vector<1x32xf32> to vector<64x32xf32>
    %149 = arith.addf %147, %148 : vector<64x32xf32>
    %cst_49 = arith.constant dense<0.000000e+00> : vector<64x64xf32>
    %150 = tpu.matmul %149, %25, %cst_49 {dimension_numbers = #tpu.dot_dimension_numbers<[1], [0], [0], [1], [0, 0, 1, 1], [], []>} : vector<64x32xf32>, vector<32x64xf32>, vector<64x64xf32> -> vector<64x64xf32>
    %151 = vector.broadcast %34 : vector<1x64xf32> to vector<64x64xf32>
    %152 = arith.addf %150, %151 : vector<64x64xf32>
    %cst_50 = arith.constant 0.000000e+00 : f32
    %153 = vector.broadcast %cst_50 : f32 to vector<64x64xf32>
    %154 = arith.maximumf %152, %153 : vector<64x64xf32>
    %cst_51 = arith.constant dense<0.000000e+00> : vector<64x32xf32>
    %155 = tpu.matmul %154, %27, %cst_51 {dimension_numbers = #tpu.dot_dimension_numbers<[1], [0], [0], [1], [0, 0, 1, 1], [], []>} : vector<64x64xf32>, vector<64x32xf32>, vector<64x32xf32> -> vector<64x32xf32>
    %156 = vector.broadcast %35 : vector<1x32xf32> to vector<64x32xf32>
    %157 = arith.addf %155, %156 : vector<64x32xf32>
    %158 = arith.addf %157, %149 : vector<64x32xf32>
    %cst_52 = arith.constant dense<0.000000e+00> : vector<64xf32>
    %159 = vector.multi_reduction <add>, %158, %cst_52 [1] : vector<64x32xf32> to vector<64xf32>
    %160 = vector.shape_cast %159 : vector<64xf32> to vector<64x1xf32>
    %cst_53 = arith.constant 3.200000e+01 : f32
    %161 = vector.broadcast %cst_53 : f32 to vector<64x1xf32>
    %162 = arith.divf %160, %161 : vector<64x1xf32>
    %163 = vector.broadcast %162 : vector<64x1xf32> to vector<64x32xf32>
    %164 = arith.subf %158, %163 : vector<64x32xf32>
    %165 = arith.mulf %164, %164 : vector<64x32xf32>
    %cst_54 = arith.constant dense<0.000000e+00> : vector<64xf32>
    %166 = vector.multi_reduction <add>, %165, %cst_54 [1] : vector<64x32xf32> to vector<64xf32>
    %167 = vector.shape_cast %166 : vector<64xf32> to vector<64x1xf32>
    %cst_55 = arith.constant 3.200000e+01 : f32
    %168 = vector.broadcast %cst_55 : f32 to vector<64x1xf32>
    %169 = arith.divf %167, %168 : vector<64x1xf32>
    %170 = vector.broadcast %162 : vector<64x1xf32> to vector<64x32xf32>
    %171 = arith.subf %158, %170 : vector<64x32xf32>
    %cst_56 = arith.constant 9.99999974E-6 : f32
    %172 = vector.broadcast %cst_56 : f32 to vector<64x1xf32>
    %173 = arith.addf %169, %172 : vector<64x1xf32>
    %174 = math.rsqrt %173 : vector<64x1xf32>
    %175 = vector.broadcast %174 : vector<64x1xf32> to vector<64x32xf32>
    %176 = arith.mulf %171, %175 : vector<64x32xf32>
    %177 = vector.broadcast %36 : vector<1x32xf32> to vector<64x32xf32>
    %178 = arith.mulf %176, %177 : vector<64x32xf32>
    %179 = vector.broadcast %37 : vector<1x32xf32> to vector<64x32xf32>
    %180 = arith.addf %178, %179 : vector<64x32xf32>
    %c1 = arith.constant 1 : index
    %c0_57 = arith.constant 0 : index
    %c0_58 = arith.constant 0 : index
    %181 = vector.load %arg3[%c1, %c0_57, %c0_58] : memref<2x168x96xf32, #tpu.memory_space<vmem>>, vector<1x32x96xf32>
    %182 = vector.shape_cast %181 : vector<1x32x96xf32> to vector<32x96xf32>
    %c1_59 = arith.constant 1 : index
    %c32_60 = arith.constant 32 : index
    %c0_61 = arith.constant 0 : index
    %183 = vector.load %arg3[%c1_59, %c32_60, %c0_61] : memref<2x168x96xf32, #tpu.memory_space<vmem>>, vector<1x32x32xf32>
    %184 = vector.shape_cast %183 : vector<1x32x32xf32> to vector<32x32xf32>
    %c1_62 = arith.constant 1 : index
    %c64_63 = arith.constant 64 : index
    %c0_64 = arith.constant 0 : index
    %185 = vector.load %arg3[%c1_62, %c64_63, %c0_64] : memref<2x168x96xf32, #tpu.memory_space<vmem>>, vector<1x32x64xf32>
    %186 = vector.shape_cast %185 : vector<1x32x64xf32> to vector<32x64xf32>
    %c1_65 = arith.constant 1 : index
    %c96_66 = arith.constant 96 : index
    %c0_67 = arith.constant 0 : index
    %187 = vector.load %arg3[%c1_65, %c96_66, %c0_67] : memref<2x168x96xf32, #tpu.memory_space<vmem>>, vector<1x64x32xf32>
    %188 = vector.shape_cast %187 : vector<1x64x32xf32> to vector<64x32xf32>
    %c1_68 = arith.constant 1 : index
    %c160_69 = arith.constant 160 : index
    %c0_70 = arith.constant 0 : index
    %189 = vector.load %arg3[%c1_68, %c160_69, %c0_70] : memref<2x168x96xf32, #tpu.memory_space<vmem>>, vector<1x8x96xf32>
    %190 = vector.shape_cast %189 : vector<1x8x96xf32> to vector<8x96xf32>
    %191 = vector.extract_strided_slice %190 {offsets = [0, 0], sizes = [1, 96], strides = [1, 1]} : vector<8x96xf32> to vector<1x96xf32>
    %192 = vector.extract_strided_slice %190 {offsets = [1, 0], sizes = [1, 32], strides = [1, 1]} : vector<8x96xf32> to vector<1x32xf32>
    %193 = vector.extract_strided_slice %190 {offsets = [2, 0], sizes = [1, 32], strides = [1, 1]} : vector<8x96xf32> to vector<1x32xf32>
    %194 = vector.extract_strided_slice %190 {offsets = [3, 0], sizes = [1, 32], strides = [1, 1]} : vector<8x96xf32> to vector<1x32xf32>
    %195 = vector.extract_strided_slice %190 {offsets = [4, 0], sizes = [1, 64], strides = [1, 1]} : vector<8x96xf32> to vector<1x64xf32>
    %196 = vector.extract_strided_slice %190 {offsets = [5, 0], sizes = [1, 32], strides = [1, 1]} : vector<8x96xf32> to vector<1x32xf32>
    %197 = vector.extract_strided_slice %190 {offsets = [6, 0], sizes = [1, 32], strides = [1, 1]} : vector<8x96xf32> to vector<1x32xf32>
    %198 = vector.extract_strided_slice %190 {offsets = [7, 0], sizes = [1, 32], strides = [1, 1]} : vector<8x96xf32> to vector<1x32xf32>
    %cst_71 = arith.constant dense<0.000000e+00> : vector<64x96xf32>
    %199 = tpu.matmul %180, %182, %cst_71 {dimension_numbers = #tpu.dot_dimension_numbers<[1], [0], [0], [1], [0, 0, 1, 1], [], []>} : vector<64x32xf32>, vector<32x96xf32>, vector<64x96xf32> -> vector<64x96xf32>
    %200 = vector.broadcast %191 : vector<1x96xf32> to vector<64x96xf32>
    %201 = arith.addf %199, %200 : vector<64x96xf32>
    %202 = vector.shape_cast %201 : vector<64x96xf32> to vector<8x8x96xf32>
    %203 = vector.extract_strided_slice %202 {offsets = [0, 0, 0], sizes = [8, 8, 8], strides = [1, 1, 1]} : vector<8x8x96xf32> to vector<8x8x8xf32>
    %204 = vector.extract_strided_slice %202 {offsets = [0, 0, 32], sizes = [8, 8, 8], strides = [1, 1, 1]} : vector<8x8x96xf32> to vector<8x8x8xf32>
    %205 = vector.extract_strided_slice %202 {offsets = [0, 0, 64], sizes = [8, 8, 8], strides = [1, 1, 1]} : vector<8x8x96xf32> to vector<8x8x8xf32>
    "tpu.trace_start"() <{level = 10 : i32, message = "bqd,bkd->bqk"}> : () -> ()
    %cst_72 = arith.constant dense<0.000000e+00> : vector<8x8x8xf32>
    %206 = tpu.matmul %203, %204, %cst_72 {dimension_numbers = #tpu.dot_dimension_numbers<[2], [2], [1], [1], [0, 0, 0, 1, 1, 1], [0], [0]>} : vector<8x8x8xf32>, vector<8x8x8xf32>, vector<8x8x8xf32> -> vector<8x8x8xf32>
    "tpu.trace_stop"() : () -> ()
    %cst_73 = arith.constant 0.353553385 : f32
    %207 = vector.broadcast %cst_73 : f32 to vector<8x8x8xf32>
    %208 = arith.mulf %206, %207 : vector<8x8x8xf32>
    %209 = vector.broadcast %18 : vector<8x1x8xf32> to vector<8x8x8xf32>
    %210 = arith.addf %208, %209 : vector<8x8x8xf32>
    %cst_74 = arith.constant dense<0xFF800000> : vector<8x8xf32>
    %211 = vector.multi_reduction <maximumf>, %210, %cst_74 [2] : vector<8x8x8xf32> to vector<8x8xf32>
    %212 = vector.shape_cast %211 : vector<8x8xf32> to vector<8x8x1xf32>
    %213 = vector.broadcast %212 : vector<8x8x1xf32> to vector<8x8x8xf32>
    %214 = arith.subf %210, %213 : vector<8x8x8xf32>
    %215 = math.exp %214 : vector<8x8x8xf32>
    %cst_75 = arith.constant dense<0.000000e+00> : vector<8x8xf32>
    %216 = vector.multi_reduction <add>, %215, %cst_75 [2] : vector<8x8x8xf32> to vector<8x8xf32>
    %217 = vector.shape_cast %216 : vector<8x8xf32> to vector<8x8x1xf32>
    %218 = tpu.reciprocal %217 {approx = true} : vector<8x8x1xf32> -> vector<8x8x1xf32>
    %219 = vector.broadcast %218 : vector<8x8x1xf32> to vector<8x8x8xf32>
    %220 = arith.mulf %215, %219 : vector<8x8x8xf32>
    "tpu.trace_start"() <{level = 10 : i32, message = "bqk,bkd->bqd"}> : () -> ()
    %cst_76 = arith.constant dense<0.000000e+00> : vector<8x8x8xf32>
    %221 = tpu.matmul %220, %205, %cst_76 {dimension_numbers = #tpu.dot_dimension_numbers<[2], [1], [1], [2], [0, 0, 0, 1, 1, 2], [0], [0]>} : vector<8x8x8xf32>, vector<8x8x8xf32>, vector<8x8x8xf32> -> vector<8x8x8xf32>
    "tpu.trace_stop"() : () -> ()
    %222 = vector.extract_strided_slice %202 {offsets = [0, 0, 8], sizes = [8, 8, 8], strides = [1, 1, 1]} : vector<8x8x96xf32> to vector<8x8x8xf32>
    %223 = vector.extract_strided_slice %202 {offsets = [0, 0, 40], sizes = [8, 8, 8], strides = [1, 1, 1]} : vector<8x8x96xf32> to vector<8x8x8xf32>
    %224 = vector.extract_strided_slice %202 {offsets = [0, 0, 72], sizes = [8, 8, 8], strides = [1, 1, 1]} : vector<8x8x96xf32> to vector<8x8x8xf32>
    "tpu.trace_start"() <{level = 10 : i32, message = "bqd,bkd->bqk"}> : () -> ()
    %cst_77 = arith.constant dense<0.000000e+00> : vector<8x8x8xf32>
    %225 = tpu.matmul %222, %223, %cst_77 {dimension_numbers = #tpu.dot_dimension_numbers<[2], [2], [1], [1], [0, 0, 0, 1, 1, 1], [0], [0]>} : vector<8x8x8xf32>, vector<8x8x8xf32>, vector<8x8x8xf32> -> vector<8x8x8xf32>
    "tpu.trace_stop"() : () -> ()
    %cst_78 = arith.constant 0.353553385 : f32
    %226 = vector.broadcast %cst_78 : f32 to vector<8x8x8xf32>
    %227 = arith.mulf %225, %226 : vector<8x8x8xf32>
    %228 = vector.broadcast %18 : vector<8x1x8xf32> to vector<8x8x8xf32>
    %229 = arith.addf %227, %228 : vector<8x8x8xf32>
    %cst_79 = arith.constant dense<0xFF800000> : vector<8x8xf32>
    %230 = vector.multi_reduction <maximumf>, %229, %cst_79 [2] : vector<8x8x8xf32> to vector<8x8xf32>
    %231 = vector.shape_cast %230 : vector<8x8xf32> to vector<8x8x1xf32>
    %232 = vector.broadcast %231 : vector<8x8x1xf32> to vector<8x8x8xf32>
    %233 = arith.subf %229, %232 : vector<8x8x8xf32>
    %234 = math.exp %233 : vector<8x8x8xf32>
    %cst_80 = arith.constant dense<0.000000e+00> : vector<8x8xf32>
    %235 = vector.multi_reduction <add>, %234, %cst_80 [2] : vector<8x8x8xf32> to vector<8x8xf32>
    %236 = vector.shape_cast %235 : vector<8x8xf32> to vector<8x8x1xf32>
    %237 = tpu.reciprocal %236 {approx = true} : vector<8x8x1xf32> -> vector<8x8x1xf32>
    %238 = vector.broadcast %237 : vector<8x8x1xf32> to vector<8x8x8xf32>
    %239 = arith.mulf %234, %238 : vector<8x8x8xf32>
    "tpu.trace_start"() <{level = 10 : i32, message = "bqk,bkd->bqd"}> : () -> ()
    %cst_81 = arith.constant dense<0.000000e+00> : vector<8x8x8xf32>
    %240 = tpu.matmul %239, %224, %cst_81 {dimension_numbers = #tpu.dot_dimension_numbers<[2], [1], [1], [2], [0, 0, 0, 1, 1, 2], [0], [0]>} : vector<8x8x8xf32>, vector<8x8x8xf32>, vector<8x8x8xf32> -> vector<8x8x8xf32>
    "tpu.trace_stop"() : () -> ()
    %241 = vector.extract_strided_slice %202 {offsets = [0, 0, 16], sizes = [8, 8, 8], strides = [1, 1, 1]} : vector<8x8x96xf32> to vector<8x8x8xf32>
    %242 = vector.extract_strided_slice %202 {offsets = [0, 0, 48], sizes = [8, 8, 8], strides = [1, 1, 1]} : vector<8x8x96xf32> to vector<8x8x8xf32>
    %243 = vector.extract_strided_slice %202 {offsets = [0, 0, 80], sizes = [8, 8, 8], strides = [1, 1, 1]} : vector<8x8x96xf32> to vector<8x8x8xf32>
    "tpu.trace_start"() <{level = 10 : i32, message = "bqd,bkd->bqk"}> : () -> ()
    %cst_82 = arith.constant dense<0.000000e+00> : vector<8x8x8xf32>
    %244 = tpu.matmul %241, %242, %cst_82 {dimension_numbers = #tpu.dot_dimension_numbers<[2], [2], [1], [1], [0, 0, 0, 1, 1, 1], [0], [0]>} : vector<8x8x8xf32>, vector<8x8x8xf32>, vector<8x8x8xf32> -> vector<8x8x8xf32>
    "tpu.trace_stop"() : () -> ()
    %cst_83 = arith.constant 0.353553385 : f32
    %245 = vector.broadcast %cst_83 : f32 to vector<8x8x8xf32>
    %246 = arith.mulf %244, %245 : vector<8x8x8xf32>
    %247 = vector.broadcast %18 : vector<8x1x8xf32> to vector<8x8x8xf32>
    %248 = arith.addf %246, %247 : vector<8x8x8xf32>
    %cst_84 = arith.constant dense<0xFF800000> : vector<8x8xf32>
    %249 = vector.multi_reduction <maximumf>, %248, %cst_84 [2] : vector<8x8x8xf32> to vector<8x8xf32>
    %250 = vector.shape_cast %249 : vector<8x8xf32> to vector<8x8x1xf32>
    %251 = vector.broadcast %250 : vector<8x8x1xf32> to vector<8x8x8xf32>
    %252 = arith.subf %248, %251 : vector<8x8x8xf32>
    %253 = math.exp %252 : vector<8x8x8xf32>
    %cst_85 = arith.constant dense<0.000000e+00> : vector<8x8xf32>
    %254 = vector.multi_reduction <add>, %253, %cst_85 [2] : vector<8x8x8xf32> to vector<8x8xf32>
    %255 = vector.shape_cast %254 : vector<8x8xf32> to vector<8x8x1xf32>
    %256 = tpu.reciprocal %255 {approx = true} : vector<8x8x1xf32> -> vector<8x8x1xf32>
    %257 = vector.broadcast %256 : vector<8x8x1xf32> to vector<8x8x8xf32>
    %258 = arith.mulf %253, %257 : vector<8x8x8xf32>
    "tpu.trace_start"() <{level = 10 : i32, message = "bqk,bkd->bqd"}> : () -> ()
    %cst_86 = arith.constant dense<0.000000e+00> : vector<8x8x8xf32>
    %259 = tpu.matmul %258, %243, %cst_86 {dimension_numbers = #tpu.dot_dimension_numbers<[2], [1], [1], [2], [0, 0, 0, 1, 1, 2], [0], [0]>} : vector<8x8x8xf32>, vector<8x8x8xf32>, vector<8x8x8xf32> -> vector<8x8x8xf32>
    "tpu.trace_stop"() : () -> ()
    %260 = vector.extract_strided_slice %202 {offsets = [0, 0, 24], sizes = [8, 8, 8], strides = [1, 1, 1]} : vector<8x8x96xf32> to vector<8x8x8xf32>
    %261 = vector.extract_strided_slice %202 {offsets = [0, 0, 56], sizes = [8, 8, 8], strides = [1, 1, 1]} : vector<8x8x96xf32> to vector<8x8x8xf32>
    %262 = vector.extract_strided_slice %202 {offsets = [0, 0, 88], sizes = [8, 8, 8], strides = [1, 1, 1]} : vector<8x8x96xf32> to vector<8x8x8xf32>
    "tpu.trace_start"() <{level = 10 : i32, message = "bqd,bkd->bqk"}> : () -> ()
    %cst_87 = arith.constant dense<0.000000e+00> : vector<8x8x8xf32>
    %263 = tpu.matmul %260, %261, %cst_87 {dimension_numbers = #tpu.dot_dimension_numbers<[2], [2], [1], [1], [0, 0, 0, 1, 1, 1], [0], [0]>} : vector<8x8x8xf32>, vector<8x8x8xf32>, vector<8x8x8xf32> -> vector<8x8x8xf32>
    "tpu.trace_stop"() : () -> ()
    %cst_88 = arith.constant 0.353553385 : f32
    %264 = vector.broadcast %cst_88 : f32 to vector<8x8x8xf32>
    %265 = arith.mulf %263, %264 : vector<8x8x8xf32>
    %266 = vector.broadcast %18 : vector<8x1x8xf32> to vector<8x8x8xf32>
    %267 = arith.addf %265, %266 : vector<8x8x8xf32>
    %cst_89 = arith.constant dense<0xFF800000> : vector<8x8xf32>
    %268 = vector.multi_reduction <maximumf>, %267, %cst_89 [2] : vector<8x8x8xf32> to vector<8x8xf32>
    %269 = vector.shape_cast %268 : vector<8x8xf32> to vector<8x8x1xf32>
    %270 = vector.broadcast %269 : vector<8x8x1xf32> to vector<8x8x8xf32>
    %271 = arith.subf %267, %270 : vector<8x8x8xf32>
    %272 = math.exp %271 : vector<8x8x8xf32>
    %cst_90 = arith.constant dense<0.000000e+00> : vector<8x8xf32>
    %273 = vector.multi_reduction <add>, %272, %cst_90 [2] : vector<8x8x8xf32> to vector<8x8xf32>
    %274 = vector.shape_cast %273 : vector<8x8xf32> to vector<8x8x1xf32>
    %275 = tpu.reciprocal %274 {approx = true} : vector<8x8x1xf32> -> vector<8x8x1xf32>
    %276 = vector.broadcast %275 : vector<8x8x1xf32> to vector<8x8x8xf32>
    %277 = arith.mulf %272, %276 : vector<8x8x8xf32>
    "tpu.trace_start"() <{level = 10 : i32, message = "bqk,bkd->bqd"}> : () -> ()
    %cst_91 = arith.constant dense<0.000000e+00> : vector<8x8x8xf32>
    %278 = tpu.matmul %277, %262, %cst_91 {dimension_numbers = #tpu.dot_dimension_numbers<[2], [1], [1], [2], [0, 0, 0, 1, 1, 2], [0], [0]>} : vector<8x8x8xf32>, vector<8x8x8xf32>, vector<8x8x8xf32> -> vector<8x8x8xf32>
    "tpu.trace_stop"() : () -> ()
    %279 = tpu.concatenate %220, %239, %258, %277 in 2 : vector<8x8x8xf32>, vector<8x8x8xf32>, vector<8x8x8xf32>, vector<8x8x8xf32> -> vector<8x8x32xf32>
    %c1_92 = arith.constant 1 : index
    %c0_93 = arith.constant 0 : index
    %c0_94 = arith.constant 0 : index
    %c0_95 = arith.constant 0 : index
    %280 = vector.load %arg5[%c1_92, %c0_93, %c0_94, %c0_95] : memref<2x8x8x32xf32, #tpu.memory_space<vmem>>, vector<1x8x8x32xf32>
    %281 = vector.shape_cast %280 : vector<1x8x8x32xf32> to vector<8x8x32xf32>
    %282 = vector.shape_cast %279 : vector<8x8x32xf32> to vector<1x8x8x32xf32>
    tpu.vector_store %arg5[%c1_92, %c0_93, %c0_94, %c0_95], %282 {strides = array<i32>} : memref<2x8x8x32xf32, #tpu.memory_space<vmem>>, vector<1x8x8x32xf32>,
    %283 = tpu.concatenate %221, %240, %259, %278 in 2 : vector<8x8x8xf32>, vector<8x8x8xf32>, vector<8x8x8xf32>, vector<8x8x8xf32> -> vector<8x8x32xf32>
    %284 = vector.shape_cast %283 : vector<8x8x32xf32> to vector<64x32xf32>
    %cst_96 = arith.constant dense<0.000000e+00> : vector<64x32xf32>
    %285 = tpu.matmul %284, %184, %cst_96 {dimension_numbers = #tpu.dot_dimension_numbers<[1], [0], [0], [1], [0, 0, 1, 1], [], []>} : vector<64x32xf32>, vector<32x32xf32>, vector<64x32xf32> -> vector<64x32xf32>
    %286 = vector.broadcast %192 : vector<1x32xf32> to vector<64x32xf32>
    %287 = arith.addf %285, %286 : vector<64x32xf32>
    %288 = arith.addf %287, %180 : vector<64x32xf32>
    %cst_97 = arith.constant dense<0.000000e+00> : vector<64xf32>
    %289 = vector.multi_reduction <add>, %288, %cst_97 [1] : vector<64x32xf32> to vector<64xf32>
    %290 = vector.shape_cast %289 : vector<64xf32> to vector<64x1xf32>
    %cst_98 = arith.constant 3.200000e+01 : f32
    %291 = vector.broadcast %cst_98 : f32 to vector<64x1xf32>
    %292 = arith.divf %290, %291 : vector<64x1xf32>
    %293 = vector.broadcast %292 : vector<64x1xf32> to vector<64x32xf32>
    %294 = arith.subf %288, %293 : vector<64x32xf32>
    %295 = arith.mulf %294, %294 : vector<64x32xf32>
    %cst_99 = arith.constant dense<0.000000e+00> : vector<64xf32>
    %296 = vector.multi_reduction <add>, %295, %cst_99 [1] : vector<64x32xf32> to vector<64xf32>
    %297 = vector.shape_cast %296 : vector<64xf32> to vector<64x1xf32>
    %cst_100 = arith.constant 3.200000e+01 : f32
    %298 = vector.broadcast %cst_100 : f32 to vector<64x1xf32>
    %299 = arith.divf %297, %298 : vector<64x1xf32>
    %300 = vector.broadcast %292 : vector<64x1xf32> to vector<64x32xf32>
    %301 = arith.subf %288, %300 : vector<64x32xf32>
    %cst_101 = arith.constant 9.99999974E-6 : f32
    %302 = vector.broadcast %cst_101 : f32 to vector<64x1xf32>
    %303 = arith.addf %299, %302 : vector<64x1xf32>
    %304 = math.rsqrt %303 : vector<64x1xf32>
    %305 = vector.broadcast %304 : vector<64x1xf32> to vector<64x32xf32>
    %306 = arith.mulf %301, %305 : vector<64x32xf32>
    %307 = vector.broadcast %193 : vector<1x32xf32> to vector<64x32xf32>
    %308 = arith.mulf %306, %307 : vector<64x32xf32>
    %309 = vector.broadcast %194 : vector<1x32xf32> to vector<64x32xf32>
    %310 = arith.addf %308, %309 : vector<64x32xf32>
    %cst_102 = arith.constant dense<0.000000e+00> : vector<64x64xf32>
    %311 = tpu.matmul %310, %186, %cst_102 {dimension_numbers = #tpu.dot_dimension_numbers<[1], [0], [0], [1], [0, 0, 1, 1], [], []>} : vector<64x32xf32>, vector<32x64xf32>, vector<64x64xf32> -> vector<64x64xf32>
    %312 = vector.broadcast %195 : vector<1x64xf32> to vector<64x64xf32>
    %313 = arith.addf %311, %312 : vector<64x64xf32>
    %cst_103 = arith.constant 0.000000e+00 : f32
    %314 = vector.broadcast %cst_103 : f32 to vector<64x64xf32>
    %315 = arith.maximumf %313, %314 : vector<64x64xf32>
    %cst_104 = arith.constant dense<0.000000e+00> : vector<64x32xf32>
    %316 = tpu.matmul %315, %188, %cst_104 {dimension_numbers = #tpu.dot_dimension_numbers<[1], [0], [0], [1], [0, 0, 1, 1], [], []>} : vector<64x64xf32>, vector<64x32xf32>, vector<64x32xf32> -> vector<64x32xf32>
    %317 = vector.broadcast %196 : vector<1x32xf32> to vector<64x32xf32>
    %318 = arith.addf %316, %317 : vector<64x32xf32>
    %319 = arith.addf %318, %310 : vector<64x32xf32>
    %cst_105 = arith.constant dense<0.000000e+00> : vector<64xf32>
    %320 = vector.multi_reduction <add>, %319, %cst_105 [1] : vector<64x32xf32> to vector<64xf32>
    %321 = vector.shape_cast %320 : vector<64xf32> to vector<64x1xf32>
    %cst_106 = arith.constant 3.200000e+01 : f32
    %322 = vector.broadcast %cst_106 : f32 to vector<64x1xf32>
    %323 = arith.divf %321, %322 : vector<64x1xf32>
    %324 = vector.broadcast %323 : vector<64x1xf32> to vector<64x32xf32>
    %325 = arith.subf %319, %324 : vector<64x32xf32>
    %326 = arith.mulf %325, %325 : vector<64x32xf32>
    %cst_107 = arith.constant dense<0.000000e+00> : vector<64xf32>
    %327 = vector.multi_reduction <add>, %326, %cst_107 [1] : vector<64x32xf32> to vector<64xf32>
    %328 = vector.shape_cast %327 : vector<64xf32> to vector<64x1xf32>
    %cst_108 = arith.constant 3.200000e+01 : f32
    %329 = vector.broadcast %cst_108 : f32 to vector<64x1xf32>
    %330 = arith.divf %328, %329 : vector<64x1xf32>
    %331 = vector.broadcast %323 : vector<64x1xf32> to vector<64x32xf32>
    %332 = arith.subf %319, %331 : vector<64x32xf32>
    %cst_109 = arith.constant 9.99999974E-6 : f32
    %333 = vector.broadcast %cst_109 : f32 to vector<64x1xf32>
    %334 = arith.addf %330, %333 : vector<64x1xf32>
    %335 = math.rsqrt %334 : vector<64x1xf32>
    %336 = vector.broadcast %335 : vector<64x1xf32> to vector<64x32xf32>
    %337 = arith.mulf %332, %336 : vector<64x32xf32>
    %338 = vector.broadcast %197 : vector<1x32xf32> to vector<64x32xf32>
    %339 = arith.mulf %337, %338 : vector<64x32xf32>
    %340 = vector.broadcast %198 : vector<1x32xf32> to vector<64x32xf32>
    %341 = arith.addf %339, %340 : vector<64x32xf32>
    %342 = vector.shape_cast %341 : vector<64x32xf32> to vector<8x8x32xf32>
    %c0_110 = arith.constant 0 : index
    %c0_111 = arith.constant 0 : index
    %c0_112 = arith.constant 0 : index
    %343 = vector.load %arg4[%c0_110, %c0_111, %c0_112] : memref<8x8x32xf32, #tpu.memory_space<vmem>>, vector<8x8x32xf32>
    tpu.vector_store %arg4[%c0_110, %c0_111, %c0_112], %342 {strides = array<i32>} : memref<8x8x32xf32, #tpu.memory_space<vmem>>, vector<8x8x32xf32>,
    return
  }
}

</mosaic_0001>

<bundles_post_ra>
// kernel: encoder_forward.1
= control target key start
LH: loop header
LB: loop body
LE: loop exit
PB: predicated region body
PF: predicated region fallthrough
CT: control target
= control target key end

     0   :  { %11 = vsyncpa [#allocation3], 0  ;;  %s18247_s0 = inlined_call_operand.hbm [shape: s32[8,8], index: 0, kind: input, shape index: {}]   ;;  %s18248_s1 = inlined_call_operand.hbm [shape: f32[16,32], index: 1, kind: input, shape index: {}]   ;;  %s18249_s2 = inlined_call_operand.hbm [shape: f32[8,32], index: 2, kind: input, shape index: {}]   ;;  %s18250_s3 = inlined_call_operand.hbm [shape: f32[2,168,96], index: 3, kind: input, shape index: {}]   ;;  %s18251_s4 = inlined_call_operand.hbm [shape: f32[8,8,32], index: 4, kind: output, shape index: {0}]   ;;  %s18252_s5 = inlined_call_operand.vmem [shape: f32[2,8,8,32], index: 5, kind: output, shape index: {1}]  }
   0x1   :  { %12 = vsyncpa [#allocation6], 0 }
   0x2   :  { %13 = vsyncpa [#allocation9], 0 }
   0x3   :  { %14 = vsyncpa [#allocation4], 0  ;;  %s15236_s18 = smov [#allocation5]   ;;  %s15118_s22 = scalar_lea.hbm %s18248_s1, 256 }
   0x4   :  { %s30_s19 = sshll.u32 %s15236_s18, 4  ;;  %p15119_p0 = scmp.ne.s32.totalorder %s18248_s1, %s15118_s22  ;;  %s31_s19 = int_to_ptr.vmem [resolvable:$true] %s30_s19 }
   0x5   :  { %p15122_p1 = scmp.lt.u32.totalorder %s15118_s22, %s18248_s1 }
   0x7   :  { %p15124_p2 = pnand %p15122_p1, %p15119_p0 }
   0x9   :  { %15127 = shalt.err (!%p15124_p2)
}
   0xa   :  { %s15128_s27 = scalar_lea.vmem %s31_s19, 256  ;;  %p15133_p4 = scmp.lt.s32.totalorder %s31_s19, %s31_s19 }
   0xb   :  { %p15129_p3 = scmp.ne.s32.totalorder %s31_s19, %s15128_s27  ;;  %p15134_p5 = scmp.lt.s32.totalorder %s15128_s27, %s15128_s27 }
   0xd   :  { %p15135_p6 = por %p15134_p5, %p15133_p4 }
   0xf   :  { %p15136_p7 = pnand %p15135_p6, %p15129_p3 }
  0x11   :  { %15139 = shalt.err (!%p15136_p7)
}
  0x12   :  { %s15237_s28 = smov 128   ;;  %s15238_s29 = smov 8  }
  0x13   :  { %36 = dma.hbm_to_vmem [thread:$0]  %s18248_s1, 256, %s31_s19, [#allocation6], %s15237_s28, %s15237_s28, %s15238_s29  }
  0x14   :  { %s15239_s7 = smov [#allocation2]   ;;  %s15240_s9 = smov [#allocation7]  }
  0x15   :  { %s21_s8 = sshll.u32 %s15239_s7, 4  ;;  %s43_s10 = sshll.u32 %s15240_s9, 4  ;;  %s22_s8 = int_to_ptr.vmem [resolvable:$true] %s21_s8  ;;  %s44_s10 = int_to_ptr.vmem [resolvable:$true] %s43_s10 }
  0x16   :  { %s15140_s13 = scalar_lea.hbm %s18247_s0, 128 }
  0x17   :  { %p15141_p8 = scmp.ne.s32.totalorder %s18247_s0, %s15140_s13  ;;  %p15144_p9 = scmp.lt.u32.totalorder %s15140_s13, %s18247_s0 }
  0x19   :  { %p15146_p10 = pnand %p15144_p9, %p15141_p8 }
  0x1b   :  { %15149 = shalt.err (!%p15146_p10)
}
  0x1c   :  { %s15150_s1 = scalar_lea.vmem %s22_s8, 128  ;;  %p15155_p12 = scmp.lt.s32.totalorder %s22_s8, %s22_s8 }
  0x1d   :  { %p15151_p11 = scmp.ne.s32.totalorder %s22_s8, %s15150_s1  ;;  %p15156_p13 = scmp.lt.s32.totalorder %s15150_s1, %s15150_s1 }
  0x1f   :  { %p15157_p0 = por %p15156_p13, %p15155_p12 }
  0x21   :  { %p15158_p1 = pnand %p15157_p0, %p15151_p11 }
  0x23   :  { %15161 = shalt.err (!%p15158_p1)
}
  0x24   :  { %24 = dma.hbm_to_vmem [thread:$0]  %s18247_s0, 128, %s22_s8, [#allocation3]  }
  0x25   :  { %s15162_s22 = scalar_lea.hbm %s18249_s2, 128 }
  0x26   :  { %p15163_p2 = scmp.ne.s32.totalorder %s18249_s2, %s15162_s22  ;;  %p15166_p3 = scmp.lt.u32.totalorder %s15162_s22, %s18249_s2 }
  0x28   :  { %p15168_p4 = pnand %p15166_p3, %p15163_p2 }
  0x2a   :  { %15171 = shalt.err (!%p15168_p4)
}
  0x2b   :  { %s15172_s27 = scalar_lea.vmem %s44_s10, 128  ;;  %p15177_p6 = scmp.lt.s32.totalorder %s44_s10, %s44_s10 }
  0x2c   :  { %p15173_p5 = scmp.ne.s32.totalorder %s44_s10, %s15172_s27  ;;  %p15178_p7 = scmp.lt.s32.totalorder %s15172_s27, %s15172_s27 }
  0x2e   :  { %p15179_p8 = por %p15178_p7, %p15177_p6 }
  0x30   :  { %p15180_p9 = pnand %p15179_p8, %p15173_p5 }
  0x32   :  { %15183 = shalt.err (!%p15180_p9)
}
  0x33   :  { %46 = dma.hbm_to_vmem [thread:$0]  %s18249_s2, 128, %s44_s10, [#allocation6]  }
  0x34   :  { %s15241_s6 = smov [#allocation8]   ;;  %s15184_s11 = scalar_lea.hbm %s18250_s3, 5376 }
  0x35   :  { %s52_s7 = sshll.u32 %s15241_s6, 4  ;;  %p15185_p10 = scmp.ne.s32.totalorder %s18250_s3, %s15184_s11  ;;  %s53_s7 = int_to_ptr.vmem [resolvable:$true] %s52_s7 }
  0x36   :  { %p15188_p11 = scmp.lt.u32.totalorder %s15184_s11, %s18250_s3 }
  0x38   :  { %p15190_p12 = pnand %p15188_p11, %p15185_p10 }
  0x3a   :  { %15193 = shalt.err (!%p15190_p12)
}
  0x3b   :  { %s15194_s16 = scalar_lea.vmem %s53_s7, 5376  ;;  %p15199_p0 = scmp.lt.s32.totalorder %s53_s7, %s53_s7 }
  0x3c   :  { %p15195_p13 = scmp.ne.s32.totalorder %s53_s7, %s15194_s16  ;;  %p15200_p1 = scmp.lt.s32.totalorder %s15194_s16, %s15194_s16 }
  0x3e   :  { %p15201_p2 = por %p15200_p1, %p15199_p0 }
  0x40   :  { %p15202_p3 = pnand %p15201_p2, %p15195_p13 }
  0x42   :  { %15205 = shalt.err (!%p15202_p3)
}
  0x43   :  { %58 = dma.hbm_to_vmem [thread:$0]  %s18250_s3, 5376, %s53_s7, [#allocation9], %s15237_s28, %s15237_s28, %s15238_s29  }
  0x44   :  { %15228 = dma.done.wait [#allocation3], 128  }
  0x45   :  { %15229 = vsyncadd [#allocation3], 4294967168 }
  0x46   :  { %15230 = dma.done.wait [#allocation6], 384  }
  0x47   :  { %15231 = vsyncadd [#allocation6], 4294966912 }
  0x48   :  { %15232 = dma.done.wait [#allocation9], 5376  }
  0x49   :  { %15233 = vsyncadd [#allocation9], 4294961920  ;;  %v72_v0 = vlaneseq  ;;  %v15357_v6 = vld [vmem:[#allocation2] sm:$0xff]  ;;  %v154_v13 = vld [vmem:[#allocation5] sm:$0xff]  ;;  %vm157_vm0 = vcmask 130048   ;;  %v18253_v28 = vmov 0.0  }
  0x4a   :  { %v155_v14 = vld [vmem:[#allocation5 + $0x8] sm:$0xff]  ;;  %v339_v20 = vld [vmem:[#allocation8] sm:$0xff]  ;;  %v340_v21 = vld [vmem:[#allocation8 + $0x8] sm:$0xff]  ;;  %vm364_vm9 = vcmask 261120   ;;  %vm15243_vm10 = vmmov 0   ;;  %s15244_s3 = smov 96  }
  0x4b   :  { %v15343_v1 = vshrl.u32 %v72_v0, 7  ;;  %v14685_v15 = vpack.c.bf16 %v155_v14, %v154_v13  ;;  %v14689_v22 = vpack.c.bf16 %v340_v21, %v339_v20  ;;  %v73_v25 = vand.u32 127, %v72_v0  ;;  %v341_v43 = vld [vmem:[#allocation8 + $0x10] sm:$0xff]  ;;  %v342_v44 = vld [vmem:[#allocation8 + $0x18] sm:$0xff]  ;;  %v359_v63 = vld [vmem:[#allocation8 + $0xa0] sm:$0xff]  ;;  %s15246_s17 = smov 64  }
  0x4c   :  { %v14693_v45 = vpack.c.bf16 %v342_v44, %v341_v43  ;;  %v156_v46 = vld [vmem:[#allocation7] sm:$0xff]  ;;  %vm497_vm11 = vcmask 64512   ;;  %vm287_vm12 = vcmp.eq.s32.totalorder %v15357_v6, 0  ;;  %s15247_s1 = smov 88   ;;  %s15248_s18 = smov 120   ;;  %vm5959_vm13 = vcmask 195584  }
  0x4d   :  { %v15346_v2 = vsub.s32 0, %v15343_v1  ;;  %v15349_v3 = vsub.s32 2, %v15343_v1  ;;  %v15352_v4 = vsub.s32 1, %v15343_v1  ;;  %v15355_v5 = vsub.s32 3, %v15343_v1  ;;  %14686 = vmatprep.subr.bf16.mxu0 %v14685_v15  ;;  %14769 = vmatprep.subr.bf16.mxu1 %v14689_v22  ;;  %s15249_s19 = smov 56   ;;  %s15250_s20 = smov 80  }
  0x4e   :  { %v15368_v11 = vsub.s32 4, %v15343_v1  ;;  %v15371_v12 = vsub.s32 5, %v15343_v1  ;;  %v15378_v18 = vsub.s32 6, %v15343_v1  ;;  %v15381_v19 = vsub.s32 7, %v15343_v1  ;;  %14688 = vmatpush3.bf16.msra.mxu0 %v14685_v15  ;;  %14771 = vmatpush3.bf16.msra.mxu1 %v14689_v22  ;;  %s15251_s21 = smov 112   ;;  %s15252_s22 = smov 48  }
  0x4f   :  { %18335 = vst [vmem:[#allocation15_spill] sm:$0xff] %v15346_v2  ;;  %18336 = vst [vmem:[#allocation16_spill] sm:$0xff] %v15349_v3  ;;  %v77_v7 = vrot.slane %v15357_v6, %v15346_v2  ;;  %v91_v8 = vrot.slane %v15357_v6, %v15349_v3  ;;  %v84_v9 = vrot.slane %v15357_v6, %v15352_v4  ;;  %14690 = vmatprep.subr.bf16.mxu0 %v14689_v22  ;;  %s15253_s23 = smov 72   ;;  %s15254_s24 = smov 104   ;;  %vm6511_vm14 = vcmask 523264  }
  0x50   :  { %18337 = vst [vmem:[#allocation17_spill] sm:$0xff] %v15352_v4  ;;  %18338 = vst [vmem:[#allocation18_spill] sm:$0xff] %v15355_v5  ;;  %v98_v10 = vrot.slane %v15357_v6, %v15355_v5  ;;  %v105_v16 = vrot.slane %v15357_v6, %v15368_v11  ;;  %v112_v17 = vrot.slane %v15357_v6, %v15371_v12  ;;  %14770 = vmatprep.subr.bf16.mxu1 %v14693_v45  ;;  %s15255_s25 = smov 40   ;;  %s15256_s26 = smov 16  }
  0x51   :  { %79 = vbcast.lane.b32.xlu0 %v77_v7, 256  ;;  %93 = vbcast.lane.b32.xlu1 %v91_v8, 256  ;;  %18339 = vst [vmem:[#allocation19_spill] sm:$0xff] %v15368_v11  ;;  %18340 = vst [vmem:[#allocation20_spill] sm:$0xff] %v15371_v12  ;;  %v119_v23 = vrot.slane %v15357_v6, %v15378_v18  ;;  %v126_v24 = vrot.slane %v15357_v6, %v15381_v19  ;;  %s15257_s27 = smov 24   ;;  %s15258_s9 = smov [#allocation10]  }
  0x52   :  { %18341 = vst [vmem:[#allocation21_spill] sm:$0xff] %v15378_v18  ;;  %18342 = vst [vmem:[#allocation22_spill] sm:$0xff] %v15381_v19  ;;  %14772 = vmatpush3.bf16.msra.mxu1 %v14693_v45  ;;  %v363_v0 = vrot.slane %v359_v63, %v15346_v2  ;;  %s13185_s11 = sshll.u32 %s15258_s9, 4  ;;  %s13186_s11 = int_to_ptr.vmem [resolvable:$true] %s13185_s11 }
  0x53   :  { %13899 = vmatprep.subr.mxu1 %v18253_v28  ;;  %s15206_s12 = scalar_lea.vmem %s13186_s11, 1024  ;;  %p15211_p5 = scmp.lt.s32.totalorder %s13186_s11, %s13186_s11 }
  0x54   :  { %p15207_p4 = scmp.ne.s32.totalorder %s13186_s11, %s15206_s12  ;;  %p15212_p6 = scmp.lt.s32.totalorder %s15206_s12, %s15206_s12 }
  0x55   :  { %86 = vbcast.lane.b32.xlu0 %v84_v9, 256  ;;  %100 = vbcast.lane.b32.xlu1 %v98_v10, 256 }
  0x56   :  { %p15213_p7 = por %p15212_p6, %p15211_p5 }
  0x58   :  { %p15214_p8 = pnand %p15213_p7, %p15207_p4 }
  0x59   :  { %107 = vbcast.lane.b32.xlu0 %v105_v16, 256  ;;  %114 = vbcast.lane.b32.xlu1 %v112_v17, 256 }
  0x5d   :  { %121 = vbcast.lane.b32.xlu0 %v119_v23, 256  ;;  %128 = vbcast.lane.b32.xlu1 %v126_v24, 256 }
  0xc3   :  { %v80_v26 = vpop.permute.xlu0 %79  ;;  %v94_v27 = vpop.permute.xlu1 %93 }
  0xc4   :  { %vm130_vm1 = vcmp.eq.s32.totalorder %v73_v25, %v80_v26  ;;  %vm132_vm2 = vcmp.eq.s32.totalorder %v73_v25, %v94_v27 }
  0xc5   :  { %v13203_v29 = vsel %vm130_vm1, 1.0, %v18253_v28  ;;  %v13205_v32 = vsel %vm132_vm2, 1.0, %v18253_v28 }
  0xc6   :  { %13857 = vmatprep.mubr.msk.f32.mxu0 %vm157_vm0, %v13203_v29 }
  0xc7   :  { %v87_v30 = vpop.permute.xlu0 %86  ;;  %v101_v31 = vpop.permute.xlu1 %100 }
  0xc8   :  { %vm131_vm3 = vcmp.eq.s32.totalorder %v73_v25, %v87_v30  ;;  %vm133_vm4 = vcmp.eq.s32.totalorder %v73_v25, %v101_v31 }
  0xc9   :  { %v13204_v33 = vsel %vm131_vm3, 1.0, %v18253_v28  ;;  %v13206_v34 = vsel %vm133_vm4, 1.0, %v18253_v28 }
  0xca   :  { %13858 = vmatmul.mubr.msk.f32.vlgmr.msra.gmra.mrb[0].mxu0 %vm157_vm0, %v13204_v33 }
  0xcb   :  { %13860 = vmatprep.mubr.msk.f32.mxu0 %vm157_vm0, %v13205_v32  ;;  %v108_v35 = vpop.permute.xlu0 %107  ;;  %v115_v36 = vpop.permute.xlu1 %114  ;;  %14692 = vmatpush3.bf16.msra.mxu0 %v14689_v22 }
  0xcc   :  { %vm134_vm5 = vcmp.eq.s32.totalorder %v73_v25, %v108_v35  ;;  %vm135_vm6 = vcmp.eq.s32.totalorder %v73_v25, %v115_v36  ;;  %14694 = vmatprep.subr.bf16.mxu0 %v14693_v45  ;;  %v15245_v36 = vmov 1966171168  }
  0xcd   :  { %v13207_v37 = vsel %vm134_vm5, 1.0, %v18253_v28  ;;  %v13208_v38 = vsel %vm135_vm6, 1.0, %v18253_v28 }
  0xce   :  { %13861 = vmatmul.mubr.msk.f32.gmra.mrb[2].mxu0 %vm157_vm0, %v13206_v34 }
  0xcf   :  { %13863 = vmatprep.mubr.msk.f32.mxu0 %vm157_vm0, %v13207_v37  ;;  %v122_v39 = vpop.permute.xlu0 %121  ;;  %v129_v40 = vpop.permute.xlu1 %128  ;;  %14696 = vmatpush3.bf16.msra.mxu0 %v14693_v45  ;;  %v292_v37 = vunpack.c.l.s4 %v15245_v36 }
  0xd0   :  { %vm136_vm7 = vcmp.eq.s32.totalorder %v73_v25, %v122_v39  ;;  %vm137_vm8 = vcmp.eq.s32.totalorder %v73_v25, %v129_v40  ;;  %13889 = vmatprep.subr.mxu0 %v18253_v28  ;;  %v288_v40 = vsel %vm287_vm12, -1e+09, %v18253_v28 }
  0xd1   :  { %v13209_v41 = vsel %vm136_vm7, 1.0, %v18253_v28  ;;  %v13210_v42 = vsel %vm137_vm8, 1.0, %v18253_v28  ;;  %v290_v44 = vcombine.high %v288_v40, %v288_v40 }
  0xd2   :  { %13864 = vmatmul.mubr.msk.f32.gmra.mrb[4].mxu0 %vm157_vm0, %v13208_v38  ;;  %v293_v38 = vunpack.c.0.s8 %v292_v37 }
  0xd3   :  { %13866 = vmatprep.mubr.msk.f32.mxu0 %vm157_vm0, %v13209_v41 }
  0xd4   :  { %v296_v39 = vsub.s32 %v293_v38, %v15343_v1 }
  0xd6   :  { %13867 = vmatmul.mubr.msk.f32.gmra.mrb[6].mxu0 %vm157_vm0, %v13210_v42  ;;  %v297_v41 = vrot.slane %v288_v40, %v296_v39 }
  0xd8   :  { %v305_v42 = vcombine.high %v297_v41, %v297_v41  ;;  %v313_v43 = vrot.slane %v297_v41, %v296_v39 }
  0xda   :  { %v327_v45 = vrot.slane %v305_v42, %v296_v39 }
  0xdc   :  { %v337_v63 = vcombine.high %v327_v45, %v327_v45 }
 0x19d   :  { %v13859_v47 = vpop.f32.mrb[0].mxu0 }
 0x19e   :  { %v248_v48 = vpop.f32.mrb[1].mxu0  ;;  %v15407_v50 = vadd.f32 %v13859_v47, %v156_v46  ;;  %v335_v47 = vcombine.high %v313_v43, %v313_v43 }
 0x19f   :  { %v15405_v49 = vadd.f32 %v248_v48, %v156_v46  ;;  %v304_v48 = vrot.slane %v290_v44, %v296_v39 }
 0x1a1   :  { %v13862_v51 = vpop.f32.mrb[2].mxu0  ;;  %13877 = vmatprep.mubr.msk.f32.mxu0 %vm364_vm9, %v15405_v49  ;;  %v306_v6 = vcombine.high %v304_v48, %v304_v48 }
 0x1a2   :  { %v258_v52 = vpop.f32.mrb[3].mxu0  ;;  %13878 = vmatmul.mubr.msk.f32.vlgmr.msra.gmra.mrb[8].mxu0 %vm364_vm9, %v15407_v50  ;;  %v15415_v54 = vadd.f32 %v13862_v51, %v156_v46 }
 0x1a3   :  { %v15413_v53 = vadd.f32 %v258_v52, %v156_v46  ;;  %13891 = vmatprep.mubr.msk.f32.mxu0 %vm15243_vm10, %v18253_v28 }
 0x1a5   :  { %v13865_v55 = vpop.f32.mrb[4].mxu0  ;;  %13880 = vmatprep.mubr.msk.f32.mxu1 %vm364_vm9, %v15413_v53 }
 0x1a6   :  { %v268_v56 = vpop.f32.mrb[5].mxu0  ;;  %13881 = vmatmul.mubr.msk.f32.vlgmr.msra.gmra.mrb[0].mxu1 %vm364_vm9, %v15415_v54  ;;  %v15423_v58 = vadd.f32 %v13865_v55, %v156_v46 }
 0x1a7   :  { %v15421_v57 = vadd.f32 %v268_v56, %v156_v46  ;;  %v15529_v56 = vrot.slane %v327_v45, %v15346_v2 }
 0x1a8   :  { %18344 = vst [vmem:[#allocation24_spill] sm:$0xff] %v15423_v58 }
 0x1a9   :  { %18343 = vst [vmem:[#allocation23_spill] sm:$0xff] %v15421_v57  ;;  %v13868_v59 = vpop.f32.mrb[6].mxu0  ;;  %13883 = vmatprep.mubr.msk.f32.mxu1 %vm364_vm9, %v15421_v57  ;;  %18348 = vst [vmem:[#allocation28_spill] sm:$0xff] %v15529_v56 }
 0x1aa   :  { %v15427_v60 = vadd.f32 %v13868_v59, %v156_v46  ;;  %v278_v61 = vpop.f32.mrb[7].mxu0  ;;  %13884 = vmatmul.mubr.msk.f32.gmra.mrb[2].mxu1 %vm364_vm9, %v15423_v58  ;;  %v15535_v59 = vrot.slane %v335_v47, %v15346_v2 }
 0x1ab   :  { %v15431_v62 = vadd.f32 %v278_v61, %v156_v46  ;;  %v15526_v46 = vrot.slane %v313_v43, %v15346_v2  ;;  %v320_v61 = vrot.slane %v304_v48, %v296_v39 }
 0x1ac   :  { %18345 = vst [vmem:[#allocation25_spill] sm:$0xff] %v15427_v60 }
 0x1ad   :  { %18346 = vst [vmem:[#allocation26_spill] sm:$0xff] %v15431_v62  ;;  %13886 = vmatprep.mubr.msk.f32.mxu1 %vm364_vm9, %v15431_v62  ;;  %18347 = vst [vmem:[#allocation27_spill] sm:$0xff] %v15526_v46 }
 0x1ae   :  { %13887 = vmatmul.mubr.msk.f32.gmra.mrb[4].mxu1 %vm364_vm9, %v15427_v60 }
 0x1af   :  { %13901 = vmatprep.mubr.msk.f32.mxu1 %vm15243_vm10, %v18253_v28 }
 0x275   :  { %v13879_v7 = vpop.f32.mrb[8].mxu0 }
 0x276   :  { %v15442_v8 = vadd.f32 %v13879_v7, %v363_v0  ;;  %v455_v9 = vpop.f32.mrb[9].mxu0 }
 0x277   :  { %v15444_v10 = vadd.f32 %v455_v9, %v363_v0 }
 0x278   :  { %573 = vrot.lane.b32.xlu1 %v15442_v8, %s15244_s3 }
 0x279   :  { %v13882_v13 = vpop.f32.mrb[0].mxu1  ;;  %495 = vrot.lane.b32.xlu0 %v15444_v10, %s15244_s3 }
 0x27a   :  { %v15450_v14 = vadd.f32 %v13882_v13, %v363_v0  ;;  %v465_v15 = vpop.f32.mrb[1].mxu1 }
 0x27b   :  { %v15452_v16 = vadd.f32 %v465_v15, %v363_v0 }
 0x27c   :  { %727 = vrot.lane.b32.xlu1 %v15450_v14, %s15244_s3 }
 0x27d   :  { %v13885_v17 = vpop.f32.mrb[2].mxu1  ;;  %650 = vrot.lane.b32.xlu0 %v15452_v16, %s15244_s3 }
 0x27e   :  { %v15458_v20 = vadd.f32 %v13885_v17, %v363_v0  ;;  %v475_v21 = vpop.f32.mrb[3].mxu1 }
 0x27f   :  { %v15460_v22 = vadd.f32 %v475_v21, %v363_v0 }
 0x280   :  { %881 = vrot.lane.b32.xlu1 %v15458_v20, %s15244_s3 }
 0x281   :  { %804 = vrot.lane.b32.xlu0 %v15460_v22, %s15244_s3  ;;  %v13888_v23 = vpop.f32.mrb[4].mxu1 }
 0x282   :  { %v15466_v24 = vadd.f32 %v13888_v23, %v363_v0  ;;  %v485_v25 = vpop.f32.mrb[5].mxu1  ;;  %v334_v23 = vrot.slane %v306_v6, %v296_v39 }
 0x283   :  { %v15468_v26 = vadd.f32 %v485_v25, %v363_v0 }
 0x284   :  { %1035 = vrot.lane.b32.xlu1 %v15466_v24, %s15244_s3  ;;  %v15556_v39 = vrot.slane %v334_v23, %v15346_v2  ;;  %v338_v42 = vcombine.high %v334_v23, %v334_v23 }
 0x285   :  { %958 = vrot.lane.b32.xlu0 %v15468_v26, %s15244_s3 }
 0x286   :  { %v15564_v6 = vrot.slane %v338_v42, %v15346_v2 }
 0x2ea   :  { %v574_v27 = vpop.permute.xlu1 %573 }
 0x2eb   :  { %v496_v29 = vpop.permute.xlu0 %495 }
 0x2ec   :  { %13890 = vmatpush3.xpose.msk.msra.mxu0 %vm497_vm11, %v496_v29  ;;  %v15546_v29 = vrot.slane %v320_v61, %v15346_v2 }
 0x2ed   :  { %13894 = vmatprep.subr.mxu0 %v18253_v28 }
 0x2ee   :  { %v728_v30 = vpop.permute.xlu1 %727 }
 0x2ef   :  { %13892 = vmatmul.mubr.msk.f32.vlgmr.msra.gmra.mrb[10].mxu0 %vm497_vm11, %v15444_v10  ;;  %v651_v31 = vpop.permute.xlu0 %650 }
 0x2f0   :  { %13895 = vmatpush3.xpose.msk.msra.mxu0 %vm497_vm11, %v574_v27  ;;  %13900 = vmatpush3.xpose.msk.msra.mxu1 %vm497_vm11, %v651_v31 }
 0x2f1   :  { %13896 = vmatprep.mubr.msk.f32.mxu0 %vm15243_vm10, %v18253_v28  ;;  %13904 = vmatprep.subr.mxu0 %v18253_v28 }
 0x2f2   :  { %13909 = vmatprep.subr.mxu1 %v18253_v28  ;;  %v882_v33 = vpop.permute.xlu1 %881 }
 0x2f3   :  { %13897 = vmatmul.mubr.msk.f32.vlgmr.msra.gmra.mrb[12].mxu0 %vm497_vm11, %v15442_v8  ;;  %v805_v32 = vpop.permute.xlu0 %804  ;;  %13902 = vmatmul.mubr.msk.f32.vlgmr.msra.gmra.mrb[6].mxu1 %vm497_vm11, %v15452_v16 }
 0x2f4   :  { %13905 = vmatpush3.xpose.msk.msra.mxu0 %vm497_vm11, %v728_v30  ;;  %13910 = vmatpush3.xpose.msk.msra.mxu1 %vm497_vm11, %v805_v32  ;;  %v15549_v30 = vrot.slane %v337_v63, %v15346_v2 }
 0x2f5   :  { %13906 = vmatprep.mubr.msk.f32.mxu0 %vm15243_vm10, %v18253_v28  ;;  %13911 = vmatprep.mubr.msk.f32.mxu1 %vm15243_vm10, %v18253_v28 }
 0x2f6   :  { %13914 = vmatprep.subr.mxu0 %v18253_v28  ;;  %13919 = vmatprep.subr.mxu1 %v18253_v28  ;;  %v1036_v35 = vpop.permute.xlu1 %1035 }
 0x2f7   :  { %13907 = vmatmul.mubr.msk.f32.vlgmr.msra.gmra.mrb[14].mxu0 %vm497_vm11, %v15450_v14  ;;  %13912 = vmatmul.mubr.msk.f32.vlgmr.msra.gmra.mrb[8].mxu1 %vm497_vm11, %v15460_v22  ;;  %v959_v34 = vpop.permute.xlu0 %958 }
 0x2f8   :  { %13915 = vmatpush3.xpose.msk.msra.mxu0 %vm497_vm11, %v882_v33  ;;  %13920 = vmatpush3.xpose.msk.msra.mxu1 %vm497_vm11, %v959_v34 }
 0x2f9   :  { %13916 = vmatprep.mubr.msk.f32.mxu0 %vm15243_vm10, %v18253_v28  ;;  %13921 = vmatprep.mubr.msk.f32.mxu1 %vm15243_vm10, %v18253_v28 }
 0x2fa   :  { %13924 = vmatprep.subr.mxu0 %v18253_v28  ;;  %13929 = vmatprep.subr.mxu1 %v18253_v28 }
 0x2fb   :  { %13917 = vmatmul.mubr.msk.f32.vlgmr.msra.gmra.mrb[16].mxu0 %vm497_vm11, %v15458_v20  ;;  %13922 = vmatmul.mubr.msk.f32.vlgmr.msra.gmra.mrb[10].mxu1 %vm497_vm11, %v15468_v26 }
 0x2fc   :  { %13925 = vmatpush3.xpose.msk.msra.mxu0 %vm497_vm11, %v1036_v35  ;;  %13926 = vmatprep.mubr.msk.f32.mxu0 %vm15243_vm10, %v18253_v28 }
 0x2fd   :  { %13934 = vmatprep.subr.mxu0 %v18253_v28  ;;  %13931 = vmatprep.mubr.msk.f32.mxu1 %vm15243_vm10, %v18253_v28 }
 0x2ff   :  { %13927 = vmatmul.mubr.msk.f32.vlgmr.msra.gmra.mrb[18].mxu0 %vm497_vm11, %v15466_v24 }
 0x300   :  { %13936 = vmatprep.mubr.msk.f32.mxu0 %vm15243_vm10, %v18253_v28 }
 0x3c2   :  { %v568_v51 = vpop.f32.mrb[10].mxu0 }
 0x3c3   :  { %v1111_v52 = vmul.f32 0.35355338, %v568_v51  ;;  %v13893_v55 = vpop.f32.mrb[11].mxu0 }
 0x3c5   :  { %v15532_v1 = vadd.f32 %v15526_v46, %v1111_v52 }
 0x3c6   :  { %v645_v0 = vpop.f32.mrb[12].mxu0  ;;  %v722_v7 = vpop.f32.mrb[6].mxu1 }
 0x3c7   :  { %v1112_v9 = vmul.f32 0.35355338, %v645_v0  ;;  %v1113_v13 = vmul.f32 0.35355338, %v722_v7  ;;  %v13898_v15 = vpop.f32.mrb[13].mxu0  ;;  %v13903_v17 = vpop.f32.mrb[7].mxu1 }
 0x3c8   :  { %v1167_v21 = vsel %vm497_vm11, %v15532_v1, -inf  ;;  %v336_v17 = vcombine.high %v320_v61, %v320_v61 }
 0x3c9   :  { %1168 = vmax.xlane.f32.xlu0 %v1167_v21  ;;  %v15540_v25 = vadd.f32 %v15529_v56, %v1112_v9  ;;  %v15543_v27 = vadd.f32 %v15535_v59, %v1113_v13 }
 0x3ca   :  { %v799_v31 = vpop.f32.mrb[14].mxu0  ;;  %v876_v32 = vpop.f32.mrb[8].mxu1  ;;  %v15580_v23 = vrot.slane %v336_v17, %v15346_v2 }
 0x3cb   :  { %v1114_v33 = vmul.f32 0.35355338, %v799_v31  ;;  %v1115_v34 = vmul.f32 0.35355338, %v876_v32  ;;  %v13908_v35 = vpop.f32.mrb[15].mxu0  ;;  %v13913_v36 = vpop.f32.mrb[9].mxu1 }
 0x3cc   :  { %v1170_v37 = vsel %vm497_vm11, %v15540_v25, -inf  ;;  %v1173_v38 = vsel %vm497_vm11, %v15543_v27, -inf }
 0x3cd   :  { %1171 = vmax.xlane.f32.xlu1 %v1170_v37  ;;  %1174 = vmax.xlane.f32.xlu0 %v1173_v38  ;;  %v1163_v40 = vadd.f32 %v15546_v29, %v1115_v34  ;;  %v1162_v41 = vadd.f32 %v15549_v30, %v1114_v33 }
 0x3ce   :  { %v953_v43 = vpop.f32.mrb[16].mxu0  ;;  %v1030_v44 = vpop.f32.mrb[10].mxu1 }
 0x3cf   :  { %v1116_v45 = vmul.f32 0.35355338, %v953_v43  ;;  %v13918_v47 = vpop.f32.mrb[17].mxu0  ;;  %v13923_v48 = vpop.f32.mrb[11].mxu1  ;;  %v1179_v51 = vsel %vm497_vm11, %v1163_v40, -inf  ;;  %v1176_v52 = vsel %vm497_vm11, %v1162_v41, -inf }
 0x3d0   :  { %v1117_v21 = vmul.f32 0.35355338, %v1030_v44 }
 0x3d1   :  { %1180 = vmax.xlane.f32.xlu1 %v1179_v51  ;;  %1177 = vmax.xlane.f32.xlu0 %v1176_v52  ;;  %v1164_v55 = vadd.f32 %v15556_v39, %v1116_v45 }
 0x3d2   :  { %v1107_v63 = vpop.f32.mrb[18].mxu0  ;;  %v15585_v31 = vadd.f32 %v15580_v23, %v1117_v21 }
 0x3d3   :  { %v1118_v0 = vmul.f32 0.35355338, %v1107_v63  ;;  %v13928_v7 = vpop.f32.mrb[19].mxu0  ;;  %v1182_v9 = vsel %vm497_vm11, %v1164_v55, -inf }
 0x3d4   :  { %v1185_v61 = vsel %vm497_vm11, %v15585_v31, -inf }
 0x3d5   :  { %1183 = vmax.xlane.f32.xlu0 %v1182_v9  ;;  %v1166_v13 = vadd.f32 %v15564_v6, %v1118_v0 }
 0x3d7   :  { %v1188_v15 = vsel %vm497_vm11, %v1166_v13, -inf }
 0x3d9   :  { %1189 = vmax.xlane.f32.xlu0 %v1188_v15 }
 0x3e2   :  { %1255 = vrot.lane.b32.xlu1 %v15444_v10, %s15246_s17 }
 0x3ef   :  { %1331 = vrot.lane.b32.xlu0 %v15442_v8, %s15246_s17 }
 0x3f3   :  { %1559 = vrot.lane.b32.xlu0 %v15460_v22, %s15246_s17 }
 0x3f7   :  { %1711 = vrot.lane.b32.xlu0 %v15468_v26, %s15246_s17 }
 0x3fb   :  { %1865 = vrot.lane.b32.xlu0 %v15444_v10, %s15247_s1 }
 0x3ff   :  { %1863 = vrot.lane.b32.xlu0 %v15444_v10, %s15248_s18 }
 0x403   :  { %2021 = vrot.lane.b32.xlu0 %v15452_v16, %s15247_s1 }
 0x406   :  { %1186 = vmax.xlane.f32.xlu1 %v1185_v61 }
 0x417   :  { %1407 = vrot.lane.b32.xlu1 %v15452_v16, %s15246_s17 }
 0x41b   :  { %1483 = vrot.lane.b32.xlu1 %v15450_v14, %s15246_s17 }
 0x41f   :  { %1635 = vrot.lane.b32.xlu1 %v15458_v20, %s15246_s17 }
 0x423   :  { %1787 = vrot.lane.b32.xlu1 %v15466_v24, %s15246_s17 }
 0x427   :  { %1943 = vrot.lane.b32.xlu1 %v15442_v8, %s15247_s1 }
 0x42b   :  { %1941 = vrot.lane.b32.xlu1 %v15442_v8, %s15248_s18 }
 0x42f   :  { %2099 = vrot.lane.b32.xlu1 %v15450_v14, %s15247_s1 }
 0x456   :  { %v1169_v32 = vpop.xlane.xlu0 %1168 }
 0x457   :  { %v1191_v33 = vsub.f32 %v15532_v1, %v1169_v32 }
 0x459   :  { %v1199_v34 = vmul.f32 1.442695, %v1191_v33 }
 0x45a   :  { %v1172_v35 = vpop.xlane.xlu1 %1171  ;;  %v1175_v36 = vpop.xlane.xlu0 %1174 }
 0x45b   :  { %14796 = vpow2.f32 %v1199_v34  ;;  %v1192_v37 = vsub.f32 %v15540_v25, %v1172_v35  ;;  %v1193_v38 = vsub.f32 %v15543_v27, %v1175_v36 }
 0x45d   :  { %v1201_v42 = vmul.f32 1.442695, %v1192_v37  ;;  %v1203_v43 = vmul.f32 1.442695, %v1193_v38 }
 0x45e   :  { %v1181_v44 = vpop.xlane.xlu1 %1180  ;;  %v1178_v45 = vpop.xlane.xlu0 %1177 }
 0x45f   :  { %14798 = vpow2.f32 %v1201_v42  ;;  %v1195_v47 = vsub.f32 %v1163_v40, %v1181_v44  ;;  %v1194_v48 = vsub.f32 %v1162_v41, %v1178_v45 }
 0x460   :  { %14800 = vpow2.f32 %v1203_v43 }
 0x461   :  { %v1207_v51 = vmul.f32 1.442695, %v1195_v47  ;;  %v1205_v52 = vmul.f32 1.442695, %v1194_v48 }
 0x462   :  { %v1256_v63 = vpop.permute.xlu1 %1255  ;;  %v1184_v1 = vpop.xlane.xlu0 %1183 }
 0x463   :  { %14802 = vpow2.f32 %v1207_v51  ;;  %v1196_v0 = vsub.f32 %v1164_v55, %v1184_v1  ;;  %13930 = vmatpush3.msra.mxu1 %v1256_v63 }
 0x464   :  { %14804 = vpow2.f32 %v1205_v52  ;;  %13939 = vmatprep.subr.mxu1 %v18253_v28 }
 0x465   :  { %v15609_v25 = vpop.eup %14796  ;;  %v1209_v27 = vmul.f32 1.442695, %v1196_v0 }
 0x466   :  { %v1190_v7 = vpop.xlane.xlu0 %1189  ;;  %v1215_v9 = vsel %vm497_vm11, %v15609_v25, 0.0 }
 0x467   :  { %14806 = vpow2.f32 %v1209_v27  ;;  %v1198_v40 = vsub.f32 %v1166_v13, %v1190_v7  ;;  %1216 = vadd.xlane.f32.xlu1 %v1215_v9 }
 0x469   :  { %v15613_v41 = vpop.eup %14798  ;;  %v1213_v15 = vmul.f32 1.442695, %v1198_v40 }
 0x46a   :  { %v15615_v17 = vpop.eup %14800  ;;  %v1332_v55 = vpop.permute.xlu0 %1331  ;;  %v1218_v21 = vsel %vm497_vm11, %v15613_v41, 0.0 }
 0x46b   :  { %14808 = vpow2.f32 %v1213_v15  ;;  %1219 = vadd.xlane.f32.xlu0 %v1218_v21  ;;  %v1221_v61 = vsel %vm497_vm11, %v15615_v17, 0.0  ;;  %13935 = vmatpush3.msra.mxu0 %v1332_v55 }
 0x46c   :  { %1222 = vadd.xlane.f32.xlu1 %v1221_v61  ;;  %13944 = vmatprep.subr.mxu0 %v18253_v28 }
 0x46d   :  { %v15622_v13 = vpop.eup %14802 }
 0x46e   :  { %v15624_v32 = vpop.eup %14804  ;;  %v1227_v33 = vsel %vm497_vm11, %v15622_v13, 0.0  ;;  %v1560_v52 = vpop.permute.xlu0 %1559 }
 0x46f   :  { %v1224_v34 = vsel %vm497_vm11, %v15624_v32, 0.0 }
 0x470   :  { %1228 = vadd.xlane.f32.xlu1 %v1227_v33  ;;  %1225 = vadd.xlane.f32.xlu0 %v1224_v34 }
 0x471   :  { %v15630_v35 = vpop.eup %14806 }
 0x472   :  { %v1230_v36 = vsel %vm497_vm11, %v15630_v35, 0.0  ;;  %v1712_v1 = vpop.permute.xlu0 %1711 }
 0x474   :  { %1231 = vadd.xlane.f32.xlu0 %v1230_v36 }
 0x475   :  { %v15634_v37 = vpop.eup %14808 }
 0x476   :  { %v1236_v38 = vsel %vm497_vm11, %v15634_v37, 0.0  ;;  %v15663_v27 = vpop.permute.xlu0 %1865 }
 0x478   :  { %1237 = vadd.xlane.f32.xlu0 %v1236_v38 }
 0x47a   :  { %v15665_v9 = vpop.permute.xlu0 %1863 }
 0x47e   :  { %v15667_v15 = vpop.permute.xlu0 %2021 }
 0x48e   :  { %2019 = vrot.lane.b32.xlu0 %v15452_v16, %s15248_s18 }
 0x492   :  { %2177 = vrot.lane.b32.xlu0 %v15460_v22, %s15247_s1 }
 0x493   :  { %v1187_v42 = vpop.xlane.xlu1 %1186 }
 0x494   :  { %v1197_v43 = vsub.f32 %v15585_v31, %v1187_v42 }
 0x496   :  { %v1211_v44 = vmul.f32 1.442695, %v1197_v43  ;;  %2175 = vrot.lane.b32.xlu0 %v15460_v22, %s15248_s18 }
 0x497   :  { %v1408_v31 = vpop.permute.xlu1 %1407 }
 0x498   :  { %14810 = vpow2.f32 %v1211_v44 }
 0x49a   :  { %2333 = vrot.lane.b32.xlu0 %v15468_v26, %s15247_s1 }
 0x49b   :  { %v1484_v48 = vpop.permute.xlu1 %1483 }
 0x49e   :  { %2331 = vrot.lane.b32.xlu0 %v15468_v26, %s15248_s18 }
 0x49f   :  { %v1636_v51 = vpop.permute.xlu1 %1635 }
 0x4a2   :  { %v15649_v45 = vpop.eup %14810 }
 0x4a3   :  { %v1233_v47 = vsel %vm497_vm11, %v15649_v45, 0.0  ;;  %v1788_v63 = vpop.permute.xlu1 %1787 }
 0x4a4   :  { %1234 = vadd.xlane.f32.xlu1 %v1233_v47 }
 0x4a7   :  { %v1944_v0 = vpop.permute.xlu1 %1943 }
 0x4ab   :  { %v1942_v7 = vpop.permute.xlu1 %1941 }
 0x4af   :  { %v2100_v40 = vpop.permute.xlu1 %2099 }
 0x4b5   :  { %2097 = vrot.lane.b32.xlu1 %v15450_v14, %s15248_s18 }
 0x4b9   :  { %2255 = vrot.lane.b32.xlu1 %v15458_v20, %s15247_s1 }
 0x4bd   :  { %2253 = vrot.lane.b32.xlu1 %v15458_v20, %s15248_s18 }
 0x4c1   :  { %2411 = vrot.lane.b32.xlu1 %v15466_v24, %s15247_s1 }
 0x4c5   :  { %2409 = vrot.lane.b32.xlu1 %v15466_v24, %s15248_s18 }
 0x4f4   :  { %v1217_v55 = vpop.xlane.xlu1 %1216 }
 0x4f5   :  { %14812 = vrcp.f32 %v1217_v55 }
 0x4f8   :  { %v1220_v21 = vpop.xlane.xlu0 %1219 }
 0x4f9   :  { %v1223_v61 = vpop.xlane.xlu1 %1222  ;;  %14814 = vrcp.f32 %v1220_v21 }
 0x4fa   :  { %14816 = vrcp.f32 %v1223_v61 }
 0x4fd   :  { %v1229_v33 = vpop.xlane.xlu1 %1228  ;;  %v1226_v34 = vpop.xlane.xlu0 %1225 }
 0x4fe   :  { %14818 = vrcp.f32 %v1229_v33 }
 0x4ff   :  { %v14813_v36 = vpop.eup %14812  ;;  %14820 = vrcp.f32 %v1226_v34 }
 0x500   :  { %v15670_v38 = vmul.f32 %v14813_v36, %v15609_v25 }
 0x501   :  { %v1232_v42 = vpop.xlane.xlu0 %1231 }
 0x502   :  { %18349 = vst [vmem:[#allocation29_spill] sm:$0xff] %v15670_v38  ;;  %14822 = vrcp.f32 %v1232_v42  ;;  %13932 = vmatmul.mubr.msk.f32.vlgmr.msra.gmra.mrb[12].mxu1 %vm497_vm11, %v15670_v38 }
 0x503   :  { %v14815_v43 = vpop.eup %14814  ;;  %13940 = vmatpush3.msra.mxu1 %v1408_v31  ;;  %13941 = vmatprep.mubr.msk.f32.mxu1 %vm15243_vm10, %v18253_v28 }
 0x504   :  { %v14817_v44 = vpop.eup %14816  ;;  %13949 = vmatprep.subr.mxu1 %v18253_v28  ;;  %v15678_v47 = vmul.f32 %v14815_v43, %v15613_v41 }
 0x505   :  { %v1238_v55 = vpop.xlane.xlu0 %1237  ;;  %v15681_v25 = vmul.f32 %v14817_v44, %v15615_v17 }
 0x506   :  { %18350 = vst [vmem:[#allocation30_spill] sm:$0xff] %v15678_v47  ;;  %14824 = vrcp.f32 %v1238_v55  ;;  %13937 = vmatmul.mubr.msk.f32.vlgmr.msra.gmra.mrb[20].mxu0 %vm497_vm11, %v15678_v47 }
 0x507   :  { %18351 = vst [vmem:[#allocation31_spill] sm:$0xff] %v15681_v25  ;;  %13942 = vmatmul.mubr.msk.f32.vlgmr.msra.gmra.mrb[14].mxu1 %vm497_vm11, %v15681_v25  ;;  %13945 = vmatpush3.msra.mxu0 %v1484_v48 }
 0x508   :  { %v14819_v31 = vpop.eup %14818  ;;  %13950 = vmatpush3.msra.mxu1 %v1560_v52  ;;  %13946 = vmatprep.mubr.msk.f32.mxu0 %vm15243_vm10, %v18253_v28 }
 0x509   :  { %v14821_v21 = vpop.eup %14820  ;;  %13951 = vmatprep.mubr.msk.f32.mxu1 %vm15243_vm10, %v18253_v28  ;;  %13954 = vmatprep.subr.mxu0 %v18253_v28  ;;  %v15693_v41 = vmul.f32 %v14819_v31, %v15622_v13  ;;  %v2020_v52 = vpop.permute.xlu0 %2019 }
 0x50a   :  { %13959 = vmatprep.subr.mxu1 %v18253_v28  ;;  %v15697_v17 = vmul.f32 %v14821_v21, %v15624_v32 }
 0x50b   :  { %18352 = vst [vmem:[#allocation32_spill] sm:$0xff] %v15693_v41  ;;  %13952 = vmatmul.mubr.msk.f32.vlgmr.msra.gmra.mrb[16].mxu1 %vm497_vm11, %v15693_v41 }
 0x50c   :  { %18353 = vst [vmem:[#allocation33_spill] sm:$0xff] %v15697_v17  ;;  %v14823_v48 = vpop.eup %14822  ;;  %13947 = vmatmul.mubr.msk.f32.vlgmr.msra.gmra.mrb[22].mxu0 %vm497_vm11, %v15697_v17  ;;  %13960 = vmatpush3.msra.mxu1 %v1712_v1 }
 0x50d   :  { %13955 = vmatpush3.msra.mxu0 %v1636_v51  ;;  %13956 = vmatprep.mubr.msk.f32.mxu0 %vm15243_vm10, %v18253_v28  ;;  %v15706_v13 = vmul.f32 %v14823_v48, %v15630_v35 }
 0x50e   :  { %13964 = vmatprep.subr.mxu0 %v18253_v28  ;;  %13961 = vmatprep.mubr.msk.f32.mxu1 %vm15243_vm10, %v18253_v28 }
 0x50f   :  { %18354 = vst [vmem:[#allocation34_spill] sm:$0xff] %v15706_v13  ;;  %13969 = vmatprep.subr.mxu1 %v18253_v28 }
 0x510   :  { %v14825_v32 = vpop.eup %14824  ;;  %13957 = vmatmul.mubr.msk.f32.vlgmr.msra.gmra.mrb[24].mxu0 %vm497_vm11, %v15706_v13 }
 0x511   :  { %13965 = vmatpush3.msra.mxu0 %v1788_v63  ;;  %13966 = vmatprep.mubr.msk.f32.mxu0 %vm15243_vm10, %v18253_v28  ;;  %v15717_v51 = vmul.f32 %v14825_v32, %v15634_v37 }
 0x512   :  { %13974 = vmatprep.subr.mxu0 %v18253_v28 }
 0x513   :  { %18355 = vst [vmem:[#allocation35_spill] sm:$0xff] %v15717_v51 }
 0x514   :  { %13967 = vmatmul.mubr.msk.f32.vlgmr.msra.gmra.mrb[26].mxu0 %vm497_vm11, %v15717_v51 }
 0x515   :  { %13976 = vmatprep.mubr.msk.f32.mxu0 %vm15243_vm10, %v18253_v28 }
 0x518   :  { %13975 = vmatpush3.xpose.msk.msra.mxu0 %vm497_vm11, %v1944_v0  ;;  %v2178_v0 = vpop.permute.xlu0 %2177 }
 0x519   :  { %13984 = vmatprep.subr.mxu0 %v18253_v28 }
 0x51b   :  { %13977 = vmatmul.mubr.msk.f32.vlgmr.msra.gmra.mrb[28].mxu0 %vm497_vm11, %v1942_v7 }
 0x51c   :  { %13985 = vmatpush3.xpose.msk.msra.mxu0 %vm497_vm11, %v2100_v40  ;;  %13986 = vmatprep.mubr.msk.f32.mxu0 %vm15243_vm10, %v18253_v28  ;;  %v2176_v33 = vpop.permute.xlu0 %2175 }
 0x51d   :  { %13994 = vmatprep.subr.mxu0 %v18253_v28 }
 0x531   :  { %v1235_v35 = vpop.xlane.xlu1 %1234 }
 0x532   :  { %14826 = vrcp.f32 %v1235_v35 }
 0x535   :  { %v2098_v37 = vpop.permute.xlu1 %2097 }
 0x536   :  { %13987 = vmatmul.mubr.msk.f32.vlgmr.msra.gmra.mrb[30].mxu0 %vm497_vm11, %v2098_v37 }
 0x537   :  { %13996 = vmatprep.mubr.msk.f32.mxu0 %vm15243_vm10, %v18253_v28 }
 0x539   :  { %v2256_v63 = vpop.permute.xlu1 %2255 }
 0x53a   :  { %13995 = vmatpush3.xpose.msk.msra.mxu0 %vm497_vm11, %v2256_v63 }
 0x53b   :  { %14004 = vmatprep.subr.mxu0 %v18253_v28 }
 0x53c   :  { %v14827_v1 = vpop.eup %14826 }
 0x53d   :  { %v2254_v7 = vpop.permute.xlu1 %2253  ;;  %v15737_v40 = vmul.f32 %v14827_v1, %v15649_v45 }
 0x53e   :  { %13997 = vmatmul.mubr.msk.f32.vlgmr.msra.gmra.mrb[32].mxu0 %vm497_vm11, %v2254_v7 }
 0x53f   :  { %18356 = vst [vmem:[#allocation36_spill] sm:$0xff] %v15737_v40  ;;  %13962 = vmatmul.mubr.msk.f32.vlgmr.msra.gmra.mrb[18].mxu1 %vm497_vm11, %v15737_v40  ;;  %14006 = vmatprep.mubr.msk.f32.mxu0 %vm15243_vm10, %v18253_v28 }
 0x540   :  { %13970 = vmatpush3.xpose.msk.msra.mxu1 %vm497_vm11, %v15663_v27  ;;  %13971 = vmatprep.mubr.msk.f32.mxu1 %vm15243_vm10, %v18253_v28  ;;  %v2334_v27 = vpop.permute.xlu0 %2333 }
 0x541   :  { %v2412_v61 = vpop.permute.xlu1 %2411  ;;  %13979 = vmatprep.subr.mxu1 %v18253_v28 }
 0x542   :  { %14005 = vmatpush3.xpose.msk.msra.mxu0 %vm497_vm11, %v2412_v61 }
 0x543   :  { %13972 = vmatmul.mubr.msk.f32.vlgmr.msra.gmra.mrb[20].mxu1 %vm497_vm11, %v15665_v9  ;;  %14014 = vmatprep.subr.mxu0 %v18253_v28 }
 0x544   :  { %13980 = vmatpush3.xpose.msk.msra.mxu1 %vm497_vm11, %v15667_v15  ;;  %13981 = vmatprep.mubr.msk.f32.mxu1 %vm15243_vm10, %v18253_v28  ;;  %v2332_v9 = vpop.permute.xlu0 %2331 }
 0x545   :  { %v2410_v45 = vpop.permute.xlu1 %2409  ;;  %13989 = vmatprep.subr.mxu1 %v18253_v28 }
 0x546   :  { %14007 = vmatmul.mubr.msk.f32.vlgmr.msra.gmra.mrb[34].mxu0 %vm497_vm11, %v2410_v45 }
 0x547   :  { %13982 = vmatmul.mubr.msk.f32.vlgmr.msra.gmra.mrb[22].mxu1 %vm497_vm11, %v2020_v52  ;;  %14016 = vmatprep.mubr.msk.f32.mxu0 %vm15243_vm10, %v18253_v28 }
 0x548   :  { %13990 = vmatpush3.xpose.msk.msra.mxu1 %vm497_vm11, %v2178_v0  ;;  %13991 = vmatprep.mubr.msk.f32.mxu1 %vm15243_vm10, %v18253_v28 }
 0x549   :  { %13999 = vmatprep.subr.mxu1 %v18253_v28 }
 0x54b   :  { %13992 = vmatmul.mubr.msk.f32.vlgmr.msra.gmra.mrb[24].mxu1 %vm497_vm11, %v2176_v33 }
 0x54c   :  { %14000 = vmatpush3.xpose.msk.msra.mxu1 %vm497_vm11, %v2334_v27  ;;  %14001 = vmatprep.mubr.msk.f32.mxu1 %vm15243_vm10, %v18253_v28 }
 0x54d   :  { %14009 = vmatprep.subr.mxu1 %v18253_v28 }
 0x54f   :  { %14002 = vmatmul.mubr.msk.f32.vlgmr.msra.gmra.mrb[26].mxu1 %vm497_vm11, %v2332_v9 }
 0x550   :  { %14011 = vmatprep.mubr.msk.f32.mxu1 %vm15243_vm10, %v18253_v28 }
 0x5d5   :  { %v15774_v15 = vpop.f32.mrb[12].mxu1 }
 0x5d6   :  { %v13933_v34 = vpop.f32.mrb[13].mxu1 }
 0x5d9   :  { %v15776_v36 = vpop.f32.mrb[20].mxu0 }
 0x5da   :  { %v15778_v42 = vpop.f32.mrb[14].mxu1  ;;  %v13938_v43 = vpop.f32.mrb[21].mxu0 }
 0x5db   :  { %v13943_v44 = vpop.f32.mrb[15].mxu1 }
 0x5de   :  { %v15780_v55 = vpop.f32.mrb[16].mxu1 }
 0x5df   :  { %v15782_v31 = vpop.f32.mrb[22].mxu0  ;;  %v13953_v21 = vpop.f32.mrb[17].mxu1 }
 0x5e0   :  { %v13948_v48 = vpop.f32.mrb[23].mxu0 }
 0x5e3   :  { %v15784_v32 = vpop.f32.mrb[24].mxu0 }
 0x5e4   :  { %v13958_v35 = vpop.f32.mrb[25].mxu0 }
 0x5e7   :  { %v15786_v37 = vpop.f32.mrb[26].mxu0 }
 0x5e8   :  { %v13968_v52 = vpop.f32.mrb[27].mxu0 }
 0x5ee   :  { %v2015_v63 = vpop.f32.mrb[28].mxu0 }
 0x5ef   :  { %v2488_v1 = vmul.f32 0.35355338, %v2015_v63  ;;  %v13978_v0 = vpop.f32.mrb[29].mxu0 }
 0x5f1   :  { %v15789_v7 = vadd.f32 %v2488_v1, %v15529_v56 }
 0x5f3   :  { %v2506_v61 = vsel %vm497_vm11, %v15789_v7, -inf }
 0x5f4   :  { %2507 = vmax.xlane.f32.xlu1 %v2506_v61 }
 0x609   :  { %v2171_v33 = vpop.f32.mrb[30].mxu0 }
 0x60a   :  { %v13988_v45 = vpop.f32.mrb[31].mxu0  ;;  %v2490_v0 = vmul.f32 0.35355338, %v2171_v33 }
 0x611   :  { %v2327_v27 = vpop.f32.mrb[32].mxu0 }
 0x612   :  { %v15793_v9 = vpop.f32.mrb[18].mxu1  ;;  %v13998_v34 = vpop.f32.mrb[33].mxu0  ;;  %v2492_v51 = vmul.f32 0.35355338, %v2327_v27 }
 0x613   :  { %v13963_v43 = vpop.f32.mrb[19].mxu1 }
 0x616   :  { %v1937_v44 = vpop.f32.mrb[20].mxu1 }
 0x617   :  { %v2487_v21 = vmul.f32 0.35355338, %v1937_v44  ;;  %v13973_v48 = vpop.f32.mrb[21].mxu1 }
 0x618   :  { %v2498_v48 = vadd.f32 %v2490_v0, %v15549_v30 }
 0x619   :  { %v2483_v35 = vpop.f32.mrb[34].mxu0  ;;  %v2495_v52 = vadd.f32 %v2487_v21, %v15526_v46 }
 0x61a   :  { %v2093_v63 = vpop.f32.mrb[22].mxu1  ;;  %v14008_v1 = vpop.f32.mrb[35].mxu0  ;;  %v2494_v33 = vmul.f32 0.35355338, %v2483_v35 }
 0x61b   :  { %v2489_v28 = vmul.f32 0.35355338, %v2093_v63  ;;  %v13983_v47 = vpop.f32.mrb[23].mxu1  ;;  %v2503_v61 = vsel %vm497_vm11, %v2495_v52, -inf }
 0x61c   :  { %2504 = vmax.xlane.f32.xlu0 %v2503_v61  ;;  %v2512_v47 = vsel %vm497_vm11, %v2498_v48, -inf  ;;  %v2502_v27 = vadd.f32 %v2494_v33, %v15564_v6 }
 0x61d   :  { %v2497_v45 = vadd.f32 %v2489_v28, %v15535_v59  ;;  %v2500_v28 = vadd.f32 %v2492_v51, %v15556_v39 }
 0x61e   :  { %v2249_v38 = vpop.f32.mrb[24].mxu1  ;;  %v2524_v0 = vsel %vm497_vm11, %v2502_v27, -inf }
 0x61f   :  { %v2491_v34 = vmul.f32 0.35355338, %v2249_v38  ;;  %v13993_v43 = vpop.f32.mrb[25].mxu1  ;;  %v2509_v44 = vsel %vm497_vm11, %v2497_v45, -inf  ;;  %v2518_v38 = vsel %vm497_vm11, %v2500_v28, -inf }
 0x620   :  { %2510 = vmax.xlane.f32.xlu0 %v2509_v44 }
 0x621   :  { %v2499_v21 = vadd.f32 %v2491_v34, %v15546_v29 }
 0x622   :  { %v2405_v1 = vpop.f32.mrb[26].mxu1 }
 0x623   :  { %v14003_v63 = vpop.f32.mrb[27].mxu1  ;;  %v2515_v61 = vsel %vm497_vm11, %v2499_v21, -inf  ;;  %v2493_v51 = vmul.f32 0.35355338, %v2405_v1 }
 0x624   :  { %2513 = vmax.xlane.f32.xlu0 %v2512_v47  ;;  %2516 = vmax.xlane.f32.xlu1 %v2515_v61 }
 0x625   :  { %v15820_v35 = vadd.f32 %v2493_v51, %v15580_v23 }
 0x627   :  { %v2521_v34 = vsel %vm497_vm11, %v15820_v35, -inf }
 0x628   :  { %2519 = vmax.xlane.f32.xlu0 %v2518_v38 }
 0x62c   :  { %2525 = vmax.xlane.f32.xlu0 %v2524_v0 }
 0x635   :  { %2591 = vrot.lane.b32.xlu1 %v15444_v10, %s15249_s19 }
 0x642   :  { %2667 = vrot.lane.b32.xlu0 %v15442_v8, %s15249_s19 }
 0x646   :  { %2895 = vrot.lane.b32.xlu0 %v15460_v22, %s15249_s19 }
 0x64a   :  { %3047 = vrot.lane.b32.xlu0 %v15468_v26, %s15249_s19 }
 0x64e   :  { %3201 = vrot.lane.b32.xlu0 %v15444_v10, %s15250_s20 }
 0x652   :  { %3199 = vrot.lane.b32.xlu0 %v15444_v10, %s15251_s21 }
 0x656   :  { %3357 = vrot.lane.b32.xlu0 %v15452_v16, %s15250_s20 }
 0x659   :  { %2522 = vmax.xlane.f32.xlu1 %v2521_v34 }
 0x66a   :  { %2743 = vrot.lane.b32.xlu1 %v15452_v16, %s15249_s19 }
 0x66e   :  { %2819 = vrot.lane.b32.xlu1 %v15450_v14, %s15249_s19 }
 0x672   :  { %2971 = vrot.lane.b32.xlu1 %v15458_v20, %s15249_s19 }
 0x676   :  { %3123 = vrot.lane.b32.xlu1 %v15466_v24, %s15249_s19 }
 0x67a   :  { %3279 = vrot.lane.b32.xlu1 %v15442_v8, %s15250_s20 }
 0x67e   :  { %3277 = vrot.lane.b32.xlu1 %v15442_v8, %s15251_s21 }
 0x681   :  { %v2508_v43 = vpop.xlane.xlu1 %2507 }
 0x682   :  { %v2528_v44 = vsub.f32 %v15789_v7, %v2508_v43  ;;  %3435 = vrot.lane.b32.xlu1 %v15450_v14, %s15250_s20 }
 0x684   :  { %v2537_v1 = vmul.f32 1.442695, %v2528_v44 }
 0x686   :  { %14828 = vpow2.f32 %v2537_v1 }
 0x690   :  { %v15841_v33 = vpop.eup %14828 }
 0x691   :  { %v2554_v63 = vsel %vm497_vm11, %v15841_v33, 0.0 }
 0x692   :  { %2555 = vadd.xlane.f32.xlu0 %v2554_v63  ;;  %v18357_v63 = vmov 0.0  }
 0x6a9   :  { %v2505_v47 = vpop.xlane.xlu0 %2504 }
 0x6aa   :  { %v2527_v61 = vsub.f32 %v2495_v52, %v2505_v47 }
 0x6ac   :  { %v2535_v38 = vmul.f32 1.442695, %v2527_v61 }
 0x6ad   :  { %v2511_v0 = vpop.xlane.xlu0 %2510 }
 0x6ae   :  { %14830 = vpow2.f32 %v2535_v38  ;;  %v2529_v51 = vsub.f32 %v2497_v45, %v2511_v0 }
 0x6b0   :  { %v2539_v34 = vmul.f32 1.442695, %v2529_v51 }
 0x6b1   :  { %v2517_v13 = vpop.xlane.xlu1 %2516  ;;  %v2514_v7 = vpop.xlane.xlu0 %2513 }
 0x6b2   :  { %14832 = vpow2.f32 %v2539_v34  ;;  %v2531_v43 = vsub.f32 %v2499_v21, %v2517_v13  ;;  %v2530_v40 = vsub.f32 %v2498_v48, %v2514_v7 }
 0x6b4   :  { %v2543_v44 = vmul.f32 1.442695, %v2531_v43  ;;  %v2541_v1 = vmul.f32 1.442695, %v2530_v40 }
 0x6b5   :  { %v2592_v41 = vpop.permute.xlu1 %2591  ;;  %v2520_v17 = vpop.xlane.xlu0 %2519 }
 0x6b6   :  { %14834 = vpow2.f32 %v2543_v44  ;;  %v2532_v25 = vsub.f32 %v2500_v28, %v2520_v17  ;;  %14010 = vmatpush3.msra.mxu1 %v2592_v41 }
 0x6b7   :  { %14836 = vpow2.f32 %v2541_v1  ;;  %14019 = vmatprep.subr.mxu1 %v18357_v63 }
 0x6b8   :  { %v15846_v52 = vpop.eup %14830  ;;  %v2545_v47 = vmul.f32 1.442695, %v2532_v25 }
 0x6b9   :  { %v2526_v45 = vpop.xlane.xlu0 %2525  ;;  %v2551_v61 = vsel %vm497_vm11, %v15846_v52, 0.0 }
 0x6ba   :  { %14838 = vpow2.f32 %v2545_v47  ;;  %v2534_v13 = vsub.f32 %v2502_v27, %v2526_v45  ;;  %2552 = vadd.xlane.f32.xlu1 %v2551_v61 }
 0x6bc   :  { %v15850_v48 = vpop.eup %14832  ;;  %v2549_v40 = vmul.f32 1.442695, %v2534_v13 }
 0x6bd   :  { %v2668_v21 = vpop.permute.xlu0 %2667  ;;  %v2557_v41 = vsel %vm497_vm11, %v15850_v48, 0.0 }
 0x6be   :  { %14840 = vpow2.f32 %v2549_v40  ;;  %2558 = vadd.xlane.f32.xlu1 %v2557_v41  ;;  %14015 = vmatpush3.msra.mxu0 %v2668_v21 }
 0x6bf   :  { %14024 = vmatprep.subr.mxu0 %v18357_v63 }
 0x6c0   :  { %v15855_v25 = vpop.eup %14834 }
 0x6c1   :  { %v15857_v17 = vpop.eup %14836  ;;  %v2563_v28 = vsel %vm497_vm11, %v15855_v25, 0.0  ;;  %v2896_v45 = vpop.permute.xlu0 %2895 }
 0x6c2   :  { %2564 = vadd.xlane.f32.xlu1 %v2563_v28  ;;  %v2560_v27 = vsel %vm497_vm11, %v15857_v17, 0.0 }
 0x6c3   :  { %2561 = vadd.xlane.f32.xlu0 %v2560_v27 }
 0x6c4   :  { %v15863_v38 = vpop.eup %14838 }
 0x6c5   :  { %v2566_v0 = vsel %vm497_vm11, %v15863_v38, 0.0 }
 0x6c7   :  { %2567 = vadd.xlane.f32.xlu0 %v2566_v0 }
 0x6c8   :  { %v15867_v51 = vpop.eup %14840 }
 0x6c9   :  { %v2572_v34 = vsel %vm497_vm11, %v15867_v51, 0.0 }
 0x6cb   :  { %2573 = vadd.xlane.f32.xlu0 %v2572_v34 }
 0x6e1   :  { %3355 = vrot.lane.b32.xlu0 %v15452_v16, %s15251_s21 }
 0x6e5   :  { %3513 = vrot.lane.b32.xlu0 %v15460_v22, %s15250_s20 }
 0x6e6   :  { %v2523_v7 = vpop.xlane.xlu1 %2522 }
 0x6e7   :  { %v2533_v43 = vsub.f32 %v15820_v35, %v2523_v7  ;;  %v3048_v35 = vpop.permute.xlu0 %3047 }
 0x6e9   :  { %v2547_v44 = vmul.f32 1.442695, %v2533_v43  ;;  %3511 = vrot.lane.b32.xlu0 %v15460_v22, %s15251_s21 }
 0x6ea   :  { %v2744_v21 = vpop.permute.xlu1 %2743 }
 0x6eb   :  { %14842 = vpow2.f32 %v2547_v44  ;;  %v15890_v61 = vpop.permute.xlu0 %3201 }
 0x6ed   :  { %3669 = vrot.lane.b32.xlu0 %v15468_v26, %s15250_s20 }
 0x6ee   :  { %v2820_v28 = vpop.permute.xlu1 %2819 }
 0x6ef   :  { %v15896_v13 = vpop.permute.xlu0 %3199 }
 0x6f1   :  { %3667 = vrot.lane.b32.xlu0 %v15468_v26, %s15251_s21 }
 0x6f2   :  { %v2972_v0 = vpop.permute.xlu1 %2971 }
 0x6f3   :  { %v15900_v40 = vpop.permute.xlu0 %3357 }
 0x6f5   :  { %v15882_v1 = vpop.eup %14842 }
 0x6f6   :  { %v2569_v47 = vsel %vm497_vm11, %v15882_v1, 0.0  ;;  %v3124_v7 = vpop.permute.xlu1 %3123 }
 0x6f7   :  { %2570 = vadd.xlane.f32.xlu1 %v2569_v47 }
 0x6fa   :  { %v3280_v43 = vpop.permute.xlu1 %3279 }
 0x6fe   :  { %v3278_v44 = vpop.permute.xlu1 %3277 }
 0x702   :  { %v3436_v47 = vpop.permute.xlu1 %3435 }
 0x708   :  { %3433 = vrot.lane.b32.xlu1 %v15450_v14, %s15251_s21 }
 0x70c   :  { %3591 = vrot.lane.b32.xlu1 %v15458_v20, %s15250_s20 }
 0x710   :  { %3589 = vrot.lane.b32.xlu1 %v15458_v20, %s15251_s21 }
 0x714   :  { %3747 = vrot.lane.b32.xlu1 %v15466_v24, %s15250_s20 }
 0x718   :  { %3745 = vrot.lane.b32.xlu1 %v15466_v24, %s15251_s21 }
 0x71f   :  { %v2556_v41 = vpop.xlane.xlu0 %2555 }
 0x720   :  { %14844 = vrcp.f32 %v2556_v41 }
 0x72a   :  { %v14845_v27 = vpop.eup %14844 }
 0x72b   :  { %v15903_v34 = vmul.f32 %v14845_v27, %v15841_v33 }
 0x72d   :  { %18358 = vst [vmem:[#allocation37_spill] sm:$0xff] %v15903_v34  ;;  %14017 = vmatmul.mubr.msk.f32.vlgmr.msra.gmra.mrb[36].mxu0 %vm497_vm11, %v15903_v34 }
 0x72e   :  { %14025 = vmatpush3.msra.mxu0 %v2820_v28  ;;  %14026 = vmatprep.mubr.msk.f32.mxu0 %vm15243_vm10, %v18357_v63 }
 0x72f   :  { %14034 = vmatprep.subr.mxu0 %v18357_v63 }
 0x747   :  { %v2553_v41 = vpop.xlane.xlu1 %2552 }
 0x748   :  { %14846 = vrcp.f32 %v2553_v41 }
 0x74b   :  { %v2559_v2 = vpop.xlane.xlu1 %2558 }
 0x74c   :  { %14848 = vrcp.f32 %v2559_v2 }
 0x74f   :  { %v2565_v19 = vpop.xlane.xlu1 %2564 }
 0x750   :  { %14850 = vrcp.f32 %v2565_v19  ;;  %v2562_v33 = vpop.xlane.xlu0 %2561 }
 0x751   :  { %14852 = vrcp.f32 %v2562_v33 }
 0x752   :  { %v14847_v27 = vpop.eup %14846 }
 0x753   :  { %v15911_v28 = vmul.f32 %v14847_v27, %v15846_v52 }
 0x754   :  { %v2568_v34 = vpop.xlane.xlu0 %2567 }
 0x755   :  { %18359 = vst [vmem:[#allocation38_spill] sm:$0xff] %v15911_v28  ;;  %14854 = vrcp.f32 %v2568_v34  ;;  %14012 = vmatmul.mubr.msk.f32.vlgmr.msra.gmra.mrb[28].mxu1 %vm497_vm11, %v15911_v28 }
 0x756   :  { %v14849_v18 = vpop.eup %14848  ;;  %14020 = vmatpush3.msra.mxu1 %v2744_v21  ;;  %14021 = vmatprep.mubr.msk.f32.mxu1 %vm15243_vm10, %v18357_v63 }
 0x757   :  { %14029 = vmatprep.subr.mxu1 %v18357_v63  ;;  %v15919_v2 = vmul.f32 %v14849_v18, %v15850_v48 }
 0x758   :  { %v2574_v19 = vpop.xlane.xlu0 %2573 }
 0x759   :  { %18360 = vst [vmem:[#allocation39_spill] sm:$0xff] %v15919_v2  ;;  %14856 = vrcp.f32 %v2574_v19  ;;  %14022 = vmatmul.mubr.msk.f32.vlgmr.msra.gmra.mrb[30].mxu1 %vm497_vm11, %v15919_v2 }
 0x75a   :  { %v14851_v52 = vpop.eup %14850  ;;  %14030 = vmatpush3.msra.mxu1 %v2896_v45  ;;  %14031 = vmatprep.mubr.msk.f32.mxu1 %vm15243_vm10, %v18357_v63 }
 0x75b   :  { %v14853_v34 = vpop.eup %14852  ;;  %14039 = vmatprep.subr.mxu1 %v18357_v63  ;;  %v15927_v21 = vmul.f32 %v14851_v52, %v15855_v25 }
 0x75c   :  { %v15930_v41 = vmul.f32 %v14853_v34, %v15857_v17  ;;  %v3356_v45 = vpop.permute.xlu0 %3355 }
 0x75d   :  { %18361 = vst [vmem:[#allocation40_spill] sm:$0xff] %v15927_v21  ;;  %14032 = vmatmul.mubr.msk.f32.vlgmr.msra.gmra.mrb[32].mxu1 %vm497_vm11, %v15927_v21 }
 0x75e   :  { %18362 = vst [vmem:[#allocation41_spill] sm:$0xff] %v15930_v41  ;;  %14027 = vmatmul.mubr.msk.f32.vlgmr.msra.gmra.mrb[38].mxu0 %vm497_vm11, %v15930_v41  ;;  %14040 = vmatpush3.msra.mxu1 %v3048_v35 }
 0x75f   :  { %v14855_v18 = vpop.eup %14854  ;;  %14035 = vmatpush3.msra.mxu0 %v2972_v0  ;;  %14036 = vmatprep.mubr.msk.f32.mxu0 %vm15243_vm10, %v18357_v63 }
 0x760   :  { %14044 = vmatprep.subr.mxu0 %v18357_v63  ;;  %v15940_v48 = vmul.f32 %v14855_v18, %v15863_v38  ;;  %14041 = vmatprep.mubr.msk.f32.mxu1 %vm15243_vm10, %v18357_v63 }
 0x761   :  { %14049 = vmatprep.subr.mxu1 %v18357_v63 }
 0x762   :  { %18363 = vst [vmem:[#allocation42_spill] sm:$0xff] %v15940_v48  ;;  %14037 = vmatmul.mubr.msk.f32.vlgmr.msra.gmra.mrb[40].mxu0 %vm497_vm11, %v15940_v48 }
 0x763   :  { %v14857_v25 = vpop.eup %14856  ;;  %14045 = vmatpush3.msra.mxu0 %v3124_v7  ;;  %14046 = vmatprep.mubr.msk.f32.mxu0 %vm15243_vm10, %v18357_v63  ;;  %v3514_v7 = vpop.permute.xlu0 %3513 }
 0x764   :  { %v15950_v17 = vmul.f32 %v14857_v25, %v15867_v51  ;;  %14054 = vmatprep.subr.mxu0 %v18357_v63 }
 0x766   :  { %18364 = vst [vmem:[#allocation43_spill] sm:$0xff] %v15950_v17  ;;  %14047 = vmatmul.mubr.msk.f32.vlgmr.msra.gmra.mrb[42].mxu0 %vm497_vm11, %v15950_v17 }
 0x767   :  { %14056 = vmatprep.mubr.msk.f32.mxu0 %vm15243_vm10, %v18357_v63  ;;  %v3512_v33 = vpop.permute.xlu0 %3511 }
 0x76a   :  { %14055 = vmatpush3.xpose.msk.msra.mxu0 %vm497_vm11, %v3280_v43 }
 0x76b   :  { %14064 = vmatprep.subr.mxu0 %v18357_v63 }
 0x76d   :  { %14057 = vmatmul.mubr.msk.f32.vlgmr.msra.gmra.mrb[44].mxu0 %vm497_vm11, %v3278_v44 }
 0x76e   :  { %14065 = vmatpush3.xpose.msk.msra.mxu0 %vm497_vm11, %v3436_v47  ;;  %14066 = vmatprep.mubr.msk.f32.mxu0 %vm15243_vm10, %v18357_v63 }
 0x76f   :  { %14074 = vmatprep.subr.mxu0 %v18357_v63 }
 0x784   :  { %v2571_v38 = vpop.xlane.xlu1 %2570 }
 0x785   :  { %14858 = vrcp.f32 %v2571_v38 }
 0x788   :  { %v3434_v51 = vpop.permute.xlu1 %3433 }
 0x789   :  { %14067 = vmatmul.mubr.msk.f32.vlgmr.msra.gmra.mrb[46].mxu0 %vm497_vm11, %v3434_v51 }
 0x78a   :  { %14076 = vmatprep.mubr.msk.f32.mxu0 %vm15243_vm10, %v18357_v63 }
 0x78c   :  { %v3592_v35 = vpop.permute.xlu1 %3591 }
 0x78d   :  { %14075 = vmatpush3.xpose.msk.msra.mxu0 %vm497_vm11, %v3592_v35 }
 0x78e   :  { %14084 = vmatprep.subr.mxu0 %v18357_v63 }
 0x78f   :  { %v14859_v0 = vpop.eup %14858 }
 0x790   :  { %v3590_v43 = vpop.permute.xlu1 %3589  ;;  %v15970_v44 = vmul.f32 %v14859_v0, %v15882_v1 }
 0x791   :  { %14077 = vmatmul.mubr.msk.f32.vlgmr.msra.gmra.mrb[48].mxu0 %vm497_vm11, %v3590_v43 }
 0x792   :  { %18365 = vst [vmem:[#allocation44_spill] sm:$0xff] %v15970_v44  ;;  %14042 = vmatmul.mubr.msk.f32.vlgmr.msra.gmra.mrb[34].mxu1 %vm497_vm11, %v15970_v44  ;;  %14086 = vmatprep.mubr.msk.f32.mxu0 %vm15243_vm10, %v18357_v63 }
 0x793   :  { %14050 = vmatpush3.xpose.msk.msra.mxu1 %vm497_vm11, %v15890_v61  ;;  %14051 = vmatprep.mubr.msk.f32.mxu1 %vm15243_vm10, %v18357_v63  ;;  %v3670_v61 = vpop.permute.xlu0 %3669 }
 0x794   :  { %v3748_v47 = vpop.permute.xlu1 %3747  ;;  %14059 = vmatprep.subr.mxu1 %v18357_v63 }
 0x795   :  { %14085 = vmatpush3.xpose.msk.msra.mxu0 %vm497_vm11, %v3748_v47 }
 0x796   :  { %14052 = vmatmul.mubr.msk.f32.vlgmr.msra.gmra.mrb[36].mxu1 %vm497_vm11, %v15896_v13  ;;  %14094 = vmatprep.subr.mxu0 %v18357_v63 }
 0x797   :  { %14060 = vmatpush3.xpose.msk.msra.mxu1 %vm497_vm11, %v15900_v40  ;;  %14061 = vmatprep.mubr.msk.f32.mxu1 %vm15243_vm10, %v18357_v63  ;;  %v3668_v13 = vpop.permute.xlu0 %3667 }
 0x798   :  { %v3746_v1 = vpop.permute.xlu1 %3745  ;;  %14069 = vmatprep.subr.mxu1 %v18357_v63 }
 0x799   :  { %14087 = vmatmul.mubr.msk.f32.vlgmr.msra.gmra.mrb[50].mxu0 %vm497_vm11, %v3746_v1 }
 0x79a   :  { %14062 = vmatmul.mubr.msk.f32.vlgmr.msra.gmra.mrb[38].mxu1 %vm497_vm11, %v3356_v45  ;;  %14096 = vmatprep.mubr.msk.f32.mxu0 %vm15243_vm10, %v18357_v63 }
 0x79b   :  { %14070 = vmatpush3.xpose.msk.msra.mxu1 %vm497_vm11, %v3514_v7  ;;  %14071 = vmatprep.mubr.msk.f32.mxu1 %vm15243_vm10, %v18357_v63 }
 0x79c   :  { %14079 = vmatprep.subr.mxu1 %v18357_v63 }
 0x79e   :  { %14072 = vmatmul.mubr.msk.f32.vlgmr.msra.gmra.mrb[40].mxu1 %vm497_vm11, %v3512_v33 }
 0x79f   :  { %14080 = vmatpush3.xpose.msk.msra.mxu1 %vm497_vm11, %v3670_v61  ;;  %14081 = vmatprep.mubr.msk.f32.mxu1 %vm15243_vm10, %v18357_v63 }
 0x7a0   :  { %14089 = vmatprep.subr.mxu1 %v18357_v63 }
 0x7a2   :  { %14082 = vmatmul.mubr.msk.f32.vlgmr.msra.gmra.mrb[42].mxu1 %vm497_vm11, %v3668_v13 }
 0x7a3   :  { %14091 = vmatprep.mubr.msk.f32.mxu1 %vm15243_vm10, %v18357_v63 }
 0x800   :  { %v16007_v40 = vpop.f32.mrb[36].mxu0 }
 0x801   :  { %v14018_v27 = vpop.f32.mrb[37].mxu0 }
 0x828   :  { %v16009_v19 = vpop.f32.mrb[28].mxu1 }
 0x829   :  { %v14013_v52 = vpop.f32.mrb[29].mxu1 }
 0x82c   :  { %v16011_v34 = vpop.f32.mrb[30].mxu1 }
 0x82d   :  { %v14023_v18 = vpop.f32.mrb[31].mxu1 }
 0x830   :  { %v16013_v25 = vpop.f32.mrb[32].mxu1 }
 0x831   :  { %v16015_v38 = vpop.f32.mrb[38].mxu0  ;;  %v14033_v51 = vpop.f32.mrb[33].mxu1 }
 0x832   :  { %v14028_v45 = vpop.f32.mrb[39].mxu0 }
 0x835   :  { %v16017_v35 = vpop.f32.mrb[40].mxu0 }
 0x836   :  { %v14038_v0 = vpop.f32.mrb[41].mxu0 }
 0x839   :  { %v16019_v7 = vpop.f32.mrb[42].mxu0 }
 0x83a   :  { %v14048_v43 = vpop.f32.mrb[43].mxu0 }
 0x840   :  { %v3351_v47 = vpop.f32.mrb[44].mxu0 }
 0x841   :  { %v3824_v33 = vmul.f32 0.35355338, %v3351_v47  ;;  %v14058_v1 = vpop.f32.mrb[45].mxu0 }
 0x843   :  { %v16022_v61 = vadd.f32 %v3824_v33, %v15529_v56 }
 0x845   :  { %v3842_v13 = vsel %vm497_vm11, %v16022_v61, -inf }
 0x846   :  { %3843 = vmax.xlane.f32.xlu1 %v3842_v13 }
 0x85c   :  { %v3507_v27 = vpop.f32.mrb[46].mxu0 }
 0x85d   :  { %v14068_v52 = vpop.f32.mrb[47].mxu0  ;;  %v3826_v44 = vmul.f32 0.35355338, %v3507_v27 }
 0x864   :  { %v3663_v18 = vpop.f32.mrb[48].mxu0 }
 0x865   :  { %v16026_v51 = vpop.f32.mrb[34].mxu1  ;;  %v14078_v45 = vpop.f32.mrb[49].mxu0 }
 0x866   :  { %v14043_v0 = vpop.f32.mrb[35].mxu1  ;;  %v3834_v45 = vadd.f32 %v3826_v44, %v15549_v30 }
 0x867   :  { %v3828_v0 = vmul.f32 0.35355338, %v3663_v18 }
 0x869   :  { %v3273_v48 = vpop.f32.mrb[36].mxu1  ;;  %v3836_v27 = vadd.f32 %v3828_v0, %v15556_v39 }
 0x86a   :  { %v3823_v17 = vmul.f32 0.35355338, %v3273_v48  ;;  %v14053_v43 = vpop.f32.mrb[37].mxu1 }
 0x86c   :  { %v3819_v21 = vpop.f32.mrb[50].mxu0  ;;  %v3831_v47 = vadd.f32 %v3823_v17, %v15526_v46 }
 0x86d   :  { %v3429_v1 = vpop.f32.mrb[38].mxu1  ;;  %v14088_v33 = vpop.f32.mrb[51].mxu0 }
 0x86e   :  { %v3825_v41 = vmul.f32 0.35355338, %v3429_v1  ;;  %v14063_v2 = vpop.f32.mrb[39].mxu1  ;;  %v3839_v13 = vsel %vm497_vm11, %v3831_v47, -inf }
 0x86f   :  { %3840 = vmax.xlane.f32.xlu0 %v3839_v13  ;;  %v3830_v2 = vmul.f32 0.35355338, %v3819_v21  ;;  %v3848_v13 = vsel %vm497_vm11, %v3834_v45, -inf }
 0x870   :  { %v3833_v52 = vadd.f32 %v3825_v41, %v15535_v59 }
 0x871   :  { %v3585_v28 = vpop.f32.mrb[40].mxu1  ;;  %v3838_v44 = vadd.f32 %v3830_v2, %v15564_v6 }
 0x872   :  { %v3827_v12 = vmul.f32 0.35355338, %v3585_v28  ;;  %v14073_v48 = vpop.f32.mrb[41].mxu1  ;;  %v3845_v43 = vsel %vm497_vm11, %v3833_v52, -inf  ;;  %v3854_v28 = vsel %vm497_vm11, %v3836_v27, -inf }
 0x873   :  { %3846 = vmax.xlane.f32.xlu0 %v3845_v43  ;;  %v3860_v18 = vsel %vm497_vm11, %v3838_v44, -inf }
 0x874   :  { %v3835_v17 = vadd.f32 %v3827_v12, %v15546_v29 }
 0x875   :  { %v3741_v33 = vpop.f32.mrb[42].mxu1 }
 0x876   :  { %v14083_v1 = vpop.f32.mrb[43].mxu1  ;;  %v3851_v41 = vsel %vm497_vm11, %v3835_v17, -inf  ;;  %v3829_v12 = vmul.f32 0.35355338, %v3741_v33 }
 0x877   :  { %3849 = vmax.xlane.f32.xlu0 %v3848_v13  ;;  %3852 = vmax.xlane.f32.xlu1 %v3851_v41 }
 0x878   :  { %v16053_v21 = vadd.f32 %v3829_v12, %v15580_v23 }
 0x87a   :  { %v3857_v0 = vsel %vm497_vm11, %v16053_v21, -inf }
 0x87b   :  { %3855 = vmax.xlane.f32.xlu0 %v3854_v28 }
 0x87f   :  { %3861 = vmax.xlane.f32.xlu0 %v3860_v18 }
 0x888   :  { %3927 = vrot.lane.b32.xlu1 %v15444_v10, %s15252_s22 }
 0x895   :  { %4003 = vrot.lane.b32.xlu0 %v15442_v8, %s15252_s22 }
 0x899   :  { %4231 = vrot.lane.b32.xlu0 %v15460_v22, %s15252_s22 }
 0x89d   :  { %4383 = vrot.lane.b32.xlu0 %v15468_v26, %s15252_s22 }
 0x8a1   :  { %4537 = vrot.lane.b32.xlu0 %v15444_v10, %s15253_s23 }
 0x8a5   :  { %4535 = vrot.lane.b32.xlu0 %v15444_v10, %s15254_s24 }
 0x8a9   :  { %4693 = vrot.lane.b32.xlu0 %v15452_v16, %s15253_s23 }
 0x8ac   :  { %3858 = vmax.xlane.f32.xlu1 %v3857_v0 }
 0x8bd   :  { %4079 = vrot.lane.b32.xlu1 %v15452_v16, %s15252_s22 }
 0x8c1   :  { %4155 = vrot.lane.b32.xlu1 %v15450_v14, %s15252_s22 }
 0x8c5   :  { %4307 = vrot.lane.b32.xlu1 %v15458_v20, %s15252_s22 }
 0x8c9   :  { %4459 = vrot.lane.b32.xlu1 %v15466_v24, %s15252_s22 }
 0x8cd   :  { %4615 = vrot.lane.b32.xlu1 %v15442_v8, %s15253_s23 }
 0x8d1   :  { %4613 = vrot.lane.b32.xlu1 %v15442_v8, %s15254_s24 }
 0x8d3   :  { %v3844_v48 = vpop.xlane.xlu1 %3843 }
 0x8d4   :  { %v3864_v43 = vsub.f32 %v16022_v61, %v3844_v48 }
 0x8d5   :  { %4771 = vrot.lane.b32.xlu1 %v15450_v14, %s15253_s23 }
 0x8d6   :  { %v3873_v33 = vmul.f32 1.442695, %v3864_v43 }
 0x8d8   :  { %14860 = vpow2.f32 %v3873_v33 }
 0x8e2   :  { %v16074_v2 = vpop.eup %14860 }
 0x8e3   :  { %v3890_v1 = vsel %vm497_vm11, %v16074_v2, 0.0 }
 0x8e4   :  { %3891 = vadd.xlane.f32.xlu0 %v3890_v1 }
 0x8fc   :  { %v3841_v13 = vpop.xlane.xlu0 %3840 }
 0x8fd   :  { %v3863_v41 = vsub.f32 %v3831_v47, %v3841_v13 }
 0x8ff   :  { %v3871_v28 = vmul.f32 1.442695, %v3863_v41 }
 0x900   :  { %v3847_v18 = vpop.xlane.xlu0 %3846 }
 0x901   :  { %14862 = vpow2.f32 %v3871_v28  ;;  %v3865_v12 = vsub.f32 %v3833_v52, %v3847_v18 }
 0x903   :  { %v3875_v0 = vmul.f32 1.442695, %v3865_v12 }
 0x904   :  { %v3853_v11 = vpop.xlane.xlu1 %3852  ;;  %v3850_v61 = vpop.xlane.xlu0 %3849 }
 0x905   :  { %14864 = vpow2.f32 %v3875_v0  ;;  %v3867_v48 = vsub.f32 %v3835_v17, %v3853_v11  ;;  %v3866_v5 = vsub.f32 %v3834_v45, %v3850_v61 }
 0x907   :  { %v3879_v43 = vmul.f32 1.442695, %v3867_v48  ;;  %v3877_v33 = vmul.f32 1.442695, %v3866_v5 }
 0x908   :  { %v3928_v3 = vpop.permute.xlu1 %3927  ;;  %v3856_v62 = vpop.xlane.xlu0 %3855 }
 0x909   :  { %14866 = vpow2.f32 %v3879_v43  ;;  %v3868_v60 = vsub.f32 %v3836_v27, %v3856_v62  ;;  %14090 = vmatpush3.msra.mxu1 %v3928_v3 }
 0x90a   :  { %14868 = vpow2.f32 %v3877_v33  ;;  %14099 = vmatprep.subr.mxu1 %v18357_v63 }
 0x90b   :  { %v16079_v47 = vpop.eup %14862  ;;  %v3881_v1 = vmul.f32 1.442695, %v3868_v60 }
 0x90c   :  { %v3862_v52 = vpop.xlane.xlu0 %3861  ;;  %v3887_v13 = vsel %vm497_vm11, %v16079_v47, 0.0 }
 0x90d   :  { %14870 = vpow2.f32 %v3881_v1  ;;  %v3870_v11 = vsub.f32 %v3838_v44, %v3862_v52  ;;  %3888 = vadd.xlane.f32.xlu1 %v3887_v13 }
 0x90f   :  { %v16083_v45 = vpop.eup %14864  ;;  %v3885_v5 = vmul.f32 1.442695, %v3870_v11 }
 0x910   :  { %v4004_v17 = vpop.permute.xlu0 %4003  ;;  %v3893_v3 = vsel %vm497_vm11, %v16083_v45, 0.0 }
 0x911   :  { %14872 = vpow2.f32 %v3885_v5  ;;  %3894 = vadd.xlane.f32.xlu1 %v3893_v3  ;;  %14095 = vmatpush3.msra.mxu0 %v4004_v17 }
 0x912   :  { %14104 = vmatprep.subr.mxu0 %v18357_v63 }
 0x913   :  { %v16088_v60 = vpop.eup %14866 }
 0x914   :  { %v16090_v62 = vpop.eup %14868  ;;  %v3899_v27 = vsel %vm497_vm11, %v16088_v60, 0.0  ;;  %v4232_v1 = vpop.permute.xlu0 %4231 }
 0x915   :  { %3900 = vadd.xlane.f32.xlu1 %v3899_v27  ;;  %v3896_v44 = vsel %vm497_vm11, %v16090_v62, 0.0 }
 0x916   :  { %3897 = vadd.xlane.f32.xlu0 %v3896_v44 }
 0x917   :  { %v16096_v41 = vpop.eup %14870 }
 0x918   :  { %v3902_v28 = vsel %vm497_vm11, %v16096_v41, 0.0  ;;  %v4384_v52 = vpop.permute.xlu0 %4383 }
 0x91a   :  { %3903 = vadd.xlane.f32.xlu0 %v3902_v28 }
 0x91b   :  { %v16100_v18 = vpop.eup %14872 }
 0x91c   :  { %v3908_v12 = vsel %vm497_vm11, %v16100_v18, 0.0 }
 0x91e   :  { %3909 = vadd.xlane.f32.xlu0 %v3908_v12 }
 0x934   :  { %4691 = vrot.lane.b32.xlu0 %v15452_v16, %s15254_s24 }
 0x938   :  { %4849 = vrot.lane.b32.xlu0 %v15460_v22, %s15253_s23 }
 0x939   :  { %v3859_v0 = vpop.xlane.xlu1 %3858 }
 0x93a   :  { %v3869_v61 = vsub.f32 %v16053_v21, %v3859_v0  ;;  %v16123_v21 = vpop.permute.xlu0 %4537 }
 0x93c   :  { %v3883_v48 = vmul.f32 1.442695, %v3869_v61  ;;  %4847 = vrot.lane.b32.xlu0 %v15460_v22, %s15254_s24 }
 0x93d   :  { %v4080_v17 = vpop.permute.xlu1 %4079 }
 0x93e   :  { %14874 = vpow2.f32 %v3883_v48  ;;  %v16127_v13 = vpop.permute.xlu0 %4535 }
 0x940   :  { %5005 = vrot.lane.b32.xlu0 %v15468_v26, %s15253_s23 }
 0x941   :  { %v4156_v3 = vpop.permute.xlu1 %4155 }
 0x942   :  { %v16133_v11 = vpop.permute.xlu0 %4693 }
 0x944   :  { %5003 = vrot.lane.b32.xlu0 %v15468_v26, %s15254_s24 }
 0x945   :  { %v4308_v28 = vpop.permute.xlu1 %4307 }
 0x948   :  { %v16115_v43 = vpop.eup %14874 }
 0x949   :  { %v3905_v33 = vsel %vm497_vm11, %v16115_v43, 0.0  ;;  %v4460_v12 = vpop.permute.xlu1 %4459 }
 0x94a   :  { %3906 = vadd.xlane.f32.xlu1 %v3905_v33 }
 0x94d   :  { %v4616_v0 = vpop.permute.xlu1 %4615 }
 0x951   :  { %v4614_v61 = vpop.permute.xlu1 %4613 }
 0x955   :  { %v4772_v48 = vpop.permute.xlu1 %4771 }
 0x95b   :  { %4769 = vrot.lane.b32.xlu1 %v15450_v14, %s15254_s24 }
 0x95f   :  { %4927 = vrot.lane.b32.xlu1 %v15458_v20, %s15253_s23 }
 0x963   :  { %4925 = vrot.lane.b32.xlu1 %v15458_v20, %s15254_s24 }
 0x967   :  { %5083 = vrot.lane.b32.xlu1 %v15466_v24, %s15253_s23 }
 0x96b   :  { %5081 = vrot.lane.b32.xlu1 %v15466_v24, %s15254_s24 }
 0x971   :  { %v3892_v5 = vpop.xlane.xlu0 %3891 }
 0x972   :  { %14876 = vrcp.f32 %v3892_v5 }
 0x97c   :  { %v14877_v27 = vpop.eup %14876 }
 0x97d   :  { %v16136_v44 = vmul.f32 %v14877_v27, %v16074_v2 }
 0x97f   :  { %18366 = vst [vmem:[#allocation45_spill] sm:$0xff] %v16136_v44  ;;  %14097 = vmatmul.mubr.msk.f32.vlgmr.msra.gmra.mrb[52].mxu0 %vm497_vm11, %v16136_v44 }
 0x980   :  { %14105 = vmatpush3.msra.mxu0 %v4156_v3  ;;  %14106 = vmatprep.mubr.msk.f32.mxu0 %vm15243_vm10, %v18357_v63 }
 0x981   :  { %14114 = vmatprep.subr.mxu0 %v18357_v63 }
 0x99a   :  { %v3889_v33 = vpop.xlane.xlu1 %3888 }
 0x99b   :  { %14878 = vrcp.f32 %v3889_v33 }
 0x99e   :  { %v3895_v5 = vpop.xlane.xlu1 %3894 }
 0x99f   :  { %14880 = vrcp.f32 %v3895_v5 }
 0x9a2   :  { %v3901_v2 = vpop.xlane.xlu1 %3900 }
 0x9a3   :  { %14882 = vrcp.f32 %v3901_v2  ;;  %v3898_v27 = vpop.xlane.xlu0 %3897 }
 0x9a4   :  { %14884 = vrcp.f32 %v3898_v27 }
 0x9a5   :  { %v14879_v58 = vpop.eup %14878 }
 0x9a6   :  { %v16144_v3 = vmul.f32 %v14879_v58, %v16079_v47 }
 0x9a7   :  { %v3904_v44 = vpop.xlane.xlu0 %3903 }
 0x9a8   :  { %18367 = vst [vmem:[#allocation46_spill] sm:$0xff] %v16144_v3  ;;  %14886 = vrcp.f32 %v3904_v44  ;;  %14092 = vmatmul.mubr.msk.f32.vlgmr.msra.gmra.mrb[44].mxu1 %vm497_vm11, %v16144_v3 }
 0x9a9   :  { %v14881_v57 = vpop.eup %14880  ;;  %14100 = vmatpush3.msra.mxu1 %v4080_v17  ;;  %14101 = vmatprep.mubr.msk.f32.mxu1 %vm15243_vm10, %v18357_v63 }
 0x9aa   :  { %14109 = vmatprep.subr.mxu1 %v18357_v63  ;;  %v16152_v33 = vmul.f32 %v14881_v57, %v16083_v45 }
 0x9ab   :  { %v3910_v5 = vpop.xlane.xlu0 %3909 }
 0x9ac   :  { %18368 = vst [vmem:[#allocation47_spill] sm:$0xff] %v16152_v33  ;;  %14888 = vrcp.f32 %v3910_v5  ;;  %14102 = vmatmul.mubr.msk.f32.vlgmr.msra.gmra.mrb[46].mxu1 %vm497_vm11, %v16152_v33 }
 0x9ad   :  { %v14883_v58 = vpop.eup %14882  ;;  %14110 = vmatpush3.msra.mxu1 %v4232_v1  ;;  %14111 = vmatprep.mubr.msk.f32.mxu1 %vm15243_vm10, %v18357_v63 }
 0x9ae   :  { %v14885_v47 = vpop.eup %14884  ;;  %14119 = vmatprep.subr.mxu1 %v18357_v63  ;;  %v16160_v17 = vmul.f32 %v14883_v58, %v16088_v60 }
 0x9af   :  { %v16163_v44 = vmul.f32 %v14885_v47, %v16090_v62  ;;  %v4692_v1 = vpop.permute.xlu0 %4691 }
 0x9b0   :  { %18369 = vst [vmem:[#allocation48_spill] sm:$0xff] %v16160_v17  ;;  %14112 = vmatmul.mubr.msk.f32.vlgmr.msra.gmra.mrb[48].mxu1 %vm497_vm11, %v16160_v17 }
 0x9b1   :  { %18370 = vst [vmem:[#allocation49_spill] sm:$0xff] %v16163_v44  ;;  %14107 = vmatmul.mubr.msk.f32.vlgmr.msra.gmra.mrb[54].mxu0 %vm497_vm11, %v16163_v44  ;;  %14120 = vmatpush3.msra.mxu1 %v4384_v52 }
 0x9b2   :  { %v14887_v57 = vpop.eup %14886  ;;  %14115 = vmatpush3.msra.mxu0 %v4308_v28  ;;  %14116 = vmatprep.mubr.msk.f32.mxu0 %vm15243_vm10, %v18357_v63 }
 0x9b3   :  { %14124 = vmatprep.subr.mxu0 %v18357_v63  ;;  %v16173_v45 = vmul.f32 %v14887_v57, %v16096_v41  ;;  %14121 = vmatprep.mubr.msk.f32.mxu1 %vm15243_vm10, %v18357_v63 }
 0x9b4   :  { %14129 = vmatprep.subr.mxu1 %v18357_v63 }
 0x9b5   :  { %18371 = vst [vmem:[#allocation50_spill] sm:$0xff] %v16173_v45  ;;  %14117 = vmatmul.mubr.msk.f32.vlgmr.msra.gmra.mrb[56].mxu0 %vm497_vm11, %v16173_v45 }
 0x9b6   :  { %v14889_v60 = vpop.eup %14888  ;;  %14125 = vmatpush3.msra.mxu0 %v4460_v12  ;;  %14126 = vmatprep.mubr.msk.f32.mxu0 %vm15243_vm10, %v18357_v63  ;;  %v4850_v12 = vpop.permute.xlu0 %4849 }
 0x9b7   :  { %v16183_v62 = vmul.f32 %v14889_v60, %v16100_v18  ;;  %14134 = vmatprep.subr.mxu0 %v18357_v63 }
 0x9b9   :  { %18372 = vst [vmem:[#allocation51_spill] sm:$0xff] %v16183_v62  ;;  %14127 = vmatmul.mubr.msk.f32.vlgmr.msra.gmra.mrb[58].mxu0 %vm497_vm11, %v16183_v62 }
 0x9ba   :  { %14136 = vmatprep.mubr.msk.f32.mxu0 %vm15243_vm10, %v18357_v63  ;;  %v4848_v2 = vpop.permute.xlu0 %4847 }
 0x9bd   :  { %14135 = vmatpush3.xpose.msk.msra.mxu0 %vm497_vm11, %v4616_v0 }
 0x9be   :  { %14144 = vmatprep.subr.mxu0 %v18357_v63 }
 0x9c0   :  { %14137 = vmatmul.mubr.msk.f32.vlgmr.msra.gmra.mrb[60].mxu0 %vm497_vm11, %v4614_v61 }
 0x9c1   :  { %14145 = vmatpush3.xpose.msk.msra.mxu0 %vm497_vm11, %v4772_v48  ;;  %14146 = vmatprep.mubr.msk.f32.mxu0 %vm15243_vm10, %v18357_v63 }
 0x9c2   :  { %14154 = vmatprep.subr.mxu0 %v18357_v63 }
 0x9d7   :  { %v3907_v41 = vpop.xlane.xlu1 %3906 }
 0x9d8   :  { %14890 = vrcp.f32 %v3907_v41 }
 0x9db   :  { %v4770_v18 = vpop.permute.xlu1 %4769 }
 0x9dc   :  { %14147 = vmatmul.mubr.msk.f32.vlgmr.msra.gmra.mrb[62].mxu0 %vm497_vm11, %v4770_v18 }
 0x9dd   :  { %14156 = vmatprep.mubr.msk.f32.mxu0 %vm15243_vm10, %v18357_v63 }
 0x9df   :  { %v4928_v52 = vpop.permute.xlu1 %4927 }
 0x9e0   :  { %14155 = vmatpush3.xpose.msk.msra.mxu0 %vm497_vm11, %v4928_v52 }
 0x9e1   :  { %14164 = vmatprep.subr.mxu0 %v18357_v63 }
 0x9e2   :  { %v14891_v28 = vpop.eup %14890 }
 0x9e3   :  { %v4926_v0 = vpop.permute.xlu1 %4925  ;;  %v16203_v61 = vmul.f32 %v14891_v28, %v16115_v43 }
 0x9e4   :  { %14157 = vmatmul.mubr.msk.f32.vlgmr.msra.gmra.mrb[64].mxu0 %vm497_vm11, %v4926_v0 }
 0x9e5   :  { %18373 = vst [vmem:[#allocation52_spill] sm:$0xff] %v16203_v61  ;;  %14122 = vmatmul.mubr.msk.f32.vlgmr.msra.gmra.mrb[50].mxu1 %vm497_vm11, %v16203_v61  ;;  %14166 = vmatprep.mubr.msk.f32.mxu0 %vm15243_vm10, %v18357_v63 }
 0x9e6   :  { %14130 = vmatpush3.xpose.msk.msra.mxu1 %vm497_vm11, %v16123_v21  ;;  %14131 = vmatprep.mubr.msk.f32.mxu1 %vm15243_vm10, %v18357_v63  ;;  %v5006_v21 = vpop.permute.xlu0 %5005 }
 0x9e7   :  { %v5084_v48 = vpop.permute.xlu1 %5083  ;;  %14139 = vmatprep.subr.mxu1 %v18357_v63 }
 0x9e8   :  { %14165 = vmatpush3.xpose.msk.msra.mxu0 %vm497_vm11, %v5084_v48 }
 0x9e9   :  { %14132 = vmatmul.mubr.msk.f32.vlgmr.msra.gmra.mrb[52].mxu1 %vm497_vm11, %v16127_v13  ;;  %14174 = vmatprep.subr.mxu0 %v18357_v63 }
 0x9ea   :  { %14140 = vmatpush3.xpose.msk.msra.mxu1 %vm497_vm11, %v16133_v11  ;;  %14141 = vmatprep.mubr.msk.f32.mxu1 %vm15243_vm10, %v18357_v63  ;;  %v5004_v13 = vpop.permute.xlu0 %5003 }
 0x9eb   :  { %v5082_v43 = vpop.permute.xlu1 %5081  ;;  %14149 = vmatprep.subr.mxu1 %v18357_v63 }
 0x9ec   :  { %14167 = vmatmul.mubr.msk.f32.vlgmr.msra.gmra.mrb[66].mxu0 %vm497_vm11, %v5082_v43 }
 0x9ed   :  { %14142 = vmatmul.mubr.msk.f32.vlgmr.msra.gmra.mrb[54].mxu1 %vm497_vm11, %v4692_v1  ;;  %14176 = vmatprep.mubr.msk.f32.mxu0 %vm15243_vm10, %v18357_v63 }
 0x9ee   :  { %14150 = vmatpush3.xpose.msk.msra.mxu1 %vm497_vm11, %v4850_v12  ;;  %14151 = vmatprep.mubr.msk.f32.mxu1 %vm15243_vm10, %v18357_v63 }
 0x9ef   :  { %14159 = vmatprep.subr.mxu1 %v18357_v63 }
 0x9f1   :  { %14152 = vmatmul.mubr.msk.f32.vlgmr.msra.gmra.mrb[56].mxu1 %vm497_vm11, %v4848_v2 }
 0x9f2   :  { %14160 = vmatpush3.xpose.msk.msra.mxu1 %vm497_vm11, %v5006_v21  ;;  %14161 = vmatprep.mubr.msk.f32.mxu1 %vm15243_vm10, %v18357_v63 }
 0x9f3   :  { %14169 = vmatprep.subr.mxu1 %v18357_v63 }
 0x9f5   :  { %14162 = vmatmul.mubr.msk.f32.vlgmr.msra.gmra.mrb[58].mxu1 %vm497_vm11, %v5004_v13 }
 0x9f6   :  { %14171 = vmatprep.mubr.msk.f32.mxu1 %vm15243_vm10, %v18357_v63 }
 0xa52   :  { %v16240_v11 = vpop.f32.mrb[52].mxu0 }
 0xa53   :  { %v14098_v27 = vpop.f32.mrb[53].mxu0 }
 0xa7b   :  { %v16242_v5 = vpop.f32.mrb[44].mxu1 }
 0xa7c   :  { %v14093_v58 = vpop.f32.mrb[45].mxu1 }
 0xa7f   :  { %v16244_v47 = vpop.f32.mrb[46].mxu1 }
 0xa80   :  { %v14103_v57 = vpop.f32.mrb[47].mxu1 }
 0xa83   :  { %v16246_v60 = vpop.f32.mrb[48].mxu1 }
 0xa84   :  { %v16248_v41 = vpop.f32.mrb[54].mxu0  ;;  %v14113_v18 = vpop.f32.mrb[49].mxu1 }
 0xa85   :  { %v14108_v1 = vpop.f32.mrb[55].mxu0 }
 0xa88   :  { %v16250_v52 = vpop.f32.mrb[56].mxu0 }
 0xa89   :  { %v14118_v28 = vpop.f32.mrb[57].mxu0 }
 0xa8c   :  { %v16252_v12 = vpop.f32.mrb[58].mxu0 }
 0xa8d   :  { %v14128_v0 = vpop.f32.mrb[59].mxu0 }
 0xa93   :  { %v4687_v48 = vpop.f32.mrb[60].mxu0 }
 0xa94   :  { %v5160_v2 = vmul.f32 0.35355338, %v4687_v48  ;;  %v14138_v43 = vpop.f32.mrb[61].mxu0 }
 0xa96   :  { %v5168_v21 = vadd.f32 %v5160_v2, %v15529_v56 }
 0xa98   :  { %v5178_v13 = vsel %vm497_vm11, %v5168_v21, -inf }
 0xa99   :  { %5179 = vmax.xlane.f32.xlu1 %v5178_v13 }
 0xaaf   :  { %v4843_v27 = vpop.f32.mrb[62].mxu0 }
 0xab0   :  { %v14148_v58 = vpop.f32.mrb[63].mxu0  ;;  %v5162_v48 = vmul.f32 0.35355338, %v4843_v27 }
 0xab2   :  { %v5170_v3 = vadd.f32 %v5162_v48, %v15549_v30 }
 0xab7   :  { %v4999_v57 = vpop.f32.mrb[64].mxu0 }
 0xab8   :  { %v16256_v61 = vpop.f32.mrb[50].mxu1  ;;  %v14158_v18 = vpop.f32.mrb[65].mxu0 }
 0xab9   :  { %v14123_v1 = vpop.f32.mrb[51].mxu1 }
 0xaba   :  { %v5164_v1 = vmul.f32 0.35355338, %v4999_v57 }
 0xabc   :  { %v4609_v62 = vpop.f32.mrb[52].mxu1 }
 0xabd   :  { %v5159_v28 = vmul.f32 0.35355338, %v4609_v62  ;;  %v14133_v17 = vpop.f32.mrb[53].mxu1 }
 0xabf   :  { %v5167_v0 = vadd.f32 %v5159_v28, %v15526_v46  ;;  %v5155_v45 = vpop.f32.mrb[66].mxu0 }
 0xac0   :  { %v4765_v43 = vpop.f32.mrb[54].mxu1  ;;  %v14168_v33 = vpop.f32.mrb[67].mxu0 }
 0xac1   :  { %v5161_v2 = vmul.f32 0.35355338, %v4765_v43  ;;  %v14143_v44 = vpop.f32.mrb[55].mxu1  ;;  %v5175_v13 = vsel %vm497_vm11, %v5167_v0, -inf  ;;  %v5184_v33 = vsel %vm497_vm11, %v5170_v3, -inf }
 0xac2   :  { %5176 = vmax.xlane.f32.xlu0 %v5175_v13  ;;  %v5172_v44 = vadd.f32 %v5164_v1, %v15556_v39  ;;  %v5166_v43 = vmul.f32 0.35355338, %v5155_v45 }
 0xac3   :  { %v5169_v58 = vadd.f32 %v5161_v2, %v15535_v59 }
 0xac4   :  { %v4921_v18 = vpop.f32.mrb[56].mxu1  ;;  %v5174_v48 = vadd.f32 %v5166_v43, %v15564_v6 }
 0xac5   :  { %v5163_v56 = vmul.f32 0.35355338, %v4921_v18  ;;  %v14153_v62 = vpop.f32.mrb[57].mxu1  ;;  %v5181_v17 = vsel %vm497_vm11, %v5169_v58, -inf  ;;  %v5190_v18 = vsel %vm497_vm11, %v5172_v44, -inf }
 0xac6   :  { %5182 = vmax.xlane.f32.xlu0 %v5181_v17  ;;  %v5196_v62 = vsel %vm497_vm11, %v5174_v48, -inf }
 0xac7   :  { %v5171_v27 = vadd.f32 %v5163_v56, %v15546_v29 }
 0xac8   :  { %v5077_v28 = vpop.f32.mrb[58].mxu1 }
 0xac9   :  { %v5165_v13 = vmul.f32 0.35355338, %v5077_v28  ;;  %v14163_v46 = vpop.f32.mrb[59].mxu1  ;;  %v5187_v2 = vsel %vm497_vm11, %v5171_v27, -inf }
 0xaca   :  { %5185 = vmax.xlane.f32.xlu0 %v5184_v33  ;;  %5188 = vmax.xlane.f32.xlu1 %v5187_v2 }
 0xacb   :  { %v5173_v57 = vadd.f32 %v5165_v13, %v15580_v23 }
 0xacd   :  { %v5193_v56 = vsel %vm497_vm11, %v5173_v57, -inf }
 0xace   :  { %5191 = vmax.xlane.f32.xlu0 %v5190_v18  ;;  %5194 = vmax.xlane.f32.xlu1 %v5193_v56 }
 0xad2   :  { %5197 = vmax.xlane.f32.xlu0 %v5196_v62 }
 0xadf   :  { %5263 = vrot.lane.b32.xlu1 %v15444_v10, %s15255_s25 }
 0xae3   :  { %5415 = vrot.lane.b32.xlu1 %v15452_v16, %s15255_s25 }
 0xae7   :  { %5491 = vrot.lane.b32.xlu1 %v15450_v14, %s15255_s25 }
 0xae8   :  { %5339 = vrot.lane.b32.xlu0 %v15442_v8, %s15255_s25 }
 0xaeb   :  { %5643 = vrot.lane.b32.xlu1 %v15458_v20, %s15255_s25 }
 0xaec   :  { %5567 = vrot.lane.b32.xlu0 %v15460_v22, %s15255_s25 }
 0xb26   :  { %v5180_v46 = vpop.xlane.xlu1 %5179 }
 0xb27   :  { %v5200_v45 = vsub.f32 %v5168_v21, %v5180_v46 }
 0xb29   :  { %v5209_v1 = vmul.f32 1.442695, %v5200_v45 }
 0xb2b   :  { %14892 = vpow2.f32 %v5209_v1 }
 0xb35   :  { %v16284_v10 = vpop.eup %14892 }
 0xb36   :  { %v5226_v16 = vsel %vm497_vm11, %v16284_v10, 0.0 }
 0xb37   :  { %5227 = vadd.xlane.f32.xlu0 %v5226_v16 }
 0xb4f   :  { %v5177_v14 = vpop.xlane.xlu0 %5176 }
 0xb50   :  { %v5199_v17 = vsub.f32 %v5167_v0, %v5177_v14 }
 0xb52   :  { %v5207_v28 = vmul.f32 1.442695, %v5199_v17 }
 0xb53   :  { %v5183_v8 = vpop.xlane.xlu0 %5182 }
 0xb54   :  { %14894 = vpow2.f32 %v5207_v28  ;;  %v5201_v33 = vsub.f32 %v5169_v58, %v5183_v8 }
 0xb56   :  { %v5211_v20 = vmul.f32 1.442695, %v5201_v33 }
 0xb57   :  { %v5189_v43 = vpop.xlane.xlu1 %5188  ;;  %v5186_v13 = vpop.xlane.xlu0 %5185 }
 0xb58   :  { %14896 = vpow2.f32 %v5211_v20  ;;  %v5203_v22 = vsub.f32 %v5171_v27, %v5189_v43  ;;  %v5202_v21 = vsub.f32 %v5170_v3, %v5186_v13 }
 0xb5a   :  { %v5215_v2 = vmul.f32 1.442695, %v5203_v22  ;;  %v5213_v18 = vmul.f32 1.442695, %v5202_v21 }
 0xb5b   :  { %v5195_v56 = vpop.xlane.xlu1 %5194  ;;  %v5192_v62 = vpop.xlane.xlu0 %5191 }
 0xb5c   :  { %14898 = vpow2.f32 %v5215_v2  ;;  %v5205_v46 = vsub.f32 %v5173_v57, %v5195_v56  ;;  %v5204_v45 = vsub.f32 %v5172_v44, %v5192_v62 }
 0xb5d   :  { %14900 = vpow2.f32 %v5213_v18 }
 0xb5e   :  { %v16288_v1 = vpop.eup %14894  ;;  %v5219_v0 = vmul.f32 1.442695, %v5205_v46  ;;  %v5217_v16 = vmul.f32 1.442695, %v5204_v45 }
 0xb5f   :  { %v5264_v14 = vpop.permute.xlu1 %5263  ;;  %v5198_v58 = vpop.xlane.xlu0 %5197  ;;  %v5223_v17 = vsel %vm497_vm11, %v16288_v1, 0.0 }
 0xb60   :  { %14902 = vpow2.f32 %v5219_v0  ;;  %v5206_v27 = vsub.f32 %v5174_v48, %v5198_v58  ;;  %14170 = vmatpush3.msra.mxu1 %v5264_v14  ;;  %5224 = vadd.xlane.f32.xlu1 %v5223_v17 }
 0xb61   :  { %14904 = vpow2.f32 %v5217_v16  ;;  %14179 = vmatprep.subr.mxu1 %v18357_v63 }
 0xb62   :  { %v16293_v3 = vpop.eup %14896  ;;  %v5221_v44 = vmul.f32 1.442695, %v5206_v27 }
 0xb63   :  { %v5340_v57 = vpop.permute.xlu0 %5339  ;;  %v5229_v28 = vsel %vm497_vm11, %v16293_v3, 0.0 }
 0xb64   :  { %14906 = vpow2.f32 %v5221_v44  ;;  %5230 = vadd.xlane.f32.xlu1 %v5229_v28  ;;  %14175 = vmatpush3.msra.mxu0 %v5340_v57  ;;  %v343_v57 = vld [vmem:[#allocation8 + $0x20] sm:$0xff]  ;;  %v344_v28 = vld [vmem:[#allocation8 + $0x28] sm:$0xff] }
 0xb65   :  { %14184 = vmatprep.subr.mxu0 %v18357_v63 }
 0xb66   :  { %v16298_v8 = vpop.eup %14898 }
 0xb67   :  { %v16300_v48 = vpop.eup %14900  ;;  %v5235_v33 = vsel %vm497_vm11, %v16298_v8, 0.0 }
 0xb68   :  { %5236 = vadd.xlane.f32.xlu1 %v5235_v33  ;;  %v5232_v20 = vsel %vm497_vm11, %v16300_v48, 0.0  ;;  %v346_v33 = vld [vmem:[#allocation8 + $0x38] sm:$0xff] }
 0xb69   :  { %5233 = vadd.xlane.f32.xlu0 %v5232_v20 }
 0xb6a   :  { %v16306_v43 = vpop.eup %14902 }
 0xb6b   :  { %v16308_v13 = vpop.eup %14904  ;;  %v5241_v22 = vsel %vm497_vm11, %v16306_v43, 0.0 }
 0xb6c   :  { %5242 = vadd.xlane.f32.xlu1 %v5241_v22  ;;  %v5238_v21 = vsel %vm497_vm11, %v16308_v13, 0.0 }
 0xb6d   :  { %5239 = vadd.xlane.f32.xlu0 %v5238_v21 }
 0xb6e   :  { %v16314_v2 = vpop.eup %14906 }
 0xb6f   :  { %v5244_v18 = vsel %vm497_vm11, %v16314_v2, 0.0 }
 0xb71   :  { %5245 = vadd.xlane.f32.xlu0 %v5244_v18 }
 0xb7d   :  { %5795 = vrot.lane.b32.xlu1 %v15466_v24, %s15255_s25  ;;  %v5568_v24 = vpop.permute.xlu0 %5567 }
 0xb81   :  { %5986 = vrot.lane.b32.xlu1 %v16007_v40, %s15238_s29  ;;  %v5416_v40 = vpop.permute.xlu1 %5415 }
 0xb85   :  { %6018 = vrot.lane.b32.xlu1 %v16240_v11, %s15256_s26 }
 0xb87   :  { %5719 = vrot.lane.b32.xlu0 %v15468_v26, %s15255_s25 }
 0xb89   :  { %5990 = vrot.lane.b32.xlu1 %v16015_v38, %s15238_s29  ;;  %v5492_v38 = vpop.permute.xlu1 %5491 }
 0xb8b   :  { %5984 = vrot.lane.b32.xlu0 %v16009_v19, %s15238_s29 }
 0xb8d   :  { %6022 = vrot.lane.b32.xlu1 %v16248_v41, %s15256_s26 }
 0xb8f   :  { %6016 = vrot.lane.b32.xlu0 %v16242_v5, %s15256_s26 }
 0xb91   :  { %5994 = vrot.lane.b32.xlu1 %v16017_v35, %s15238_s29 }
 0xb93   :  { %5988 = vrot.lane.b32.xlu0 %v16011_v34, %s15238_s29 }
 0xb95   :  { %6026 = vrot.lane.b32.xlu1 %v16250_v52, %s15256_s26 }
 0xb97   :  { %6020 = vrot.lane.b32.xlu0 %v16244_v47, %s15256_s26 }
 0xb99   :  { %5998 = vrot.lane.b32.xlu1 %v16019_v7, %s15238_s29 }
 0xb9b   :  { %5992 = vrot.lane.b32.xlu0 %v16013_v25, %s15238_s29  ;;  %v5644_v25 = vpop.permute.xlu1 %5643 }
 0xb9f   :  { %6024 = vrot.lane.b32.xlu0 %v16246_v60, %s15256_s26 }
 0xba3   :  { %5996 = vrot.lane.b32.xlu0 %v16026_v51, %s15238_s29 }
 0xbc4   :  { %v5228_v26 = vpop.xlane.xlu0 %5227 }
 0xbc5   :  { %14908 = vrcp.f32 %v5228_v26 }
 0xbcf   :  { %v14909_v19 = vpop.eup %14908 }
 0xbd0   :  { %v16351_v34 = vmul.f32 %v14909_v19, %v16284_v10 }
 0xbd2   :  { %18374 = vst [vmem:[#allocation53_spill] sm:$0xff] %v16351_v34  ;;  %14177 = vmatmul.mubr.msk.f32.vlgmr.msra.gmra.mrb[68].mxu0 %vm497_vm11, %v16351_v34 }
 0xbd3   :  { %14185 = vmatpush3.msra.mxu0 %v5492_v38  ;;  %14186 = vmatprep.mubr.msk.f32.mxu0 %vm15243_vm10, %v18357_v63 }
 0xbd4   :  { %14194 = vmatprep.subr.mxu0 %v18357_v63 }
 0xbed   :  { %v5225_v35 = vpop.xlane.xlu1 %5224 }
 0xbee   :  { %14910 = vrcp.f32 %v5225_v35 }
 0xbf1   :  { %v5231_v7 = vpop.xlane.xlu1 %5230 }
 0xbf2   :  { %14912 = vrcp.f32 %v5231_v7 }
 0xbf5   :  { %v5237_v51 = vpop.xlane.xlu1 %5236 }
 0xbf6   :  { %14914 = vrcp.f32 %v5237_v51  ;;  %v5234_v11 = vpop.xlane.xlu0 %5233 }
 0xbf7   :  { %14916 = vrcp.f32 %v5234_v11 }
 0xbf8   :  { %v14911_v5 = vpop.eup %14910 }
 0xbf9   :  { %v5243_v47 = vpop.xlane.xlu1 %5242  ;;  %v16359_v60 = vmul.f32 %v14911_v5, %v16288_v1 }
 0xbfa   :  { %14918 = vrcp.f32 %v5243_v47  ;;  %v5240_v41 = vpop.xlane.xlu0 %5239 }
 0xbfb   :  { %18375 = vst [vmem:[#allocation54_spill] sm:$0xff] %v16359_v60  ;;  %14920 = vrcp.f32 %v5240_v41  ;;  %14172 = vmatmul.mubr.msk.f32.vlgmr.msra.gmra.mrb[60].mxu1 %vm497_vm11, %v16359_v60 }
 0xbfc   :  { %v14913_v52 = vpop.eup %14912  ;;  %14180 = vmatpush3.msra.mxu1 %v5416_v40  ;;  %14181 = vmatprep.mubr.msk.f32.mxu1 %vm15243_vm10, %v18357_v63 }
 0xbfd   :  { %14189 = vmatprep.subr.mxu1 %v18357_v63  ;;  %v16367_v10 = vmul.f32 %v14913_v52, %v16293_v3  ;;  %v5796_v27 = vpop.permute.xlu1 %5795 }
 0xbfe   :  { %v5246_v56 = vpop.xlane.xlu0 %5245 }
 0xbff   :  { %18376 = vst [vmem:[#allocation55_spill] sm:$0xff] %v16367_v10  ;;  %14922 = vrcp.f32 %v5246_v56  ;;  %14182 = vmatmul.mubr.msk.f32.vlgmr.msra.gmra.mrb[62].mxu1 %vm497_vm11, %v16367_v10 }
 0xc00   :  { %v14915_v62 = vpop.eup %14914  ;;  %14190 = vmatpush3.msra.mxu1 %v5568_v24  ;;  %14191 = vmatprep.mubr.msk.f32.mxu1 %vm15243_vm10, %v18357_v63 }
 0xc01   :  { %v14917_v46 = vpop.eup %14916  ;;  %14199 = vmatprep.subr.mxu1 %v18357_v63  ;;  %v16375_v45 = vmul.f32 %v14915_v62, %v16298_v8  ;;  %v345_v8 = vld [vmem:[#allocation8 + $0x30] sm:$0xff]  ;;  %v5987_v5 = vpop.permute.xlu1 %5986 }
 0xc02   :  { %v5720_v1 = vpop.permute.xlu0 %5719  ;;  %v16378_v0 = vmul.f32 %v14917_v46, %v16300_v48  ;;  %v14697_v48 = vpack.c.bf16 %v344_v28, %v343_v57  ;;  %v14701_v20 = vpack.c.bf16 %v346_v33, %v345_v8  ;;  %v6073_v8 = vsel %vm497_vm11, %v15776_v36, %v5987_v5 }
 0xc03   :  { %18377 = vst [vmem:[#allocation56_spill] sm:$0xff] %v16375_v45  ;;  %14192 = vmatmul.mubr.msk.f32.vlgmr.msra.gmra.mrb[64].mxu1 %vm497_vm11, %v16375_v45 }
 0xc04   :  { %18378 = vst [vmem:[#allocation57_spill] sm:$0xff] %v16378_v0  ;;  %v14919_v16 = vpop.eup %14918  ;;  %14187 = vmatmul.mubr.msk.f32.vlgmr.msra.gmra.mrb[70].mxu0 %vm497_vm11, %v16378_v0  ;;  %14200 = vmatpush3.msra.mxu1 %v5720_v1 }
 0xc05   :  { %v14921_v14 = vpop.eup %14920  ;;  %14195 = vmatpush3.msra.mxu0 %v5644_v25  ;;  %14196 = vmatprep.mubr.msk.f32.mxu0 %vm15243_vm10, %v18357_v63  ;;  %v16387_v58 = vmul.f32 %v14919_v16, %v16306_v43  ;;  %v6019_v41 = vpop.permute.xlu1 %6018 }
 0xc06   :  { %14201 = vmatprep.mubr.msk.f32.mxu1 %vm15243_vm10, %v18357_v63  ;;  %14204 = vmatprep.subr.mxu0 %v18357_v63  ;;  %v16393_v17 = vmul.f32 %v14921_v14, %v16308_v13  ;;  %v5985_v47 = vpop.permute.xlu0 %5984 }
 0xc07   :  { %18379 = vst [vmem:[#allocation58_spill] sm:$0xff] %v16387_v58  ;;  %14202 = vmatmul.mubr.msk.f32.vlgmr.msra.gmra.mrb[66].mxu1 %vm497_vm11, %v16387_v58  ;;  %14698 = vmatprep.subr.bf16.mxu1 %v14697_v48 }
 0xc08   :  { %18380 = vst [vmem:[#allocation59_spill] sm:$0xff] %v16393_v17  ;;  %14197 = vmatmul.mubr.msk.f32.vlgmr.msra.gmra.mrb[72].mxu0 %vm497_vm11, %v16393_v17  ;;  %14700 = vmatpush3.bf16.msra.mxu1 %v14697_v48 }
 0xc09   :  { %v14923_v3 = vpop.eup %14922  ;;  %14205 = vmatpush3.msra.mxu0 %v5796_v27  ;;  %14206 = vmatprep.mubr.msk.f32.mxu0 %vm15243_vm10, %v18357_v63  ;;  %v5991_v56 = vpop.permute.xlu1 %5990 }
 0xc0a   :  { %v16402_v44 = vmul.f32 %v14923_v3, %v16314_v2  ;;  %14702 = vmatprep.subr.bf16.mxu1 %v14701_v20  ;;  %v6017_v52 = vpop.permute.xlu0 %6016 }
 0xc0c   :  { %18381 = vst [vmem:[#allocation60_spill] sm:$0xff] %v16402_v44  ;;  %14207 = vmatmul.mubr.msk.f32.vlgmr.msra.gmra.mrb[74].mxu0 %vm497_vm11, %v16402_v44  ;;  %14704 = vmatpush3.bf16.msra.mxu1 %v14701_v20  ;;  %v6081_v20 = vsel %vm157_vm0, %v6073_v8, %v6019_v41 }
 0xc0e   :  { %v5989_v62 = vpop.permute.xlu0 %5988 }
 0xc12   :  { %v6021_v46 = vpop.permute.xlu0 %6020 }
 0xc16   :  { %v5993_v16 = vpop.permute.xlu0 %5992 }
 0xc1a   :  { %v6025_v27 = vpop.permute.xlu0 %6024 }
 0xc1e   :  { %v5997_v57 = vpop.permute.xlu0 %5996 }
 0xca5   :  { %v5411_v43 = vpop.f32.mrb[68].mxu0 }
 0xca6   :  { %6050 = vrot.lane.b32.xlu1 %v5411_v43, %s15257_s27  ;;  %v14178_v13 = vpop.f32.mrb[69].mxu0 }
 0xcce   :  { %v5335_v22 = vpop.f32.mrb[60].mxu1 }
 0xccf   :  { %v14173_v21 = vpop.f32.mrb[61].mxu1  ;;  %6048 = vrot.lane.b32.xlu0 %v5335_v22, %s15257_s27  ;;  %v6074_v22 = vsel %vm497_vm11, %v15778_v42, %v5989_v62 }
 0xcd2   :  { %v5487_v2 = vpop.f32.mrb[62].mxu1 }
 0xcd3   :  { %v14183_v18 = vpop.f32.mrb[63].mxu1  ;;  %6052 = vrot.lane.b32.xlu0 %v5487_v2, %s15257_s27  ;;  %v6076_v2 = vsel %vm497_vm11, %v15780_v55, %v5993_v16 }
 0xcd4   :  { %v6075_v18 = vsel %vm497_vm11, %v15782_v31, %v5991_v56 }
 0xcd6   :  { %v5639_v24 = vpop.f32.mrb[64].mxu1 }
 0xcd7   :  { %v5563_v26 = vpop.f32.mrb[70].mxu0  ;;  %6056 = vrot.lane.b32.xlu0 %v5639_v24, %s15257_s27  ;;  %v14193_v40 = vpop.f32.mrb[65].mxu1  ;;  %v6084_v24 = vsel %vm157_vm0, %v6076_v2, %v6025_v27 }
 0xcd8   :  { %6054 = vrot.lane.b32.xlu1 %v5563_v26, %s15257_s27  ;;  %v14188_v19 = vpop.f32.mrb[71].mxu0 }
 0xcda   :  { %v5791_v38 = vpop.f32.mrb[66].mxu1 }
 0xcdb   :  { %v5715_v25 = vpop.f32.mrb[72].mxu0  ;;  %6028 = vrot.lane.b32.xlu0 %v16256_v61, %s15256_s26  ;;  %v14203_v35 = vpop.f32.mrb[67].mxu1 }
 0xcdc   :  { %6058 = vrot.lane.b32.xlu1 %v5715_v25, %s15257_s27  ;;  %v14198_v7 = vpop.f32.mrb[73].mxu0  ;;  %v6023_v61 = vpop.permute.xlu1 %6022 }
 0xcdd   :  { %v6083_v42 = vsel %vm157_vm0, %v6075_v18, %v6023_v61 }
 0xcdf   :  { %v5867_v51 = vpop.f32.mrb[74].mxu0  ;;  %6060 = vrot.lane.b32.xlu0 %v5791_v38, %s15257_s27 }
 0xce0   :  { %6030 = vrot.lane.b32.xlu1 %v16252_v12, %s15256_s26  ;;  %v14208_v11 = vpop.f32.mrb[75].mxu0  ;;  %v5995_v1 = vpop.permute.xlu1 %5994  ;;  %v6072_v12 = vsel %vm497_vm11, %v15774_v15, %v5985_v47  ;;  %v6082_v15 = vsel %vm157_vm0, %v6074_v22, %v6021_v46 }
 0xce1   :  { %v6080_v48 = vsel %vm157_vm0, %v6072_v12, %v6017_v52  ;;  %v6077_v25 = vsel %vm497_vm11, %v15784_v32, %v5995_v1 }
 0xce4   :  { %6062 = vrot.lane.b32.xlu1 %v5867_v51, %s15257_s27  ;;  %v6027_v14 = vpop.permute.xlu1 %6026  ;;  %v6078_v51 = vsel %vm497_vm11, %v15793_v9, %v5997_v57  ;;  %v16458_v9 = vld [vmem:[#allocation8 + $0xa0] sm:$0xff] }
 0xce5   :  { %v6085_v31 = vsel %vm157_vm0, %v6077_v25, %v6027_v14  ;;  %v6099_v61 = vrot.slane %v16458_v9, %v15352_v4  ;;  %v18385_v25 = vld [vmem:[#allocation26_spill] sm:$0xff] }
 0xce8   :  { %v5999_v3 = vpop.permute.xlu1 %5998 }
 0xce9   :  { %v6079_v32 = vsel %vm497_vm11, %v15786_v37, %v5999_v3 }
 0xd18   :  { %v6051_v28 = vpop.permute.xlu1 %6050 }
 0xd19   :  { %v6089_v13 = vsel %vm5959_vm13, %v6081_v20, %v6051_v28 }
 0xd41   :  { %v6049_v33 = vpop.permute.xlu0 %6048 }
 0xd42   :  { %v6088_v43 = vsel %vm5959_vm13, %v6080_v48, %v6049_v33 }
 0xd43   :  { %14217 = vmatprep.mubr.msk.f32.mxu1 %vm364_vm9, %v6088_v43 }
 0xd44   :  { %14218 = vmatmul.mubr.msk.f32.vlgmr.msra.gmra.mrb[68].mxu1 %vm364_vm9, %v6089_v13 }
 0xd45   :  { %v6053_v21 = vpop.permute.xlu0 %6052 }
 0xd46   :  { %v6090_v36 = vsel %vm5959_vm13, %v6082_v15, %v6053_v21  ;;  %v18382_v15 = vld [vmem:[#allocation23_spill] sm:$0xff] }
 0xd47   :  { %14220 = vmatprep.mubr.msk.f32.mxu1 %vm364_vm9, %v6090_v36  ;;  %v18383_v36 = vld [vmem:[#allocation24_spill] sm:$0xff] }
 0xd49   :  { %v6057_v26 = vpop.permute.xlu0 %6056 }
 0xd4a   :  { %v6055_v40 = vpop.permute.xlu1 %6054  ;;  %v6092_v19 = vsel %vm5959_vm13, %v6084_v24, %v6057_v26 }
 0xd4b   :  { %v6091_v38 = vsel %vm5959_vm13, %v6083_v42, %v6055_v40 }
 0xd4c   :  { %14221 = vmatmul.mubr.msk.f32.gmra.mrb[70].mxu1 %vm364_vm9, %v6091_v38 }
 0xd4d   :  { %14223 = vmatprep.mubr.msk.f32.mxu1 %vm364_vm9, %v6092_v19  ;;  %v6029_v55 = vpop.permute.xlu0 %6028  ;;  %v18384_v19 = vld [vmem:[#allocation25_spill] sm:$0xff] }
 0xd4e   :  { %v6059_v35 = vpop.permute.xlu1 %6058  ;;  %v6086_v11 = vsel %vm157_vm0, %v6078_v51, %v6029_v55 }
 0xd4f   :  { %v6093_v7 = vsel %vm5959_vm13, %v6085_v31, %v6059_v35 }
 0xd50   :  { %14224 = vmatmul.mubr.msk.f32.gmra.mrb[72].mxu1 %vm364_vm9, %v6093_v7 }
 0xd51   :  { %v6061_v5 = vpop.permute.xlu0 %6060 }
 0xd52   :  { %v6031_v47 = vpop.permute.xlu1 %6030  ;;  %v6094_v41 = vsel %vm5959_vm13, %v6086_v11, %v6061_v5 }
 0xd53   :  { %14226 = vmatprep.mubr.msk.f32.mxu1 %vm364_vm9, %v6094_v41  ;;  %v6087_v52 = vsel %vm157_vm0, %v6079_v32, %v6031_v47 }
 0xd56   :  { %v6063_v56 = vpop.permute.xlu1 %6062 }
 0xd57   :  { %v6095_v62 = vsel %vm5959_vm13, %v6087_v52, %v6063_v56 }
 0xd58   :  { %14227 = vmatmul.mubr.msk.f32.gmra.mrb[74].mxu1 %vm364_vm9, %v6095_v62 }
 0xe17   :  { %v14219_v46 = vpop.f32.mrb[68].mxu1 }
 0xe18   :  { %v6196_v1 = vadd.f32 %v14219_v46, %v6099_v61  ;;  %v6190_v16 = vpop.f32.mrb[69].mxu1 }
 0xe19   :  { %v6191_v14 = vadd.f32 %v6190_v16, %v6099_v61 }
 0xe1a   :  { %v6230_v27 = vadd.f32 %v6196_v1, %v15407_v50 }
 0xe1b   :  { %v6229_v37 = vadd.f32 %v6191_v14, %v15405_v49 }
 0xe1c   :  { %v6240_v3 = vsel %vm364_vm9, %v6230_v27, 0.0 }
 0xe1d   :  { %6241 = vadd.xlane.f32.xlu1 %v6240_v3  ;;  %v6237_v57 = vsel %vm364_vm9, %v6229_v37, 0.0 }
 0xe1e   :  { %6238 = vadd.xlane.f32.xlu0 %v6237_v57 }
 0xe1f   :  { %v14222_v12 = vpop.f32.mrb[70].mxu1 }
 0xe20   :  { %v6206_v28 = vadd.f32 %v14222_v12, %v6099_v61  ;;  %v6200_v8 = vpop.f32.mrb[71].mxu1 }
 0xe21   :  { %v6201_v48 = vadd.f32 %v6200_v8, %v6099_v61 }
 0xe22   :  { %v6232_v22 = vadd.f32 %v6206_v28, %v15415_v54 }
 0xe23   :  { %v6231_v33 = vadd.f32 %v6201_v48, %v15413_v53  ;;  %v14225_v20 = vpop.f32.mrb[72].mxu1 }
 0xe24   :  { %v6216_v43 = vadd.f32 %v14225_v20, %v6099_v61  ;;  %v6210_v13 = vpop.f32.mrb[73].mxu1  ;;  %v6246_v18 = vsel %vm364_vm9, %v6232_v22, 0.0 }
 0xe25   :  { %v6211_v50 = vadd.f32 %v6210_v13, %v6099_v61  ;;  %v6243_v49 = vsel %vm364_vm9, %v6231_v33, 0.0 }
 0xe26   :  { %6244 = vadd.xlane.f32.xlu0 %v6243_v49  ;;  %v6234_v2 = vadd.f32 %v6216_v43, %v18383_v36 }
 0xe27   :  { %v6233_v21 = vadd.f32 %v6211_v50, %v18382_v15 }
 0xe28   :  { %v6252_v54 = vsel %vm364_vm9, %v6234_v2, 0.0 }
 0xe29   :  { %v6249_v24 = vsel %vm364_vm9, %v6233_v21, 0.0 }
 0xe2a   :  { %6247 = vadd.xlane.f32.xlu0 %v6246_v18  ;;  %6250 = vadd.xlane.f32.xlu1 %v6249_v24 }
 0xe2b   :  { %v14228_v53 = vpop.f32.mrb[74].mxu1 }
 0xe2c   :  { %v6226_v26 = vadd.f32 %v14228_v53, %v6099_v61  ;;  %v6220_v42 = vpop.f32.mrb[75].mxu1 }
 0xe2d   :  { %v6221_v40 = vadd.f32 %v6220_v42, %v6099_v61 }
 0xe2e   :  { %v6236_v38 = vadd.f32 %v6226_v26, %v18384_v19  ;;  %6253 = vadd.xlane.f32.xlu0 %v6252_v54  ;;  %v347_v54 = vld [vmem:[#allocation8 + $0x40] sm:$0xff]  ;;  %v348_v19 = vld [vmem:[#allocation8 + $0x48] sm:$0xff] }
 0xe2f   :  { %v6235_v55 = vadd.f32 %v6221_v40, %v18385_v25  ;;  %v14705_v25 = vpack.c.bf16 %v348_v19, %v347_v54 }
 0xe30   :  { %v6258_v31 = vsel %vm364_vm9, %v6236_v38, 0.0 }
 0xe31   :  { %v6255_v35 = vsel %vm364_vm9, %v6235_v55, 0.0  ;;  %14706 = vmatprep.subr.bf16.mxu0 %v14705_v25 }
 0xe32   :  { %6259 = vadd.xlane.f32.xlu0 %v6258_v31  ;;  %6256 = vadd.xlane.f32.xlu1 %v6255_v35  ;;  %v351_v35 = vld [vmem:[#allocation8 + $0x60] sm:$0xff] }
 0xe33   :  { %14708 = vmatpush3.bf16.msra.mxu0 %v14705_v25 }
 0xeaa   :  { %v6242_v7 = vpop.xlane.xlu1 %6241 }
 0xeab   :  { %v6263_v51 = vmul.f32 0.03125, %v6242_v7  ;;  %v6239_v11 = vpop.xlane.xlu0 %6238  ;;  %v352_v7 = vld [vmem:[#allocation8 + $0x68] sm:$0xff] }
 0xeac   :  { %v6262_v5 = vmul.f32 0.03125, %v6239_v11  ;;  %v14713_v11 = vpack.c.bf16 %v352_v7, %v351_v35 }
 0xead   :  { %v16478_v47 = vsub.f32 %v6230_v27, %v6263_v51  ;;  %v353_v51 = vld [vmem:[#allocation8 + $0x70] sm:$0xff] }
 0xeae   :  { %v16480_v41 = vsub.f32 %v6229_v37, %v6262_v5  ;;  %v354_v5 = vld [vmem:[#allocation8 + $0x78] sm:$0xff]  ;;  %14714 = vmatprep.subr.bf16.mxu1 %v14713_v11 }
 0xeaf   :  { %v6279_v32 = vmul.f32 %v16478_v47, %v16478_v47  ;;  %14716 = vmatpush3.bf16.msra.mxu1 %v14713_v11 }
 0xeb0   :  { %v6278_v52 = vmul.f32 %v16480_v41, %v16480_v41 }
 0xeb1   :  { %v6289_v56 = vsel %vm364_vm9, %v6279_v32, 0.0  ;;  %v14717_v32 = vpack.c.bf16 %v354_v5, %v353_v51 }
 0xeb2   :  { %6290 = vadd.xlane.f32.xlu0 %v6289_v56  ;;  %v6286_v62 = vsel %vm364_vm9, %v6278_v52, 0.0  ;;  %v355_v52 = vld [vmem:[#allocation8 + $0x80] sm:$0xff]  ;;  %v356_v56 = vld [vmem:[#allocation8 + $0x88] sm:$0xff] }
 0xeb3   :  { %v6245_v61 = vpop.xlane.xlu0 %6244  ;;  %6287 = vadd.xlane.f32.xlu1 %v6286_v62  ;;  %14718 = vmatprep.subr.bf16.mxu1 %v14717_v32  ;;  %v14721_v62 = vpack.c.bf16 %v356_v56, %v355_v52 }
 0xeb4   :  { %v6264_v46 = vmul.f32 0.03125, %v6245_v61  ;;  %14720 = vmatpush3.bf16.msra.mxu1 %v14717_v32 }
 0xeb5   :  { %14722 = vmatprep.subr.bf16.mxu1 %v14721_v62 }
 0xeb6   :  { %v16488_v1 = vsub.f32 %v6231_v33, %v6264_v46 }
 0xeb7   :  { %v6251_v16 = vpop.xlane.xlu1 %6250  ;;  %v6248_v14 = vpop.xlane.xlu0 %6247 }
 0xeb8   :  { %v6266_v27 = vmul.f32 0.03125, %v6251_v16  ;;  %v6265_v37 = vmul.f32 0.03125, %v6248_v14  ;;  %v6280_v3 = vmul.f32 %v16488_v1, %v16488_v1  ;;  %14724 = vmatpush3.bf16.msra.mxu1 %v14721_v62 }
 0xeba   :  { %v16492_v57 = vsub.f32 %v6233_v21, %v6266_v27  ;;  %v16494_v12 = vsub.f32 %v6232_v22, %v6265_v37  ;;  %v6292_v28 = vsel %vm364_vm9, %v6280_v3, 0.0 }
 0xebb   :  { %6293 = vadd.xlane.f32.xlu1 %v6292_v28  ;;  %v6254_v8 = vpop.xlane.xlu0 %6253 }
 0xebc   :  { %v6267_v48 = vmul.f32 0.03125, %v6254_v8  ;;  %v6282_v33 = vmul.f32 %v16492_v57, %v16492_v57  ;;  %v6281_v20 = vmul.f32 %v16494_v12, %v16494_v12 }
 0xebe   :  { %v16501_v43 = vsub.f32 %v6234_v2, %v6267_v48  ;;  %v6298_v13 = vsel %vm364_vm9, %v6282_v33, 0.0  ;;  %v6295_v50 = vsel %vm364_vm9, %v6281_v20, 0.0  ;;  %v18386_v20 = vld [vmem:[#allocation16_spill] sm:$0xff] }
 0xebf   :  { %v6257_v49 = vpop.xlane.xlu1 %6256  ;;  %6299 = vadd.xlane.f32.xlu1 %v6298_v13  ;;  %6296 = vadd.xlane.f32.xlu0 %v6295_v50  ;;  %v6260_v22 = vpop.xlane.xlu0 %6259  ;;  %v6345_v13 = vrot.slane %v16458_v9, %v18386_v20 }
 0xec0   :  { %v6268_v15 = vmul.f32 0.03125, %v6257_v49  ;;  %v6269_v21 = vmul.f32 0.03125, %v6260_v22  ;;  %v6283_v36 = vmul.f32 %v16501_v43, %v16501_v43 }
 0xec2   :  { %v16507_v18 = vsub.f32 %v6235_v55, %v6268_v15  ;;  %v16509_v24 = vsub.f32 %v6236_v38, %v6269_v21  ;;  %v6301_v2 = vsel %vm364_vm9, %v6283_v36, 0.0  ;;  %v349_v38 = vld [vmem:[#allocation8 + $0x50] sm:$0xff]  ;;  %v350_v55 = vld [vmem:[#allocation8 + $0x58] sm:$0xff]  ;;  %v18387_v21 = vld [vmem:[#allocation18_spill] sm:$0xff] }
 0xec3   :  { %6302 = vadd.xlane.f32.xlu0 %v6301_v2  ;;  %v14709_v31 = vpack.c.bf16 %v350_v55, %v349_v38  ;;  %v6357_v36 = vrot.slane %v16458_v9, %v18387_v21 }
 0xec4   :  { %v6284_v53 = vmul.f32 %v16507_v18, %v16507_v18  ;;  %v6285_v26 = vmul.f32 %v16509_v24, %v16509_v24 }
 0xec5   :  { %14710 = vmatprep.subr.bf16.mxu0 %v14709_v31 }
 0xec6   :  { %v6304_v42 = vsel %vm364_vm9, %v6284_v53, 0.0  ;;  %v6307_v40 = vsel %vm364_vm9, %v6285_v26, 0.0  ;;  %14712 = vmatpush3.bf16.msra.mxu0 %v14709_v31 }
 0xec7   :  { %6305 = vadd.xlane.f32.xlu1 %v6304_v42  ;;  %6308 = vadd.xlane.f32.xlu0 %v6307_v40 }
 0xf3f   :  { %v6291_v61 = vpop.xlane.xlu0 %6290 }
 0xf40   :  { %v6311_v46 = vmul.f32 0.03125, %v6291_v61  ;;  %v6288_v16 = vpop.xlane.xlu1 %6287 }
 0xf41   :  { %v6310_v14 = vmul.f32 0.03125, %v6288_v16 }
 0xf42   :  { %v6319_v27 = vadd.f32 1e-05, %v6311_v46 }
 0xf43   :  { %v6318_v37 = vadd.f32 1e-05, %v6310_v14 }
 0xf44   :  { %14924 = vrsqrt.f32 %v6319_v27 }
 0xf45   :  { %14926 = vrsqrt.f32 %v6318_v37 }
 0xf48   :  { %v6294_v3 = vpop.xlane.xlu1 %6293 }
 0xf49   :  { %v6312_v28 = vmul.f32 0.03125, %v6294_v3 }
 0xf4b   :  { %v6320_v8 = vadd.f32 1e-05, %v6312_v28 }
 0xf4c   :  { %v6300_v48 = vpop.xlane.xlu1 %6299  ;;  %v6297_v33 = vpop.xlane.xlu0 %6296 }
 0xf4d   :  { %14928 = vrsqrt.f32 %v6320_v8  ;;  %v6314_v50 = vmul.f32 0.03125, %v6300_v48  ;;  %v6313_v49 = vmul.f32 0.03125, %v6297_v33 }
 0xf4e   :  { %v14925_v22 = vpop.eup %14924 }
 0xf4f   :  { %v14927_v15 = vpop.eup %14926  ;;  %v6335_v2 = vmul.f32 %v14925_v22, %v16478_v47  ;;  %v6322_v53 = vadd.f32 1e-05, %v6314_v50  ;;  %v6321_v26 = vadd.f32 1e-05, %v6313_v49 }
 0xf50   :  { %v6303_v42 = vpop.xlane.xlu0 %6302  ;;  %v6334_v40 = vmul.f32 %v14927_v15, %v16480_v41 }
 0xf51   :  { %14930 = vrsqrt.f32 %v6322_v53  ;;  %v6315_v54 = vmul.f32 0.03125, %v6303_v42  ;;  %v6347_v19 = vmul.f32 %v6345_v13, %v6335_v2  ;;  %v357_v2 = vld [vmem:[#allocation8 + $0x90] sm:$0xff]  ;;  %v358_v53 = vld [vmem:[#allocation8 + $0x98] sm:$0xff] }
 0xf52   :  { %14932 = vrsqrt.f32 %v6321_v26  ;;  %v6346_v25 = vmul.f32 %v6345_v13, %v6334_v40 }
 0xf53   :  { %v6323_v38 = vadd.f32 1e-05, %v6315_v54  ;;  %v16524_v55 = vadd.f32 %v6357_v36, %v6347_v19 }
 0xf54   :  { %v6306_v31 = vpop.xlane.xlu1 %6305  ;;  %v6309_v35 = vpop.xlane.xlu0 %6308  ;;  %v16526_v7 = vadd.f32 %v6357_v36, %v6346_v25 }
 0xf55   :  { %14934 = vrsqrt.f32 %v6323_v38  ;;  %v6316_v51 = vmul.f32 0.03125, %v6306_v31  ;;  %v6317_v47 = vmul.f32 0.03125, %v6309_v35 }
 0xf56   :  { %14237 = vmatprep.mubr.msk.f32.mxu0 %vm364_vm9, %v16526_v7 }
 0xf57   :  { %v14929_v11 = vpop.eup %14928  ;;  %v6324_v41 = vadd.f32 1e-05, %v6316_v51  ;;  %v6325_v5 = vadd.f32 1e-05, %v6317_v47  ;;  %14238 = vmatmul.mubr.msk.f32.vlgmr.msra.gmra.mrb[76].mxu0 %vm364_vm9, %v16524_v55 }
 0xf58   :  { %v6336_v32 = vmul.f32 %v14929_v11, %v16488_v1 }
 0xf59   :  { %14936 = vrsqrt.f32 %v6324_v41 }
 0xf5a   :  { %14938 = vrsqrt.f32 %v6325_v5  ;;  %v6348_v52 = vmul.f32 %v6345_v13, %v6336_v32 }
 0xf5b   :  { %v14931_v56 = vpop.eup %14930 }
 0xf5c   :  { %v14933_v62 = vpop.eup %14932  ;;  %v16533_v61 = vadd.f32 %v6357_v36, %v6348_v52  ;;  %v6338_v46 = vmul.f32 %v14931_v56, %v16492_v57 }
 0xf5d   :  { %v6337_v16 = vmul.f32 %v14933_v62, %v16494_v12 }
 0xf5e   :  { %14240 = vmatprep.mubr.msk.f32.mxu0 %vm364_vm9, %v16533_v61  ;;  %v6350_v14 = vmul.f32 %v6345_v13, %v6338_v46 }
 0xf5f   :  { %v14935_v27 = vpop.eup %14934  ;;  %v6349_v37 = vmul.f32 %v6345_v13, %v6337_v16 }
 0xf60   :  { %v16539_v3 = vadd.f32 %v6357_v36, %v6350_v14  ;;  %v6339_v1 = vmul.f32 %v14935_v27, %v16501_v43 }
 0xf61   :  { %v16542_v28 = vadd.f32 %v6357_v36, %v6349_v37 }
 0xf62   :  { %v6351_v8 = vmul.f32 %v6345_v13, %v6339_v1  ;;  %v18389_v1 = vld [vmem:[#allocation20_spill] sm:$0xff] }
 0xf63   :  { %v14937_v48 = vpop.eup %14936  ;;  %14241 = vmatmul.mubr.msk.f32.gmra.mrb[78].mxu0 %vm364_vm9, %v16542_v28 }
 0xf64   :  { %v14939_v57 = vpop.eup %14938  ;;  %14243 = vmatprep.mubr.msk.f32.mxu0 %vm364_vm9, %v16539_v3  ;;  %v16548_v12 = vadd.f32 %v6357_v36, %v6351_v8  ;;  %v6340_v33 = vmul.f32 %v14937_v48, %v16507_v18  ;;  %v14725_v18 = vpack.c.bf16 %v358_v53, %v357_v2  ;;  %v6510_v8 = vrot.slane %v16458_v9, %v18389_v1 }
 0xf65   :  { %v6341_v50 = vmul.f32 %v14939_v57, %v16509_v24  ;;  %v18388_v24 = vld [vmem:[#allocation19_spill] sm:$0xff] }
 0xf66   :  { %v6352_v49 = vmul.f32 %v6345_v13, %v6340_v33  ;;  %14726 = vmatprep.subr.bf16.mxu1 %v14725_v18 }
 0xf67   :  { %14244 = vmatmul.mubr.msk.f32.gmra.mrb[80].mxu0 %vm364_vm9, %v16548_v12  ;;  %v6353_v43 = vmul.f32 %v6345_v13, %v6341_v50  ;;  %14728 = vmatpush3.bf16.msra.mxu1 %v14725_v18  ;;  %v6369_v13 = vrot.slane %v16458_v9, %v18388_v24 }
 0xf68   :  { %v16554_v22 = vadd.f32 %v6357_v36, %v6352_v49  ;;  %14297 = vmatprep.subr.mxu1 %v18357_v63 }
 0xf69   :  { %v16556_v15 = vadd.f32 %v6357_v36, %v6353_v43 }
 0xf6a   :  { %14246 = vmatprep.mubr.msk.f32.mxu0 %vm364_vm9, %v16554_v22 }
 0xf6b   :  { %14247 = vmatmul.mubr.msk.f32.gmra.mrb[82].mxu0 %vm364_vm9, %v16556_v15 }
0x102a   :  { %v14239_v26 = vpop.f32.mrb[76].mxu0 }
0x102b   :  { %v6466_v42 = vadd.f32 %v14239_v26, %v6369_v13  ;;  %v6460_v36 = vpop.f32.mrb[77].mxu0 }
0x102c   :  { %v6461_v40 = vadd.f32 %v6460_v36, %v6369_v13 }
0x102d   :  { %v6500_v19 = vmax.f32 %v6466_v42, 0.0 }
0x102e   :  { %v6499_v54 = vmax.f32 %v6461_v40, 0.0 }
0x1030   :  { %14265 = vmatprep.mubr.msk.f32.mxu1 %vm6511_vm14, %v6499_v54 }
0x1031   :  { %14266 = vmatmul.mubr.msk.f32.vlgmr.msra.gmra.mrb[76].mxu1 %vm6511_vm14, %v6500_v19 }
0x1036   :  { %v14242_v25 = vpop.f32.mrb[78].mxu0 }
0x1037   :  { %v6476_v38 = vadd.f32 %v14242_v25, %v6369_v13  ;;  %v6470_v31 = vpop.f32.mrb[79].mxu0 }
0x1038   :  { %v6471_v35 = vadd.f32 %v6470_v31, %v6369_v13 }
0x1039   :  { %v6502_v11 = vmax.f32 %v6476_v38, 0.0 }
0x103a   :  { %v6501_v51 = vmax.f32 %v6471_v35, 0.0  ;;  %v14245_v47 = vpop.f32.mrb[80].mxu0 }
0x103b   :  { %v6486_v41 = vadd.f32 %v14245_v47, %v6369_v13  ;;  %v6480_v5 = vpop.f32.mrb[81].mxu0 }
0x103c   :  { %v6481_v32 = vadd.f32 %v6480_v5, %v6369_v13  ;;  %14268 = vmatprep.mubr.msk.f32.mxu1 %vm6511_vm14, %v6501_v51 }
0x103d   :  { %14269 = vmatmul.mubr.msk.f32.gmra.mrb[78].mxu1 %vm6511_vm14, %v6502_v11  ;;  %v6504_v62 = vmax.f32 %v6486_v41, 0.0 }
0x103e   :  { %v6503_v52 = vmax.f32 %v6481_v32, 0.0  ;;  %v14248_v56 = vpop.f32.mrb[82].mxu0 }
0x103f   :  { %v6496_v46 = vadd.f32 %v14248_v56, %v6369_v13  ;;  %v6490_v16 = vpop.f32.mrb[83].mxu0 }
0x1040   :  { %v6491_v14 = vadd.f32 %v6490_v16, %v6369_v13  ;;  %14271 = vmatprep.mubr.msk.f32.mxu1 %vm6511_vm14, %v6503_v52 }
0x1041   :  { %14272 = vmatmul.mubr.msk.f32.gmra.mrb[80].mxu1 %vm6511_vm14, %v6504_v62  ;;  %v6506_v37 = vmax.f32 %v6496_v46, 0.0 }
0x1042   :  { %v6505_v27 = vmax.f32 %v6491_v14, 0.0 }
0x1044   :  { %14274 = vmatprep.mubr.msk.f32.mxu1 %vm6511_vm14, %v6505_v27 }
0x1045   :  { %14275 = vmatmul.mubr.msk.f32.gmra.mrb[82].mxu1 %vm6511_vm14, %v6506_v37 }
0x1046   :  { %14299 = vmatprep.mubr.msk.f32.mxu1 %vm15243_vm10, %v18357_v63 }
0x1104   :  { %v14267_v48 = vpop.f32.mrb[76].mxu1 }
0x1105   :  { %v6608_v57 = vadd.f32 %v14267_v48, %v6510_v8  ;;  %v6602_v33 = vpop.f32.mrb[77].mxu1 }
0x1106   :  { %v6603_v50 = vadd.f32 %v6602_v33, %v6510_v8 }
0x1107   :  { %v6642_v49 = vadd.f32 %v6608_v57, %v16524_v55 }
0x1108   :  { %v6641_v43 = vadd.f32 %v6603_v50, %v16526_v7 }
0x1109   :  { %v6652_v2 = vsel %vm364_vm9, %v6642_v49, 0.0 }
0x110a   :  { %6653 = vadd.xlane.f32.xlu0 %v6652_v2  ;;  %v6649_v53 = vsel %vm364_vm9, %v6641_v43, 0.0 }
0x110b   :  { %6650 = vadd.xlane.f32.xlu1 %v6649_v53 }
0x1110   :  { %v14270_v18 = vpop.f32.mrb[78].mxu1 }
0x1111   :  { %v6618_v13 = vadd.f32 %v14270_v18, %v6510_v8  ;;  %v6612_v26 = vpop.f32.mrb[79].mxu1 }
0x1112   :  { %v6613_v42 = vadd.f32 %v6612_v26, %v6510_v8 }
0x1113   :  { %v6644_v36 = vadd.f32 %v6618_v13, %v16542_v28 }
0x1114   :  { %v6643_v40 = vadd.f32 %v6613_v42, %v16533_v61  ;;  %v14273_v54 = vpop.f32.mrb[80].mxu1 }
0x1115   :  { %v6628_v19 = vadd.f32 %v14273_v54, %v6510_v8  ;;  %v6622_v25 = vpop.f32.mrb[81].mxu1  ;;  %v6658_v55 = vsel %vm364_vm9, %v6644_v36, 0.0 }
0x1116   :  { %v6623_v7 = vadd.f32 %v6622_v25, %v6510_v8  ;;  %6659 = vadd.xlane.f32.xlu0 %v6658_v55  ;;  %v6655_v38 = vsel %vm364_vm9, %v6643_v40, 0.0 }
0x1117   :  { %v6646_v31 = vadd.f32 %v6628_v19, %v16548_v12  ;;  %6656 = vadd.xlane.f32.xlu1 %v6655_v38 }
0x1118   :  { %v6645_v35 = vadd.f32 %v6623_v7, %v16539_v3  ;;  %v14276_v51 = vpop.f32.mrb[82].mxu1 }
0x1119   :  { %v6638_v47 = vadd.f32 %v14276_v51, %v6510_v8  ;;  %v6664_v28 = vsel %vm364_vm9, %v6646_v31, 0.0  ;;  %v6632_v11 = vpop.f32.mrb[83].mxu1 }
0x111a   :  { %6665 = vadd.xlane.f32.xlu0 %v6664_v28  ;;  %v6633_v61 = vadd.f32 %v6632_v11, %v6510_v8  ;;  %v6661_v41 = vsel %vm364_vm9, %v6645_v35, 0.0 }
0x111b   :  { %v6648_v5 = vadd.f32 %v6638_v47, %v16556_v15  ;;  %6662 = vadd.xlane.f32.xlu1 %v6661_v41 }
0x111c   :  { %v6647_v32 = vadd.f32 %v6633_v61, %v16554_v22 }
0x111d   :  { %v6670_v52 = vsel %vm364_vm9, %v6648_v5, 0.0 }
0x111e   :  { %6671 = vadd.xlane.f32.xlu0 %v6670_v52  ;;  %v6667_v12 = vsel %vm364_vm9, %v6647_v32, 0.0  ;;  %v6778_v52 = vld [vmem:[#allocation8 + $0xa8] sm:$0xff] }
0x111f   :  { %6668 = vadd.xlane.f32.xlu1 %v6667_v12  ;;  %v6779_v12 = vld [vmem:[#allocation8 + $0xb0] sm:$0xff] }
0x1197   :  { %v6654_v3 = vpop.xlane.xlu0 %6653 }
0x1198   :  { %v6674_v56 = vmul.f32 0.03125, %v6654_v3  ;;  %v6651_v62 = vpop.xlane.xlu1 %6650  ;;  %v6780_v3 = vld [vmem:[#allocation8 + $0xb8] sm:$0xff] }
0x1199   :  { %v6673_v46 = vmul.f32 0.03125, %v6651_v62 }
0x119a   :  { %v16593_v16 = vsub.f32 %v6642_v49, %v6674_v56  ;;  %v6781_v56 = vld [vmem:[#allocation8 + $0xc0] sm:$0xff] }
0x119b   :  { %v16595_v14 = vsub.f32 %v6641_v43, %v6673_v46  ;;  %v14733_v62 = vpack.c.bf16 %v6781_v56, %v6780_v3 }
0x119c   :  { %v6690_v15 = vmul.f32 %v16593_v16, %v16593_v16 }
0x119d   :  { %v6689_v22 = vmul.f32 %v16595_v14, %v16595_v14 }
0x119e   :  { %v6700_v27 = vsel %vm364_vm9, %v6690_v15, 0.0 }
0x119f   :  { %6701 = vadd.xlane.f32.xlu0 %v6700_v27  ;;  %v6697_v37 = vsel %vm364_vm9, %v6689_v22, 0.0 }
0x11a0   :  { %6698 = vadd.xlane.f32.xlu1 %v6697_v37 }
0x11a3   :  { %v6660_v8 = vpop.xlane.xlu0 %6659 }
0x11a4   :  { %v6676_v48 = vmul.f32 0.03125, %v6660_v8  ;;  %v6657_v57 = vpop.xlane.xlu1 %6656 }
0x11a5   :  { %v6675_v33 = vmul.f32 0.03125, %v6657_v57 }
0x11a6   :  { %v16603_v50 = vsub.f32 %v6644_v36, %v6676_v48 }
0x11a7   :  { %v16605_v49 = vsub.f32 %v6643_v40, %v6675_v33  ;;  %v6666_v43 = vpop.xlane.xlu0 %6665 }
0x11a8   :  { %v6678_v2 = vmul.f32 0.03125, %v6666_v43  ;;  %v6663_v53 = vpop.xlane.xlu1 %6662  ;;  %v6692_v18 = vmul.f32 %v16603_v50, %v16603_v50  ;;  %v18390_v43 = vld [vmem:[#allocation21_spill] sm:$0xff] }
0x11a9   :  { %v6677_v13 = vmul.f32 0.03125, %v6663_v53  ;;  %v6691_v26 = vmul.f32 %v16605_v49, %v16605_v49 }
0x11aa   :  { %v16611_v42 = vsub.f32 %v6646_v31, %v6678_v2  ;;  %v6706_v54 = vsel %vm364_vm9, %v6692_v18, 0.0  ;;  %v6756_v2 = vrot.slane %v16458_v9, %v18390_v43 }
0x11ab   :  { %v16614_v19 = vsub.f32 %v6645_v35, %v6677_v13  ;;  %6707 = vadd.xlane.f32.xlu0 %v6706_v54  ;;  %v6703_v36 = vsel %vm364_vm9, %v6691_v26, 0.0  ;;  %v6672_v40 = vpop.xlane.xlu0 %6671  ;;  %v18391_v54 = vld [vmem:[#allocation22_spill] sm:$0xff] }
0x11ac   :  { %6704 = vadd.xlane.f32.xlu1 %v6703_v36  ;;  %v6680_v25 = vmul.f32 0.03125, %v6672_v40  ;;  %v6669_v55 = vpop.xlane.xlu1 %6668  ;;  %v6694_v7 = vmul.f32 %v16611_v42, %v16611_v42  ;;  %v6768_v36 = vrot.slane %v16458_v9, %v18391_v54 }
0x11ad   :  { %v6679_v38 = vmul.f32 0.03125, %v6669_v55  ;;  %v6693_v51 = vmul.f32 %v16614_v19, %v16614_v19 }
0x11ae   :  { %v16621_v31 = vsub.f32 %v6648_v5, %v6680_v25  ;;  %v6712_v47 = vsel %vm364_vm9, %v6694_v7, 0.0 }
0x11af   :  { %v16624_v35 = vsub.f32 %v6647_v32, %v6679_v38  ;;  %6713 = vadd.xlane.f32.xlu0 %v6712_v47  ;;  %v6709_v28 = vsel %vm364_vm9, %v6693_v51, 0.0  ;;  %v14729_v32 = vpack.c.bf16 %v6779_v12, %v6778_v52 }
0x11b0   :  { %6710 = vadd.xlane.f32.xlu1 %v6709_v28  ;;  %v6696_v11 = vmul.f32 %v16621_v31, %v16621_v31 }
0x11b1   :  { %v6695_v61 = vmul.f32 %v16624_v35, %v16624_v35  ;;  %14730 = vmatprep.subr.bf16.mxu0 %v14729_v32 }
0x11b2   :  { %v6718_v41 = vsel %vm364_vm9, %v6696_v11, 0.0  ;;  %14732 = vmatpush3.bf16.msra.mxu0 %v14729_v32 }
0x11b3   :  { %6719 = vadd.xlane.f32.xlu0 %v6718_v41  ;;  %v6715_v5 = vsel %vm364_vm9, %v6695_v61, 0.0  ;;  %14734 = vmatprep.subr.bf16.mxu0 %v14733_v62 }
0x11b4   :  { %6716 = vadd.xlane.f32.xlu1 %v6715_v5 }
0x11b6   :  { %14736 = vmatpush3.bf16.msra.mxu0 %v14733_v62 }
0x11b7   :  { %14302 = vmatprep.subr.mxu0 %v18357_v63 }
0x122c   :  { %v6702_v46 = vpop.xlane.xlu0 %6701 }
0x122d   :  { %v6722_v15 = vmul.f32 0.03125, %v6702_v46  ;;  %v6699_v22 = vpop.xlane.xlu1 %6698 }
0x122e   :  { %v6721_v27 = vmul.f32 0.03125, %v6699_v22 }
0x122f   :  { %v6730_v37 = vadd.f32 1e-05, %v6722_v15 }
0x1230   :  { %v6729_v8 = vadd.f32 1e-05, %v6721_v27 }
0x1231   :  { %14940 = vrsqrt.f32 %v6730_v37 }
0x1232   :  { %14942 = vrsqrt.f32 %v6729_v8 }
0x1238   :  { %v6708_v48 = vpop.xlane.xlu0 %6707 }
0x1239   :  { %v6724_v57 = vmul.f32 0.03125, %v6708_v48  ;;  %v6705_v33 = vpop.xlane.xlu1 %6704 }
0x123a   :  { %v6723_v53 = vmul.f32 0.03125, %v6705_v33 }
0x123b   :  { %v14941_v18 = vpop.eup %14940  ;;  %v6732_v13 = vadd.f32 1e-05, %v6724_v57 }
0x123c   :  { %v14943_v26 = vpop.eup %14942  ;;  %v6746_v40 = vmul.f32 %v14941_v18, %v16593_v16  ;;  %v6731_v25 = vadd.f32 1e-05, %v6723_v53  ;;  %v6714_v55 = vpop.xlane.xlu0 %6713 }
0x123d   :  { %14944 = vrsqrt.f32 %v6732_v13  ;;  %v6726_v7 = vmul.f32 0.03125, %v6714_v55  ;;  %v6711_v38 = vpop.xlane.xlu1 %6710  ;;  %v6745_v51 = vmul.f32 %v14943_v26, %v16595_v14 }
0x123e   :  { %v6758_v47 = vmul.f32 %v6756_v2, %v6746_v40  ;;  %14946 = vrsqrt.f32 %v6731_v25  ;;  %v6725_v28 = vmul.f32 0.03125, %v6711_v38 }
0x123f   :  { %v6734_v11 = vadd.f32 1e-05, %v6726_v7  ;;  %v6757_v61 = vmul.f32 %v6756_v2, %v6745_v51 }
0x1240   :  { %v6733_v41 = vadd.f32 1e-05, %v6725_v28  ;;  %v6720_v5 = vpop.xlane.xlu0 %6719  ;;  %v16640_v52 = vadd.f32 %v6768_v36, %v6758_v47 }
0x1241   :  { %14948 = vrsqrt.f32 %v6734_v11  ;;  %v6728_v9 = vmul.f32 0.03125, %v6720_v5  ;;  %v6717_v12 = vpop.xlane.xlu1 %6716  ;;  %v16642_v16 = vadd.f32 %v6768_v36, %v6757_v61 }
0x1242   :  { %18392 = vst [vmem:[#allocation23_spill] sm:$0xff] %v16640_v52  ;;  %14950 = vrsqrt.f32 %v6733_v41  ;;  %v6727_v32 = vmul.f32 0.03125, %v6717_v12 }
0x1243   :  { %18393 = vst [vmem:[#allocation24_spill] sm:$0xff] %v16642_v16  ;;  %v6736_v3 = vadd.f32 1e-05, %v6728_v9  ;;  %14285 = vmatprep.mubr.msk.f32.mxu0 %vm364_vm9, %v16642_v16 }
0x1244   :  { %v6735_v14 = vadd.f32 1e-05, %v6727_v32  ;;  %14286 = vmatmul.mubr.msk.f32.vlgmr.msra.gmra.mrb[84].mxu0 %vm364_vm9, %v16640_v52 }
0x1245   :  { %14952 = vrsqrt.f32 %v6736_v3 }
0x1246   :  { %14954 = vrsqrt.f32 %v6735_v14 }
0x1247   :  { %v14945_v56 = vpop.eup %14944 }
0x1248   :  { %v14947_v62 = vpop.eup %14946  ;;  %v6748_v46 = vmul.f32 %v14945_v56, %v16603_v50 }
0x1249   :  { %v6747_v15 = vmul.f32 %v14947_v62, %v16605_v49 }
0x124a   :  { %v6760_v22 = vmul.f32 %v6756_v2, %v6748_v46 }
0x124b   :  { %v14949_v27 = vpop.eup %14948  ;;  %v6759_v37 = vmul.f32 %v6756_v2, %v6747_v15 }
0x124c   :  { %v14951_v8 = vpop.eup %14950  ;;  %v16650_v48 = vadd.f32 %v6768_v36, %v6760_v22  ;;  %v6750_v57 = vmul.f32 %v14949_v27, %v16611_v42 }
0x124d   :  { %v16653_v33 = vadd.f32 %v6768_v36, %v6759_v37  ;;  %v6749_v53 = vmul.f32 %v14951_v8, %v16614_v19 }
0x124e   :  { %18394 = vst [vmem:[#allocation25_spill] sm:$0xff] %v16650_v48  ;;  %v6762_v18 = vmul.f32 %v6756_v2, %v6750_v57 }
0x124f   :  { %18395 = vst [vmem:[#allocation26_spill] sm:$0xff] %v16653_v33  ;;  %v14953_v13 = vpop.eup %14952  ;;  %14288 = vmatprep.mubr.msk.f32.mxu0 %vm364_vm9, %v16653_v33  ;;  %v6761_v50 = vmul.f32 %v6756_v2, %v6749_v53 }
0x1250   :  { %v14955_v26 = vpop.eup %14954  ;;  %14289 = vmatmul.mubr.msk.f32.gmra.mrb[86].mxu0 %vm364_vm9, %v16650_v48  ;;  %v16660_v49 = vadd.f32 %v6768_v36, %v6762_v18  ;;  %v6752_v40 = vmul.f32 %v14953_v13, %v16621_v31  ;;  %v6798_v31 = vld [vmem:[#allocation8 + $0x148] sm:$0xff] }
0x1251   :  { %v16663_v25 = vadd.f32 %v6768_v36, %v6761_v50  ;;  %v6751_v42 = vmul.f32 %v14955_v26, %v16624_v35  ;;  %v18400_v35 = vld [vmem:[#allocation15_spill] sm:$0xff] }
0x1252   :  { %18396 = vst [vmem:[#allocation61_spill] sm:$0xff] %v16660_v49  ;;  %v6764_v55 = vmul.f32 %v6756_v2, %v6752_v40  ;;  %v6802_v51 = vrot.slane %v6798_v31, %v18400_v35  ;;  %v18402_v35 = vld [vmem:[#allocation27_spill] sm:$0xff] }
0x1253   :  { %18397 = vst [vmem:[#allocation62_spill] sm:$0xff] %v16663_v25  ;;  %14291 = vmatprep.mubr.msk.f32.mxu0 %vm364_vm9, %v16663_v25  ;;  %v6763_v19 = vmul.f32 %v6756_v2, %v6751_v42 }
0x1254   :  { %14292 = vmatmul.mubr.msk.f32.gmra.mrb[88].mxu0 %vm364_vm9, %v16660_v49  ;;  %v16670_v7 = vadd.f32 %v6768_v36, %v6764_v55 }
0x1255   :  { %v16672_v38 = vadd.f32 %v6768_v36, %v6763_v19  ;;  %v18401_v19 = vld [vmem:[#allocation28_spill] sm:$0xff] }
0x1256   :  { %18398 = vst [vmem:[#allocation63_spill] sm:$0xff] %v16670_v7 }
0x1257   :  { %18399 = vst [vmem:[#allocation64_spill] sm:$0xff] %v16672_v38  ;;  %14294 = vmatprep.mubr.msk.f32.mxu0 %vm364_vm9, %v16672_v38 }
0x1258   :  { %14295 = vmatmul.mubr.msk.f32.gmra.mrb[90].mxu0 %vm364_vm9, %v16670_v7 }
0x1259   :  { %14304 = vmatprep.mubr.msk.f32.mxu0 %vm15243_vm10, %v18357_v63 }
0x1317   :  { %v14287_v2 = vpop.f32.mrb[84].mxu0 }
0x1318   :  { %v16681_v47 = vadd.f32 %v14287_v2, %v6802_v51  ;;  %v6893_v28 = vpop.f32.mrb[85].mxu0 }
0x1319   :  { %v16683_v11 = vadd.f32 %v6893_v28, %v6802_v51 }
0x131a   :  { %7010 = vrot.lane.b32.xlu0 %v16681_v47, %s15244_s3 }
0x131b   :  { %6933 = vrot.lane.b32.xlu1 %v16683_v11, %s15244_s3 }
0x1323   :  { %v14290_v36 = vpop.f32.mrb[86].mxu0 }
0x1324   :  { %v6903_v61 = vpop.f32.mrb[87].mxu0  ;;  %v16693_v12 = vadd.f32 %v14290_v36, %v6802_v51 }
0x1325   :  { %v16689_v41 = vadd.f32 %v6903_v61, %v6802_v51 }
0x1327   :  { %7087 = vrot.lane.b32.xlu1 %v16689_v41, %s15244_s3  ;;  %v14293_v5 = vpop.f32.mrb[88].mxu0 }
0x1328   :  { %v6913_v9 = vpop.f32.mrb[89].mxu0  ;;  %v16701_v56 = vadd.f32 %v14293_v5, %v6802_v51 }
0x1329   :  { %v16695_v32 = vadd.f32 %v6913_v9, %v6802_v51 }
0x132b   :  { %7164 = vrot.lane.b32.xlu1 %v16693_v12, %s15244_s3  ;;  %7241 = vrot.lane.b32.xlu0 %v16695_v32, %s15244_s3  ;;  %v14296_v3 = vpop.f32.mrb[90].mxu0 }
0x132c   :  { %v6923_v14 = vpop.f32.mrb[91].mxu0  ;;  %v16709_v46 = vadd.f32 %v14296_v3, %v6802_v51 }
0x132d   :  { %v16703_v62 = vadd.f32 %v6923_v14, %v6802_v51 }
0x132f   :  { %7318 = vrot.lane.b32.xlu1 %v16701_v56, %s15244_s3  ;;  %7395 = vrot.lane.b32.xlu0 %v16703_v62, %s15244_s3 }
0x1333   :  { %7472 = vrot.lane.b32.xlu1 %v16709_v46, %s15244_s3 }
0x138c   :  { %v7011_v15 = vpop.permute.xlu0 %7010 }
0x138d   :  { %v6934_v22 = vpop.permute.xlu1 %6933  ;;  %14303 = vmatpush3.xpose.msk.msra.mxu0 %vm497_vm11, %v7011_v15 }
0x138e   :  { %14298 = vmatpush3.xpose.msk.msra.mxu1 %vm497_vm11, %v6934_v22  ;;  %14312 = vmatprep.subr.mxu0 %v18357_v63 }
0x138f   :  { %14307 = vmatprep.subr.mxu1 %v18357_v63 }
0x1390   :  { %14305 = vmatmul.mubr.msk.f32.vlgmr.msra.gmra.mrb[92].mxu0 %vm497_vm11, %v16681_v47 }
0x1391   :  { %14300 = vmatmul.mubr.msk.f32.vlgmr.msra.gmra.mrb[84].mxu1 %vm497_vm11, %v16683_v11  ;;  %14314 = vmatprep.mubr.msk.f32.mxu0 %vm15243_vm10, %v18357_v63 }
0x1392   :  { %14309 = vmatprep.mubr.msk.f32.mxu1 %vm15243_vm10, %v18357_v63 }
0x1399   :  { %v7088_v27 = vpop.permute.xlu1 %7087 }
0x139a   :  { %14308 = vmatpush3.xpose.msk.msra.mxu1 %vm497_vm11, %v7088_v27 }
0x139b   :  { %14317 = vmatprep.subr.mxu1 %v18357_v63 }
0x139d   :  { %14310 = vmatmul.mubr.msk.f32.vlgmr.msra.gmra.mrb[86].mxu1 %vm497_vm11, %v16689_v41  ;;  %v7165_v37 = vpop.permute.xlu1 %7164  ;;  %v7242_v8 = vpop.permute.xlu0 %7241 }
0x139e   :  { %14313 = vmatpush3.xpose.msk.msra.mxu0 %vm497_vm11, %v7165_v37  ;;  %14318 = vmatpush3.xpose.msk.msra.mxu1 %vm497_vm11, %v7242_v8 }
0x139f   :  { %14319 = vmatprep.mubr.msk.f32.mxu1 %vm15243_vm10, %v18357_v63  ;;  %14322 = vmatprep.subr.mxu0 %v18357_v63 }
0x13a0   :  { %14327 = vmatprep.subr.mxu1 %v18357_v63 }
0x13a1   :  { %v7319_v57 = vpop.permute.xlu1 %7318  ;;  %14315 = vmatmul.mubr.msk.f32.vlgmr.msra.gmra.mrb[94].mxu0 %vm497_vm11, %v16693_v12  ;;  %14320 = vmatmul.mubr.msk.f32.vlgmr.msra.gmra.mrb[88].mxu1 %vm497_vm11, %v16695_v32  ;;  %v7396_v53 = vpop.permute.xlu0 %7395 }
0x13a2   :  { %14323 = vmatpush3.xpose.msk.msra.mxu0 %vm497_vm11, %v7319_v57  ;;  %14328 = vmatpush3.xpose.msk.msra.mxu1 %vm497_vm11, %v7396_v53 }
0x13a3   :  { %14324 = vmatprep.mubr.msk.f32.mxu0 %vm15243_vm10, %v18357_v63  ;;  %14329 = vmatprep.mubr.msk.f32.mxu1 %vm15243_vm10, %v18357_v63 }
0x13a4   :  { %14332 = vmatprep.subr.mxu0 %v18357_v63  ;;  %14337 = vmatprep.subr.mxu1 %v18357_v63 }
0x13a5   :  { %v7473_v18 = vpop.permute.xlu1 %7472  ;;  %14325 = vmatmul.mubr.msk.f32.vlgmr.msra.gmra.mrb[96].mxu0 %vm497_vm11, %v16701_v56  ;;  %14330 = vmatmul.mubr.msk.f32.vlgmr.msra.gmra.mrb[90].mxu1 %vm497_vm11, %v16703_v62 }
0x13a6   :  { %14333 = vmatpush3.xpose.msk.msra.mxu0 %vm497_vm11, %v7473_v18  ;;  %14334 = vmatprep.mubr.msk.f32.mxu0 %vm15243_vm10, %v18357_v63 }
0x13a7   :  { %14342 = vmatprep.subr.mxu0 %v18357_v63  ;;  %14339 = vmatprep.mubr.msk.f32.mxu1 %vm15243_vm10, %v18357_v63 }
0x13a9   :  { %14335 = vmatmul.mubr.msk.f32.vlgmr.msra.gmra.mrb[98].mxu0 %vm497_vm11, %v16709_v46 }
0x13aa   :  { %14344 = vmatprep.mubr.msk.f32.mxu0 %vm15243_vm10, %v18357_v63 }
0x1463   :  { %v7082_v13 = vpop.f32.mrb[92].mxu0 }
0x1464   :  { %v7549_v50 = vmul.f32 0.35355338, %v7082_v13  ;;  %v7005_v26 = vpop.f32.mrb[84].mxu1  ;;  %v14306_v40 = vpop.f32.mrb[93].mxu0 }
0x1465   :  { %v7548_v42 = vmul.f32 0.35355338, %v7005_v26  ;;  %v14301_v55 = vpop.f32.mrb[85].mxu1 }
0x1466   :  { %v7557_v31 = vadd.f32 %v7549_v50, %v18401_v19 }
0x1467   :  { %v16763_v51 = vadd.f32 %v7548_v42, %v18402_v35 }
0x1468   :  { %v7567_v2 = vsel %vm497_vm11, %v7557_v31, -inf }
0x1469   :  { %7568 = vmax.xlane.f32.xlu1 %v7567_v2  ;;  %v7564_v28 = vsel %vm497_vm11, %v16763_v51, -inf }
0x146a   :  { %7565 = vmax.xlane.f32.xlu0 %v7564_v28 }
0x1470   :  { %v7159_v36 = vpop.f32.mrb[86].mxu1 }
0x1471   :  { %v7550_v61 = vmul.f32 0.35355338, %v7159_v36  ;;  %v14311_v5 = vpop.f32.mrb[87].mxu1 }
0x1473   :  { %v16769_v9 = vadd.f32 %v7550_v61, %v15535_v59 }
0x1474   :  { %v7236_v3 = vpop.f32.mrb[94].mxu0  ;;  %v7313_v14 = vpop.f32.mrb[88].mxu1 }
0x1475   :  { %v7551_v15 = vmul.f32 0.35355338, %v7236_v3  ;;  %v14316_v22 = vpop.f32.mrb[95].mxu0  ;;  %v14321_v27 = vpop.f32.mrb[89].mxu1  ;;  %v7570_v37 = vsel %vm497_vm11, %v16769_v9, -inf }
0x1476   :  { %7571 = vmax.xlane.f32.xlu0 %v7570_v37  ;;  %v7552_v5 = vmul.f32 0.35355338, %v7313_v14 }
0x1477   :  { %v7559_v8 = vadd.f32 %v7551_v15, %v15549_v30 }
0x1478   :  { %v7390_v57 = vpop.f32.mrb[96].mxu0  ;;  %v7467_v53 = vpop.f32.mrb[90].mxu1  ;;  %v16782_v3 = vadd.f32 %v7552_v5, %v15546_v29 }
0x1479   :  { %v7553_v18 = vmul.f32 0.35355338, %v7390_v57  ;;  %v14326_v13 = vpop.f32.mrb[97].mxu0  ;;  %v7573_v50 = vsel %vm497_vm11, %v7559_v8, -inf  ;;  %v14331_v26 = vpop.f32.mrb[91].mxu1 }
0x147a   :  { %7652 = vrot.lane.b32.xlu1 %v16683_v11, %s15246_s17  ;;  %7574 = vmax.xlane.f32.xlu0 %v7573_v50  ;;  %v7576_v15 = vsel %vm497_vm11, %v16782_v3, -inf  ;;  %v7554_v14 = vmul.f32 0.35355338, %v7467_v53 }
0x147b   :  { %v7561_v40 = vadd.f32 %v7553_v18, %v15556_v39 }
0x147c   :  { %v7544_v42 = vpop.f32.mrb[98].mxu0  ;;  %v16811_v22 = vadd.f32 %v7554_v14, %v15580_v23 }
0x147d   :  { %v7555_v55 = vmul.f32 0.35355338, %v7544_v42  ;;  %v14336_v2 = vpop.f32.mrb[99].mxu0  ;;  %v7579_v28 = vsel %vm497_vm11, %v7561_v40, -inf }
0x147e   :  { %7580 = vmax.xlane.f32.xlu0 %v7579_v28  ;;  %v7582_v27 = vsel %vm497_vm11, %v16811_v22, -inf }
0x147f   :  { %v7563_v36 = vadd.f32 %v7555_v55, %v15564_v6 }
0x1481   :  { %v7585_v61 = vsel %vm497_vm11, %v7563_v36, -inf }
0x1482   :  { %7586 = vmax.xlane.f32.xlu0 %v7585_v61 }
0x1498   :  { %7728 = vrot.lane.b32.xlu0 %v16681_v47, %s15246_s17 }
0x149c   :  { %7956 = vrot.lane.b32.xlu0 %v16695_v32, %s15246_s17 }
0x149e   :  { %7577 = vmax.xlane.f32.xlu1 %v7576_v15 }
0x14a0   :  { %8108 = vrot.lane.b32.xlu0 %v16703_v62, %s15246_s17 }
0x14a4   :  { %8262 = vrot.lane.b32.xlu0 %v16683_v11, %s15247_s1 }
0x14a8   :  { %8260 = vrot.lane.b32.xlu0 %v16683_v11, %s15248_s18 }
0x14ac   :  { %8418 = vrot.lane.b32.xlu0 %v16689_v41, %s15247_s1 }
0x14af   :  { %7804 = vrot.lane.b32.xlu1 %v16689_v41, %s15246_s17 }
0x14b3   :  { %7880 = vrot.lane.b32.xlu1 %v16693_v12, %s15246_s17 }
0x14b7   :  { %8032 = vrot.lane.b32.xlu1 %v16701_v56, %s15246_s17 }
0x14bb   :  { %8184 = vrot.lane.b32.xlu1 %v16709_v46, %s15246_s17 }
0x14bf   :  { %8340 = vrot.lane.b32.xlu1 %v16681_v47, %s15247_s1 }
0x14c3   :  { %8338 = vrot.lane.b32.xlu1 %v16681_v47, %s15248_s18 }
0x14e7   :  { %7583 = vmax.xlane.f32.xlu1 %v7582_v27 }
0x14f6   :  { %v7569_v37 = vpop.xlane.xlu1 %7568 }
0x14f7   :  { %v7589_v57 = vsub.f32 %v7557_v31, %v7569_v37  ;;  %v7566_v50 = vpop.xlane.xlu0 %7565 }
0x14f8   :  { %8496 = vrot.lane.b32.xlu1 %v16693_v12, %s15247_s1  ;;  %v7588_v42 = vsub.f32 %v16763_v51, %v7566_v50 }
0x14f9   :  { %v7598_v18 = vmul.f32 1.442695, %v7589_v57 }
0x14fa   :  { %v7653_v13 = vpop.permute.xlu1 %7652  ;;  %v7596_v28 = vmul.f32 1.442695, %v7588_v42 }
0x14fb   :  { %14956 = vpow2.f32 %v7598_v18  ;;  %14338 = vmatpush3.msra.mxu1 %v7653_v13 }
0x14fc   :  { %14347 = vmatprep.subr.mxu1 %v18357_v63 }
0x1503   :  { %v7572_v53 = vpop.xlane.xlu0 %7571 }
0x1504   :  { %v7590_v61 = vsub.f32 %v16769_v9, %v7572_v53 }
0x1505   :  { %v16818_v26 = vpop.eup %14956 }
0x1506   :  { %v7615_v55 = vsel %vm497_vm11, %v16818_v26, 0.0  ;;  %v7600_v27 = vmul.f32 1.442695, %v7590_v61 }
0x1507   :  { %7616 = vadd.xlane.f32.xlu0 %v7615_v55  ;;  %v7575_v31 = vpop.xlane.xlu0 %7574 }
0x1508   :  { %v7591_v2 = vsub.f32 %v7559_v8, %v7575_v31 }
0x150a   :  { %v7602_v5 = vmul.f32 1.442695, %v7591_v2 }
0x150b   :  { %v7581_v15 = vpop.xlane.xlu0 %7580 }
0x150c   :  { %14958 = vpow2.f32 %v7602_v5  ;;  %v7593_v14 = vsub.f32 %v7561_v40, %v7581_v15 }
0x150d   :  { %14960 = vpow2.f32 %v7596_v28 }
0x150e   :  { %v7606_v37 = vmul.f32 1.442695, %v7593_v14 }
0x150f   :  { %v7587_v57 = vpop.xlane.xlu0 %7586 }
0x1510   :  { %14962 = vpow2.f32 %v7606_v37  ;;  %v7595_v18 = vsub.f32 %v7563_v36, %v7587_v57 }
0x1511   :  { %14964 = vpow2.f32 %v7600_v27 }
0x1512   :  { %v7610_v51 = vmul.f32 1.442695, %v7595_v18 }
0x1513   :  { %v7729_v13 = vpop.permute.xlu0 %7728 }
0x1514   :  { %14966 = vpow2.f32 %v7610_v51  ;;  %14343 = vmatpush3.msra.mxu0 %v7729_v13 }
0x1515   :  { %14352 = vmatprep.subr.mxu0 %v18357_v63 }
0x1516   :  { %v16825_v8 = vpop.eup %14958 }
0x1517   :  { %v16827_v9 = vpop.eup %14960  ;;  %v7621_v40 = vsel %vm497_vm11, %v16825_v8, 0.0 }
0x1518   :  { %7622 = vadd.xlane.f32.xlu0 %v7621_v40  ;;  %v7612_v36 = vsel %vm497_vm11, %v16827_v9, 0.0 }
0x151a   :  { %v16831_v50 = vpop.eup %14962 }
0x151b   :  { %v16835_v53 = vpop.eup %14964  ;;  %v7627_v42 = vsel %vm497_vm11, %v16831_v50, 0.0 }
0x151c   :  { %7613 = vadd.xlane.f32.xlu1 %v7612_v36  ;;  %7628 = vadd.xlane.f32.xlu0 %v7627_v42  ;;  %v7618_v31 = vsel %vm497_vm11, %v16835_v53, 0.0  ;;  %v7957_v42 = vpop.permute.xlu0 %7956 }
0x151e   :  { %v16839_v55 = vpop.eup %14966 }
0x151f   :  { %v7633_v2 = vsel %vm497_vm11, %v16839_v55, 0.0 }
0x1520   :  { %7619 = vadd.xlane.f32.xlu1 %v7618_v31  ;;  %7634 = vadd.xlane.f32.xlu0 %v7633_v2  ;;  %v16867_v31 = vpop.permute.xlu0 %8108 }
0x152b   :  { %v7578_v28 = vpop.xlane.xlu1 %7577 }
0x152c   :  { %v7592_v61 = vsub.f32 %v16782_v3, %v7578_v28  ;;  %v16871_v28 = vpop.permute.xlu0 %8262 }
0x152e   :  { %v7604_v5 = vmul.f32 1.442695, %v7592_v61 }
0x152f   :  { %v7805_v3 = vpop.permute.xlu1 %7804 }
0x1530   :  { %14968 = vpow2.f32 %v7604_v5  ;;  %v16875_v5 = vpop.permute.xlu0 %8260 }
0x1533   :  { %v7881_v27 = vpop.permute.xlu1 %7880 }
0x1536   :  { %8416 = vrot.lane.b32.xlu0 %v16689_v41, %s15248_s18 }
0x1537   :  { %v8033_v37 = vpop.permute.xlu1 %8032 }
0x153a   :  { %v16848_v15 = vpop.eup %14968  ;;  %8574 = vrot.lane.b32.xlu0 %v16695_v32, %s15247_s1 }
0x153b   :  { %v7624_v14 = vsel %vm497_vm11, %v16848_v15, 0.0  ;;  %v8185_v57 = vpop.permute.xlu1 %8184 }
0x153c   :  { %7625 = vadd.xlane.f32.xlu1 %v7624_v14  ;;  %v16877_v14 = vpop.permute.xlu0 %8418 }
0x153e   :  { %8572 = vrot.lane.b32.xlu0 %v16695_v32, %s15248_s18 }
0x153f   :  { %v16862_v18 = vpop.permute.xlu1 %8340 }
0x1542   :  { %8730 = vrot.lane.b32.xlu0 %v16703_v62, %s15247_s1 }
0x1543   :  { %v16864_v51 = vpop.permute.xlu1 %8338 }
0x1546   :  { %8728 = vrot.lane.b32.xlu0 %v16703_v62, %s15248_s18 }
0x154d   :  { %8494 = vrot.lane.b32.xlu1 %v16693_v12, %s15248_s18 }
0x1574   :  { %v7584_v13 = vpop.xlane.xlu1 %7583 }
0x1575   :  { %v7594_v40 = vsub.f32 %v16811_v22, %v7584_v13 }
0x1577   :  { %v7608_v36 = vmul.f32 1.442695, %v7594_v40 }
0x1579   :  { %14970 = vpow2.f32 %v7608_v36 }
0x1583   :  { %v16869_v2 = vpop.eup %14970 }
0x1584   :  { %v7630_v61 = vsel %vm497_vm11, %v16869_v2, 0.0 }
0x1585   :  { %7631 = vadd.xlane.f32.xlu1 %v7630_v61 }
0x1594   :  { %v7617_v54 = vpop.xlane.xlu0 %7616 }
0x1595   :  { %14972 = vrcp.f32 %v7617_v54  ;;  %v8497_v54 = vpop.permute.xlu1 %8496 }
0x1596   :  { %8652 = vrot.lane.b32.xlu1 %v16701_v56, %s15247_s1 }
0x159a   :  { %8650 = vrot.lane.b32.xlu1 %v16701_v56, %s15248_s18 }
0x159e   :  { %8808 = vrot.lane.b32.xlu1 %v16709_v46, %s15247_s1 }
0x159f   :  { %v14973_v22 = vpop.eup %14972 }
0x15a0   :  { %v16886_v13 = vmul.f32 %v14973_v22, %v16818_v26 }
0x15a2   :  { %18403 = vst [vmem:[#allocation15_spill] sm:$0xff] %v16886_v13  ;;  %8806 = vrot.lane.b32.xlu1 %v16709_v46, %s15248_s18  ;;  %14345 = vmatmul.mubr.msk.f32.vlgmr.msra.gmra.mrb[100].mxu0 %vm497_vm11, %v16886_v13 }
0x15a3   :  { %14353 = vmatpush3.msra.mxu0 %v7881_v27  ;;  %14354 = vmatprep.mubr.msk.f32.mxu0 %vm15243_vm10, %v18357_v63 }
0x15a4   :  { %14362 = vmatprep.subr.mxu0 %v18357_v63 }
0x15a5   :  { %v7623_v40 = vpop.xlane.xlu0 %7622 }
0x15a6   :  { %14974 = vrcp.f32 %v7623_v40 }
0x15a9   :  { %v7614_v36 = vpop.xlane.xlu1 %7613  ;;  %v7629_v61 = vpop.xlane.xlu0 %7628 }
0x15aa   :  { %14976 = vrcp.f32 %v7614_v36 }
0x15ab   :  { %14978 = vrcp.f32 %v7629_v61 }
0x15ad   :  { %v7620_v26 = vpop.xlane.xlu1 %7619  ;;  %v7635_v22 = vpop.xlane.xlu0 %7634 }
0x15ae   :  { %14980 = vrcp.f32 %v7620_v26 }
0x15af   :  { %14982 = vrcp.f32 %v7635_v22 }
0x15b0   :  { %v14975_v43 = vpop.eup %14974 }
0x15b1   :  { %v16896_v44 = vmul.f32 %v14975_v43, %v16825_v8 }
0x15b3   :  { %18404 = vst [vmem:[#allocation28_spill] sm:$0xff] %v16896_v44  ;;  %14355 = vmatmul.mubr.msk.f32.vlgmr.msra.gmra.mrb[102].mxu0 %vm497_vm11, %v16896_v44 }
0x15b4   :  { %v14977_v27 = vpop.eup %14976  ;;  %14363 = vmatpush3.msra.mxu0 %v8033_v37  ;;  %14364 = vmatprep.mubr.msk.f32.mxu0 %vm15243_vm10, %v18357_v63 }
0x15b5   :  { %v14979_v17 = vpop.eup %14978  ;;  %v16903_v40 = vmul.f32 %v14977_v27, %v16827_v9  ;;  %14372 = vmatprep.subr.mxu0 %v18357_v63 }
0x15b6   :  { %v16907_v36 = vmul.f32 %v14979_v17, %v16831_v50 }
0x15b7   :  { %18405 = vst [vmem:[#allocation27_spill] sm:$0xff] %v16903_v40  ;;  %14340 = vmatmul.mubr.msk.f32.vlgmr.msra.gmra.mrb[92].mxu1 %vm497_vm11, %v16903_v40 }
0x15b8   :  { %18406 = vst [vmem:[#allocation65_spill] sm:$0xff] %v16907_v36  ;;  %v14981_v43 = vpop.eup %14980  ;;  %14365 = vmatmul.mubr.msk.f32.vlgmr.msra.gmra.mrb[104].mxu0 %vm497_vm11, %v16907_v36  ;;  %14348 = vmatpush3.msra.mxu1 %v7805_v3 }
0x15b9   :  { %v14983_v8 = vpop.eup %14982  ;;  %14373 = vmatpush3.msra.mxu0 %v8185_v57  ;;  %14374 = vmatprep.mubr.msk.f32.mxu0 %vm15243_vm10, %v18357_v63  ;;  %v16916_v9 = vmul.f32 %v14981_v43, %v16835_v53 }
0x15ba   :  { %v16919_v37 = vmul.f32 %v14983_v8, %v16839_v55  ;;  %14349 = vmatprep.mubr.msk.f32.mxu1 %vm15243_vm10, %v18357_v63  ;;  %14357 = vmatprep.subr.mxu1 %v18357_v63 }
0x15bb   :  { %18407 = vst [vmem:[#allocation66_spill] sm:$0xff] %v16916_v9  ;;  %14350 = vmatmul.mubr.msk.f32.vlgmr.msra.gmra.mrb[94].mxu1 %vm497_vm11, %v16916_v9  ;;  %14382 = vmatprep.subr.mxu0 %v18357_v63 }
0x15bc   :  { %18408 = vst [vmem:[#allocation67_spill] sm:$0xff] %v16919_v37  ;;  %14375 = vmatmul.mubr.msk.f32.vlgmr.msra.gmra.mrb[106].mxu0 %vm497_vm11, %v16919_v37  ;;  %14358 = vmatpush3.msra.mxu1 %v7957_v42 }
0x15bd   :  { %14384 = vmatprep.mubr.msk.f32.mxu0 %vm15243_vm10, %v18357_v63  ;;  %14359 = vmatprep.mubr.msk.f32.mxu1 %vm15243_vm10, %v18357_v63 }
0x15be   :  { %14367 = vmatprep.subr.mxu1 %v18357_v63 }
0x15c0   :  { %14383 = vmatpush3.xpose.msk.msra.mxu0 %vm497_vm11, %v16862_v18  ;;  %v8417_v18 = vpop.permute.xlu0 %8416 }
0x15c1   :  { %14392 = vmatprep.subr.mxu0 %v18357_v63 }
0x15c3   :  { %14385 = vmatmul.mubr.msk.f32.vlgmr.msra.gmra.mrb[108].mxu0 %vm497_vm11, %v16864_v51 }
0x15c4   :  { %14393 = vmatpush3.xpose.msk.msra.mxu0 %vm497_vm11, %v8497_v54  ;;  %14394 = vmatprep.mubr.msk.f32.mxu0 %vm15243_vm10, %v18357_v63  ;;  %v8575_v42 = vpop.permute.xlu0 %8574 }
0x15c5   :  { %14402 = vmatprep.subr.mxu0 %v18357_v63 }
0x15c8   :  { %v8573_v26 = vpop.permute.xlu0 %8572 }
0x15c9   :  { %v7626_v17 = vpop.xlane.xlu1 %7625 }
0x15ca   :  { %14984 = vrcp.f32 %v7626_v17 }
0x15cd   :  { %v8495_v50 = vpop.permute.xlu1 %8494 }
0x15ce   :  { %14395 = vmatmul.mubr.msk.f32.vlgmr.msra.gmra.mrb[110].mxu0 %vm497_vm11, %v8495_v50 }
0x15cf   :  { %14404 = vmatprep.mubr.msk.f32.mxu0 %vm15243_vm10, %v18357_v63 }
0x15d4   :  { %v14985_v53 = vpop.eup %14984 }
0x15d5   :  { %v16947_v55 = vmul.f32 %v14985_v53, %v16848_v15 }
0x15d7   :  { %18409 = vst [vmem:[#allocation68_spill] sm:$0xff] %v16947_v55  ;;  %14360 = vmatmul.mubr.msk.f32.vlgmr.msra.gmra.mrb[96].mxu1 %vm497_vm11, %v16947_v55 }
0x15d8   :  { %14368 = vmatpush3.msra.mxu1 %v16867_v31  ;;  %14369 = vmatprep.mubr.msk.f32.mxu1 %vm15243_vm10, %v18357_v63 }
0x15d9   :  { %14377 = vmatprep.subr.mxu1 %v18357_v63 }
0x1612   :  { %v7632_v3 = vpop.xlane.xlu1 %7631 }
0x1613   :  { %14986 = vrcp.f32 %v7632_v3 }
0x1616   :  { %v8653_v57 = vpop.permute.xlu1 %8652 }
0x1617   :  { %14403 = vmatpush3.xpose.msk.msra.mxu0 %vm497_vm11, %v8653_v57 }
0x1618   :  { %14412 = vmatprep.subr.mxu0 %v18357_v63 }
0x161a   :  { %v8651_v15 = vpop.permute.xlu1 %8650 }
0x161b   :  { %14405 = vmatmul.mubr.msk.f32.vlgmr.msra.gmra.mrb[112].mxu0 %vm497_vm11, %v8651_v15 }
0x161c   :  { %14414 = vmatprep.mubr.msk.f32.mxu0 %vm15243_vm10, %v18357_v63 }
0x161d   :  { %v14987_v51 = vpop.eup %14986 }
0x161e   :  { %v8809_v31 = vpop.permute.xlu1 %8808  ;;  %v16961_v54 = vmul.f32 %v14987_v51, %v16869_v2  ;;  %v8731_v2 = vpop.permute.xlu0 %8730 }
0x161f   :  { %14413 = vmatpush3.xpose.msk.msra.mxu0 %vm497_vm11, %v8809_v31 }
0x1620   :  { %18410 = vst [vmem:[#allocation69_spill] sm:$0xff] %v16961_v54  ;;  %14370 = vmatmul.mubr.msk.f32.vlgmr.msra.gmra.mrb[98].mxu1 %vm497_vm11, %v16961_v54  ;;  %14422 = vmatprep.subr.mxu0 %v18357_v63 }
0x1621   :  { %14378 = vmatpush3.xpose.msk.msra.mxu1 %vm497_vm11, %v16871_v28  ;;  %14379 = vmatprep.mubr.msk.f32.mxu1 %vm15243_vm10, %v18357_v63 }
0x1622   :  { %v8807_v61 = vpop.permute.xlu1 %8806  ;;  %14387 = vmatprep.subr.mxu1 %v18357_v63  ;;  %v8729_v28 = vpop.permute.xlu0 %8728 }
0x1623   :  { %14415 = vmatmul.mubr.msk.f32.vlgmr.msra.gmra.mrb[114].mxu0 %vm497_vm11, %v8807_v61 }
0x1624   :  { %14380 = vmatmul.mubr.msk.f32.vlgmr.msra.gmra.mrb[100].mxu1 %vm497_vm11, %v16875_v5  ;;  %14424 = vmatprep.mubr.msk.f32.mxu0 %vm15243_vm10, %v18357_v63 }
0x1625   :  { %14388 = vmatpush3.xpose.msk.msra.mxu1 %vm497_vm11, %v16877_v14  ;;  %14389 = vmatprep.mubr.msk.f32.mxu1 %vm15243_vm10, %v18357_v63 }
0x1626   :  { %14397 = vmatprep.subr.mxu1 %v18357_v63 }
0x1628   :  { %14390 = vmatmul.mubr.msk.f32.vlgmr.msra.gmra.mrb[102].mxu1 %vm497_vm11, %v8417_v18 }
0x1629   :  { %14398 = vmatpush3.xpose.msk.msra.mxu1 %vm497_vm11, %v8575_v42  ;;  %14399 = vmatprep.mubr.msk.f32.mxu1 %vm15243_vm10, %v18357_v63 }
0x162a   :  { %14407 = vmatprep.subr.mxu1 %v18357_v63 }
0x162c   :  { %14400 = vmatmul.mubr.msk.f32.vlgmr.msra.gmra.mrb[104].mxu1 %vm497_vm11, %v8573_v26 }
0x162d   :  { %14408 = vmatpush3.xpose.msk.msra.mxu1 %vm497_vm11, %v8731_v2  ;;  %14409 = vmatprep.mubr.msk.f32.mxu1 %vm15243_vm10, %v18357_v63 }
0x162e   :  { %14417 = vmatprep.subr.mxu1 %v18357_v63 }
0x1630   :  { %14410 = vmatmul.mubr.msk.f32.vlgmr.msra.gmra.mrb[106].mxu1 %vm497_vm11, %v8729_v28 }
0x1631   :  { %14419 = vmatprep.mubr.msk.f32.mxu1 %vm15243_vm10, %v18357_v63 }
0x1675   :  { %v16995_v5 = vpop.f32.mrb[100].mxu0 }
0x1676   :  { %v14346_v14 = vpop.f32.mrb[101].mxu0 }
0x1686   :  { %v16997_v22 = vpop.f32.mrb[102].mxu0 }
0x1687   :  { %v14356_v27 = vpop.f32.mrb[103].mxu0 }
0x168a   :  { %v16999_v43 = vpop.f32.mrb[92].mxu1 }
0x168b   :  { %v17001_v8 = vpop.f32.mrb[104].mxu0  ;;  %v14341_v17 = vpop.f32.mrb[93].mxu1 }
0x168c   :  { %v14366_v50 = vpop.f32.mrb[105].mxu0 }
0x168e   :  { %v17003_v53 = vpop.f32.mrb[94].mxu1 }
0x168f   :  { %v17005_v3 = vpop.f32.mrb[106].mxu0  ;;  %v14351_v57 = vpop.f32.mrb[95].mxu1 }
0x1690   :  { %18411 = vst [vmem:[#allocation70_spill] sm:$0xff] %v17005_v3  ;;  %v14376_v18 = vpop.f32.mrb[107].mxu0 }
0x1696   :  { %v8412_v15 = vpop.f32.mrb[108].mxu0 }
0x1697   :  { %v8885_v51 = vmul.f32 0.35355338, %v8412_v15  ;;  %v14386_v42 = vpop.f32.mrb[109].mxu0 }
0x1699   :  { %v17008_v31 = vadd.f32 %v8885_v51, %v18401_v19 }
0x169b   :  { %v8903_v61 = vsel %vm497_vm11, %v17008_v31, -inf }
0x169c   :  { %8904 = vmax.xlane.f32.xlu1 %v8903_v61 }
0x16a1   :  { %v8568_v26 = vpop.f32.mrb[110].mxu0 }
0x16a2   :  { %v14396_v2 = vpop.f32.mrb[111].mxu0 }
0x16a3   :  { %v8887_v2 = vmul.f32 0.35355338, %v8568_v26 }
0x16a5   :  { %v8895_v24 = vadd.f32 %v8887_v2, %v15549_v30 }
0x16aa   :  { %v17012_v28 = vpop.f32.mrb[96].mxu1 }
0x16ab   :  { %v14361_v14 = vpop.f32.mrb[97].mxu1 }
0x16ad   :  { %8988 = vrot.lane.b32.xlu1 %v16683_v11, %s15249_s19 }
0x16ee   :  { %v8724_v27 = vpop.f32.mrb[112].mxu0 }
0x16ef   :  { %v14406_v17 = vpop.f32.mrb[113].mxu0 }
0x16f3   :  { %v17016_v50 = vpop.f32.mrb[98].mxu1 }
0x16f4   :  { %v14371_v57 = vpop.f32.mrb[99].mxu1 }
0x16f5   :  { %v8889_v57 = vmul.f32 0.35355338, %v8724_v27 }
0x16f6   :  { %v8880_v18 = vpop.f32.mrb[114].mxu0 }
0x16f7   :  { %v8334_v15 = vpop.f32.mrb[100].mxu1  ;;  %v14416_v51 = vpop.f32.mrb[115].mxu0 }
0x16f8   :  { %v8884_v42 = vmul.f32 0.35355338, %v8334_v15  ;;  %v14381_v58 = vpop.f32.mrb[101].mxu1 }
0x16fa   :  { %v8892_v61 = vadd.f32 %v8884_v42, %v18402_v35  ;;  %v8909_v42 = vsel %vm497_vm11, %v8895_v24, -inf }
0x16fb   :  { %v8490_v45 = vpop.f32.mrb[102].mxu1 }
0x16fc   :  { %v8886_v10 = vmul.f32 0.35355338, %v8490_v45  ;;  %v14391_v0 = vpop.f32.mrb[103].mxu1  ;;  %v8900_v14 = vsel %vm497_vm11, %v8892_v61, -inf  ;;  %v8897_v45 = vadd.f32 %v8889_v57, %v15556_v39 }
0x16fd   :  { %8901 = vmax.xlane.f32.xlu0 %v8900_v14  ;;  %v8891_v0 = vmul.f32 0.35355338, %v8880_v18 }
0x16fe   :  { %v8894_v1 = vadd.f32 %v8886_v10, %v15535_v59 }
0x16ff   :  { %v8646_v17 = vpop.f32.mrb[104].mxu1  ;;  %v8899_v27 = vadd.f32 %v8891_v0, %v15564_v6 }
0x1700   :  { %v8888_v37 = vmul.f32 0.35355338, %v8646_v17  ;;  %v14401_v54 = vpop.f32.mrb[105].mxu1  ;;  %v8906_v15 = vsel %vm497_vm11, %v8894_v1, -inf }
0x1701   :  { %8907 = vmax.xlane.f32.xlu0 %v8906_v15  ;;  %v8915_v54 = vsel %vm497_vm11, %v8897_v45, -inf  ;;  %v8921_v2 = vsel %vm497_vm11, %v8899_v27, -inf }
0x1702   :  { %v8896_v58 = vadd.f32 %v8888_v37, %v15546_v29 }
0x1703   :  { %v8802_v51 = vpop.f32.mrb[106].mxu1 }
0x1704   :  { %v14411_v26 = vpop.f32.mrb[107].mxu1  ;;  %v8912_v10 = vsel %vm497_vm11, %v8896_v58, -inf  ;;  %v8890_v57 = vmul.f32 0.35355338, %v8802_v51 }
0x1705   :  { %8910 = vmax.xlane.f32.xlu0 %v8909_v42  ;;  %8913 = vmax.xlane.f32.xlu1 %v8912_v10 }
0x1706   :  { %v17057_v15 = vadd.f32 %v8890_v57, %v15580_v23 }
0x1708   :  { %v8918_v0 = vsel %vm497_vm11, %v17057_v15, -inf }
0x1709   :  { %8916 = vmax.xlane.f32.xlu0 %v8915_v54 }
0x170d   :  { %8922 = vmax.xlane.f32.xlu0 %v8921_v2 }
0x1716   :  { %9140 = vrot.lane.b32.xlu1 %v16689_v41, %s15249_s19 }
0x171a   :  { %9216 = vrot.lane.b32.xlu1 %v16693_v12, %s15249_s19 }
0x171e   :  { %9368 = vrot.lane.b32.xlu1 %v16701_v56, %s15249_s19 }
0x1722   :  { %9520 = vrot.lane.b32.xlu1 %v16709_v46, %s15249_s19 }
0x1723   :  { %9064 = vrot.lane.b32.xlu0 %v16681_v47, %s15249_s19 }
0x1726   :  { %9676 = vrot.lane.b32.xlu1 %v16681_v47, %s15250_s20 }
0x1727   :  { %9292 = vrot.lane.b32.xlu0 %v16695_v32, %s15249_s19 }
0x1729   :  { %v8905_v37 = vpop.xlane.xlu1 %8904 }
0x172a   :  { %9674 = vrot.lane.b32.xlu1 %v16681_v47, %s15251_s21  ;;  %v8925_v14 = vsub.f32 %v17008_v31, %v8905_v37 }
0x172b   :  { %9444 = vrot.lane.b32.xlu0 %v16703_v62, %s15249_s19 }
0x172c   :  { %v8934_v17 = vmul.f32 1.442695, %v8925_v14 }
0x172d   :  { %v8989_v18 = vpop.permute.xlu1 %8988 }
0x172e   :  { %14418 = vmatpush3.msra.mxu1 %v8989_v18  ;;  %14988 = vpow2.f32 %v8934_v17 }
0x172f   :  { %9598 = vrot.lane.b32.xlu0 %v16683_v11, %s15250_s20  ;;  %14427 = vmatprep.subr.mxu1 %v18357_v63 }
0x1733   :  { %9596 = vrot.lane.b32.xlu0 %v16683_v11, %s15251_s21 }
0x1737   :  { %9754 = vrot.lane.b32.xlu0 %v16689_v41, %s15250_s20 }
0x1738   :  { %v17061_v26 = vpop.eup %14988 }
0x1739   :  { %v8951_v42 = vsel %vm497_vm11, %v17061_v26, 0.0 }
0x174e   :  { %8919 = vmax.xlane.f32.xlu1 %v8918_v0 }
0x1756   :  { %8952 = vadd.xlane.f32.xlu0 %v8951_v42 }
0x175f   :  { %9832 = vrot.lane.b32.xlu1 %v16693_v12, %s15250_s20 }
0x178a   :  { %v8902_v31 = vpop.xlane.xlu0 %8901 }
0x178b   :  { %v8924_v10 = vsub.f32 %v8892_v61, %v8902_v31 }
0x178d   :  { %v8932_v51 = vmul.f32 1.442695, %v8924_v10 }
0x178e   :  { %v8908_v54 = vpop.xlane.xlu0 %8907 }
0x178f   :  { %14990 = vpow2.f32 %v8932_v51  ;;  %v8926_v2 = vsub.f32 %v8894_v1, %v8908_v54 }
0x1791   :  { %v8936_v37 = vmul.f32 1.442695, %v8926_v2 }
0x1792   :  { %v8914_v18 = vpop.xlane.xlu1 %8913  ;;  %v8911_v14 = vpop.xlane.xlu0 %8910 }
0x1793   :  { %14992 = vpow2.f32 %v8936_v37  ;;  %v8928_v17 = vsub.f32 %v8896_v58, %v8914_v18  ;;  %v8927_v57 = vsub.f32 %v8895_v24, %v8911_v14 }
0x1795   :  { %v8940_v0 = vmul.f32 1.442695, %v8928_v17  ;;  %v8938_v36 = vmul.f32 1.442695, %v8927_v57 }
0x1796   :  { %v8917_v55 = vpop.xlane.xlu0 %8916  ;;  %v9141_v18 = vpop.permute.xlu1 %9140 }
0x1797   :  { %14994 = vpow2.f32 %v8940_v0  ;;  %v8929_v42 = vsub.f32 %v8897_v45, %v8917_v55 }
0x1798   :  { %14996 = vpow2.f32 %v8938_v36 }
0x1799   :  { %v17067_v44 = vpop.eup %14990  ;;  %v8942_v9 = vmul.f32 1.442695, %v8929_v42 }
0x179a   :  { %v8923_v61 = vpop.xlane.xlu0 %8922  ;;  %v8948_v31 = vsel %vm497_vm11, %v17067_v44, 0.0  ;;  %v9217_v14 = vpop.permute.xlu1 %9216 }
0x179b   :  { %14998 = vpow2.f32 %v8942_v9  ;;  %v8931_v1 = vsub.f32 %v8899_v27, %v8923_v61  ;;  %8949 = vadd.xlane.f32.xlu1 %v8948_v31 }
0x179d   :  { %v17071_v10 = vpop.eup %14992  ;;  %v8946_v58 = vmul.f32 1.442695, %v8931_v1 }
0x179e   :  { %v9065_v24 = vpop.permute.xlu0 %9064  ;;  %v8954_v51 = vsel %vm497_vm11, %v17071_v10, 0.0  ;;  %v17096_v17 = vpop.permute.xlu1 %9368 }
0x179f   :  { %15000 = vpow2.f32 %v8946_v58  ;;  %8955 = vadd.xlane.f32.xlu1 %v8954_v51  ;;  %14423 = vmatpush3.msra.mxu0 %v9065_v24 }
0x17a0   :  { %14432 = vmatprep.subr.mxu0 %v18357_v63 }
0x17a1   :  { %v17076_v36 = vpop.eup %14994 }
0x17a2   :  { %v17078_v55 = vpop.eup %14996  ;;  %v8960_v9 = vsel %vm497_vm11, %v17076_v36, 0.0  ;;  %v17100_v57 = vpop.permute.xlu0 %9292 }
0x17a3   :  { %8961 = vadd.xlane.f32.xlu1 %v8960_v9  ;;  %v8957_v45 = vsel %vm497_vm11, %v17078_v55, 0.0  ;;  %v17104_v0 = vpop.permute.xlu1 %9520 }
0x17a4   :  { %8958 = vadd.xlane.f32.xlu0 %v8957_v45 }
0x17a5   :  { %v17084_v27 = vpop.eup %14998 }
0x17a6   :  { %v8963_v54 = vsel %vm497_vm11, %v17084_v27, 0.0  ;;  %v17106_v42 = vpop.permute.xlu0 %9444 }
0x17a7   :  { %v17110_v61 = vpop.permute.xlu1 %9676 }
0x17a8   :  { %8964 = vadd.xlane.f32.xlu0 %v8963_v54 }
0x17a9   :  { %v17088_v2 = vpop.eup %15000 }
0x17aa   :  { %v8969_v37 = vsel %vm497_vm11, %v17088_v2, 0.0  ;;  %v17114_v31 = vpop.permute.xlu0 %9598 }
0x17ab   :  { %v17118_v1 = vpop.permute.xlu1 %9674 }
0x17ac   :  { %8970 = vadd.xlane.f32.xlu0 %v8969_v37 }
0x17ae   :  { %v17120_v58 = vpop.permute.xlu0 %9596 }
0x17b2   :  { %v17127_v45 = vpop.permute.xlu0 %9754 }
0x17b4   :  { %9830 = vrot.lane.b32.xlu1 %v16693_v12, %s15251_s21 }
0x17c2   :  { %9752 = vrot.lane.b32.xlu0 %v16689_v41, %s15251_s21 }
0x17c6   :  { %9910 = vrot.lane.b32.xlu0 %v16695_v32, %s15250_s20 }
0x17ca   :  { %9908 = vrot.lane.b32.xlu0 %v16695_v32, %s15251_s21 }
0x17ce   :  { %10066 = vrot.lane.b32.xlu0 %v16703_v62, %s15250_s20 }
0x17d2   :  { %10064 = vrot.lane.b32.xlu0 %v16703_v62, %s15251_s21 }
0x17d6   :  { %10400 = vrot.lane.b32.xlu0 %v16681_v47, %s15252_s22 }
0x17da   :  { %10628 = vrot.lane.b32.xlu0 %v16695_v32, %s15252_s22 }
0x17db   :  { %v8920_v24 = vpop.xlane.xlu1 %8919 }
0x17dc   :  { %v8930_v51 = vsub.f32 %v17057_v15, %v8920_v24 }
0x17de   :  { %v8944_v9 = vmul.f32 1.442695, %v8930_v51  ;;  %10780 = vrot.lane.b32.xlu0 %v16703_v62, %s15252_s22 }
0x17e0   :  { %15002 = vpow2.f32 %v8944_v9 }
0x17e2   :  { %10934 = vrot.lane.b32.xlu0 %v16683_v11, %s15253_s23 }
0x17e3   :  { %v8953_v54 = vpop.xlane.xlu0 %8952 }
0x17e4   :  { %15004 = vrcp.f32 %v8953_v54 }
0x17e6   :  { %10932 = vrot.lane.b32.xlu0 %v16683_v11, %s15254_s24 }
0x17ea   :  { %v17133_v37 = vpop.eup %15002 }
0x17eb   :  { %v8966_v15 = vsel %vm497_vm11, %v17133_v37, 0.0 }
0x17ec   :  { %8967 = vadd.xlane.f32.xlu1 %v8966_v15 }
0x17ee   :  { %v15005_v24 = vpop.eup %15004 }
0x17ef   :  { %v17138_v51 = vmul.f32 %v15005_v24, %v17061_v26  ;;  %v9833_v26 = vpop.permute.xlu1 %9832 }
0x17f1   :  { %18412 = vst [vmem:[#allocation71_spill] sm:$0xff] %v17138_v51  ;;  %14425 = vmatmul.mubr.msk.f32.vlgmr.msra.gmra.mrb[116].mxu0 %vm497_vm11, %v17138_v51 }
0x17f2   :  { %14433 = vmatpush3.msra.mxu0 %v9217_v14  ;;  %14434 = vmatprep.mubr.msk.f32.mxu0 %vm15243_vm10, %v18357_v63 }
0x17f3   :  { %14442 = vmatprep.subr.mxu0 %v18357_v63 }
0x17fd   :  { %9988 = vrot.lane.b32.xlu1 %v16701_v56, %s15250_s20 }
0x1801   :  { %9986 = vrot.lane.b32.xlu1 %v16701_v56, %s15251_s21 }
0x1805   :  { %10144 = vrot.lane.b32.xlu1 %v16709_v46, %s15250_s20 }
0x1809   :  { %10142 = vrot.lane.b32.xlu1 %v16709_v46, %s15251_s21 }
0x180d   :  { %10324 = vrot.lane.b32.xlu1 %v16683_v11, %s15252_s22 }
0x1811   :  { %10476 = vrot.lane.b32.xlu1 %v16689_v41, %s15252_s22 }
0x1815   :  { %10552 = vrot.lane.b32.xlu1 %v16693_v12, %s15252_s22 }
0x1819   :  { %10704 = vrot.lane.b32.xlu1 %v16701_v56, %s15252_s22 }
0x181d   :  { %10856 = vrot.lane.b32.xlu1 %v16709_v46, %s15252_s22 }
0x1821   :  { %11012 = vrot.lane.b32.xlu1 %v16681_v47, %s15253_s23 }
0x1825   :  { %11010 = vrot.lane.b32.xlu1 %v16681_v47, %s15254_s24 }
0x1828   :  { %v8950_v14 = vpop.xlane.xlu1 %8949 }
0x1829   :  { %15006 = vrcp.f32 %v8950_v14 }
0x182c   :  { %v8956_v9 = vpop.xlane.xlu1 %8955 }
0x182d   :  { %15008 = vrcp.f32 %v8956_v9 }
0x1830   :  { %v8962_v54 = vpop.xlane.xlu1 %8961 }
0x1831   :  { %15010 = vrcp.f32 %v8962_v54  ;;  %v8959_v15 = vpop.xlane.xlu0 %8958 }
0x1832   :  { %15012 = vrcp.f32 %v8959_v15 }
0x1833   :  { %v15007_v24 = vpop.eup %15006 }
0x1834   :  { %v17168_v13 = vmul.f32 %v15007_v24, %v17067_v44 }
0x1835   :  { %v8965_v40 = vpop.xlane.xlu0 %8964 }
0x1836   :  { %18413 = vst [vmem:[#allocation72_spill] sm:$0xff] %v17168_v13  ;;  %15014 = vrcp.f32 %v8965_v40  ;;  %14420 = vmatmul.mubr.msk.f32.vlgmr.msra.gmra.mrb[108].mxu1 %vm497_vm11, %v17168_v13 }
0x1837   :  { %v15009_v21 = vpop.eup %15008  ;;  %14428 = vmatpush3.msra.mxu1 %v9141_v18  ;;  %14429 = vmatprep.mubr.msk.f32.mxu1 %vm15243_vm10, %v18357_v63 }
0x1838   :  { %14437 = vmatprep.subr.mxu1 %v18357_v63  ;;  %v17176_v14 = vmul.f32 %v15009_v21, %v17071_v10 }
0x1839   :  { %v8971_v9 = vpop.xlane.xlu0 %8970 }
0x183a   :  { %18414 = vst [vmem:[#allocation73_spill] sm:$0xff] %v17176_v14  ;;  %15016 = vrcp.f32 %v8971_v9  ;;  %14430 = vmatmul.mubr.msk.f32.vlgmr.msra.gmra.mrb[110].mxu1 %vm497_vm11, %v17176_v14 }
0x183b   :  { %v15011_v44 = vpop.eup %15010  ;;  %14438 = vmatpush3.msra.mxu1 %v17100_v57  ;;  %14439 = vmatprep.mubr.msk.f32.mxu1 %vm15243_vm10, %v18357_v63 }
0x183c   :  { %v15013_v40 = vpop.eup %15012  ;;  %14447 = vmatprep.subr.mxu1 %v18357_v63  ;;  %v17185_v18 = vmul.f32 %v15011_v44, %v17076_v36 }
0x183d   :  { %v17188_v21 = vmul.f32 %v15013_v40, %v17078_v55 }
0x183e   :  { %18415 = vst [vmem:[#allocation74_spill] sm:$0xff] %v17185_v18  ;;  %14440 = vmatmul.mubr.msk.f32.vlgmr.msra.gmra.mrb[112].mxu1 %vm497_vm11, %v17185_v18 }
0x183f   :  { %18416 = vst [vmem:[#allocation75_spill] sm:$0xff] %v17188_v21  ;;  %14435 = vmatmul.mubr.msk.f32.vlgmr.msra.gmra.mrb[118].mxu0 %vm497_vm11, %v17188_v21  ;;  %14448 = vmatpush3.msra.mxu1 %v17106_v42 }
0x1840   :  { %v15015_v10 = vpop.eup %15014  ;;  %14443 = vmatpush3.msra.mxu0 %v17096_v17  ;;  %14444 = vmatprep.mubr.msk.f32.mxu0 %vm15243_vm10, %v18357_v63 }
0x1841   :  { %14452 = vmatprep.subr.mxu0 %v18357_v63  ;;  %v17200_v36 = vmul.f32 %v15015_v10, %v17084_v27  ;;  %14449 = vmatprep.mubr.msk.f32.mxu1 %vm15243_vm10, %v18357_v63  ;;  %v9831_v27 = vpop.permute.xlu1 %9830 }
0x1842   :  { %14457 = vmatprep.subr.mxu1 %v18357_v63 }
0x1843   :  { %18417 = vst [vmem:[#allocation76_spill] sm:$0xff] %v17200_v36  ;;  %14445 = vmatmul.mubr.msk.f32.vlgmr.msra.gmra.mrb[120].mxu0 %vm497_vm11, %v17200_v36 }
0x1844   :  { %v15017_v55 = vpop.eup %15016  ;;  %14453 = vmatpush3.msra.mxu0 %v17104_v0  ;;  %14454 = vmatprep.mubr.msk.f32.mxu0 %vm15243_vm10, %v18357_v63 }
0x1845   :  { %v17211_v17 = vmul.f32 %v15017_v55, %v17088_v2  ;;  %14462 = vmatprep.subr.mxu0 %v18357_v63  ;;  %v9753_v2 = vpop.permute.xlu0 %9752 }
0x1847   :  { %18418 = vst [vmem:[#allocation77_spill] sm:$0xff] %v17211_v17  ;;  %14455 = vmatmul.mubr.msk.f32.vlgmr.msra.gmra.mrb[122].mxu0 %vm497_vm11, %v17211_v17 }
0x1848   :  { %14464 = vmatprep.mubr.msk.f32.mxu0 %vm15243_vm10, %v18357_v63 }
0x1849   :  { %v9911_v57 = vpop.permute.xlu0 %9910 }
0x184b   :  { %14463 = vmatpush3.xpose.msk.msra.mxu0 %vm497_vm11, %v17110_v61 }
0x184c   :  { %14472 = vmatprep.subr.mxu0 %v18357_v63 }
0x184d   :  { %v9909_v0 = vpop.permute.xlu0 %9908 }
0x184e   :  { %14465 = vmatmul.mubr.msk.f32.vlgmr.msra.gmra.mrb[124].mxu0 %vm497_vm11, %v17118_v1 }
0x184f   :  { %14473 = vmatpush3.xpose.msk.msra.mxu0 %vm497_vm11, %v9833_v26  ;;  %14474 = vmatprep.mubr.msk.f32.mxu0 %vm15243_vm10, %v18357_v63 }
0x1850   :  { %14482 = vmatprep.subr.mxu0 %v18357_v63 }
0x1851   :  { %v10067_v1 = vpop.permute.xlu0 %10066 }
0x1852   :  { %14475 = vmatmul.mubr.msk.f32.vlgmr.msra.gmra.mrb[126].mxu0 %vm497_vm11, %v9831_v27 }
0x1853   :  { %14484 = vmatprep.mubr.msk.f32.mxu0 %vm15243_vm10, %v18357_v63 }
0x1855   :  { %v10065_v15 = vpop.permute.xlu0 %10064 }
0x1859   :  { %v10401_v40 = vpop.permute.xlu0 %10400 }
0x185d   :  { %v17330_v13 = vpop.permute.xlu0 %10628 }
0x1861   :  { %v17332_v51 = vpop.permute.xlu0 %10780 }
0x1865   :  { %v17334_v7 = vpop.permute.xlu0 %10934 }
0x1879   :  { %v8968_v42 = vpop.xlane.xlu1 %8967 }
0x187a   :  { %15018 = vrcp.f32 %v8968_v42 }
0x187d   :  { %v9989_v61 = vpop.permute.xlu1 %9988 }
0x187e   :  { %14483 = vmatpush3.xpose.msk.msra.mxu0 %vm497_vm11, %v9989_v61 }
0x187f   :  { %14492 = vmatprep.subr.mxu0 %v18357_v63 }
0x1881   :  { %v9987_v26 = vpop.permute.xlu1 %9986 }
0x1882   :  { %14485 = vmatmul.mubr.msk.f32.vlgmr.msra.gmra.mrb[128].mxu0 %vm497_vm11, %v9987_v26 }
0x1883   :  { %14494 = vmatprep.mubr.msk.f32.mxu0 %vm15243_vm10, %v18357_v63 }
0x1884   :  { %v15019_v54 = vpop.eup %15018 }
0x1885   :  { %v10145_v24 = vpop.permute.xlu1 %10144  ;;  %v17236_v9 = vmul.f32 %v15019_v54, %v17133_v37 }
0x1886   :  { %14493 = vmatpush3.xpose.msk.msra.mxu0 %vm497_vm11, %v10145_v24 }
0x1887   :  { %18419 = vst [vmem:[#allocation78_spill] sm:$0xff] %v17236_v9  ;;  %14450 = vmatmul.mubr.msk.f32.vlgmr.msra.gmra.mrb[114].mxu1 %vm497_vm11, %v17236_v9  ;;  %14502 = vmatprep.subr.mxu0 %v18357_v63 }
0x1888   :  { %14458 = vmatpush3.xpose.msk.msra.mxu1 %vm497_vm11, %v17114_v31  ;;  %14459 = vmatprep.mubr.msk.f32.mxu1 %vm15243_vm10, %v18357_v63 }
0x1889   :  { %v10143_v44 = vpop.permute.xlu1 %10142  ;;  %14467 = vmatprep.subr.mxu1 %v18357_v63 }
0x188a   :  { %14495 = vmatmul.mubr.msk.f32.vlgmr.msra.gmra.mrb[130].mxu0 %vm497_vm11, %v10143_v44 }
0x188b   :  { %14503 = vmatpush3.msra.mxu0 %v10401_v40  ;;  %14460 = vmatmul.mubr.msk.f32.vlgmr.msra.gmra.mrb[116].mxu1 %vm497_vm11, %v17120_v58 }
0x188c   :  { %14468 = vmatpush3.xpose.msk.msra.mxu1 %vm497_vm11, %v17127_v45  ;;  %14469 = vmatprep.mubr.msk.f32.mxu1 %vm15243_vm10, %v18357_v63 }
0x188d   :  { %14477 = vmatprep.subr.mxu1 %v18357_v63  ;;  %14504 = vmatprep.mubr.msk.f32.mxu0 %vm15243_vm10, %v18357_v63  ;;  %v10325_v31 = vpop.permute.xlu1 %10324 }
0x188e   :  { %14512 = vmatprep.subr.mxu0 %v18357_v63 }
0x188f   :  { %14470 = vmatmul.mubr.msk.f32.vlgmr.msra.gmra.mrb[118].mxu1 %vm497_vm11, %v9753_v2 }
0x1890   :  { %14478 = vmatpush3.xpose.msk.msra.mxu1 %vm497_vm11, %v9911_v57  ;;  %14479 = vmatprep.mubr.msk.f32.mxu1 %vm15243_vm10, %v18357_v63 }
0x1891   :  { %14487 = vmatprep.subr.mxu1 %v18357_v63 }
0x1893   :  { %14480 = vmatmul.mubr.msk.f32.vlgmr.msra.gmra.mrb[120].mxu1 %vm497_vm11, %v9909_v0 }
0x1894   :  { %14488 = vmatpush3.xpose.msk.msra.mxu1 %vm497_vm11, %v10067_v1  ;;  %14489 = vmatprep.mubr.msk.f32.mxu1 %vm15243_vm10, %v18357_v63 }
0x1895   :  { %14497 = vmatprep.subr.mxu1 %v18357_v63 }
0x1897   :  { %14490 = vmatmul.mubr.msk.f32.vlgmr.msra.gmra.mrb[122].mxu1 %vm497_vm11, %v10065_v15 }
0x1898   :  { %14498 = vmatpush3.msra.mxu1 %v10325_v31  ;;  %14499 = vmatprep.mubr.msk.f32.mxu1 %vm15243_vm10, %v18357_v63 }
0x1899   :  { %14507 = vmatprep.subr.mxu1 %v18357_v63 }
0x18c4   :  { %v17272_v58 = vpop.f32.mrb[116].mxu0 }
0x18c5   :  { %v14426_v45 = vpop.f32.mrb[117].mxu0 }
0x1909   :  { %v17274_v37 = vpop.f32.mrb[108].mxu1 }
0x190a   :  { %v14421_v10 = vpop.f32.mrb[109].mxu1 }
0x190d   :  { %v17276_v55 = vpop.f32.mrb[110].mxu1 }
0x190e   :  { %v14431_v27 = vpop.f32.mrb[111].mxu1 }
0x1911   :  { %v17278_v2 = vpop.f32.mrb[112].mxu1 }
0x1912   :  { %v17280_v57 = vpop.f32.mrb[118].mxu0  ;;  %v14441_v0 = vpop.f32.mrb[113].mxu1 }
0x1913   :  { %v14436_v42 = vpop.f32.mrb[119].mxu0 }
0x1916   :  { %v17282_v61 = vpop.f32.mrb[120].mxu0 }
0x1917   :  { %v14446_v1 = vpop.f32.mrb[121].mxu0 }
0x191a   :  { %v17284_v26 = vpop.f32.mrb[122].mxu0 }
0x191b   :  { %v14456_v54 = vpop.f32.mrb[123].mxu0 }
0x1921   :  { %v9748_v15 = vpop.f32.mrb[124].mxu0 }
0x1922   :  { %v10221_v24 = vmul.f32 0.35355338, %v9748_v15  ;;  %v14466_v44 = vpop.f32.mrb[125].mxu0 }
0x1924   :  { %v10229_v40 = vadd.f32 %v10221_v24, %v18401_v19 }
0x1925   :  { %v9904_v31 = vpop.f32.mrb[126].mxu0 }
0x1926   :  { %v14476_v45 = vpop.f32.mrb[127].mxu0  ;;  %v10239_v10 = vsel %vm497_vm11, %v10229_v40, -inf  ;;  %v10223_v9 = vmul.f32 0.35355338, %v9904_v31 }
0x1927   :  { %10240 = vmax.xlane.f32.xlu1 %v10239_v10 }
0x1928   :  { %v10231_v24 = vadd.f32 %v10223_v9, %v15549_v30 }
0x1955   :  { %v10060_v27 = vpop.f32.mrb[128].mxu0 }
0x1956   :  { %v14486_v20 = vpop.f32.mrb[129].mxu0  ;;  %v10225_v36 = vmul.f32 0.35355338, %v10060_v27 }
0x1958   :  { %v10233_v9 = vadd.f32 %v10225_v36, %v15556_v39 }
0x195a   :  { %v17288_v0 = vpop.f32.mrb[114].mxu1 }
0x195b   :  { %v14451_v42 = vpop.f32.mrb[115].mxu1 }
0x195d   :  { %v10216_v60 = vpop.f32.mrb[130].mxu0 }
0x195e   :  { %v9670_v1 = vpop.f32.mrb[116].mxu1  ;;  %v14496_v34 = vpop.f32.mrb[131].mxu0 }
0x195f   :  { %v10220_v54 = vmul.f32 0.35355338, %v9670_v1  ;;  %v14461_v17 = vpop.f32.mrb[117].mxu1  ;;  %v10245_v34 = vsel %vm497_vm11, %v10231_v24, -inf  ;;  %v10227_v1 = vmul.f32 0.35355338, %v10216_v60  ;;  %v17312_v60 = vpop.permute.xlu1 %10476 }
0x1961   :  { %v10228_v15 = vadd.f32 %v10220_v54, %v18402_v35 }
0x1962   :  { %v9826_v44 = vpop.f32.mrb[118].mxu1 }
0x1963   :  { %v10222_v45 = vmul.f32 0.35355338, %v9826_v44  ;;  %v14471_v18 = vpop.f32.mrb[119].mxu1  ;;  %v10236_v10 = vsel %vm497_vm11, %v10228_v15, -inf  ;;  %v10251_v44 = vsel %vm497_vm11, %v10233_v9, -inf  ;;  %v17314_v36 = vpop.permute.xlu1 %10552 }
0x1964   :  { %10237 = vmax.xlane.f32.xlu0 %v10236_v10 }
0x1965   :  { %v10230_v42 = vadd.f32 %v10222_v45, %v15535_v59 }
0x1966   :  { %v9982_v20 = vpop.f32.mrb[120].mxu1 }
0x1967   :  { %v10224_v14 = vmul.f32 0.35355338, %v9982_v20  ;;  %v14481_v21 = vpop.f32.mrb[121].mxu1  ;;  %v10242_v54 = vsel %vm497_vm11, %v10230_v42, -inf  ;;  %v17319_v20 = vpop.permute.xlu1 %10704 }
0x1968   :  { %10246 = vmax.xlane.f32.xlu0 %v10245_v34  ;;  %v17303_v21 = vadd.f32 %v10227_v1, %v15564_v6 }
0x1969   :  { %v17296_v17 = vadd.f32 %v10224_v14, %v15546_v29 }
0x196a   :  { %v10138_v31 = vpop.f32.mrb[122].mxu1  ;;  %v10257_v14 = vsel %vm497_vm11, %v17303_v21, -inf }
0x196b   :  { %v14491_v18 = vpop.f32.mrb[123].mxu1  ;;  %v10248_v27 = vsel %vm497_vm11, %v17296_v17, -inf  ;;  %v10226_v45 = vmul.f32 0.35355338, %v10138_v31  ;;  %v17323_v1 = vpop.permute.xlu1 %10856 }
0x196c   :  { %10243 = vmax.xlane.f32.xlu0 %v10242_v54  ;;  %10249 = vmax.xlane.f32.xlu1 %v10248_v27 }
0x196d   :  { %v17317_v10 = vadd.f32 %v10226_v45, %v15580_v23 }
0x196f   :  { %v10254_v34 = vsel %vm497_vm11, %v17317_v10, -inf  ;;  %v17325_v18 = vpop.permute.xlu1 %11012 }
0x1970   :  { %10252 = vmax.xlane.f32.xlu0 %v10251_v44 }
0x1973   :  { %v17327_v54 = vpop.permute.xlu1 %11010 }
0x1974   :  { %10258 = vmax.xlane.f32.xlu0 %v10257_v14 }
0x197d   :  { %11168 = vrot.lane.b32.xlu1 %v16693_v12, %s15253_s23 }
0x198a   :  { %11090 = vrot.lane.b32.xlu0 %v16689_v41, %s15253_s23 }
0x19a1   :  { %10255 = vmax.xlane.f32.xlu1 %v10254_v34  ;;  %v17336_v34 = vpop.permute.xlu0 %10932 }
0x19b4   :  { %v10241_v27 = vpop.xlane.xlu1 %10240 }
0x19b5   :  { %v10261_v44 = vsub.f32 %v10229_v40, %v10241_v27 }
0x19b7   :  { %v10270_v14 = vmul.f32 1.442695, %v10261_v44 }
0x19b9   :  { %15020 = vpow2.f32 %v10270_v14 }
0x19c3   :  { %v15021_v31 = vpop.eup %15020 }
0x19c4   :  { %v10287_v45 = vsel %vm497_vm11, %v15021_v31, 0.0 }
0x19c5   :  { %10288 = vadd.xlane.f32.xlu0 %v10287_v45 }
0x19f1   :  { %v10238_v38 = vpop.xlane.xlu0 %10237 }
0x19f2   :  { %v10260_v49 = vsub.f32 %v10228_v15, %v10238_v38 }
0x19f4   :  { %v10268_v25 = vmul.f32 1.442695, %v10260_v49 }
0x19f5   :  { %v10247_v48 = vpop.xlane.xlu0 %10246 }
0x19f6   :  { %15022 = vpow2.f32 %v10268_v25  ;;  %v10263_v40 = vsub.f32 %v10231_v24, %v10247_v48 }
0x19f8   :  { %v10274_v27 = vmul.f32 1.442695, %v10263_v40 }
0x19f9   :  { %v10244_v44 = vpop.xlane.xlu0 %10243 }
0x19fa   :  { %15024 = vpow2.f32 %v10274_v27  ;;  %v10262_v14 = vsub.f32 %v10230_v42, %v10244_v44 }
0x19fc   :  { %v10272_v33 = vmul.f32 1.442695, %v10262_v14 }
0x19fd   :  { %v10253_v45 = vpop.xlane.xlu0 %10252 }
0x19fe   :  { %v10265_v16 = vsub.f32 %v10233_v9, %v10253_v45  ;;  %15026 = vpow2.f32 %v10272_v33 }
0x1a00   :  { %v17338_v52 = vpop.eup %15022  ;;  %v10278_v4 = vmul.f32 1.442695, %v10265_v16 }
0x1a01   :  { %v10284_v3 = vsel %vm497_vm11, %v17338_v52, 0.0  ;;  %v10259_v15 = vpop.xlane.xlu0 %10258 }
0x1a02   :  { %15028 = vpow2.f32 %v10278_v4  ;;  %10285 = vadd.xlane.f32.xlu1 %v10284_v3  ;;  %v10250_v4 = vpop.xlane.xlu1 %10249  ;;  %v10267_v24 = vsub.f32 %v17303_v21, %v10259_v15 }
0x1a03   :  { %v10264_v3 = vsub.f32 %v17296_v17, %v10250_v4 }
0x1a04   :  { %v17342_v49 = vpop.eup %15024  ;;  %v10282_v9 = vmul.f32 1.442695, %v10267_v24 }
0x1a05   :  { %v10293_v48 = vsel %vm497_vm11, %v17342_v49, 0.0  ;;  %v10276_v42 = vmul.f32 1.442695, %v10264_v3  ;;  %v17368_v17 = vpop.permute.xlu0 %11090 }
0x1a06   :  { %10294 = vadd.xlane.f32.xlu0 %v10293_v48  ;;  %v17372_v45 = vpop.permute.xlu1 %11168 }
0x1a07   :  { %15030 = vpow2.f32 %v10276_v42 }
0x1a08   :  { %v17346_v25 = vpop.eup %15026  ;;  %15032 = vpow2.f32 %v10282_v9 }
0x1a09   :  { %v10290_v38 = vsel %vm497_vm11, %v17346_v25, 0.0 }
0x1a0a   :  { %10291 = vadd.xlane.f32.xlu1 %v10290_v38 }
0x1a0c   :  { %v17350_v33 = vpop.eup %15028 }
0x1a0d   :  { %v10299_v16 = vsel %vm497_vm11, %v17350_v33, 0.0 }
0x1a0e   :  { %10300 = vadd.xlane.f32.xlu0 %v10299_v16 }
0x1a11   :  { %v17360_v40 = vpop.eup %15030 }
0x1a12   :  { %v17362_v27 = vpop.eup %15032  ;;  %v10296_v44 = vsel %vm497_vm11, %v17360_v40, 0.0 }
0x1a13   :  { %v10305_v14 = vsel %vm497_vm11, %v17362_v27, 0.0 }
0x1a1b   :  { %11166 = vrot.lane.b32.xlu1 %v16693_v12, %s15254_s24 }
0x1a24   :  { %11088 = vrot.lane.b32.xlu0 %v16689_v41, %s15254_s24 }
0x1a2e   :  { %v10256_v48 = vpop.xlane.xlu1 %10255 }
0x1a2f   :  { %v10266_v4 = vsub.f32 %v17317_v10, %v10256_v48 }
0x1a31   :  { %v10280_v3 = vmul.f32 1.442695, %v10266_v4 }
0x1a3f   :  { %10297 = vadd.xlane.f32.xlu1 %v10296_v44 }
0x1a43   :  { %10306 = vadd.xlane.f32.xlu0 %v10305_v14 }
0x1a50   :  { %11324 = vrot.lane.b32.xlu1 %v16701_v56, %s15253_s23 }
0x1a52   :  { %v10289_v21 = vpop.xlane.xlu0 %10288 }
0x1a53   :  { %15034 = vrcp.f32 %v10289_v21 }
0x1a54   :  { %15036 = vpow2.f32 %v10280_v3 }
0x1a59   :  { %11246 = vrot.lane.b32.xlu0 %v16695_v32, %s15253_s23 }
0x1a5d   :  { %v15035_v38 = vpop.eup %15034  ;;  %11244 = vrot.lane.b32.xlu0 %v16695_v32, %s15254_s24 }
0x1a5e   :  { %v17378_v16 = vmul.f32 %v15035_v38, %v15021_v31  ;;  %v17391_v31 = vpop.eup %15036 }
0x1a5f   :  { %v10302_v10 = vsel %vm497_vm11, %v17391_v31, 0.0 }
0x1a60   :  { %14505 = vmatmul.mubr.msk.f32.vlgmr.msra.gmra.mrb[132].mxu0 %vm497_vm11, %v17378_v16 }
0x1a61   :  { %14513 = vmatpush3.msra.mxu0 %v17314_v36  ;;  %11402 = vrot.lane.b32.xlu0 %v16703_v62, %s15253_s23 }
0x1a62   :  { %14514 = vmatprep.mubr.msk.f32.mxu0 %vm15243_vm10, %v18357_v63  ;;  %14522 = vmatprep.subr.mxu0 %v18357_v63 }
0x1a65   :  { %11400 = vrot.lane.b32.xlu0 %v16703_v62, %s15254_s24 }
0x1a74   :  { %10303 = vadd.xlane.f32.xlu1 %v10302_v10 }
0x1a85   :  { %11322 = vrot.lane.b32.xlu1 %v16701_v56, %s15254_s24 }
0x1a89   :  { %11480 = vrot.lane.b32.xlu1 %v16709_v46, %s15253_s23 }
0x1a8d   :  { %11478 = vrot.lane.b32.xlu1 %v16709_v46, %s15254_s24 }
0x1a8f   :  { %v10286_v36 = vpop.xlane.xlu1 %10285 }
0x1a90   :  { %15038 = vrcp.f32 %v10286_v36 }
0x1a93   :  { %v10295_v15 = vpop.xlane.xlu0 %10294 }
0x1a94   :  { %15040 = vrcp.f32 %v10295_v15 }
0x1a97   :  { %v10292_v24 = vpop.xlane.xlu1 %10291 }
0x1a98   :  { %15042 = vrcp.f32 %v10292_v24 }
0x1a9a   :  { %v15039_v42 = vpop.eup %15038 }
0x1a9b   :  { %v10301_v9 = vpop.xlane.xlu0 %10300  ;;  %v17402_v44 = vmul.f32 %v15039_v42, %v17338_v52 }
0x1a9c   :  { %15044 = vrcp.f32 %v10301_v9 }
0x1a9d   :  { %14500 = vmatmul.mubr.msk.f32.vlgmr.msra.gmra.mrb[124].mxu1 %vm497_vm11, %v17402_v44 }
0x1a9e   :  { %v15041_v14 = vpop.eup %15040  ;;  %14508 = vmatpush3.msra.mxu1 %v17312_v60  ;;  %14509 = vmatprep.mubr.msk.f32.mxu1 %vm15243_vm10, %v18357_v63 }
0x1a9f   :  { %v17410_v21 = vmul.f32 %v15041_v14, %v17342_v49  ;;  %14517 = vmatprep.subr.mxu1 %v18357_v63 }
0x1aa1   :  { %14515 = vmatmul.mubr.msk.f32.vlgmr.msra.gmra.mrb[134].mxu0 %vm497_vm11, %v17410_v21 }
0x1aa2   :  { %14523 = vmatpush3.msra.mxu0 %v17319_v20  ;;  %14524 = vmatprep.mubr.msk.f32.mxu0 %vm15243_vm10, %v18357_v63  ;;  %v15043_v52 = vpop.eup %15042  ;;  %v11167_v20 = vpop.permute.xlu1 %11166 }
0x1aa3   :  { %14532 = vmatprep.subr.mxu0 %v18357_v63  ;;  %v17420_v60 = vmul.f32 %v15043_v52, %v17346_v25 }
0x1aa5   :  { %14510 = vmatmul.mubr.msk.f32.vlgmr.msra.gmra.mrb[126].mxu1 %vm497_vm11, %v17420_v60 }
0x1aa6   :  { %v15045_v48 = vpop.eup %15044  ;;  %14518 = vmatpush3.msra.mxu1 %v17330_v13  ;;  %14519 = vmatprep.mubr.msk.f32.mxu1 %vm15243_vm10, %v18357_v63  ;;  %v11089_v13 = vpop.permute.xlu0 %11088 }
0x1aa7   :  { %v17426_v49 = vmul.f32 %v15045_v48, %v17350_v33  ;;  %14527 = vmatprep.subr.mxu1 %v18357_v63 }
0x1aa9   :  { %14525 = vmatmul.mubr.msk.f32.vlgmr.msra.gmra.mrb[136].mxu0 %vm497_vm11, %v17426_v49 }
0x1aaa   :  { %14533 = vmatpush3.msra.mxu0 %v17323_v1  ;;  %14534 = vmatprep.mubr.msk.f32.mxu0 %vm15243_vm10, %v18357_v63 }
0x1aab   :  { %14542 = vmatprep.subr.mxu0 %v18357_v63 }
0x1acc   :  { %v10298_v25 = vpop.xlane.xlu1 %10297 }
0x1acd   :  { %15046 = vrcp.f32 %v10298_v25 }
0x1ad0   :  { %v10307_v33 = vpop.xlane.xlu0 %10306 }
0x1ad1   :  { %15048 = vrcp.f32 %v10307_v33 }
0x1ad7   :  { %v15047_v38 = vpop.eup %15046 }
0x1ad8   :  { %v17438_v4 = vmul.f32 %v15047_v38, %v17360_v40 }
0x1ada   :  { %14520 = vmatmul.mubr.msk.f32.vlgmr.msra.gmra.mrb[128].mxu1 %vm497_vm11, %v17438_v4 }
0x1adb   :  { %v15049_v3 = vpop.eup %15048  ;;  %14528 = vmatpush3.msra.mxu1 %v17332_v51  ;;  %14529 = vmatprep.mubr.msk.f32.mxu1 %vm15243_vm10, %v18357_v63  ;;  %v11325_v51 = vpop.permute.xlu1 %11324 }
0x1adc   :  { %v17444_v1 = vmul.f32 %v15049_v3, %v17362_v27  ;;  %14537 = vmatprep.subr.mxu1 %v18357_v63 }
0x1ade   :  { %18420 = vst [vmem:[#allocation79_spill] sm:$0xff] %v17444_v1  ;;  %14535 = vmatmul.mubr.msk.f32.vlgmr.msra.gmra.mrb[138].mxu0 %vm497_vm11, %v17444_v1 }
0x1adf   :  { %14543 = vmatpush3.xpose.msk.msra.mxu0 %vm497_vm11, %v17325_v18  ;;  %14544 = vmatprep.mubr.msk.f32.mxu0 %vm15243_vm10, %v18357_v63 }
0x1ae0   :  { %14552 = vmatprep.subr.mxu0 %v18357_v63 }
0x1ae2   :  { %14545 = vmatmul.mubr.msk.f32.vlgmr.msra.gmra.mrb[140].mxu0 %vm497_vm11, %v17327_v54 }
0x1ae3   :  { %14553 = vmatpush3.xpose.msk.msra.mxu0 %vm497_vm11, %v17372_v45  ;;  %14554 = vmatprep.mubr.msk.f32.mxu0 %vm15243_vm10, %v18357_v63  ;;  %v11247_v45 = vpop.permute.xlu0 %11246 }
0x1ae4   :  { %14562 = vmatprep.subr.mxu0 %v18357_v63 }
0x1ae6   :  { %14555 = vmatmul.mubr.msk.f32.vlgmr.msra.gmra.mrb[142].mxu0 %vm497_vm11, %v11167_v20 }
0x1ae7   :  { %14563 = vmatpush3.xpose.msk.msra.mxu0 %vm497_vm11, %v11325_v51  ;;  %14564 = vmatprep.mubr.msk.f32.mxu0 %vm15243_vm10, %v18357_v63  ;;  %v11245_v15 = vpop.permute.xlu0 %11244 }
0x1ae8   :  { %14572 = vmatprep.subr.mxu0 %v18357_v63 }
0x1b01   :  { %v10304_v18 = vpop.xlane.xlu1 %10303 }
0x1b02   :  { %15050 = vrcp.f32 %v10304_v18 }
0x1b05   :  { %v11323_v54 = vpop.permute.xlu1 %11322 }
0x1b06   :  { %14565 = vmatmul.mubr.msk.f32.vlgmr.msra.gmra.mrb[144].mxu0 %vm497_vm11, %v11323_v54 }
0x1b07   :  { %14574 = vmatprep.mubr.msk.f32.mxu0 %vm15243_vm10, %v18357_v63 }
0x1b09   :  { %v11481_v40 = vpop.permute.xlu1 %11480 }
0x1b0a   :  { %14573 = vmatpush3.xpose.msk.msra.mxu0 %vm497_vm11, %v11481_v40 }
0x1b0b   :  { %14582 = vmatprep.subr.mxu0 %v18357_v63 }
0x1b0c   :  { %v15051_v27 = vpop.eup %15050 }
0x1b0d   :  { %v11479_v10 = vpop.permute.xlu1 %11478  ;;  %v17474_v36 = vmul.f32 %v15051_v27, %v17391_v31 }
0x1b0e   :  { %14575 = vmatmul.mubr.msk.f32.vlgmr.msra.gmra.mrb[146].mxu0 %vm497_vm11, %v11479_v10 }
0x1b0f   :  { %18421 = vst [vmem:[#allocation80_spill] sm:$0xff] %v17474_v36  ;;  %14530 = vmatmul.mubr.msk.f32.vlgmr.msra.gmra.mrb[130].mxu1 %vm497_vm11, %v17474_v36  ;;  %14584 = vmatprep.mubr.msk.f32.mxu0 %vm15243_vm10, %v18357_v63 }
0x1b10   :  { %14538 = vmatpush3.xpose.msk.msra.mxu1 %vm497_vm11, %v17334_v7  ;;  %14539 = vmatprep.mubr.msk.f32.mxu1 %vm15243_vm10, %v18357_v63  ;;  %v11403_v7 = vpop.permute.xlu0 %11402 }
0x1b11   :  { %14547 = vmatprep.subr.mxu1 %v18357_v63 }
0x1b13   :  { %14540 = vmatmul.mubr.msk.f32.vlgmr.msra.gmra.mrb[132].mxu1 %vm497_vm11, %v17336_v34 }
0x1b14   :  { %14548 = vmatpush3.xpose.msk.msra.mxu1 %vm497_vm11, %v17368_v17  ;;  %14549 = vmatprep.mubr.msk.f32.mxu1 %vm15243_vm10, %v18357_v63  ;;  %v11401_v34 = vpop.permute.xlu0 %11400 }
0x1b15   :  { %14557 = vmatprep.subr.mxu1 %v18357_v63 }
0x1b17   :  { %14550 = vmatmul.mubr.msk.f32.vlgmr.msra.gmra.mrb[134].mxu1 %vm497_vm11, %v11089_v13 }
0x1b18   :  { %14558 = vmatpush3.xpose.msk.msra.mxu1 %vm497_vm11, %v11247_v45  ;;  %14559 = vmatprep.mubr.msk.f32.mxu1 %vm15243_vm10, %v18357_v63 }
0x1b19   :  { %14567 = vmatprep.subr.mxu1 %v18357_v63 }
0x1b1b   :  { %14560 = vmatmul.mubr.msk.f32.vlgmr.msra.gmra.mrb[136].mxu1 %vm497_vm11, %v11245_v15 }
0x1b1c   :  { %14568 = vmatpush3.xpose.msk.msra.mxu1 %vm497_vm11, %v11403_v7  ;;  %14569 = vmatprep.mubr.msk.f32.mxu1 %vm15243_vm10, %v18357_v63 }
0x1b1d   :  { %14577 = vmatprep.subr.mxu1 %v18357_v63 }
0x1b1f   :  { %14570 = vmatmul.mubr.msk.f32.vlgmr.msra.gmra.mrb[138].mxu1 %vm497_vm11, %v11401_v34 }
0x1b20   :  { %14579 = vmatprep.mubr.msk.f32.mxu1 %vm15243_vm10, %v18357_v63 }
0x1b33   :  { %v17506_v17 = vpop.f32.mrb[132].mxu0 }
0x1b34   :  { %v14506_v31 = vpop.f32.mrb[133].mxu0 }
0x1b70   :  { %v17508_v24 = vpop.f32.mrb[124].mxu1 }
0x1b71   :  { %v14501_v42 = vpop.f32.mrb[125].mxu1 }
0x1b74   :  { %v17510_v9 = vpop.f32.mrb[134].mxu0 }
0x1b75   :  { %v14516_v14 = vpop.f32.mrb[135].mxu0 }
0x1b78   :  { %v17512_v52 = vpop.f32.mrb[126].mxu1 }
0x1b79   :  { %v14511_v48 = vpop.f32.mrb[127].mxu1 }
0x1b7c   :  { %v17514_v20 = vpop.f32.mrb[136].mxu0 }
0x1b7d   :  { %v14526_v13 = vpop.f32.mrb[137].mxu0 }
0x1bad   :  { %v17516_v25 = vpop.f32.mrb[128].mxu1 }
0x1bae   :  { %v14521_v33 = vpop.f32.mrb[129].mxu1 }
0x1bb1   :  { %v17518_v38 = vpop.f32.mrb[138].mxu0 }
0x1bb2   :  { %v14536_v3 = vpop.f32.mrb[139].mxu0 }
0x1bb5   :  { %v11084_v51 = vpop.f32.mrb[140].mxu0 }
0x1bb6   :  { %v11557_v18 = vmul.f32 0.35355338, %v11084_v51  ;;  %v14546_v54 = vpop.f32.mrb[141].mxu0 }
0x1bb8   :  { %v11565_v40 = vadd.f32 %v11557_v18, %v18401_v19 }
0x1bb9   :  { %v11240_v27 = vpop.f32.mrb[142].mxu0 }
0x1bba   :  { %v14556_v45 = vpop.f32.mrb[143].mxu0  ;;  %v11575_v10 = vsel %vm497_vm11, %v11565_v40, -inf  ;;  %v11559_v51 = vmul.f32 0.35355338, %v11240_v27 }
0x1bbb   :  { %11576 = vmax.xlane.f32.xlu1 %v11575_v10 }
0x1bd9   :  { %v11396_v15 = vpop.f32.mrb[144].mxu0 }
0x1bda   :  { %v14566_v7 = vpop.f32.mrb[145].mxu0  ;;  %v11561_v1 = vmul.f32 0.35355338, %v11396_v15 }
0x1bdb   :  { %v11567_v7 = vadd.f32 %v11559_v51, %v15549_v30 }
0x1be1   :  { %v11552_v34 = vpop.f32.mrb[146].mxu0 }
0x1be2   :  { %v17522_v31 = vpop.f32.mrb[130].mxu1  ;;  %v14576_v42 = vpop.f32.mrb[147].mxu0 }
0x1be3   :  { %v14531_v14 = vpop.f32.mrb[131].mxu1 }
0x1be6   :  { %v11006_v48 = vpop.f32.mrb[132].mxu1 }
0x1be7   :  { %v11556_v13 = vmul.f32 0.35355338, %v11006_v48  ;;  %v14541_v33 = vpop.f32.mrb[133].mxu1 }
0x1be8   :  { %v11569_v33 = vadd.f32 %v11561_v1, %v15556_v39 }
0x1be9   :  { %v11564_v3 = vadd.f32 %v11556_v13, %v18402_v35  ;;  %v11581_v13 = vsel %vm497_vm11, %v11567_v7, -inf }
0x1bea   :  { %v11162_v54 = vpop.f32.mrb[134].mxu1  ;;  %v11587_v15 = vsel %vm497_vm11, %v11569_v33, -inf }
0x1beb   :  { %v11558_v19 = vmul.f32 0.35355338, %v11162_v54  ;;  %v14551_v18 = vpop.f32.mrb[135].mxu1  ;;  %v11572_v45 = vsel %vm497_vm11, %v11564_v3, -inf  ;;  %v11563_v54 = vmul.f32 0.35355338, %v11552_v34 }
0x1bec   :  { %11573 = vmax.xlane.f32.xlu0 %v11572_v45 }
0x1bed   :  { %v11566_v10 = vadd.f32 %v11558_v19, %v15535_v59 }
0x1bee   :  { %v11318_v36 = vpop.f32.mrb[136].mxu1 }
0x1bef   :  { %v11560_v42 = vmul.f32 0.35355338, %v11318_v36  ;;  %v14561_v14 = vpop.f32.mrb[137].mxu1  ;;  %v11578_v48 = vsel %vm497_vm11, %v11566_v10, -inf  ;;  %v11571_v36 = vadd.f32 %v11563_v54, %v15564_v6 }
0x1bf0   :  { %11579 = vmax.xlane.f32.xlu0 %v11578_v48 }
0x1bf1   :  { %v11568_v35 = vadd.f32 %v11560_v42, %v15546_v29  ;;  %v11593_v51 = vsel %vm497_vm11, %v11571_v36, -inf }
0x1bf2   :  { %v11474_v27 = vpop.f32.mrb[138].mxu1 }
0x1bf3   :  { %v11562_v18 = vmul.f32 0.35355338, %v11474_v27  ;;  %v14571_v45 = vpop.f32.mrb[139].mxu1  ;;  %v11584_v59 = vsel %vm497_vm11, %v11568_v35, -inf }
0x1bf4   :  { %11582 = vmax.xlane.f32.xlu0 %v11581_v13  ;;  %11585 = vmax.xlane.f32.xlu1 %v11584_v59 }
0x1bf5   :  { %v11570_v30 = vadd.f32 %v11562_v18, %v15580_v23 }
0x1bf7   :  { %v11590_v29 = vsel %vm497_vm11, %v11570_v30, -inf }
0x1bf8   :  { %11588 = vmax.xlane.f32.xlu0 %v11587_v15  ;;  %11591 = vmax.xlane.f32.xlu1 %v11590_v29 }
0x1bfc   :  { %11594 = vmax.xlane.f32.xlu0 %v11593_v51 }
0x1c09   :  { %11660 = vrot.lane.b32.xlu1 %v16683_v11, %s15255_s25 }
0x1c0d   :  { %11812 = vrot.lane.b32.xlu1 %v16689_v41, %s15255_s25 }
0x1c11   :  { %11888 = vrot.lane.b32.xlu1 %v16693_v12, %s15255_s25 }
0x1c12   :  { %11736 = vrot.lane.b32.xlu0 %v16681_v47, %s15255_s25 }
0x1c15   :  { %12040 = vrot.lane.b32.xlu1 %v16701_v56, %s15255_s25 }
0x1c16   :  { %11964 = vrot.lane.b32.xlu0 %v16695_v32, %s15255_s25 }
0x1c48   :  { %v11577_v39 = vpop.xlane.xlu1 %11576 }
0x1c49   :  { %v11597_v6 = vsub.f32 %v11565_v40, %v11577_v39 }
0x1c4b   :  { %v11606_v23 = vmul.f32 1.442695, %v11597_v6 }
0x1c4d   :  { %15052 = vpow2.f32 %v11606_v23 }
0x1c57   :  { %v17550_v11 = vpop.eup %15052 }
0x1c58   :  { %v11623_v41 = vsel %vm497_vm11, %v17550_v11, 0.0 }
0x1c59   :  { %11624 = vadd.xlane.f32.xlu0 %v11623_v41 }
0x1c79   :  { %v11574_v12 = vpop.xlane.xlu0 %11573 }
0x1c7a   :  { %v11596_v1 = vsub.f32 %v11564_v3, %v11574_v12 }
0x1c7c   :  { %v11604_v34 = vmul.f32 1.442695, %v11596_v1 }
0x1c7d   :  { %v11580_v47 = vpop.xlane.xlu0 %11579 }
0x1c7e   :  { %15054 = vpow2.f32 %v11604_v34  ;;  %v11598_v19 = vsub.f32 %v11566_v10, %v11580_v47 }
0x1c80   :  { %v11608_v56 = vmul.f32 1.442695, %v11598_v19 }
0x1c81   :  { %v11586_v42 = vpop.xlane.xlu1 %11585  ;;  %v11583_v14 = vpop.xlane.xlu0 %11582 }
0x1c82   :  { %15056 = vpow2.f32 %v11608_v56  ;;  %v11600_v32 = vsub.f32 %v11568_v35, %v11586_v42  ;;  %v11599_v40 = vsub.f32 %v11567_v7, %v11583_v14 }
0x1c84   :  { %v11612_v48 = vmul.f32 1.442695, %v11600_v32  ;;  %v11610_v27 = vmul.f32 1.442695, %v11599_v40 }
0x1c85   :  { %v11592_v13 = vpop.xlane.xlu1 %11591  ;;  %v11589_v54 = vpop.xlane.xlu0 %11588 }
0x1c86   :  { %15058 = vpow2.f32 %v11612_v48  ;;  %v11602_v18 = vsub.f32 %v11570_v30, %v11592_v13  ;;  %v11601_v45 = vsub.f32 %v11569_v33, %v11589_v54 }
0x1c87   :  { %15060 = vpow2.f32 %v11610_v27 }
0x1c88   :  { %v17554_v59 = vpop.eup %15054  ;;  %v11616_v3 = vmul.f32 1.442695, %v11602_v18  ;;  %v11614_v15 = vmul.f32 1.442695, %v11601_v45 }
0x1c89   :  { %v11661_v29 = vpop.permute.xlu1 %11660  ;;  %v11595_v10 = vpop.xlane.xlu0 %11594  ;;  %v11620_v51 = vsel %vm497_vm11, %v17554_v59, 0.0 }
0x1c8a   :  { %15062 = vpow2.f32 %v11616_v3  ;;  %v11603_v35 = vsub.f32 %v11571_v36, %v11595_v10  ;;  %14578 = vmatpush3.msra.mxu1 %v11661_v29  ;;  %11621 = vadd.xlane.f32.xlu1 %v11620_v51  ;;  %v6782_v3 = vld [vmem:[#allocation8 + $0xc8] sm:$0xff]  ;;  %v6784_v29 = vld [vmem:[#allocation8 + $0xd8] sm:$0xff]  ;;  %v6785_v51 = vld [vmem:[#allocation8 + $0xe0] sm:$0xff] }
0x1c8b   :  { %15064 = vpow2.f32 %v11614_v15  ;;  %14587 = vmatprep.subr.mxu1 %v18357_v63  ;;  %v6783_v15 = vld [vmem:[#allocation8 + $0xd0] sm:$0xff] }
0x1c8c   :  { %v17559_v7 = vpop.eup %15056  ;;  %v11618_v33 = vmul.f32 1.442695, %v11603_v35  ;;  %v14737_v10 = vpack.c.bf16 %v6783_v15, %v6782_v3  ;;  %v14741_v35 = vpack.c.bf16 %v6785_v51, %v6784_v29 }
0x1c8d   :  { %v11737_v30 = vpop.permute.xlu0 %11736  ;;  %v11626_v39 = vsel %vm497_vm11, %v17559_v7, 0.0 }
0x1c8e   :  { %15066 = vpow2.f32 %v11618_v33  ;;  %11627 = vadd.xlane.f32.xlu1 %v11626_v39  ;;  %14583 = vmatpush3.msra.mxu0 %v11737_v30 }
0x1c8f   :  { %14592 = vmatprep.subr.mxu0 %v18357_v63 }
0x1c90   :  { %v17564_v6 = vpop.eup %15058 }
0x1c91   :  { %v17566_v36 = vpop.eup %15060  ;;  %v11632_v23 = vsel %vm497_vm11, %v17564_v6, 0.0 }
0x1c92   :  { %11633 = vadd.xlane.f32.xlu1 %v11632_v23  ;;  %v11629_v41 = vsel %vm497_vm11, %v17566_v36, 0.0 }
0x1c93   :  { %11630 = vadd.xlane.f32.xlu0 %v11629_v41 }
0x1c94   :  { %v17572_v12 = vpop.eup %15062 }
0x1c95   :  { %v17574_v1 = vpop.eup %15064  ;;  %v11638_v34 = vsel %vm497_vm11, %v17572_v12, 0.0 }
0x1c96   :  { %11639 = vadd.xlane.f32.xlu1 %v11638_v34  ;;  %v11635_v47 = vsel %vm497_vm11, %v17574_v1, 0.0 }
0x1c97   :  { %11636 = vadd.xlane.f32.xlu0 %v11635_v47 }
0x1c98   :  { %v17580_v19 = vpop.eup %15066 }
0x1c99   :  { %v11641_v56 = vsel %vm497_vm11, %v17580_v19, 0.0 }
0x1c9b   :  { %11642 = vadd.xlane.f32.xlu0 %v11641_v56 }
0x1ca7   :  { %12192 = vrot.lane.b32.xlu1 %v16709_v46, %s15255_s25 }
0x1cab   :  { %12383 = vrot.lane.b32.xlu1 %v17272_v58, %s15238_s29  ;;  %v11813_v58 = vpop.permute.xlu1 %11812 }
0x1caf   :  { %12415 = vrot.lane.b32.xlu1 %v17506_v17, %s15256_s26 }
0x1cb1   :  { %12116 = vrot.lane.b32.xlu0 %v16703_v62, %s15255_s25  ;;  %v11965_v62 = vpop.permute.xlu0 %11964 }
0x1cb3   :  { %12387 = vrot.lane.b32.xlu1 %v17280_v57, %s15238_s29 }
0x1cb5   :  { %12381 = vrot.lane.b32.xlu0 %v17274_v37, %s15238_s29 }
0x1cb7   :  { %12419 = vrot.lane.b32.xlu1 %v17510_v9, %s15256_s26 }
0x1cb9   :  { %12413 = vrot.lane.b32.xlu0 %v17508_v24, %s15256_s26 }
0x1cbb   :  { %12391 = vrot.lane.b32.xlu1 %v17282_v61, %s15238_s29 }
0x1cbd   :  { %12385 = vrot.lane.b32.xlu0 %v17276_v55, %s15238_s29 }
0x1cbf   :  { %12423 = vrot.lane.b32.xlu1 %v17514_v20, %s15256_s26 }
0x1cc1   :  { %12417 = vrot.lane.b32.xlu0 %v17512_v52, %s15256_s26 }
0x1cc3   :  { %12395 = vrot.lane.b32.xlu1 %v17284_v26, %s15238_s29 }
0x1cc5   :  { %12389 = vrot.lane.b32.xlu0 %v17278_v2, %s15238_s29  ;;  %v11889_v2 = vpop.permute.xlu1 %11888 }
0x1cc7   :  { %12427 = vrot.lane.b32.xlu1 %v17518_v38, %s15256_s26 }
0x1cc9   :  { %12421 = vrot.lane.b32.xlu0 %v17516_v25, %s15256_s26  ;;  %v12041_v57 = vpop.permute.xlu1 %12040 }
0x1ccd   :  { %12393 = vrot.lane.b32.xlu0 %v17288_v0, %s15238_s29 }
0x1cd1   :  { %12425 = vrot.lane.b32.xlu0 %v17522_v31, %s15256_s26 }
0x1ce6   :  { %v11625_v46 = vpop.xlane.xlu0 %11624 }
0x1ce7   :  { %15068 = vrcp.f32 %v11625_v46 }
0x1cf1   :  { %v15069_v37 = vpop.eup %15068 }
0x1cf2   :  { %v17621_v55 = vmul.f32 %v15069_v37, %v17550_v11 }
0x1cf4   :  { %14585 = vmatmul.mubr.msk.f32.vlgmr.msra.gmra.mrb[148].mxu0 %vm497_vm11, %v17621_v55 }
0x1cf5   :  { %14593 = vmatpush3.msra.mxu0 %v11889_v2  ;;  %14594 = vmatprep.mubr.msk.f32.mxu0 %vm15243_vm10, %v18357_v63 }
0x1cf6   :  { %14602 = vmatprep.subr.mxu0 %v18357_v63 }
0x1d17   :  { %v11622_v61 = vpop.xlane.xlu1 %11621 }
0x1d18   :  { %15070 = vrcp.f32 %v11622_v61 }
0x1d1b   :  { %v11628_v26 = vpop.xlane.xlu1 %11627 }
0x1d1c   :  { %15072 = vrcp.f32 %v11628_v26 }
0x1d1f   :  { %v11634_v0 = vpop.xlane.xlu1 %11633 }
0x1d20   :  { %15074 = vrcp.f32 %v11634_v0  ;;  %v11631_v17 = vpop.xlane.xlu0 %11630 }
0x1d21   :  { %15076 = vrcp.f32 %v11631_v17 }
0x1d22   :  { %v15071_v24 = vpop.eup %15070 }
0x1d23   :  { %v11640_v9 = vpop.xlane.xlu1 %11639  ;;  %v17629_v52 = vmul.f32 %v15071_v24, %v17554_v59 }
0x1d24   :  { %15078 = vrcp.f32 %v11640_v9  ;;  %v11637_v20 = vpop.xlane.xlu0 %11636 }
0x1d25   :  { %15080 = vrcp.f32 %v11637_v20  ;;  %14580 = vmatmul.mubr.msk.f32.vlgmr.msra.gmra.mrb[140].mxu1 %vm497_vm11, %v17629_v52 }
0x1d26   :  { %v15073_v25 = vpop.eup %15072  ;;  %14588 = vmatpush3.msra.mxu1 %v11813_v58  ;;  %14589 = vmatprep.mubr.msk.f32.mxu1 %vm15243_vm10, %v18357_v63 }
0x1d27   :  { %14597 = vmatprep.subr.mxu1 %v18357_v63  ;;  %v17637_v38 = vmul.f32 %v15073_v25, %v17559_v7  ;;  %v12193_v18 = vpop.permute.xlu1 %12192 }
0x1d28   :  { %v11643_v31 = vpop.xlane.xlu0 %11642 }
0x1d29   :  { %15082 = vrcp.f32 %v11643_v31  ;;  %14590 = vmatmul.mubr.msk.f32.vlgmr.msra.gmra.mrb[142].mxu1 %vm497_vm11, %v17637_v38 }
0x1d2a   :  { %v15075_v11 = vpop.eup %15074  ;;  %14598 = vmatpush3.msra.mxu1 %v11965_v62  ;;  %14599 = vmatprep.mubr.msk.f32.mxu1 %vm15243_vm10, %v18357_v63 }
0x1d2b   :  { %v15077_v42 = vpop.eup %15076  ;;  %14607 = vmatprep.subr.mxu1 %v18357_v63  ;;  %v17645_v14 = vmul.f32 %v15075_v11, %v17564_v6  ;;  %v12384_v46 = vpop.permute.xlu1 %12383 }
0x1d2c   :  { %v12117_v32 = vpop.permute.xlu0 %12116  ;;  %v17648_v40 = vmul.f32 %v15077_v42, %v17566_v36 }
0x1d2d   :  { %14600 = vmatmul.mubr.msk.f32.vlgmr.msra.gmra.mrb[144].mxu1 %vm497_vm11, %v17645_v14 }
0x1d2e   :  { %v15079_v48 = vpop.eup %15078  ;;  %14595 = vmatmul.mubr.msk.f32.vlgmr.msra.gmra.mrb[150].mxu0 %vm497_vm11, %v17648_v40  ;;  %14608 = vmatpush3.msra.mxu1 %v12117_v32 }
0x1d2f   :  { %v15081_v27 = vpop.eup %15080  ;;  %14603 = vmatpush3.msra.mxu0 %v12041_v57  ;;  %14604 = vmatprep.mubr.msk.f32.mxu0 %vm15243_vm10, %v18357_v63  ;;  %v17657_v13 = vmul.f32 %v15079_v48, %v17572_v12  ;;  %v12416_v37 = vpop.permute.xlu1 %12415 }
0x1d30   :  { %14609 = vmatprep.mubr.msk.f32.mxu1 %vm15243_vm10, %v18357_v63  ;;  %14612 = vmatprep.subr.mxu0 %v18357_v63  ;;  %v17663_v54 = vmul.f32 %v15081_v27, %v17574_v1  ;;  %v12382_v58 = vpop.permute.xlu0 %12381  ;;  %v12470_v27 = vsel %vm497_vm11, %v16995_v5, %v12384_v46  ;;  %v18423_v46 = vld [vmem:[#allocation17_spill] sm:$0xff] }
0x1d31   :  { %14610 = vmatmul.mubr.msk.f32.vlgmr.msra.gmra.mrb[146].mxu1 %vm497_vm11, %v17657_v13  ;;  %14738 = vmatprep.subr.bf16.mxu1 %v14737_v10  ;;  %v12469_v32 = vsel %vm497_vm11, %v16999_v43, %v12382_v58  ;;  %v12478_v3 = vsel %vm157_vm0, %v12470_v27, %v12416_v37 }
0x1d32   :  { %14605 = vmatmul.mubr.msk.f32.vlgmr.msra.gmra.mrb[152].mxu0 %vm497_vm11, %v17663_v54  ;;  %14740 = vmatpush3.bf16.msra.mxu1 %v14737_v10 }
0x1d33   :  { %v15083_v45 = vpop.eup %15082  ;;  %14613 = vmatpush3.msra.mxu0 %v12193_v18  ;;  %14614 = vmatprep.mubr.msk.f32.mxu0 %vm15243_vm10, %v18357_v63  ;;  %v12388_v57 = vpop.permute.xlu1 %12387 }
0x1d34   :  { %v17672_v59 = vmul.f32 %v15083_v45, %v17580_v19  ;;  %14742 = vmatprep.subr.bf16.mxu1 %v14741_v35  ;;  %v12414_v2 = vpop.permute.xlu0 %12413 }
0x1d35   :  { %v12477_v18 = vsel %vm157_vm0, %v12469_v32, %v12414_v2  ;;  %v18426_v32 = vld [vmem:[#allocation26_spill] sm:$0xff] }
0x1d36   :  { %14615 = vmatmul.mubr.msk.f32.vlgmr.msra.gmra.mrb[154].mxu0 %vm497_vm11, %v17672_v59  ;;  %14744 = vmatpush3.bf16.msra.mxu1 %v14741_v35 }
0x1d37   :  { %v12420_v26 = vpop.permute.xlu1 %12419 }
0x1d38   :  { %v12386_v61 = vpop.permute.xlu0 %12385 }
0x1d39   :  { %v12471_v10 = vsel %vm497_vm11, %v17003_v53, %v12386_v61 }
0x1d3b   :  { %v12392_v17 = vpop.permute.xlu1 %12391 }
0x1d3c   :  { %v12418_v0 = vpop.permute.xlu0 %12417 }
0x1d3d   :  { %v12479_v43 = vsel %vm157_vm0, %v12471_v10, %v12418_v0 }
0x1d3f   :  { %v12424_v9 = vpop.permute.xlu1 %12423 }
0x1d40   :  { %v12390_v24 = vpop.permute.xlu0 %12389 }
0x1d41   :  { %v12473_v35 = vsel %vm497_vm11, %v17012_v28, %v12390_v24  ;;  %v12474_v28 = vsel %vm497_vm11, %v17001_v8, %v12392_v17  ;;  %v18425_v17 = vld [vmem:[#allocation24_spill] sm:$0xff] }
0x1d43   :  { %v12396_v25 = vpop.permute.xlu1 %12395 }
0x1d44   :  { %v12422_v20 = vpop.permute.xlu0 %12421 }
0x1d47   :  { %v12428_v11 = vpop.permute.xlu1 %12427 }
0x1d48   :  { %v12394_v31 = vpop.permute.xlu0 %12393 }
0x1d4c   :  { %v12426_v42 = vpop.permute.xlu0 %12425 }
0x1dc7   :  { %v11808_v7 = vpop.f32.mrb[148].mxu0 }
0x1dc8   :  { %12447 = vrot.lane.b32.xlu1 %v11808_v7, %s15257_s27  ;;  %v14586_v63 = vpop.f32.mrb[149].mxu0  ;;  %v12472_v7 = vsel %vm497_vm11, %v16997_v22, %v12388_v57 }
0x1dc9   :  { %v12481_v63 = vsel %vm157_vm0, %v12473_v35, %v12422_v20  ;;  %v12480_v53 = vsel %vm157_vm0, %v12472_v7, %v12420_v26  ;;  %v18424_v26 = vld [vmem:[#allocation23_spill] sm:$0xff] }
0x1df8   :  { %v11732_v33 = vpop.f32.mrb[140].mxu1 }
0x1df9   :  { %v14581_v30 = vpop.f32.mrb[141].mxu1  ;;  %12445 = vrot.lane.b32.xlu0 %v11732_v33, %s15257_s27 }
0x1dfc   :  { %v11884_v39 = vpop.f32.mrb[142].mxu1 }
0x1dfd   :  { %v14591_v6 = vpop.f32.mrb[143].mxu1  ;;  %12449 = vrot.lane.b32.xlu0 %v11884_v39, %s15257_s27 }
0x1e00   :  { %v12036_v36 = vpop.f32.mrb[144].mxu1 }
0x1e01   :  { %v11960_v23 = vpop.f32.mrb[150].mxu0  ;;  %12453 = vrot.lane.b32.xlu0 %v12036_v36, %s15257_s27  ;;  %v14601_v41 = vpop.f32.mrb[145].mxu1  ;;  %v12475_v36 = vsel %vm497_vm11, %v17016_v50, %v12394_v31  ;;  %v18422_v50 = vld [vmem:[#allocation70_spill] sm:$0xff] }
0x1e02   :  { %12451 = vrot.lane.b32.xlu1 %v11960_v23, %s15257_s27  ;;  %v14596_v12 = vpop.f32.mrb[151].mxu0  ;;  %v12483_v22 = vsel %vm157_vm0, %v12475_v36, %v12426_v42  ;;  %v12482_v41 = vsel %vm157_vm0, %v12474_v28, %v12424_v9  ;;  %v18431_v28 = vld [vmem:[#allocation63_spill] sm:$0xff] }
0x1e04   :  { %v12188_v1 = vpop.f32.mrb[146].mxu1 }
0x1e05   :  { %v12112_v34 = vpop.f32.mrb[152].mxu0  ;;  %12457 = vrot.lane.b32.xlu0 %v12188_v1, %s15257_s27  ;;  %v14611_v47 = vpop.f32.mrb[147].mxu1 }
0x1e06   :  { %12455 = vrot.lane.b32.xlu1 %v12112_v34, %s15257_s27  ;;  %v14606_v19 = vpop.f32.mrb[153].mxu0  ;;  %v12476_v47 = vsel %vm497_vm11, %v18422_v50, %v12396_v25 }
0x1e07   :  { %v12484_v8 = vsel %vm157_vm0, %v12476_v47, %v12428_v11 }
0x1e09   :  { %v12264_v56 = vpop.f32.mrb[154].mxu0 }
0x1e0a   :  { %12459 = vrot.lane.b32.xlu1 %v12264_v56, %s15257_s27  ;;  %v14616_v62 = vpop.f32.mrb[155].mxu0 }
0x1e0b   :  { %v17724_v62 = vld [vmem:[#allocation8 + $0x148] sm:$0xff] }
0x1e0c   :  { %v12496_v58 = vrot.slane %v17724_v62, %v18423_v46 }
0x1e3a   :  { %v12448_v48 = vpop.permute.xlu1 %12447 }
0x1e3b   :  { %v12486_v29 = vsel %vm5959_vm13, %v12478_v3, %v12448_v48  ;;  %v18427_v3 = vld [vmem:[#allocation25_spill] sm:$0xff] }
0x1e6b   :  { %v12446_v45 = vpop.permute.xlu0 %12445 }
0x1e6c   :  { %v12485_v15 = vsel %vm5959_vm13, %v12477_v18, %v12446_v45 }
0x1e6d   :  { %14625 = vmatprep.mubr.msk.f32.mxu1 %vm364_vm9, %v12485_v15 }
0x1e6e   :  { %14626 = vmatmul.mubr.msk.f32.vlgmr.msra.gmra.mrb[148].mxu1 %vm364_vm9, %v12486_v29 }
0x1e6f   :  { %v12450_v51 = vpop.permute.xlu0 %12449 }
0x1e70   :  { %v12487_v5 = vsel %vm5959_vm13, %v12479_v43, %v12450_v51  ;;  %v18428_v43 = vld [vmem:[#allocation62_spill] sm:$0xff] }
0x1e71   :  { %14628 = vmatprep.mubr.msk.f32.mxu1 %vm364_vm9, %v12487_v5 }
0x1e73   :  { %v12454_v33 = vpop.permute.xlu0 %12453 }
0x1e74   :  { %v12452_v30 = vpop.permute.xlu1 %12451  ;;  %v12489_v39 = vsel %vm5959_vm13, %v12481_v63, %v12454_v33  ;;  %v18429_v63 = vld [vmem:[#allocation61_spill] sm:$0xff] }
0x1e75   :  { %v12488_v6 = vsel %vm5959_vm13, %v12480_v53, %v12452_v30 }
0x1e76   :  { %14629 = vmatmul.mubr.msk.f32.gmra.mrb[150].mxu1 %vm364_vm9, %v12488_v6  ;;  %v18430_v6 = vld [vmem:[#allocation64_spill] sm:$0xff] }
0x1e77   :  { %14631 = vmatprep.mubr.msk.f32.mxu1 %vm364_vm9, %v12489_v39  ;;  %v12458_v23 = vpop.permute.xlu0 %12457 }
0x1e78   :  { %v12456_v12 = vpop.permute.xlu1 %12455  ;;  %v12491_v1 = vsel %vm5959_vm13, %v12483_v22, %v12458_v23 }
0x1e79   :  { %v12490_v34 = vsel %vm5959_vm13, %v12482_v41, %v12456_v12 }
0x1e7a   :  { %14632 = vmatmul.mubr.msk.f32.gmra.mrb[152].mxu1 %vm364_vm9, %v12490_v34 }
0x1e7b   :  { %14634 = vmatprep.mubr.msk.f32.mxu1 %vm364_vm9, %v12491_v1 }
0x1e7c   :  { %v12460_v19 = vpop.permute.xlu1 %12459 }
0x1e7d   :  { %v12492_v56 = vsel %vm5959_vm13, %v12484_v8, %v12460_v19 }
0x1e7e   :  { %14635 = vmatmul.mubr.msk.f32.gmra.mrb[154].mxu1 %vm364_vm9, %v12492_v56 }
0x1f41   :  { %v14627_v37 = vpop.f32.mrb[148].mxu1 }
0x1f42   :  { %v12593_v2 = vadd.f32 %v14627_v37, %v12496_v58  ;;  %v12587_v57 = vpop.f32.mrb[149].mxu1 }
0x1f43   :  { %v12588_v61 = vadd.f32 %v12587_v57, %v12496_v58 }
0x1f44   :  { %v12627_v0 = vadd.f32 %v12593_v2, %v18424_v26 }
0x1f45   :  { %v12626_v24 = vadd.f32 %v12588_v61, %v18425_v17 }
0x1f46   :  { %v12637_v9 = vsel %vm364_vm9, %v12627_v0, 0.0 }
0x1f47   :  { %12638 = vadd.xlane.f32.xlu1 %v12637_v9  ;;  %v12634_v20 = vsel %vm364_vm9, %v12626_v24, 0.0 }
0x1f48   :  { %12635 = vadd.xlane.f32.xlu0 %v12634_v20 }
0x1f49   :  { %v14630_v25 = vpop.f32.mrb[150].mxu1 }
0x1f4a   :  { %v12603_v31 = vadd.f32 %v14630_v25, %v12496_v58  ;;  %v12597_v11 = vpop.f32.mrb[151].mxu1 }
0x1f4b   :  { %v12598_v42 = vadd.f32 %v12597_v11, %v12496_v58 }
0x1f4c   :  { %v12629_v15 = vadd.f32 %v12603_v31, %v18427_v3 }
0x1f4d   :  { %v12628_v48 = vadd.f32 %v12598_v42, %v18426_v32  ;;  %v14633_v27 = vpop.f32.mrb[152].mxu1 }
0x1f4e   :  { %v12613_v18 = vadd.f32 %v14633_v27, %v12496_v58  ;;  %v12607_v45 = vpop.f32.mrb[153].mxu1  ;;  %v12643_v30 = vsel %vm364_vm9, %v12629_v15, 0.0 }
0x1f4f   :  { %v12608_v29 = vadd.f32 %v12607_v45, %v12496_v58  ;;  %v12640_v10 = vsel %vm364_vm9, %v12628_v48, 0.0 }
0x1f50   :  { %12641 = vadd.xlane.f32.xlu0 %v12640_v10  ;;  %v12631_v33 = vadd.f32 %v12613_v18, %v18429_v63 }
0x1f51   :  { %v12630_v51 = vadd.f32 %v12608_v29, %v18428_v43  ;;  %v14636_v5 = vpop.f32.mrb[154].mxu1 }
0x1f52   :  { %v12623_v35 = vadd.f32 %v14636_v5, %v12496_v58  ;;  %v12617_v7 = vpop.f32.mrb[155].mxu1  ;;  %v12649_v23 = vsel %vm364_vm9, %v12631_v33, 0.0 }
0x1f53   :  { %v12618_v53 = vadd.f32 %v12617_v7, %v12496_v58  ;;  %v12646_v39 = vsel %vm364_vm9, %v12630_v51, 0.0 }
0x1f54   :  { %12644 = vadd.xlane.f32.xlu0 %v12643_v30  ;;  %12647 = vadd.xlane.f32.xlu1 %v12646_v39  ;;  %v12633_v22 = vadd.f32 %v12623_v35, %v18431_v28  ;;  %v6786_v30 = vld [vmem:[#allocation8 + $0xe8] sm:$0xff]  ;;  %v6787_v39 = vld [vmem:[#allocation8 + $0xf0] sm:$0xff]  ;;  %v6789_v28 = vld [vmem:[#allocation8 + $0x100] sm:$0xff] }
0x1f55   :  { %v12632_v36 = vadd.f32 %v12618_v53, %v18430_v6  ;;  %v14745_v6 = vpack.c.bf16 %v6787_v39, %v6786_v30 }
0x1f56   :  { %v12655_v12 = vsel %vm364_vm9, %v12633_v22, 0.0 }
0x1f57   :  { %v12652_v41 = vsel %vm364_vm9, %v12632_v36, 0.0  ;;  %14746 = vmatprep.subr.bf16.mxu0 %v14745_v6 }
0x1f58   :  { %12650 = vadd.xlane.f32.xlu0 %v12649_v23  ;;  %12653 = vadd.xlane.f32.xlu1 %v12652_v41  ;;  %v18433_v41 = vld [vmem:[#allocation39_spill] sm:$0xff] }
0x1f59   :  { %14748 = vmatpush3.bf16.msra.mxu0 %v14745_v6 }
0x1f5c   :  { %12656 = vadd.xlane.f32.xlu0 %v12655_v12  ;;  %v18434_v12 = vld [vmem:[#allocation41_spill] sm:$0xff] }
0x1fd4   :  { %v12639_v1 = vpop.xlane.xlu1 %12638 }
0x1fd5   :  { %v12659_v34 = vmul.f32 0.03125, %v12639_v1  ;;  %v12636_v50 = vpop.xlane.xlu0 %12635  ;;  %v18435_v1 = vld [vmem:[#allocation37_spill] sm:$0xff] }
0x1fd6   :  { %v12658_v47 = vmul.f32 0.03125, %v12636_v50  ;;  %v18437_v50 = vld [vmem:[#allocation40_spill] sm:$0xff] }
0x1fd7   :  { %v17744_v8 = vsub.f32 %v12627_v0, %v12659_v34  ;;  %v18436_v34 = vld [vmem:[#allocation44_spill] sm:$0xff] }
0x1fd8   :  { %v17746_v19 = vsub.f32 %v12626_v24, %v12658_v47  ;;  %v18438_v47 = vld [vmem:[#allocation43_spill] sm:$0xff] }
0x1fd9   :  { %v12675_v56 = vmul.f32 %v17744_v8, %v17744_v8 }
0x1fda   :  { %v12674_v46 = vmul.f32 %v17746_v19, %v17746_v19 }
0x1fdb   :  { %v12685_v58 = vsel %vm364_vm9, %v12675_v56, 0.0  ;;  %v18439_v56 = vld [vmem:[#allocation42_spill] sm:$0xff] }
0x1fdc   :  { %12686 = vadd.xlane.f32.xlu0 %v12685_v58  ;;  %v12682_v37 = vsel %vm364_vm9, %v12674_v46, 0.0  ;;  %v18440_v46 = vld [vmem:[#allocation71_spill] sm:$0xff]  ;;  %v18441_v58 = vld [vmem:[#allocation72_spill] sm:$0xff] }
0x1fdd   :  { %v12642_v2 = vpop.xlane.xlu0 %12641  ;;  %12683 = vadd.xlane.f32.xlu1 %v12682_v37  ;;  %v18442_v37 = vld [vmem:[#allocation75_spill] sm:$0xff] }
0x1fde   :  { %v12660_v57 = vmul.f32 0.03125, %v12642_v2  ;;  %v18443_v2 = vld [vmem:[#allocation73_spill] sm:$0xff] }
0x1fe0   :  { %v17754_v61 = vsub.f32 %v12628_v48, %v12660_v57  ;;  %v18444_v57 = vld [vmem:[#allocation76_spill] sm:$0xff] }
0x1fe1   :  { %v12648_v26 = vpop.xlane.xlu1 %12647  ;;  %v12645_v0 = vpop.xlane.xlu0 %12644 }
0x1fe2   :  { %v12662_v17 = vmul.f32 0.03125, %v12648_v26  ;;  %v12661_v24 = vmul.f32 0.03125, %v12645_v0  ;;  %v12676_v9 = vmul.f32 %v17754_v61, %v17754_v61  ;;  %v18445_v26 = vld [vmem:[#allocation74_spill] sm:$0xff]  ;;  %v18446_v0 = vld [vmem:[#allocation77_spill] sm:$0xff] }
0x1fe4   :  { %v17758_v20 = vsub.f32 %v12630_v51, %v12662_v17  ;;  %v17760_v25 = vsub.f32 %v12629_v15, %v12661_v24  ;;  %v12688_v31 = vsel %vm364_vm9, %v12676_v9, 0.0  ;;  %v18447_v17 = vld [vmem:[#allocation78_spill] sm:$0xff]  ;;  %v18448_v24 = vld [vmem:[#allocation45_spill] sm:$0xff] }
0x1fe5   :  { %v12654_v11 = vpop.xlane.xlu1 %12653  ;;  %12689 = vadd.xlane.f32.xlu1 %v12688_v31  ;;  %v12651_v42 = vpop.xlane.xlu0 %12650  ;;  %v18449_v9 = vld [vmem:[#allocation46_spill] sm:$0xff]  ;;  %v18450_v31 = vld [vmem:[#allocation49_spill] sm:$0xff] }
0x1fe6   :  { %v12664_v32 = vmul.f32 0.03125, %v12654_v11  ;;  %v12663_v27 = vmul.f32 0.03125, %v12651_v42  ;;  %v12678_v48 = vmul.f32 %v17758_v20, %v17758_v20  ;;  %v12677_v18 = vmul.f32 %v17760_v25, %v17760_v25  ;;  %v18451_v11 = vld [vmem:[#allocation47_spill] sm:$0xff]  ;;  %v18452_v42 = vld [vmem:[#allocation50_spill] sm:$0xff] }
0x1fe8   :  { %v17767_v45 = vsub.f32 %v12632_v36, %v12664_v32  ;;  %v17769_v3 = vsub.f32 %v12631_v33, %v12663_v27  ;;  %v12694_v15 = vsel %vm364_vm9, %v12678_v48, 0.0  ;;  %v12691_v29 = vsel %vm364_vm9, %v12677_v18, 0.0  ;;  %v6788_v36 = vld [vmem:[#allocation8 + $0xf8] sm:$0xff]  ;;  %v18454_v27 = vld [vmem:[#allocation51_spill] sm:$0xff] }
0x1fe9   :  { %12695 = vadd.xlane.f32.xlu1 %v12694_v15  ;;  %12692 = vadd.xlane.f32.xlu0 %v12691_v29  ;;  %v12657_v10 = vpop.xlane.xlu0 %12656  ;;  %v14749_v23 = vpack.c.bf16 %v6789_v28, %v6788_v36  ;;  %v18453_v32 = vld [vmem:[#allocation48_spill] sm:$0xff]  ;;  %v18456_v18 = vld [vmem:[#allocation79_spill] sm:$0xff]  ;;  %v6790_v15 = vld [vmem:[#allocation8 + $0x108] sm:$0xff] }
0x1fea   :  { %v12665_v43 = vmul.f32 0.03125, %v12657_v10  ;;  %v12680_v51 = vmul.f32 %v17767_v45, %v17767_v45  ;;  %v12679_v5 = vmul.f32 %v17769_v3, %v17769_v3  ;;  %v18455_v48 = vld [vmem:[#allocation52_spill] sm:$0xff] }
0x1feb   :  { %14750 = vmatprep.subr.bf16.mxu0 %v14749_v23  ;;  %v6792_v29 = vld [vmem:[#allocation8 + $0x118] sm:$0xff] }
0x1fec   :  { %v17777_v35 = vsub.f32 %v12633_v22, %v12665_v43  ;;  %v12700_v7 = vsel %vm364_vm9, %v12680_v51, 0.0  ;;  %v12697_v63 = vsel %vm364_vm9, %v12679_v5, 0.0  ;;  %v18432_v22 = vld [vmem:[#allocation38_spill] sm:$0xff]  ;;  %14752 = vmatpush3.bf16.msra.mxu0 %v14749_v23 }
0x1fed   :  { %12701 = vadd.xlane.f32.xlu1 %v12700_v7  ;;  %12698 = vadd.xlane.f32.xlu0 %v12697_v63  ;;  %v6794_v51 = vld [vmem:[#allocation8 + $0x128] sm:$0xff] }
0x1fee   :  { %v12681_v33 = vmul.f32 %v17777_v35, %v17777_v35 }
0x1ff0   :  { %v12703_v53 = vsel %vm364_vm9, %v12681_v33, 0.0 }
0x1ff1   :  { %12704 = vadd.xlane.f32.xlu0 %v12703_v53 }
0x1ffe   :  { %5871 = vrot.lane.b32.xlu1 %v18432_v22, %s15238_s29 }
0x2002   :  { %5875 = vrot.lane.b32.xlu1 %v18433_v41, %s15238_s29  ;;  %v18460_v41 = vld [vmem:[#allocation16_spill] sm:$0xff] }
0x2006   :  { %5877 = vrot.lane.b32.xlu1 %v18434_v12, %s15238_s29  ;;  %v17854_v12 = vrot.slane %v17724_v62, %v18460_v41 }
0x2007   :  { %5873 = vrot.lane.b32.xlu0 %v18435_v1, %s15238_s29 }
0x200a   :  { %5883 = vrot.lane.b32.xlu1 %v18436_v34, %s15238_s29 }
0x200b   :  { %5879 = vrot.lane.b32.xlu0 %v18437_v50, %s15238_s29 }
0x200e   :  { %5885 = vrot.lane.b32.xlu1 %v18438_v47, %s15238_s29 }
0x200f   :  { %5881 = vrot.lane.b32.xlu0 %v18439_v56, %s15238_s29  ;;  %v18461_v56 = vld [vmem:[#allocation18_spill] sm:$0xff] }
0x2012   :  { %12270 = vrot.lane.b32.xlu1 %v18440_v46, %s15238_s29  ;;  %v17858_v46 = vrot.slane %v17724_v62, %v18461_v56 }
0x2013   :  { %12268 = vrot.lane.b32.xlu0 %v18441_v58, %s15238_s29 }
0x2016   :  { %12274 = vrot.lane.b32.xlu1 %v18442_v37, %s15238_s29 }
0x2017   :  { %12272 = vrot.lane.b32.xlu0 %v18443_v2, %s15238_s29 }
0x201a   :  { %12278 = vrot.lane.b32.xlu1 %v18444_v57, %s15238_s29 }
0x201b   :  { %12276 = vrot.lane.b32.xlu0 %v18445_v26, %s15238_s29 }
0x201e   :  { %12282 = vrot.lane.b32.xlu1 %v18446_v0, %s15238_s29 }
0x201f   :  { %12280 = vrot.lane.b32.xlu0 %v18447_v17, %s15238_s29 }
0x2022   :  { %5897 = vrot.lane.b32.xlu1 %v18448_v24, %s15256_s26 }
0x2023   :  { %5895 = vrot.lane.b32.xlu0 %v18449_v9, %s15256_s26 }
0x2026   :  { %5901 = vrot.lane.b32.xlu1 %v18450_v31, %s15256_s26 }
0x2027   :  { %5899 = vrot.lane.b32.xlu0 %v18451_v11, %s15256_s26 }
0x202a   :  { %5905 = vrot.lane.b32.xlu1 %v18452_v42, %s15256_s26 }
0x202b   :  { %5903 = vrot.lane.b32.xlu0 %v18453_v32, %s15256_s26 }
0x202e   :  { %5909 = vrot.lane.b32.xlu1 %v18454_v27, %s15256_s26 }
0x202f   :  { %5907 = vrot.lane.b32.xlu0 %v18455_v48, %s15256_s26 }
0x2032   :  { %12294 = vrot.lane.b32.xlu1 %v17378_v16, %s15256_s26  ;;  %v18457_v16 = vld [vmem:[#allocation80_spill] sm:$0xff] }
0x2033   :  { %12292 = vrot.lane.b32.xlu0 %v17402_v44, %s15256_s26  ;;  %v18458_v44 = vld [vmem:[#allocation53_spill] sm:$0xff] }
0x2036   :  { %12298 = vrot.lane.b32.xlu1 %v17410_v21, %s15256_s26  ;;  %v18459_v21 = vld [vmem:[#allocation54_spill] sm:$0xff] }
0x2037   :  { %12296 = vrot.lane.b32.xlu0 %v17420_v60, %s15256_s26  ;;  %v6791_v60 = vld [vmem:[#allocation8 + $0x110] sm:$0xff] }
0x2038   :  { %v14753_v10 = vpack.c.bf16 %v6791_v60, %v6790_v15 }
0x203a   :  { %12302 = vrot.lane.b32.xlu1 %v17426_v49, %s15256_s26  ;;  %v6793_v49 = vld [vmem:[#allocation8 + $0x120] sm:$0xff]  ;;  %14754 = vmatprep.subr.bf16.mxu1 %v14753_v10 }
0x203b   :  { %12300 = vrot.lane.b32.xlu0 %v17438_v4, %s15256_s26  ;;  %v14757_v43 = vpack.c.bf16 %v6793_v49, %v6792_v29  ;;  %v6795_v4 = vld [vmem:[#allocation8 + $0x130] sm:$0xff]  ;;  %14756 = vmatpush3.bf16.msra.mxu1 %v14753_v10 }
0x203c   :  { %v14761_v5 = vpack.c.bf16 %v6795_v4, %v6794_v51 }
0x203d   :  { %14758 = vmatprep.subr.bf16.mxu1 %v14757_v43 }
0x203e   :  { %12306 = vrot.lane.b32.xlu1 %v18456_v18, %s15256_s26 }
0x203f   :  { %12304 = vrot.lane.b32.xlu0 %v18457_v16, %s15256_s26  ;;  %14760 = vmatpush3.bf16.msra.mxu1 %v14757_v43 }
0x2040   :  { %14762 = vmatprep.subr.bf16.mxu1 %v14761_v5 }
0x2042   :  { %5921 = vrot.lane.b32.xlu1 %v18458_v44, %s15257_s27 }
0x2043   :  { %5919 = vrot.lane.b32.xlu0 %v18459_v21, %s15257_s27  ;;  %14764 = vmatpush3.bf16.msra.mxu1 %v14761_v5 }
0x2069   :  { %v12687_v7 = vpop.xlane.xlu0 %12686 }
0x206a   :  { %v12707_v63 = vmul.f32 0.03125, %v12687_v7  ;;  %v12684_v33 = vpop.xlane.xlu1 %12683 }
0x206b   :  { %v12706_v53 = vmul.f32 0.03125, %v12684_v33 }
0x206c   :  { %v12715_v30 = vadd.f32 1e-05, %v12707_v63 }
0x206d   :  { %v12714_v39 = vadd.f32 1e-05, %v12706_v53 }
0x206e   :  { %15084 = vrsqrt.f32 %v12715_v30 }
0x206f   :  { %15086 = vrsqrt.f32 %v12714_v39 }
0x2072   :  { %v12690_v6 = vpop.xlane.xlu1 %12689 }
0x2073   :  { %v12708_v36 = vmul.f32 0.03125, %v12690_v6 }
0x2075   :  { %v12716_v28 = vadd.f32 1e-05, %v12708_v36 }
0x2076   :  { %v12696_v22 = vpop.xlane.xlu1 %12695  ;;  %v12693_v23 = vpop.xlane.xlu0 %12692 }
0x2077   :  { %15088 = vrsqrt.f32 %v12716_v28  ;;  %v12710_v1 = vmul.f32 0.03125, %v12696_v22  ;;  %v12709_v34 = vmul.f32 0.03125, %v12693_v23 }
0x2078   :  { %v15085_v50 = vpop.eup %15084 }
0x2079   :  { %v15087_v47 = vpop.eup %15086  ;;  %v12731_v58 = vmul.f32 %v15085_v50, %v17744_v8  ;;  %v12718_v37 = vadd.f32 1e-05, %v12710_v1  ;;  %v12717_v2 = vadd.f32 1e-05, %v12709_v34 }
0x207a   :  { %v12702_v57 = vpop.xlane.xlu1 %12701  ;;  %v12699_v26 = vpop.xlane.xlu0 %12698  ;;  %v12730_v0 = vmul.f32 %v15087_v47, %v17746_v19 }
0x207b   :  { %15090 = vrsqrt.f32 %v12718_v37  ;;  %v12712_v17 = vmul.f32 0.03125, %v12702_v57  ;;  %v12711_v24 = vmul.f32 0.03125, %v12699_v26  ;;  %v12743_v9 = vmul.f32 %v17854_v12, %v12731_v58  ;;  %v18462_v26 = vld [vmem:[#allocation31_spill] sm:$0xff] }
0x207c   :  { %15092 = vrsqrt.f32 %v12717_v2  ;;  %v12742_v31 = vmul.f32 %v17854_v12, %v12730_v0 }
0x207d   :  { %v12720_v11 = vadd.f32 1e-05, %v12712_v17  ;;  %v12719_v42 = vadd.f32 1e-05, %v12711_v24  ;;  %v17865_v32 = vadd.f32 %v17858_v46, %v12743_v9 }
0x207e   :  { %v17867_v8 = vpop.permute.xlu1 %5871  ;;  %v12705_v27 = vpop.xlane.xlu0 %12704  ;;  %v17870_v48 = vadd.f32 %v17858_v46, %v12742_v31  ;;  %v18463_v31 = vld [vmem:[#allocation33_spill] sm:$0xff] }
0x207f   :  { %15094 = vrsqrt.f32 %v12720_v11  ;;  %v12713_v19 = vmul.f32 0.03125, %v12705_v27  ;;  %v18464_v11 = vld [vmem:[#allocation32_spill] sm:$0xff] }
0x2080   :  { %15096 = vrsqrt.f32 %v12719_v42  ;;  %14645 = vmatprep.mubr.msk.f32.mxu0 %vm364_vm9, %v17870_v48 }
0x2081   :  { %v15089_v18 = vpop.eup %15088  ;;  %v12721_v16 = vadd.f32 1e-05, %v12713_v19  ;;  %14646 = vmatmul.mubr.msk.f32.vlgmr.msra.gmra.mrb[156].mxu0 %vm364_vm9, %v17865_v32 }
0x2082   :  { %v5876_v44 = vpop.permute.xlu1 %5875  ;;  %v17876_v21 = vpop.permute.xlu0 %5873  ;;  %v12732_v15 = vmul.f32 %v15089_v18, %v17754_v61 }
0x2083   :  { %15098 = vrsqrt.f32 %v12721_v16  ;;  %v5945_v0 = vsel %vm497_vm11, %v18462_v26, %v5876_v44  ;;  %v18465_v44 = vld [vmem:[#allocation36_spill] sm:$0xff] }
0x2084   :  { %v12744_v60 = vmul.f32 %v17854_v12, %v12732_v15  ;;  %v18471_v26 = vld [vmem:[#allocation28_spill] sm:$0xff] }
0x2085   :  { %v15091_v29 = vpop.eup %15090 }
0x2086   :  { %v15093_v10 = vpop.eup %15092  ;;  %v5878_v49 = vpop.permute.xlu1 %5877  ;;  %v17881_v51 = vadd.f32 %v17858_v46, %v12744_v60  ;;  %v12734_v4 = vmul.f32 %v15091_v29, %v17758_v20  ;;  %v18466_v60 = vld [vmem:[#allocation34_spill] sm:$0xff] }
0x2087   :  { %v5880_v43 = vpop.permute.xlu0 %5879  ;;  %v12733_v5 = vmul.f32 %v15093_v10, %v17760_v25 }
0x2088   :  { %14648 = vmatprep.mubr.msk.f32.mxu0 %vm364_vm9, %v17881_v51  ;;  %v12746_v7 = vmul.f32 %v17854_v12, %v12734_v4  ;;  %v5947_v42 = vsel %vm497_vm11, %v18464_v11, %v5880_v43 }
0x2089   :  { %v15095_v61 = vpop.eup %15094  ;;  %v12745_v63 = vmul.f32 %v17854_v12, %v12733_v5  ;;  %v18467_v5 = vld [vmem:[#allocation35_spill] sm:$0xff] }
0x208a   :  { %v15097_v33 = vpop.eup %15096  ;;  %v5884_v53 = vpop.permute.xlu1 %5883  ;;  %v17890_v39 = vadd.f32 %v17858_v46, %v12746_v7  ;;  %v12736_v6 = vmul.f32 %v15095_v61, %v17767_v45  ;;  %v18468_v61 = vld [vmem:[#allocation27_spill] sm:$0xff] }
0x208b   :  { %v5882_v30 = vpop.permute.xlu0 %5881  ;;  %v17894_v20 = vadd.f32 %v17858_v46, %v12745_v63  ;;  %v12735_v25 = vmul.f32 %v15097_v33, %v17769_v3  ;;  %v5949_v15 = vsel %vm497_vm11, %v18465_v44, %v5884_v53 }
0x208c   :  { %v12748_v36 = vmul.f32 %v17854_v12, %v12736_v6  ;;  %v5948_v29 = vsel %vm497_vm11, %v18466_v60, %v5882_v30 }
0x208d   :  { %v15099_v28 = vpop.eup %15098  ;;  %14649 = vmatmul.mubr.msk.f32.gmra.mrb[158].mxu0 %vm364_vm9, %v17894_v20  ;;  %v12747_v22 = vmul.f32 %v17854_v12, %v12735_v25  ;;  %v18469_v25 = vld [vmem:[#allocation15_spill] sm:$0xff] }
0x208e   :  { %14651 = vmatprep.mubr.msk.f32.mxu0 %vm364_vm9, %v17890_v39  ;;  %v5886_v23 = vpop.permute.xlu1 %5885  ;;  %v17904_v45 = vadd.f32 %v17858_v46, %v12748_v36  ;;  %v12737_v1 = vmul.f32 %v15099_v28, %v17777_v35  ;;  %v18470_v28 = vld [vmem:[#allocation66_spill] sm:$0xff] }
0x208f   :  { %v12269_v41 = vpop.permute.xlu0 %12268  ;;  %v17908_v3 = vadd.f32 %v17858_v46, %v12747_v22  ;;  %v5950_v7 = vsel %vm497_vm11, %v18467_v5, %v5886_v23 }
0x2090   :  { %v12749_v34 = vmul.f32 %v17854_v12, %v12737_v1  ;;  %v12340_v63 = vsel %vm497_vm11, %v18468_v61, %v12269_v41 }
0x2091   :  { %14652 = vmatmul.mubr.msk.f32.gmra.mrb[160].mxu0 %vm364_vm9, %v17908_v3 }
0x2092   :  { %14654 = vmatprep.mubr.msk.f32.mxu0 %vm364_vm9, %v17904_v45  ;;  %v12271_v50 = vpop.permute.xlu1 %12270  ;;  %v17916_v56 = vadd.f32 %v17858_v46, %v12749_v34  ;;  %v5946_v46 = vsel %vm497_vm11, %v18463_v31, %v5878_v49 }
0x2093   :  { %v12273_v47 = vpop.permute.xlu0 %12272  ;;  %v12341_v36 = vsel %vm497_vm11, %v18469_v25, %v12271_v50  ;;  %v6796_v25 = vld [vmem:[#allocation8 + $0x138] sm:$0xff] }
0x2094   :  { %v12342_v22 = vsel %vm497_vm11, %v18470_v28, %v12273_v47 }
0x2095   :  { %14655 = vmatmul.mubr.msk.f32.gmra.mrb[162].mxu0 %vm364_vm9, %v17916_v56 }
0x2096   :  { %v12275_v35 = vpop.permute.xlu1 %12274 }
0x2097   :  { %v12277_v58 = vpop.permute.xlu0 %12276 }
0x209a   :  { %v12279_v37 = vpop.permute.xlu1 %12278 }
0x209b   :  { %v12281_v2 = vpop.permute.xlu0 %12280 }
0x209e   :  { %v12283_v57 = vpop.permute.xlu1 %12282 }
0x209f   :  { %v5896_v12 = vpop.permute.xlu0 %5895 }
0x20a2   :  { %v5898_v17 = vpop.permute.xlu1 %5897 }
0x20a3   :  { %v5900_v24 = vpop.permute.xlu0 %5899 }
0x20a4   :  { %v17923_v9 = vsel %vm157_vm0, %v5945_v0, %v5900_v24  ;;  %v12343_v0 = vsel %vm497_vm11, %v18471_v26, %v12275_v35  ;;  %v18472_v24 = vld [vmem:[#allocation68_spill] sm:$0xff] }
0x20a5   :  { %v12344_v31 = vsel %vm497_vm11, %v18472_v24, %v12277_v58 }
0x20a6   :  { %v5902_v27 = vpop.permute.xlu1 %5901 }
0x20a7   :  { %v5904_v19 = vpop.permute.xlu0 %5903  ;;  %v17930_v18 = vsel %vm157_vm0, %v5946_v46, %v5902_v27 }
0x20a8   :  { %v17933_v16 = vsel %vm157_vm0, %v5947_v42, %v5904_v19  ;;  %v18473_v42 = vld [vmem:[#allocation65_spill] sm:$0xff] }
0x20a9   :  { %v12345_v27 = vsel %vm497_vm11, %v18473_v42, %v12279_v37  ;;  %v18474_v19 = vld [vmem:[#allocation69_spill] sm:$0xff] }
0x20aa   :  { %v5906_v10 = vpop.permute.xlu1 %5905  ;;  %v12346_v44 = vsel %vm497_vm11, %v18474_v19, %v12281_v2 }
0x20ab   :  { %v5908_v4 = vpop.permute.xlu0 %5907  ;;  %v17940_v49 = vsel %vm157_vm0, %v5948_v29, %v5906_v10  ;;  %v18475_v29 = vld [vmem:[#allocation29_spill] sm:$0xff] }
0x20ac   :  { %v17943_v43 = vsel %vm157_vm0, %v5949_v15, %v5908_v4  ;;  %v5943_v10 = vsel %vm497_vm11, %v18475_v29, %v17867_v8  ;;  %v18476_v4 = vld [vmem:[#allocation67_spill] sm:$0xff] }
0x20ad   :  { %v12347_v5 = vsel %vm497_vm11, %v18476_v4, %v12283_v57  ;;  %v5951_v37 = vsel %vm157_vm0, %v5943_v10, %v5896_v12 }
0x20ae   :  { %v5910_v33 = vpop.permute.xlu1 %5909 }
0x20af   :  { %v12293_v6 = vpop.permute.xlu0 %12292  ;;  %v17950_v53 = vsel %vm157_vm0, %v5950_v7, %v5910_v33  ;;  %v18477_v33 = vld [vmem:[#allocation30_spill] sm:$0xff] }
0x20b0   :  { %v17953_v30 = vsel %vm157_vm0, %v12340_v63, %v12293_v6  ;;  %v5944_v8 = vsel %vm497_vm11, %v18477_v33, %v17876_v21 }
0x20b1   :  { %v5952_v57 = vsel %vm157_vm0, %v5944_v8, %v5898_v17  ;;  %v18479_v8 = vld [vmem:[#allocation20_spill] sm:$0xff] }
0x20b2   :  { %v12295_v1 = vpop.permute.xlu1 %12294 }
0x20b3   :  { %v12297_v34 = vpop.permute.xlu0 %12296  ;;  %v17960_v23 = vsel %vm157_vm0, %v12341_v36, %v12295_v1  ;;  %v6797_v36 = vld [vmem:[#allocation8 + $0x140] sm:$0xff] }
0x20b4   :  { %v17963_v41 = vsel %vm157_vm0, %v12342_v22, %v12297_v34  ;;  %v14765_v28 = vpack.c.bf16 %v6797_v36, %v6796_v25  ;;  %v18478_v22 = vld [vmem:[#allocation19_spill] sm:$0xff] }
0x20b5   :  { %v12765_v1 = vrot.slane %v17724_v62, %v18478_v22 }
0x20b6   :  { %v12299_v46 = vpop.permute.xlu1 %12298  ;;  %14766 = vmatprep.subr.bf16.mxu1 %v14765_v28 }
0x20b7   :  { %v12301_v11 = vpop.permute.xlu0 %12300  ;;  %v17970_v50 = vsel %vm157_vm0, %v12343_v0, %v12299_v46  ;;  %14768 = vmatpush3.bf16.msra.mxu1 %v14765_v28 }
0x20b8   :  { %v17973_v47 = vsel %vm157_vm0, %v12344_v31, %v12301_v11 }
0x20ba   :  { %v12303_v15 = vpop.permute.xlu1 %12302 }
0x20bb   :  { %v12305_v60 = vpop.permute.xlu0 %12304  ;;  %v17980_v35 = vsel %vm157_vm0, %v12345_v27, %v12303_v15 }
0x20bc   :  { %v17983_v58 = vsel %vm157_vm0, %v12346_v44, %v12305_v60 }
0x20be   :  { %v12307_v7 = vpop.permute.xlu1 %12306 }
0x20bf   :  { %v5920_v61 = vpop.permute.xlu0 %5919  ;;  %v17992_v2 = vsel %vm157_vm0, %v12347_v5, %v12307_v7 }
0x20c0   :  { %v5960_v63 = vsel %vm5959_vm13, %v5951_v37, %v5920_v61 }
0x20c1   :  { %5968 = vst.msk [vmem:[%s18252_s5] sm:$0xff] %vm364_vm9, %v5960_v63 }
0x20c2   :  { %v5922_v6 = vpop.permute.xlu1 %5921 }
0x20c3   :  { %v5961_v12 = vsel %vm5959_vm13, %v5952_v57, %v5922_v6  ;;  %v12906_v57 = vrot.slane %v17724_v62, %v18479_v8 }
0x20c4   :  { %5969 = vst.msk [vmem:[%s18252_s5 + $0x8] sm:$0xff] %vm364_vm9, %v5961_v12 }
0x2154   :  { %v14647_v34 = vpop.f32.mrb[156].mxu0 }
0x2155   :  { %v12862_v21 = vadd.f32 %v14647_v34, %v12765_v1  ;;  %v12856_v26 = vpop.f32.mrb[157].mxu0 }
0x2156   :  { %v12857_v17 = vadd.f32 %v12856_v26, %v12765_v1 }
0x2157   :  { %v12896_v24 = vmax.f32 %v12862_v21, 0.0 }
0x2158   :  { %v12895_v0 = vmax.f32 %v12857_v17, 0.0 }
0x215a   :  { %14673 = vmatprep.mubr.msk.f32.mxu1 %vm6511_vm14, %v12895_v0 }
0x215b   :  { %14674 = vmatmul.mubr.msk.f32.vlgmr.msra.gmra.mrb[156].mxu1 %vm6511_vm14, %v12896_v24 }
0x2160   :  { %v14650_v31 = vpop.f32.mrb[158].mxu0 }
0x2161   :  { %v12872_v46 = vadd.f32 %v14650_v31, %v12765_v1  ;;  %v12866_v11 = vpop.f32.mrb[159].mxu0 }
0x2162   :  { %v12867_v42 = vadd.f32 %v12866_v11, %v12765_v1 }
0x2163   :  { %v12898_v44 = vmax.f32 %v12872_v46, 0.0 }
0x2164   :  { %v12897_v27 = vmax.f32 %v12867_v42, 0.0  ;;  %v14653_v19 = vpop.f32.mrb[160].mxu0 }
0x2165   :  { %v12882_v15 = vadd.f32 %v14653_v19, %v12765_v1  ;;  %v12876_v60 = vpop.f32.mrb[161].mxu0 }
0x2166   :  { %v12877_v29 = vadd.f32 %v12876_v60, %v12765_v1  ;;  %14676 = vmatprep.mubr.msk.f32.mxu1 %vm6511_vm14, %v12897_v27 }
0x2167   :  { %14677 = vmatmul.mubr.msk.f32.gmra.mrb[158].mxu1 %vm6511_vm14, %v12898_v44  ;;  %v12900_v5 = vmax.f32 %v12882_v15, 0.0 }
0x2168   :  { %v12899_v10 = vmax.f32 %v12877_v29, 0.0  ;;  %v14656_v4 = vpop.f32.mrb[162].mxu0 }
0x2169   :  { %v12892_v37 = vadd.f32 %v14656_v4, %v12765_v1  ;;  %v12886_v7 = vpop.f32.mrb[163].mxu0 }
0x216a   :  { %v12887_v61 = vadd.f32 %v12886_v7, %v12765_v1  ;;  %14679 = vmatprep.mubr.msk.f32.mxu1 %vm6511_vm14, %v12899_v10  ;;  %v18483_v7 = vld [vmem:[#allocation58_spill] sm:$0xff] }
0x216b   :  { %14680 = vmatmul.mubr.msk.f32.gmra.mrb[160].mxu1 %vm6511_vm14, %v12900_v5  ;;  %v12902_v33 = vmax.f32 %v12892_v37, 0.0  ;;  %v18482_v37 = vld [vmem:[#allocation56_spill] sm:$0xff] }
0x216c   :  { %v12901_v63 = vmax.f32 %v12887_v61, 0.0 }
0x216e   :  { %14682 = vmatprep.mubr.msk.f32.mxu1 %vm6511_vm14, %v12901_v63  ;;  %v18484_v63 = vld [vmem:[#allocation59_spill] sm:$0xff] }
0x216f   :  { %14683 = vmatmul.mubr.msk.f32.gmra.mrb[162].mxu1 %vm6511_vm14, %v12902_v33  ;;  %v18485_v33 = vld [vmem:[#allocation60_spill] sm:$0xff] }
0x222e   :  { %v14675_v6 = vpop.f32.mrb[156].mxu1 }
0x222f   :  { %v13003_v12 = vadd.f32 %v14675_v6, %v12906_v57  ;;  %v12997_v25 = vpop.f32.mrb[157].mxu1 }
0x2230   :  { %v12998_v36 = vadd.f32 %v12997_v25, %v12906_v57 }
0x2231   :  { %v13037_v28 = vadd.f32 %v13003_v12, %v17865_v32 }
0x2232   :  { %v13036_v22 = vadd.f32 %v12998_v36, %v17870_v48 }
0x2233   :  { %v13047_v1 = vsel %vm364_vm9, %v13037_v28, 0.0 }
0x2234   :  { %13048 = vadd.xlane.f32.xlu0 %v13047_v1  ;;  %v13044_v34 = vsel %vm364_vm9, %v13036_v22, 0.0 }
0x2235   :  { %13045 = vadd.xlane.f32.xlu1 %v13044_v34 }
0x223a   :  { %v14678_v21 = vpop.f32.mrb[158].mxu1 }
0x223b   :  { %v13013_v26 = vadd.f32 %v14678_v21, %v12906_v57  ;;  %v13007_v17 = vpop.f32.mrb[159].mxu1 }
0x223c   :  { %v13008_v0 = vadd.f32 %v13007_v17, %v12906_v57 }
0x223d   :  { %v13039_v24 = vadd.f32 %v13013_v26, %v17894_v20 }
0x223e   :  { %v13038_v31 = vadd.f32 %v13008_v0, %v17881_v51  ;;  %v14681_v46 = vpop.f32.mrb[160].mxu1 }
0x223f   :  { %v13023_v11 = vadd.f32 %v14681_v46, %v12906_v57  ;;  %v13017_v42 = vpop.f32.mrb[161].mxu1  ;;  %v13053_v32 = vsel %vm364_vm9, %v13039_v24, 0.0 }
0x2240   :  { %v13018_v48 = vadd.f32 %v13017_v42, %v12906_v57  ;;  %13054 = vadd.xlane.f32.xlu0 %v13053_v32  ;;  %v13050_v27 = vsel %vm364_vm9, %v13038_v31, 0.0 }
0x2241   :  { %v13041_v19 = vadd.f32 %v13023_v11, %v17908_v3  ;;  %13051 = vadd.xlane.f32.xlu1 %v13050_v27  ;;  %v18480_v3 = vld [vmem:[#allocation57_spill] sm:$0xff] }
0x2242   :  { %v13040_v44 = vadd.f32 %v13018_v48, %v17890_v39  ;;  %v14684_v15 = vpop.f32.mrb[162].mxu1  ;;  %v18481_v39 = vld [vmem:[#allocation55_spill] sm:$0xff] }
0x2243   :  { %v13033_v60 = vadd.f32 %v14684_v15, %v12906_v57  ;;  %v13027_v29 = vpop.f32.mrb[163].mxu1  ;;  %v13059_v20 = vsel %vm364_vm9, %v13041_v19, 0.0 }
0x2244   :  { %v13028_v51 = vadd.f32 %v13027_v29, %v12906_v57  ;;  %13060 = vadd.xlane.f32.xlu0 %v13059_v20  ;;  %v13056_v10 = vsel %vm364_vm9, %v13040_v44, 0.0 }
0x2245   :  { %v13043_v4 = vadd.f32 %v13033_v60, %v17916_v56  ;;  %13057 = vadd.xlane.f32.xlu1 %v13056_v10 }
0x2246   :  { %v18047_v56 = vadd.f32 %v13028_v51, %v17904_v45 }
0x2247   :  { %v13065_v5 = vsel %vm364_vm9, %v13043_v4, 0.0 }
0x2248   :  { %13066 = vadd.xlane.f32.xlu0 %v13065_v5  ;;  %v13062_v61 = vsel %vm364_vm9, %v18047_v56, 0.0 }
0x2256   :  { %5925 = vrot.lane.b32.xlu1 %v18480_v3, %s15257_s27 }
0x225e   :  { %5923 = vrot.lane.b32.xlu0 %v18481_v39, %s15257_s27 }
0x2262   :  { %5927 = vrot.lane.b32.xlu0 %v18482_v37, %s15257_s27 }
0x2266   :  { %5931 = vrot.lane.b32.xlu0 %v18483_v7, %s15257_s27 }
0x226a   :  { %12316 = vrot.lane.b32.xlu0 %v17629_v52, %s15257_s27 }
0x226e   :  { %12320 = vrot.lane.b32.xlu0 %v17637_v38, %s15257_s27 }
0x227a   :  { %13063 = vadd.xlane.f32.xlu1 %v13062_v61 }
0x228b   :  { %5929 = vrot.lane.b32.xlu1 %v18484_v63, %s15257_s27 }
0x228f   :  { %5933 = vrot.lane.b32.xlu1 %v18485_v33, %s15257_s27 }
0x2293   :  { %12318 = vrot.lane.b32.xlu1 %v17621_v55, %s15257_s27 }
0x2297   :  { %12322 = vrot.lane.b32.xlu1 %v17648_v40, %s15257_s27 }
0x22c1   :  { %v13049_v52 = vpop.xlane.xlu0 %13048 }
0x22c2   :  { %v13069_v38 = vmul.f32 0.03125, %v13049_v52  ;;  %v13046_v45 = vpop.xlane.xlu1 %13045 }
0x22c3   :  { %v13068_v8 = vmul.f32 0.03125, %v13046_v45 }
0x22c4   :  { %v18059_v57 = vsub.f32 %v13037_v28, %v13069_v38 }
0x22c5   :  { %v18061_v6 = vsub.f32 %v13036_v22, %v13068_v8 }
0x22c6   :  { %v13085_v12 = vmul.f32 %v18059_v57, %v18059_v57 }
0x22c7   :  { %v13084_v25 = vmul.f32 %v18061_v6, %v18061_v6 }
0x22c8   :  { %v13095_v36 = vsel %vm364_vm9, %v13085_v12, 0.0 }
0x22c9   :  { %13096 = vadd.xlane.f32.xlu0 %v13095_v36  ;;  %v13092_v55 = vsel %vm364_vm9, %v13084_v25, 0.0 }
0x22ca   :  { %13093 = vadd.xlane.f32.xlu1 %v13092_v55 }
0x22cd   :  { %v13055_v40 = vpop.xlane.xlu0 %13054 }
0x22ce   :  { %v13071_v1 = vmul.f32 0.03125, %v13055_v40  ;;  %v13052_v34 = vpop.xlane.xlu1 %13051 }
0x22cf   :  { %v13070_v21 = vmul.f32 0.03125, %v13052_v34 }
0x22d0   :  { %v18069_v28 = vsub.f32 %v13039_v24, %v13071_v1 }
0x22d1   :  { %v18071_v22 = vsub.f32 %v13038_v31, %v13070_v21  ;;  %v13061_v26 = vpop.xlane.xlu0 %13060 }
0x22d2   :  { %v13073_v17 = vmul.f32 0.03125, %v13061_v26  ;;  %v13058_v0 = vpop.xlane.xlu1 %13057  ;;  %v13087_v46 = vmul.f32 %v18069_v28, %v18069_v28  ;;  %v18486_v26 = vld [vmem:[#allocation21_spill] sm:$0xff] }
0x22d3   :  { %v13072_v11 = vmul.f32 0.03125, %v13058_v0  ;;  %v13086_v42 = vmul.f32 %v18071_v22, %v18071_v22 }
0x22d4   :  { %v18077_v32 = vsub.f32 %v13041_v19, %v13073_v17  ;;  %v13101_v48 = vsel %vm364_vm9, %v13087_v46, 0.0  ;;  %v18170_v17 = vrot.slane %v17724_v62, %v18486_v26 }
0x22d5   :  { %v18080_v27 = vsub.f32 %v13040_v44, %v13072_v11  ;;  %13102 = vadd.xlane.f32.xlu1 %v13101_v48  ;;  %v13067_v24 = vpop.xlane.xlu0 %13066  ;;  %v13098_v31 = vsel %vm364_vm9, %v13086_v42, 0.0 }
0x22d6   :  { %v13075_v15 = vmul.f32 0.03125, %v13067_v24  ;;  %v5926_v60 = vpop.permute.xlu1 %5925  ;;  %13099 = vadd.xlane.f32.xlu0 %v13098_v31  ;;  %v13089_v29 = vmul.f32 %v18077_v32, %v18077_v32 }
0x22d7   :  { %v5963_v20 = vsel %vm5959_vm13, %v17930_v18, %v5926_v60  ;;  %v13088_v19 = vmul.f32 %v18080_v27, %v18080_v27 }
0x22d8   :  { %v18089_v51 = vsub.f32 %v13043_v4, %v13075_v15  ;;  %5971 = vst.msk [vmem:[%s18252_s5 + $0x18] sm:$0xff] %vm364_vm9, %v5963_v20  ;;  %v13107_v44 = vsel %vm364_vm9, %v13089_v29, 0.0 }
0x22d9   :  { %13108 = vadd.xlane.f32.xlu1 %v13107_v44  ;;  %v5924_v10 = vpop.permute.xlu0 %5923  ;;  %v13104_v5 = vsel %vm364_vm9, %v13088_v19, 0.0 }
0x22da   :  { %v5962_v3 = vsel %vm5959_vm13, %v17923_v9, %v5924_v10  ;;  %13105 = vadd.xlane.f32.xlu0 %v13104_v5  ;;  %v13091_v18 = vmul.f32 %v18089_v51, %v18089_v51 }
0x22db   :  { %5970 = vst.msk [vmem:[%s18252_s5 + $0x10] sm:$0xff] %vm364_vm9, %v5962_v3 }
0x22dc   :  { %v13113_v4 = vsel %vm364_vm9, %v13091_v18, 0.0 }
0x22dd   :  { %13114 = vadd.xlane.f32.xlu1 %v13113_v4  ;;  %v5928_v39 = vpop.permute.xlu0 %5927 }
0x22de   :  { %v5964_v37 = vsel %vm5959_vm13, %v17933_v16, %v5928_v39 }
0x22df   :  { %5972 = vst.msk [vmem:[%s18252_s5 + $0x20] sm:$0xff] %vm364_vm9, %v5964_v37 }
0x22e1   :  { %v5932_v9 = vpop.permute.xlu0 %5931 }
0x22e2   :  { %v5966_v7 = vsel %vm5959_vm13, %v17943_v43, %v5932_v9 }
0x22e3   :  { %5974 = vst.msk [vmem:[%s18252_s5 + $0x30] sm:$0xff] %vm364_vm9, %v5966_v7 }
0x22e5   :  { %v12317_v61 = vpop.permute.xlu0 %12316 }
0x22e6   :  { %v12356_v63 = vsel %vm5959_vm13, %v17953_v30, %v12317_v61 }
0x22e7   :  { %13451 = vst.msk [vmem:[%s18252_s5 + $0x40] sm:$0xff] %vm364_vm9, %v12356_v63 }
0x22e9   :  { %v12321_v16 = vpop.permute.xlu0 %12320 }
0x22ea   :  { %v12358_v33 = vsel %vm5959_vm13, %v17963_v41, %v12321_v16 }
0x22eb   :  { %13453 = vst.msk [vmem:[%s18252_s5 + $0x50] sm:$0xff] %vm364_vm9, %v12358_v33 }
0x22ee   :  { %12326 = vrot.lane.b32.xlu1 %v17663_v54, %s15257_s27 }
0x22f2   :  { %12330 = vrot.lane.b32.xlu1 %v17672_v59, %s15257_s27 }
0x2307   :  { %v13064_v43 = vpop.xlane.xlu1 %13063 }
0x2308   :  { %v13074_v30 = vmul.f32 0.03125, %v13064_v43 }
0x230a   :  { %v18135_v52 = vsub.f32 %v18047_v56, %v13074_v30 }
0x230b   :  { %v5930_v38 = vpop.permute.xlu1 %5929 }
0x230c   :  { %v5965_v41 = vsel %vm5959_vm13, %v17940_v49, %v5930_v38  ;;  %v13090_v45 = vmul.f32 %v18135_v52, %v18135_v52 }
0x230d   :  { %5973 = vst.msk [vmem:[%s18252_s5 + $0x28] sm:$0xff] %vm364_vm9, %v5965_v41 }
0x230e   :  { %v13110_v54 = vsel %vm364_vm9, %v13090_v45, 0.0 }
0x230f   :  { %v5934_v59 = vpop.permute.xlu1 %5933  ;;  %13111 = vadd.xlane.f32.xlu0 %v13110_v54 }
0x2310   :  { %v5967_v56 = vsel %vm5959_vm13, %v17950_v53, %v5934_v59 }
0x2311   :  { %5975 = vst.msk [vmem:[%s18252_s5 + $0x38] sm:$0xff] %vm364_vm9, %v5967_v56 }
0x2313   :  { %v12319_v49 = vpop.permute.xlu1 %12318 }
0x2314   :  { %v12357_v8 = vsel %vm5959_vm13, %v17960_v23, %v12319_v49 }
0x2315   :  { %13452 = vst.msk [vmem:[%s18252_s5 + $0x48] sm:$0xff] %vm364_vm9, %v12357_v8 }
0x2317   :  { %v12323_v12 = vpop.permute.xlu1 %12322 }
0x2318   :  { %v12359_v25 = vsel %vm5959_vm13, %v17970_v50, %v12323_v12 }
0x2319   :  { %13454 = vst.msk [vmem:[%s18252_s5 + $0x58] sm:$0xff] %vm364_vm9, %v12359_v25 }
0x2325   :  { %12324 = vrot.lane.b32.xlu0 %v17645_v14, %s15257_s27 }
0x2329   :  { %12328 = vrot.lane.b32.xlu0 %v17657_v13, %s15257_s27  ;;  %v18487_v13 = vld [vmem:[#allocation22_spill] sm:$0xff] }
0x232a   :  { %v18174_v42 = vrot.slane %v17724_v62, %v18487_v13 }
0x2356   :  { %v13097_v53 = vpop.xlane.xlu0 %13096 }
0x2357   :  { %v13117_v23 = vmul.f32 0.03125, %v13097_v53  ;;  %v13094_v36 = vpop.xlane.xlu1 %13093 }
0x2358   :  { %v13116_v55 = vmul.f32 0.03125, %v13094_v36 }
0x2359   :  { %v13125_v40 = vadd.f32 1e-05, %v13117_v23 }
0x235a   :  { %v13124_v1 = vadd.f32 1e-05, %v13116_v55 }
0x235b   :  { %15100 = vrsqrt.f32 %v13125_v40 }
0x235c   :  { %15102 = vrsqrt.f32 %v13124_v1 }
0x2362   :  { %v13103_v50 = vpop.xlane.xlu1 %13102 }
0x2363   :  { %v13119_v34 = vmul.f32 0.03125, %v13103_v50  ;;  %v13100_v21 = vpop.xlane.xlu0 %13099 }
0x2364   :  { %v13118_v0 = vmul.f32 0.03125, %v13100_v21 }
0x2365   :  { %v15101_v14 = vpop.eup %15100  ;;  %v13127_v46 = vadd.f32 1e-05, %v13119_v34 }
0x2366   :  { %v15103_v11 = vpop.eup %15102  ;;  %v13141_v48 = vmul.f32 %v15101_v14, %v18059_v57  ;;  %v13126_v24 = vadd.f32 1e-05, %v13118_v0  ;;  %v13109_v31 = vpop.xlane.xlu1 %13108 }
0x2367   :  { %v13140_v15 = vmul.f32 %v15103_v11, %v18061_v6  ;;  %15104 = vrsqrt.f32 %v13127_v46  ;;  %v13121_v60 = vmul.f32 0.03125, %v13109_v31  ;;  %v13106_v29 = vpop.xlane.xlu0 %13105 }
0x2368   :  { %v13153_v20 = vmul.f32 %v18170_v17, %v13141_v48  ;;  %15106 = vrsqrt.f32 %v13126_v24  ;;  %v13120_v19 = vmul.f32 0.03125, %v13106_v29 }
0x2369   :  { %v13152_v44 = vmul.f32 %v18170_v17, %v13140_v15  ;;  %v13129_v10 = vadd.f32 1e-05, %v13121_v60 }
0x236a   :  { %v13165_v5 = vadd.f32 %v18174_v42, %v13153_v20  ;;  %v13128_v62 = vadd.f32 1e-05, %v13120_v19  ;;  %v13115_v3 = vpop.xlane.xlu1 %13114 }
0x236b   :  { %v13164_v57 = vadd.f32 %v18174_v42, %v13152_v44  ;;  %15108 = vrsqrt.f32 %v13129_v10  ;;  %v13123_v18 = vmul.f32 0.03125, %v13115_v3 }
0x236c   :  { %13173 = vst.msk [vmem:[#allocation10 + $0x8] sm:$0xff] %vm364_vm9, %v13165_v5  ;;  %15110 = vrsqrt.f32 %v13128_v62 }
0x236d   :  { %13172 = vst.msk [vmem:[#allocation10] sm:$0xff] %vm364_vm9, %v13164_v57  ;;  %v13131_v6 = vadd.f32 1e-05, %v13123_v18 }
0x236e   :  { %v12327_v4 = vpop.permute.xlu1 %12326 }
0x236f   :  { %15112 = vrsqrt.f32 %v13131_v6  ;;  %v12361_v39 = vsel %vm5959_vm13, %v17980_v35, %v12327_v4 }
0x2370   :  { %13456 = vst.msk [vmem:[%s18252_s5 + $0x68] sm:$0xff] %vm364_vm9, %v12361_v39 }
0x2371   :  { %v15105_v37 = vpop.eup %15104 }
0x2372   :  { %v15107_v9 = vpop.eup %15106  ;;  %v13143_v7 = vmul.f32 %v15105_v37, %v18069_v28  ;;  %v12331_v61 = vpop.permute.xlu1 %12330 }
0x2373   :  { %v13142_v63 = vmul.f32 %v15107_v9, %v18071_v22  ;;  %v12363_v16 = vsel %vm5959_vm13, %v17992_v2, %v12331_v61 }
0x2374   :  { %v13155_v33 = vmul.f32 %v18170_v17, %v13143_v7  ;;  %13458 = vst.msk [vmem:[%s18252_s5 + $0x78] sm:$0xff] %vm364_vm9, %v12363_v16 }
0x2375   :  { %v15109_v35 = vpop.eup %15108  ;;  %v13154_v43 = vmul.f32 %v18170_v17, %v13142_v63 }
0x2376   :  { %v15111_v30 = vpop.eup %15110  ;;  %v13167_v38 = vadd.f32 %v18174_v42, %v13155_v33  ;;  %v13145_v28 = vmul.f32 %v15109_v35, %v18077_v32 }
0x2377   :  { %v13166_v22 = vadd.f32 %v18174_v42, %v13154_v43  ;;  %v13144_v41 = vmul.f32 %v15111_v30, %v18080_v27 }
0x2378   :  { %13175 = vst.msk [vmem:[#allocation10 + $0x18] sm:$0xff] %vm364_vm9, %v13167_v38  ;;  %v13157_v2 = vmul.f32 %v18170_v17, %v13145_v28 }
0x2379   :  { %v15113_v45 = vpop.eup %15112  ;;  %13174 = vst.msk [vmem:[#allocation10 + $0x10] sm:$0xff] %vm364_vm9, %v13166_v22  ;;  %v13156_v54 = vmul.f32 %v18170_v17, %v13144_v41 }
0x237a   :  { %v13169_v59 = vadd.f32 %v18174_v42, %v13157_v2  ;;  %v13147_v56 = vmul.f32 %v15113_v45, %v18089_v51 }
0x237b   :  { %v13168_v49 = vadd.f32 %v18174_v42, %v13156_v54 }
0x237c   :  { %13177 = vst.msk [vmem:[#allocation10 + $0x28] sm:$0xff] %vm364_vm9, %v13169_v59  ;;  %v13159_v32 = vmul.f32 %v18170_v17, %v13147_v56 }
0x237d   :  { %13176 = vst.msk [vmem:[#allocation10 + $0x20] sm:$0xff] %vm364_vm9, %v13168_v49 }
0x237e   :  { %v13171_v27 = vadd.f32 %v18174_v42, %v13159_v32 }
0x2380   :  { %13179 = vst.msk [vmem:[#allocation10 + $0x38] sm:$0xff] %vm364_vm9, %v13171_v27 }
0x239c   :  { %v13112_v8 = vpop.xlane.xlu0 %13111 }
0x239d   :  { %v13122_v12 = vmul.f32 0.03125, %v13112_v8 }
0x239f   :  { %v13130_v25 = vadd.f32 1e-05, %v13122_v12 }
0x23a0   :  { %v12325_v53 = vpop.permute.xlu0 %12324 }
0x23a1   :  { %15114 = vrsqrt.f32 %v13130_v25  ;;  %v12360_v51 = vsel %vm5959_vm13, %v17973_v47, %v12325_v53 }
0x23a2   :  { %13455 = vst.msk [vmem:[%s18252_s5 + $0x60] sm:$0xff] %vm364_vm9, %v12360_v51 }
0x23a4   :  { %v12329_v23 = vpop.permute.xlu0 %12328 }
0x23a5   :  { %v12362_v36 = vsel %vm5959_vm13, %v17983_v58, %v12329_v23 }
0x23a6   :  { %13457 = vst.msk [vmem:[%s18252_s5 + $0x70] sm:$0xff] %vm364_vm9, %v12362_v36 }
0x23ab   :  { %v15115_v55 = vpop.eup %15114 }
0x23ac   :  { %v13146_v40 = vmul.f32 %v15115_v55, %v18135_v52 }
0x23ae   :  { %v13158_v47 = vmul.f32 %v18170_v17, %v13146_v40 }
0x23b0   :  { %v13170_v1 = vadd.f32 %v18174_v42, %v13158_v47 }
0x23b2   :  { %13178 = vst.msk [vmem:[#allocation10 + $0x30] sm:$0xff] %vm364_vm9, %v13170_v1 }
0x23b3   :  { %15217 = shalt.err (!%p15214_p8)
}
0x23b4   :  { %s15218_s14 = scalar_lea.hbm %s18251_s4, 1024 }
0x23b5   :  { %p15219_p9 = scmp.ne.s32.totalorder %s18251_s4, %s15218_s14  ;;  %p15222_p10 = scmp.lt.u32.totalorder %s15218_s14, %s18251_s4 }
0x23b7   :  { %p15224_p11 = pnand %p15222_p10, %p15219_p9 }
0x23b9   :  { %15227 = shalt.err (!%p15224_p11)
}
0x23ba   :  { %13191 = dma.vmem_to_hbm [thread:$0]  %s13186_s11, 1024, %s18251_s4, [#allocation4], %s15237_s28, %s15237_s28, %s15238_s29  }
0x23bb   :  { %15234 = dma.done.wait [#allocation4], 1024  }
0x23bc   :  { %15235 = vsyncadd [#allocation4], 4294966272 }
0x23bd   :  { %13199 = vsyncpa [#allocation3], 1 }
0x23be   :  { %13200 = vsyncpa [#allocation6], 1 }
0x23bf   :  { %13201 = vsyncpa [#allocation9], 1 }
0x23c0   :  { %13202 = vsyncpa [#allocation4], 1 }

</bundles_post_ra>
